<compile_context>
chip_gen: v6e
topology: v6e:2x2x1
jax: 0.10.0
libtpu: 0.0.40
codegen_flags: <defaults>
</compile_context>

<pallas_src>
import functools

import jax
import jax.numpy as jnp
from jax.experimental import pallas as pl
from jax.experimental.pallas import tpu as pltpu


# ----------------------------------------------------------------------------
# Fused whole-network kernel
# ----------------------------------------------------------------------------
def _ppo_value_kernel(x_ref, goal_ref,
                      w1_ref, b1_ref, w2_ref, b2_ref, w3_ref, b3_ref,
                      fcw_ref, fcb_ref,
                      v1wf_ref, v1wg_ref, v1b_ref,
                      v2w_ref, v2b_ref, v3w_ref, v3b_ref,
                      out_ref, a1p_ref, a2p_ref, *, h2, w2):
    """Whole PPOValue forward for one batch tile; everything stays in VMEM.

    h2, w2 = conv2/conv3 output spatial dims (== conv1 output dims / 2).
    """
    bm = out_ref.shape[0]
    S = h2 * w2
    m = bm * S
    cin1 = x_ref.shape[-1]          # 16 * in_channels

    # Padded-activation scratch: zero every grid step (borders = conv padding).
    a1p_ref[...] = jnp.zeros_like(a1p_ref)
    a2p_ref[...] = jnp.zeros_like(a2p_ref)

    # ---- conv1: 8x8 / stride 4 / pad 2, input pre space-to-depth'd (K=96
    #      contractions).  Computed per output row/col parity phase so that the
    #      stride-2 conv2 below only ever needs unit-stride slices.
    for rh in range(2):
        for rw in range(2):
            acc = jnp.zeros((m, 32), jnp.float32)
            for ah in range(2):
                for aw in range(2):
                    th, tw = rh + ah, rw + aw
                    ph = (th % 2) * 2 + (tw % 2)
                    sl = x_ref[:, ph,
                               th // 2: th // 2 + h2,
                               tw // 2: tw // 2 + w2, :]          # (bm,h2,w2,96)
                    acc += jnp.dot(sl.reshape(m, cin1), w1_ref[ah * 2 + aw],
                                   preferred_element_type=jnp.float32)
            a1 = jnp.maximum(acc + b1_ref[...], 0.0).astype(jnp.bfloat16)
            a1p_ref[rh * 2 + rw, :, 1:1 + h2, 1:1 + w2, :] = (
                a1.reshape(bm, h2, w2, 32))

    # ---- conv2: 4x4 / stride 2 / pad 1 as 16 accumulated dots over the
    #      phase-split padded conv1 activation (unit-stride static slices only).
    acc2 = jnp.zeros((m, 64), jnp.float32)
    for kh in range(4):
        rh = (kh + 1) % 2
        jo = (kh - 1 - rh) // 2 + 1           # 0, 1, 1, 2
        for kw in range(4):
            rw = (kw + 1) % 2
            io = (kw - 1 - rw) // 2 + 1
            sl = a1p_ref[rh * 2 + rw, :, jo:jo + h2, io:io + w2, :]
            acc2 += jnp.dot(sl.reshape(m, 32), w2_ref[kh * 4 + kw],
                            preferred_element_type=jnp.float32)
    a2 = jnp.maximum(acc2 + b2_ref[...], 0.0).astype(jnp.bfloat16)
    a2p_ref[:, 1:1 + h2, 1:1 + w2, :] = a2.reshape(bm, h2, w2, 64)

    # ---- conv3: 3x3 / stride 1 / pad 1 as 9 accumulated dots.
    acc3 = jnp.zeros((m, 64), jnp.float32)
    for kh in range(3):
        for kw in range(3):
            sl = a2p_ref[:, kh:kh + h2, kw:kw + w2, :]
            acc3 += jnp.dot(sl.reshape(m, 64), w3_ref[kh * 3 + kw],
                            preferred_element_type=jnp.float32)
    a3 = jnp.maximum(acc3 + b3_ref[...], 0.0).astype(jnp.bfloat16)
    a3 = a3.reshape(bm, S, 64)

    # ---- fc (flatten -> feature_dim) as S accumulated K=64 dots; fc weight
    #      rows are stored per spatial position so no lane-collapsing reshape
    #      of the activation is needed.
    fdim = fcb_ref.shape[1]
    feat = jnp.zeros((bm, fdim), jnp.float32)
    for s in range(S):
        feat += jnp.dot(a3[:, s, :], fcw_ref[s],
                        preferred_element_type=jnp.float32)
    feat = jnp.maximum(feat + fcb_ref[...], 0.0).astype(jnp.bfloat16)

    # ---- value head: v1(concat[feat, goal]) -> relu -> v2 -> relu -> v3.
    h = jnp.dot(feat, v1wf_ref[...], preferred_element_type=jnp.float32)
    h = h + jnp.dot(goal_ref[...], v1wg_ref[...],
                    preferred_element_type=jnp.float32)     # padded K=8 goal dot
    h = jnp.maximum(h + v1b_ref[...], 0.0).astype(jnp.bfloat16)
    h = jnp.dot(h, v2w_ref[...], preferred_element_type=jnp.float32)
    h = jnp.maximum(h + v2b_ref[...], 0.0).astype(jnp.bfloat16)
    v = jnp.dot(h, v3w_ref[...], preferred_element_type=jnp.float32)
    out_ref[...] = v + v3b_ref[...]                          # (bm, 128), col 0 = value


# ----------------------------------------------------------------------------
# pallas_call wrapper
# ----------------------------------------------------------------------------
def _resident_spec(shape):
    nd = len(shape)
    return pl.BlockSpec(shape, lambda i, _nd=nd: (0,) * _nd)


def _pick_block_b(B):
    """Batch tile: >=2 grid steps when possible (megacore), VMEM-bounded,
    and a multiple of 8 (BlockSpec second-minor rule) unless it equals B."""
    for bm in (32, 16, 8):
        if B % bm == 0 and B // bm >= 2:
            return bm
    return B


def ppo_value_pallas(params, x1p, goal_pad, *, h2, w2):
    B = x1p.shape[0]
    assert x1p.shape[2] == h2 + 1 and x1p.shape[3] == w2 + 1, x1p.shape
    bm = _pick_block_b(B)
    S = h2 * w2
    fdim = params["fc_b"].shape[0]
    nout = params["v3_w"].shape[1]
    cin = x1p.shape[-1] // 16

    weight_args = (
        params["conv1_w"], params["conv1_b"].reshape(1, -1),
        params["conv2_w"], params["conv2_b"].reshape(1, -1),
        params["conv3_w"], params["conv3_b"].reshape(1, -1),
        params["fc_w"], params["fc_b"].reshape(1, -1),
        params["v1_wf"], params["v1_wg"], params["v1_b"].reshape(1, -1),
        params["v2_w"], params["v2_b"].reshape(1, -1),
        params["v3_w"], params["v3_b"].reshape(1, -1),
    )
    in_specs = [
        pl.BlockSpec((bm,) + x1p.shape[1:], lambda i: (i, 0, 0, 0, 0)),
        pl.BlockSpec((bm, goal_pad.shape[1]), lambda i: (i, 0)),
    ] + [_resident_spec(w.shape) for w in weight_args]

    macs_per_sample = (
        4 * S * 32 * (64 * cin)            # conv1
        + S * 64 * (16 * 32)               # conv2
        + S * 64 * (9 * 64)                # conv3
        + S * 64 * fdim                    # fc
        + fdim * 256 + 8 * 256 + 256 * 128 + 128 * nout)   # head
    weight_bytes = sum(int(w.size) * w.dtype.itemsize for w in weight_args)
    cost = pl.CostEstimate(
        flops=2 * macs_per_sample * B,
        transcendentals=0,
        bytes_accessed=int(x1p.size) * 2 + int(goal_pad.size) * 4
                       + B * nout * 4 + weight_bytes,
    )

    kernel = functools.partial(_ppo_value_kernel, h2=h2, w2=w2)
    return pl.pallas_call(
        kernel,
        out_shape=jax.ShapeDtypeStruct((B, nout), jnp.float32),
        grid=(B // bm,),
        in_specs=in_specs,
        out_specs=pl.BlockSpec((bm, nout), lambda i: (i, 0)),
        scratch_shapes=[
            # phase-split, zero-padded conv1 activation (4 phases)
            pltpu.VMEM((4, bm, h2 + 2, w2 + 2, 32), jnp.bfloat16),
            # zero-padded conv2 activation
            pltpu.VMEM((bm, h2 + 2, w2 + 2, 64), jnp.bfloat16),
        ],
        compiler_params=pltpu.CompilerParams(
            dimension_semantics=("parallel",)),
        cost_estimate=cost,
    )(x1p, goal_pad, *weight_args)


# ----------------------------------------------------------------------------
# Wrapper-side input layout (single input-sized XLA transform)
# ----------------------------------------------------------------------------
def _prep_conv1_input(images_nchw):
    """(B, C, H, W) f32 -> (B, 4, h2+1, w2+1, 16*C) bf16.

    Pads by conv1's padding=2, folds the stride-4 kernel taps (rh, rw) and the
    channel into a 16*C minor dim (space-to-depth), and splits the stride-4
    block grid by parity (eh, ew) so in-kernel stride-2 handling needs only
    unit-stride slices.
    """
    B, C, H, W = images_nchw.shape
    ho1 = (H + 4 - 8) // 4 + 1
    wo1 = (W + 4 - 8) // 4 + 1
    # Kernel requires even conv1 output dims (true for SENSOR_SIZE and demo).
    assert ho1 % 2 == 0 and wo1 % 2 == 0, (ho1, wo1)
    jh, jw = ho1 // 2 + 1, wo1 // 2 + 1
    Hn, Wn = 8 * jh, 8 * jw
    x = images_nchw.astype(jnp.bfloat16)
    x = jnp.pad(x, ((0, 0), (0, 0), (2, Hn - H - 2), (2, Wn - W - 2)))
    # row = (j*2 + eh)*4 + rh ; col = (i*2 + ew)*4 + rw
    x = x.reshape(B, C, jh, 2, 4, jw, 2, 4)
    x = x.transpose(0, 3, 6, 2, 5, 4, 7, 1)        # (b, eh, ew, j, i, rh, rw, c)
    return x.reshape(B, 4, jh, jw, 16 * C)


def ppo_value_forward(params, images_nchw, relative_goal):
    """images_nchw: (B, C, H, W) f32; relative_goal: (B, goal_dim) f32 -> (B,)."""
    B, C, H, W = images_nchw.shape
    ho1 = (H + 4 - 8) // 4 + 1
    wo1 = (W + 4 - 8) // 4 + 1
    h2, w2 = ho1 // 2, wo1 // 2
    x1p = _prep_conv1_input(images_nchw)
    gdim = relative_goal.shape[1]
    goal_pad = jnp.pad(relative_goal.astype(jnp.float32),
                       ((0, 0), (0, 8 - gdim)))
    out = ppo_value_pallas(params, x1p, goal_pad, h2=h2, w2=w2)   # (B, 128) f32
    return out[:, 0]


# ----------------------------------------------------------------------------
# Parameter init (deterministic, PyTorch-default-like uniform bounds)
# ----------------------------------------------------------------------------
def _uniform(key, shape, fan_in, dtype):
    bound = 1.0 / (float(fan_in) ** 0.5)
    return jax.random.uniform(key, shape, jnp.float32, -bound, bound).astype(dtype)


def init_params(key, *, in_channels=6, feature_dim=128, goal_dim=3, H=32, W=64):
    ho1 = (H + 4 - 8) // 4 + 1
    wo1 = (W + 4 - 8) // 4 + 1
    assert ho1 % 2 == 0 and wo1 % 2 == 0
    h2, w2 = ho1 // 2, wo1 // 2
    S = h2 * w2
    ks = jax.random.split(key, 16)
    p = {}
    p["conv1_w"] = _uniform(ks[0], (4, 16 * in_channels, 32), in_channels * 64,
                            jnp.bfloat16)
    p["conv1_b"] = _uniform(ks[1], (32,), in_channels * 64, jnp.float32)
    p["conv2_w"] = _uniform(ks[2], (16, 32, 64), 32 * 16, jnp.bfloat16)
    p["conv2_b"] = _uniform(ks[3], (64,), 32 * 16, jnp.float32)
    p["conv3_w"] = _uniform(ks[4], (9, 64, 64), 64 * 9, jnp.bfloat16)
    p["conv3_b"] = _uniform(ks[5], (64,), 64 * 9, jnp.float32)
    p["fc_w"] = _uniform(ks[6], (S, 64, feature_dim), 64 * S, jnp.bfloat16)
    p["fc_b"] = _uniform(ks[7], (feature_dim,), 64 * S, jnp.float32)
    comb = feature_dim + goal_dim
    p["v1_wf"] = _uniform(ks[8], (feature_dim, 256), comb, jnp.bfloat16)
    wg = _uniform(ks[9], (goal_dim, 256), comb, jnp.float32)
    p["v1_wg"] = jnp.zeros((8, 256), jnp.float32).at[:goal_dim].set(wg)
    p["v1_b"] = _uniform(ks[10], (256,), comb, jnp.float32)
    p["v2_w"] = _uniform(ks[11], (256, 128), 256, jnp.bfloat16)
    p["v2_b"] = _uniform(ks[12], (128,), 256, jnp.float32)
    w3c = _uniform(ks[13], (128, 1), 128, jnp.bfloat16)
    p["v3_w"] = jnp.zeros((128, 128), jnp.bfloat16).at[:, :1].set(w3c)
    b3c = _uniform(ks[14], (1,), 128, jnp.float32)
    p["v3_b"] = jnp.zeros((128,), jnp.float32).at[:1].set(b3c)
    return p


# ----------------------------------------------------------------------------
# Pure-JAX f32 reference (validates the conv decomposition & weight layouts)
# ----------------------------------------------------------------------------
def ppo_value_reference(params, images, relative_goal):
    B, C, H, W = images.shape
    w1 = params["conv1_w"].astype(jnp.float32).reshape(2, 2, 4, 4, C, 32)
    w1 = w1.transpose(5, 4, 0, 2, 1, 3).reshape(32, C, 8, 8)       # OIHW

    def unpack(w, k, cin, cout):
        w = w.astype(jnp.float32).reshape(k, k, cin, cout)
        return w.transpose(3, 2, 0, 1)

    w2 = unpack(params["conv2_w"], 4, 32, 64)
    w3 = unpack(params["conv3_w"], 3, 64, 64)

    def conv(x, w, b, s, p):
        y = jax.lax.conv_general_dilated(
            x, w, (s, s), [(p, p), (p, p)],
            dimension_numbers=("NCHW", "OIHW", "NCHW"))
        return jax.nn.relu(y + b.reshape(1, -1, 1, 1))

    x = conv(images.astype(jnp.float32), w1, params["conv1_b"], 4, 2)
    x = conv(x, w2, params["conv2_b"], 2, 1)
    x = conv(x, w3, params["conv3_b"], 1, 1)
    x = x.transpose(0, 2, 3, 1).reshape(B, -1, 64)                 # (B, S, 64)
    feats = jnp.einsum("nsc,scf->nf", x, params["fc_w"].astype(jnp.float32))
    feats = jax.nn.relu(feats + params["fc_b"])
    goal_pad = jnp.pad(relative_goal.astype(jnp.float32),
                       ((0, 0), (0, 8 - relative_goal.shape[1])))
    h = feats @ params["v1_wf"].astype(jnp.float32) + goal_pad @ params["v1_wg"]
    h = jax.nn.relu(h + params["v1_b"])
    h = jax.nn.relu(h @ params["v2_w"].astype(jnp.float32) + params["v2_b"])
    v = h @ params["v3_w"].astype(jnp.float32) + params["v3_b"]
    return v[:, 0]


if __name__ == "__main__":
    # Small shapes consistent with the module: SENSOR_SIZE scaled down to
    # (64, 32) -> images (B=2, C=6, H=32, W=64), feature_dim=128, goal_dim=3.
    B, C, H, W = 2, 6, 32, 64
    FEATURE_DIM, GOAL_DIM = 128, 3

    root = jax.random.PRNGKey(0)
    k_params, k_img, k_goal = jax.random.split(root, 3)

    params = init_params(k_params, in_channels=C, feature_dim=FEATURE_DIM,
                         goal_dim=GOAL_DIM, H=H, W=W)
    images = jax.random.normal(k_img, (B, C, H, W), jnp.float32)
    relative_goal = jax.random.normal(k_goal, (B, GOAL_DIM), jnp.float32)

    fwd = jax.jit(ppo_value_forward)
    value = fwd(params, images, relative_goal)
    jax.block_until_ready(value)
    assert value.shape == (B,), value.shape

    # One-time numerical check vs. the f32 XLA reference (bf16 MXU operands in
    # the kernel -> ~1e-2-level differences expected; loose tolerance).
    ref = ppo_value_reference(params, images, relative_goal)
    jax.block_until_ready(ref)
    err = float(jnp.max(jnp.abs(value - ref)))
    scale = float(jnp.max(jnp.abs(ref))) + 1e-6
    assert err <= 5e-2 + 5e-2 * scale, (err, scale)

    print("KERNEL_OK")
</pallas_src>

<mosaic_0001>
module attributes {stable_mosaic.version = 11 : i64} {
  func.func @_ppo_value_kernel(%arg0: i32, %arg1: memref<2x4x5x9x96xbf16, #tpu.memory_space<vmem>>, %arg2: memref<2x8xf32, #tpu.memory_space<vmem>>, %arg3: memref<4x96x32xbf16, #tpu.memory_space<vmem>>, %arg4: memref<1x32xf32, #tpu.memory_space<vmem>>, %arg5: memref<16x32x64xbf16, #tpu.memory_space<vmem>>, %arg6: memref<1x64xf32, #tpu.memory_space<vmem>>, %arg7: memref<9x64x64xbf16, #tpu.memory_space<vmem>>, %arg8: memref<1x64xf32, #tpu.memory_space<vmem>>, %arg9: memref<32x64x128xbf16, #tpu.memory_space<vmem>>, %arg10: memref<1x128xf32, #tpu.memory_space<vmem>>, %arg11: memref<128x256xbf16, #tpu.memory_space<vmem>>, %arg12: memref<8x256xf32, #tpu.memory_space<vmem>>, %arg13: memref<1x256xf32, #tpu.memory_space<vmem>>, %arg14: memref<256x128xbf16, #tpu.memory_space<vmem>>, %arg15: memref<1x128xf32, #tpu.memory_space<vmem>>, %arg16: memref<128x128xbf16, #tpu.memory_space<vmem>>, %arg17: memref<1x128xf32, #tpu.memory_space<vmem>>, %arg18: memref<2x128xf32, #tpu.memory_space<vmem>>, %arg19: memref<4x2x6x10x32xbf16, #tpu.memory_space<vmem>>, %arg20: memref<2x6x10x64xbf16, #tpu.memory_space<vmem>>) attributes {dimension_semantics = [#tpu.dimension_semantics<parallel>], iteration_bounds = array<i64: 1>, scalar_prefetch = 0 : i64, scratch_operands = 2 : i64, tpu.core_type = #tpu.core_type<tc>, window_params = [{transform_indices = @transform_0, window_bounds = array<i64: 2, 4, 5, 9, 96>}, {transform_indices = @transform_1, window_bounds = array<i64: 2, 8>}, {pipeline_mode = #tpu.pipeline_mode<synchronous>, transform_indices = @transform_2, window_bounds = array<i64: 4, 96, 32>}, {pipeline_mode = #tpu.pipeline_mode<synchronous>, transform_indices = @transform_3, window_bounds = array<i64: 1, 32>}, {pipeline_mode = #tpu.pipeline_mode<synchronous>, transform_indices = @transform_4, window_bounds = array<i64: 16, 32, 64>}, {pipeline_mode = #tpu.pipeline_mode<synchronous>, transform_indices = @transform_5, window_bounds = array<i64: 1, 64>}, {pipeline_mode = #tpu.pipeline_mode<synchronous>, transform_indices = @transform_6, window_bounds = array<i64: 9, 64, 64>}, {pipeline_mode = #tpu.pipeline_mode<synchronous>, transform_indices = @transform_7, window_bounds = array<i64: 1, 64>}, {pipeline_mode = #tpu.pipeline_mode<synchronous>, transform_indices = @transform_8, window_bounds = array<i64: 32, 64, 128>}, {pipeline_mode = #tpu.pipeline_mode<synchronous>, transform_indices = @transform_9, window_bounds = array<i64: 1, 128>}, {pipeline_mode = #tpu.pipeline_mode<synchronous>, transform_indices = @transform_10, window_bounds = array<i64: 128, 256>}, {pipeline_mode = #tpu.pipeline_mode<synchronous>, transform_indices = @transform_11, window_bounds = array<i64: 8, 256>}, {pipeline_mode = #tpu.pipeline_mode<synchronous>, transform_indices = @transform_12, window_bounds = array<i64: 1, 256>}, {pipeline_mode = #tpu.pipeline_mode<synchronous>, transform_indices = @transform_13, window_bounds = array<i64: 256, 128>}, {pipeline_mode = #tpu.pipeline_mode<synchronous>, transform_indices = @transform_14, window_bounds = array<i64: 1, 128>}, {pipeline_mode = #tpu.pipeline_mode<synchronous>, transform_indices = @transform_15, window_bounds = array<i64: 128, 128>}, {pipeline_mode = #tpu.pipeline_mode<synchronous>, transform_indices = @transform_16, window_bounds = array<i64: 1, 128>}, {transform_indices = @transform_17, window_bounds = array<i64: 2, 128>}]} {
    %cst = arith.constant 0.000000e+00 : bf16
    %0 = vector.broadcast %cst : bf16 to vector<4x2x6x10x32xbf16>
    %c0 = arith.constant 0 : index
    %c0_0 = arith.constant 0 : index
    %c0_1 = arith.constant 0 : index
    %c0_2 = arith.constant 0 : index
    %c0_3 = arith.constant 0 : index
    %1 = vector.load %arg19[%c0, %c0_0, %c0_1, %c0_2, %c0_3] : memref<4x2x6x10x32xbf16, #tpu.memory_space<vmem>>, vector<4x2x6x10x32xbf16>
    tpu.vector_store %arg19[%c0, %c0_0, %c0_1, %c0_2, %c0_3], %0 {strides = array<i32>} : memref<4x2x6x10x32xbf16, #tpu.memory_space<vmem>>, vector<4x2x6x10x32xbf16>,
    %cst_4 = arith.constant 0.000000e+00 : bf16
    %2 = vector.broadcast %cst_4 : bf16 to vector<2x6x10x64xbf16>
    %c0_5 = arith.constant 0 : index
    %c0_6 = arith.constant 0 : index
    %c0_7 = arith.constant 0 : index
    %c0_8 = arith.constant 0 : index
    %3 = vector.load %arg20[%c0_5, %c0_6, %c0_7, %c0_8] : memref<2x6x10x64xbf16, #tpu.memory_space<vmem>>, vector<2x6x10x64xbf16>
    tpu.vector_store %arg20[%c0_5, %c0_6, %c0_7, %c0_8], %2 {strides = array<i32>} : memref<2x6x10x64xbf16, #tpu.memory_space<vmem>>, vector<2x6x10x64xbf16>,
    %cst_9 = arith.constant 0.000000e+00 : f32
    %4 = vector.broadcast %cst_9 : f32 to vector<64x32xf32>
    %c0_10 = arith.constant 0 : index
    %c0_11 = arith.constant 0 : index
    %c0_12 = arith.constant 0 : index
    %c0_13 = arith.constant 0 : index
    %c0_14 = arith.constant 0 : index
    %5 = vector.load %arg1[%c0_10, %c0_11, %c0_12, %c0_13, %c0_14] : memref<2x4x5x9x96xbf16, #tpu.memory_space<vmem>>, vector<2x1x4x8x96xbf16>
    %6 = vector.shape_cast %5 : vector<2x1x4x8x96xbf16> to vector<2x4x8x96xbf16>
    %7 = vector.shape_cast %6 : vector<2x4x8x96xbf16> to vector<64x96xbf16>
    %c0_15 = arith.constant 0 : index
    %c0_16 = arith.constant 0 : index
    %c0_17 = arith.constant 0 : index
    %8 = vector.load %arg3[%c0_15, %c0_16, %c0_17] : memref<4x96x32xbf16, #tpu.memory_space<vmem>>, vector<1x96x32xbf16>
    %9 = vector.shape_cast %8 : vector<1x96x32xbf16> to vector<96x32xbf16>
    %cst_18 = arith.constant dense<0.000000e+00> : vector<64x32xf32>
    %10 = tpu.matmul %7, %9, %cst_18 {dimension_numbers = #tpu.dot_dimension_numbers<[1], [0], [0], [1], [0, 0, 1, 1], [], []>} : vector<64x96xbf16>, vector<96x32xbf16>, vector<64x32xf32> -> vector<64x32xf32>
    %11 = arith.addf %4, %10 : vector<64x32xf32>
    %c0_19 = arith.constant 0 : index
    %c1 = arith.constant 1 : index
    %c0_20 = arith.constant 0 : index
    %c0_21 = arith.constant 0 : index
    %c0_22 = arith.constant 0 : index
    %12 = vector.load %arg1[%c0_19, %c1, %c0_20, %c0_21, %c0_22] : memref<2x4x5x9x96xbf16, #tpu.memory_space<vmem>>, vector<2x1x4x8x96xbf16>
    %13 = vector.shape_cast %12 : vector<2x1x4x8x96xbf16> to vector<2x4x8x96xbf16>
    %14 = vector.shape_cast %13 : vector<2x4x8x96xbf16> to vector<64x96xbf16>
    %c1_23 = arith.constant 1 : index
    %c0_24 = arith.constant 0 : index
    %c0_25 = arith.constant 0 : index
    %15 = vector.load %arg3[%c1_23, %c0_24, %c0_25] : memref<4x96x32xbf16, #tpu.memory_space<vmem>>, vector<1x96x32xbf16>
    %16 = vector.shape_cast %15 : vector<1x96x32xbf16> to vector<96x32xbf16>
    %cst_26 = arith.constant dense<0.000000e+00> : vector<64x32xf32>
    %17 = tpu.matmul %14, %16, %cst_26 {dimension_numbers = #tpu.dot_dimension_numbers<[1], [0], [0], [1], [0, 0, 1, 1], [], []>} : vector<64x96xbf16>, vector<96x32xbf16>, vector<64x32xf32> -> vector<64x32xf32>
    %18 = arith.addf %11, %17 : vector<64x32xf32>
    %c0_27 = arith.constant 0 : index
    %c2 = arith.constant 2 : index
    %c0_28 = arith.constant 0 : index
    %c0_29 = arith.constant 0 : index
    %c0_30 = arith.constant 0 : index
    %19 = vector.load %arg1[%c0_27, %c2, %c0_28, %c0_29, %c0_30] : memref<2x4x5x9x96xbf16, #tpu.memory_space<vmem>>, vector<2x1x4x8x96xbf16>
    %20 = vector.shape_cast %19 : vector<2x1x4x8x96xbf16> to vector<2x4x8x96xbf16>
    %21 = vector.shape_cast %20 : vector<2x4x8x96xbf16> to vector<64x96xbf16>
    %c2_31 = arith.constant 2 : index
    %c0_32 = arith.constant 0 : index
    %c0_33 = arith.constant 0 : index
    %22 = vector.load %arg3[%c2_31, %c0_32, %c0_33] : memref<4x96x32xbf16, #tpu.memory_space<vmem>>, vector<1x96x32xbf16>
    %23 = vector.shape_cast %22 : vector<1x96x32xbf16> to vector<96x32xbf16>
    %cst_34 = arith.constant dense<0.000000e+00> : vector<64x32xf32>
    %24 = tpu.matmul %21, %23, %cst_34 {dimension_numbers = #tpu.dot_dimension_numbers<[1], [0], [0], [1], [0, 0, 1, 1], [], []>} : vector<64x96xbf16>, vector<96x32xbf16>, vector<64x32xf32> -> vector<64x32xf32>
    %25 = arith.addf %18, %24 : vector<64x32xf32>
    %c0_35 = arith.constant 0 : index
    %c3 = arith.constant 3 : index
    %c0_36 = arith.constant 0 : index
    %c0_37 = arith.constant 0 : index
    %c0_38 = arith.constant 0 : index
    %26 = vector.load %arg1[%c0_35, %c3, %c0_36, %c0_37, %c0_38] : memref<2x4x5x9x96xbf16, #tpu.memory_space<vmem>>, vector<2x1x4x8x96xbf16>
    %27 = vector.shape_cast %26 : vector<2x1x4x8x96xbf16> to vector<2x4x8x96xbf16>
    %28 = vector.shape_cast %27 : vector<2x4x8x96xbf16> to vector<64x96xbf16>
    %c3_39 = arith.constant 3 : index
    %c0_40 = arith.constant 0 : index
    %c0_41 = arith.constant 0 : index
    %29 = vector.load %arg3[%c3_39, %c0_40, %c0_41] : memref<4x96x32xbf16, #tpu.memory_space<vmem>>, vector<1x96x32xbf16>
    %30 = vector.shape_cast %29 : vector<1x96x32xbf16> to vector<96x32xbf16>
    %cst_42 = arith.constant dense<0.000000e+00> : vector<64x32xf32>
    %31 = tpu.matmul %28, %30, %cst_42 {dimension_numbers = #tpu.dot_dimension_numbers<[1], [0], [0], [1], [0, 0, 1, 1], [], []>} : vector<64x96xbf16>, vector<96x32xbf16>, vector<64x32xf32> -> vector<64x32xf32>
    %32 = arith.addf %25, %31 : vector<64x32xf32>
    %c0_43 = arith.constant 0 : index
    %c0_44 = arith.constant 0 : index
    %33 = vector.load %arg4[%c0_43, %c0_44] : memref<1x32xf32, #tpu.memory_space<vmem>>, vector<1x32xf32>
    %34 = vector.broadcast %33 : vector<1x32xf32> to vector<64x32xf32>
    %35 = arith.addf %32, %34 : vector<64x32xf32>
    %cst_45 = arith.constant 0.000000e+00 : f32
    %36 = vector.broadcast %cst_45 : f32 to vector<64x32xf32>
    %37 = arith.maximumf %35, %36 : vector<64x32xf32>
    %38 = arith.truncf %37 : vector<64x32xf32> to vector<64x32xbf16>
    %39 = vector.shape_cast %38 : vector<64x32xbf16> to vector<2x4x8x32xbf16>
    %c0_46 = arith.constant 0 : index
    %c0_47 = arith.constant 0 : index
    %c1_48 = arith.constant 1 : index
    %c1_49 = arith.constant 1 : index
    %c0_50 = arith.constant 0 : index
    %40 = vector.load %arg19[%c0_46, %c0_47, %c1_48, %c1_49, %c0_50] : memref<4x2x6x10x32xbf16, #tpu.memory_space<vmem>>, vector<1x2x4x8x32xbf16>
    %41 = vector.shape_cast %40 : vector<1x2x4x8x32xbf16> to vector<2x4x8x32xbf16>
    %42 = vector.shape_cast %39 : vector<2x4x8x32xbf16> to vector<1x2x4x8x32xbf16>
    tpu.vector_store %arg19[%c0_46, %c0_47, %c1_48, %c1_49, %c0_50], %42 {strides = array<i32>} : memref<4x2x6x10x32xbf16, #tpu.memory_space<vmem>>, vector<1x2x4x8x32xbf16>,
    %cst_51 = arith.constant 0.000000e+00 : f32
    %43 = vector.broadcast %cst_51 : f32 to vector<64x32xf32>
    %c0_52 = arith.constant 0 : index
    %c1_53 = arith.constant 1 : index
    %c0_54 = arith.constant 0 : index
    %c0_55 = arith.constant 0 : index
    %c0_56 = arith.constant 0 : index
    %44 = vector.load %arg1[%c0_52, %c1_53, %c0_54, %c0_55, %c0_56] : memref<2x4x5x9x96xbf16, #tpu.memory_space<vmem>>, vector<2x1x4x8x96xbf16>
    %45 = vector.shape_cast %44 : vector<2x1x4x8x96xbf16> to vector<2x4x8x96xbf16>
    %46 = vector.shape_cast %45 : vector<2x4x8x96xbf16> to vector<64x96xbf16>
    %c0_57 = arith.constant 0 : index
    %c0_58 = arith.constant 0 : index
    %c0_59 = arith.constant 0 : index
    %47 = vector.load %arg3[%c0_57, %c0_58, %c0_59] : memref<4x96x32xbf16, #tpu.memory_space<vmem>>, vector<1x96x32xbf16>
    %48 = vector.shape_cast %47 : vector<1x96x32xbf16> to vector<96x32xbf16>
    %cst_60 = arith.constant dense<0.000000e+00> : vector<64x32xf32>
    %49 = tpu.matmul %46, %48, %cst_60 {dimension_numbers = #tpu.dot_dimension_numbers<[1], [0], [0], [1], [0, 0, 1, 1], [], []>} : vector<64x96xbf16>, vector<96x32xbf16>, vector<64x32xf32> -> vector<64x32xf32>
    %50 = arith.addf %43, %49 : vector<64x32xf32>
    %c0_61 = arith.constant 0 : index
    %c0_62 = arith.constant 0 : index
    %c0_63 = arith.constant 0 : index
    %c1_64 = arith.constant 1 : index
    %c0_65 = arith.constant 0 : index
    %51 = vector.load %arg1[%c0_61, %c0_62, %c0_63, %c1_64, %c0_65] : memref<2x4x5x9x96xbf16, #tpu.memory_space<vmem>>, vector<2x1x4x8x96xbf16>
    %52 = vector.shape_cast %51 : vector<2x1x4x8x96xbf16> to vector<2x4x8x96xbf16>
    %53 = vector.shape_cast %52 : vector<2x4x8x96xbf16> to vector<64x96xbf16>
    %c1_66 = arith.constant 1 : index
    %c0_67 = arith.constant 0 : index
    %c0_68 = arith.constant 0 : index
    %54 = vector.load %arg3[%c1_66, %c0_67, %c0_68] : memref<4x96x32xbf16, #tpu.memory_space<vmem>>, vector<1x96x32xbf16>
    %55 = vector.shape_cast %54 : vector<1x96x32xbf16> to vector<96x32xbf16>
    %cst_69 = arith.constant dense<0.000000e+00> : vector<64x32xf32>
    %56 = tpu.matmul %53, %55, %cst_69 {dimension_numbers = #tpu.dot_dimension_numbers<[1], [0], [0], [1], [0, 0, 1, 1], [], []>} : vector<64x96xbf16>, vector<96x32xbf16>, vector<64x32xf32> -> vector<64x32xf32>
    %57 = arith.addf %50, %56 : vector<64x32xf32>
    %c0_70 = arith.constant 0 : index
    %c3_71 = arith.constant 3 : index
    %c0_72 = arith.constant 0 : index
    %c0_73 = arith.constant 0 : index
    %c0_74 = arith.constant 0 : index
    %58 = vector.load %arg1[%c0_70, %c3_71, %c0_72, %c0_73, %c0_74] : memref<2x4x5x9x96xbf16, #tpu.memory_space<vmem>>, vector<2x1x4x8x96xbf16>
    %59 = vector.shape_cast %58 : vector<2x1x4x8x96xbf16> to vector<2x4x8x96xbf16>
    %60 = vector.shape_cast %59 : vector<2x4x8x96xbf16> to vector<64x96xbf16>
    %c2_75 = arith.constant 2 : index
    %c0_76 = arith.constant 0 : index
    %c0_77 = arith.constant 0 : index
    %61 = vector.load %arg3[%c2_75, %c0_76, %c0_77] : memref<4x96x32xbf16, #tpu.memory_space<vmem>>, vector<1x96x32xbf16>
    %62 = vector.shape_cast %61 : vector<1x96x32xbf16> to vector<96x32xbf16>
    %cst_78 = arith.constant dense<0.000000e+00> : vector<64x32xf32>
    %63 = tpu.matmul %60, %62, %cst_78 {dimension_numbers = #tpu.dot_dimension_numbers<[1], [0], [0], [1], [0, 0, 1, 1], [], []>} : vector<64x96xbf16>, vector<96x32xbf16>, vector<64x32xf32> -> vector<64x32xf32>
    %64 = arith.addf %57, %63 : vector<64x32xf32>
    %c0_79 = arith.constant 0 : index
    %c2_80 = arith.constant 2 : index
    %c0_81 = arith.constant 0 : index
    %c1_82 = arith.constant 1 : index
    %c0_83 = arith.constant 0 : index
    %65 = vector.load %arg1[%c0_79, %c2_80, %c0_81, %c1_82, %c0_83] : memref<2x4x5x9x96xbf16, #tpu.memory_space<vmem>>, vector<2x1x4x8x96xbf16>
    %66 = vector.shape_cast %65 : vector<2x1x4x8x96xbf16> to vector<2x4x8x96xbf16>
    %67 = vector.shape_cast %66 : vector<2x4x8x96xbf16> to vector<64x96xbf16>
    %c3_84 = arith.constant 3 : index
    %c0_85 = arith.constant 0 : index
    %c0_86 = arith.constant 0 : index
    %68 = vector.load %arg3[%c3_84, %c0_85, %c0_86] : memref<4x96x32xbf16, #tpu.memory_space<vmem>>, vector<1x96x32xbf16>
    %69 = vector.shape_cast %68 : vector<1x96x32xbf16> to vector<96x32xbf16>
    %cst_87 = arith.constant dense<0.000000e+00> : vector<64x32xf32>
    %70 = tpu.matmul %67, %69, %cst_87 {dimension_numbers = #tpu.dot_dimension_numbers<[1], [0], [0], [1], [0, 0, 1, 1], [], []>} : vector<64x96xbf16>, vector<96x32xbf16>, vector<64x32xf32> -> vector<64x32xf32>
    %71 = arith.addf %64, %70 : vector<64x32xf32>
    %c0_88 = arith.constant 0 : index
    %c0_89 = arith.constant 0 : index
    %72 = vector.load %arg4[%c0_88, %c0_89] : memref<1x32xf32, #tpu.memory_space<vmem>>, vector<1x32xf32>
    %73 = vector.broadcast %72 : vector<1x32xf32> to vector<64x32xf32>
    %74 = arith.addf %71, %73 : vector<64x32xf32>
    %cst_90 = arith.constant 0.000000e+00 : f32
    %75 = vector.broadcast %cst_90 : f32 to vector<64x32xf32>
    %76 = arith.maximumf %74, %75 : vector<64x32xf32>
    %77 = arith.truncf %76 : vector<64x32xf32> to vector<64x32xbf16>
    %78 = vector.shape_cast %77 : vector<64x32xbf16> to vector<2x4x8x32xbf16>
    %c1_91 = arith.constant 1 : index
    %c0_92 = arith.constant 0 : index
    %c1_93 = arith.constant 1 : index
    %c1_94 = arith.constant 1 : index
    %c0_95 = arith.constant 0 : index
    %79 = vector.load %arg19[%c1_91, %c0_92, %c1_93, %c1_94, %c0_95] : memref<4x2x6x10x32xbf16, #tpu.memory_space<vmem>>, vector<1x2x4x8x32xbf16>
    %80 = vector.shape_cast %79 : vector<1x2x4x8x32xbf16> to vector<2x4x8x32xbf16>
    %81 = vector.shape_cast %78 : vector<2x4x8x32xbf16> to vector<1x2x4x8x32xbf16>
    tpu.vector_store %arg19[%c1_91, %c0_92, %c1_93, %c1_94, %c0_95], %81 {strides = array<i32>} : memref<4x2x6x10x32xbf16, #tpu.memory_space<vmem>>, vector<1x2x4x8x32xbf16>,
    %cst_96 = arith.constant 0.000000e+00 : f32
    %82 = vector.broadcast %cst_96 : f32 to vector<64x32xf32>
    %c0_97 = arith.constant 0 : index
    %c2_98 = arith.constant 2 : index
    %c0_99 = arith.constant 0 : index
    %c0_100 = arith.constant 0 : index
    %c0_101 = arith.constant 0 : index
    %83 = vector.load %arg1[%c0_97, %c2_98, %c0_99, %c0_100, %c0_101] : memref<2x4x5x9x96xbf16, #tpu.memory_space<vmem>>, vector<2x1x4x8x96xbf16>
    %84 = vector.shape_cast %83 : vector<2x1x4x8x96xbf16> to vector<2x4x8x96xbf16>
    %85 = vector.shape_cast %84 : vector<2x4x8x96xbf16> to vector<64x96xbf16>
    %c0_102 = arith.constant 0 : index
    %c0_103 = arith.constant 0 : index
    %c0_104 = arith.constant 0 : index
    %86 = vector.load %arg3[%c0_102, %c0_103, %c0_104] : memref<4x96x32xbf16, #tpu.memory_space<vmem>>, vector<1x96x32xbf16>
    %87 = vector.shape_cast %86 : vector<1x96x32xbf16> to vector<96x32xbf16>
    %cst_105 = arith.constant dense<0.000000e+00> : vector<64x32xf32>
    %88 = tpu.matmul %85, %87, %cst_105 {dimension_numbers = #tpu.dot_dimension_numbers<[1], [0], [0], [1], [0, 0, 1, 1], [], []>} : vector<64x96xbf16>, vector<96x32xbf16>, vector<64x32xf32> -> vector<64x32xf32>
    %89 = arith.addf %82, %88 : vector<64x32xf32>
    %c0_106 = arith.constant 0 : index
    %c3_107 = arith.constant 3 : index
    %c0_108 = arith.constant 0 : index
    %c0_109 = arith.constant 0 : index
    %c0_110 = arith.constant 0 : index
    %90 = vector.load %arg1[%c0_106, %c3_107, %c0_108, %c0_109, %c0_110] : memref<2x4x5x9x96xbf16, #tpu.memory_space<vmem>>, vector<2x1x4x8x96xbf16>
    %91 = vector.shape_cast %90 : vector<2x1x4x8x96xbf16> to vector<2x4x8x96xbf16>
    %92 = vector.shape_cast %91 : vector<2x4x8x96xbf16> to vector<64x96xbf16>
    %c1_111 = arith.constant 1 : index
    %c0_112 = arith.constant 0 : index
    %c0_113 = arith.constant 0 : index
    %93 = vector.load %arg3[%c1_111, %c0_112, %c0_113] : memref<4x96x32xbf16, #tpu.memory_space<vmem>>, vector<1x96x32xbf16>
    %94 = vector.shape_cast %93 : vector<1x96x32xbf16> to vector<96x32xbf16>
    %cst_114 = arith.constant dense<0.000000e+00> : vector<64x32xf32>
    %95 = tpu.matmul %92, %94, %cst_114 {dimension_numbers = #tpu.dot_dimension_numbers<[1], [0], [0], [1], [0, 0, 1, 1], [], []>} : vector<64x96xbf16>, vector<96x32xbf16>, vector<64x32xf32> -> vector<64x32xf32>
    %96 = arith.addf %89, %95 : vector<64x32xf32>
    %c0_115 = arith.constant 0 : index
    %c0_116 = arith.constant 0 : index
    %c1_117 = arith.constant 1 : index
    %c0_118 = arith.constant 0 : index
    %c0_119 = arith.constant 0 : index
    %97 = vector.load %arg1[%c0_115, %c0_116, %c1_117, %c0_118, %c0_119] : memref<2x4x5x9x96xbf16, #tpu.memory_space<vmem>>, vector<2x1x4x8x96xbf16>
    %98 = vector.shape_cast %97 : vector<2x1x4x8x96xbf16> to vector<2x4x8x96xbf16>
    %99 = vector.shape_cast %98 : vector<2x4x8x96xbf16> to vector<64x96xbf16>
    %c2_120 = arith.constant 2 : index
    %c0_121 = arith.constant 0 : index
    %c0_122 = arith.constant 0 : index
    %100 = vector.load %arg3[%c2_120, %c0_121, %c0_122] : memref<4x96x32xbf16, #tpu.memory_space<vmem>>, vector<1x96x32xbf16>
    %101 = vector.shape_cast %100 : vector<1x96x32xbf16> to vector<96x32xbf16>
    %cst_123 = arith.constant dense<0.000000e+00> : vector<64x32xf32>
    %102 = tpu.matmul %99, %101, %cst_123 {dimension_numbers = #tpu.dot_dimension_numbers<[1], [0], [0], [1], [0, 0, 1, 1], [], []>} : vector<64x96xbf16>, vector<96x32xbf16>, vector<64x32xf32> -> vector<64x32xf32>
    %103 = arith.addf %96, %102 : vector<64x32xf32>
    %c0_124 = arith.constant 0 : index
    %c1_125 = arith.constant 1 : index
    %c1_126 = arith.constant 1 : index
    %c0_127 = arith.constant 0 : index
    %c0_128 = arith.constant 0 : index
    %104 = vector.load %arg1[%c0_124, %c1_125, %c1_126, %c0_127, %c0_128] : memref<2x4x5x9x96xbf16, #tpu.memory_space<vmem>>, vector<2x1x4x8x96xbf16>
    %105 = vector.shape_cast %104 : vector<2x1x4x8x96xbf16> to vector<2x4x8x96xbf16>
    %106 = vector.shape_cast %105 : vector<2x4x8x96xbf16> to vector<64x96xbf16>
    %c3_129 = arith.constant 3 : index
    %c0_130 = arith.constant 0 : index
    %c0_131 = arith.constant 0 : index
    %107 = vector.load %arg3[%c3_129, %c0_130, %c0_131] : memref<4x96x32xbf16, #tpu.memory_space<vmem>>, vector<1x96x32xbf16>
    %108 = vector.shape_cast %107 : vector<1x96x32xbf16> to vector<96x32xbf16>
    %cst_132 = arith.constant dense<0.000000e+00> : vector<64x32xf32>
    %109 = tpu.matmul %106, %108, %cst_132 {dimension_numbers = #tpu.dot_dimension_numbers<[1], [0], [0], [1], [0, 0, 1, 1], [], []>} : vector<64x96xbf16>, vector<96x32xbf16>, vector<64x32xf32> -> vector<64x32xf32>
    %110 = arith.addf %103, %109 : vector<64x32xf32>
    %c0_133 = arith.constant 0 : index
    %c0_134 = arith.constant 0 : index
    %111 = vector.load %arg4[%c0_133, %c0_134] : memref<1x32xf32, #tpu.memory_space<vmem>>, vector<1x32xf32>
    %112 = vector.broadcast %111 : vector<1x32xf32> to vector<64x32xf32>
    %113 = arith.addf %110, %112 : vector<64x32xf32>
    %cst_135 = arith.constant 0.000000e+00 : f32
    %114 = vector.broadcast %cst_135 : f32 to vector<64x32xf32>
    %115 = arith.maximumf %113, %114 : vector<64x32xf32>
    %116 = arith.truncf %115 : vector<64x32xf32> to vector<64x32xbf16>
    %117 = vector.shape_cast %116 : vector<64x32xbf16> to vector<2x4x8x32xbf16>
    %c2_136 = arith.constant 2 : index
    %c0_137 = arith.constant 0 : index
    %c1_138 = arith.constant 1 : index
    %c1_139 = arith.constant 1 : index
    %c0_140 = arith.constant 0 : index
    %118 = vector.load %arg19[%c2_136, %c0_137, %c1_138, %c1_139, %c0_140] : memref<4x2x6x10x32xbf16, #tpu.memory_space<vmem>>, vector<1x2x4x8x32xbf16>
    %119 = vector.shape_cast %118 : vector<1x2x4x8x32xbf16> to vector<2x4x8x32xbf16>
    %120 = vector.shape_cast %117 : vector<2x4x8x32xbf16> to vector<1x2x4x8x32xbf16>
    tpu.vector_store %arg19[%c2_136, %c0_137, %c1_138, %c1_139, %c0_140], %120 {strides = array<i32>} : memref<4x2x6x10x32xbf16, #tpu.memory_space<vmem>>, vector<1x2x4x8x32xbf16>,
    %cst_141 = arith.constant 0.000000e+00 : f32
    %121 = vector.broadcast %cst_141 : f32 to vector<64x32xf32>
    %c0_142 = arith.constant 0 : index
    %c3_143 = arith.constant 3 : index
    %c0_144 = arith.constant 0 : index
    %c0_145 = arith.constant 0 : index
    %c0_146 = arith.constant 0 : index
    %122 = vector.load %arg1[%c0_142, %c3_143, %c0_144, %c0_145, %c0_146] : memref<2x4x5x9x96xbf16, #tpu.memory_space<vmem>>, vector<2x1x4x8x96xbf16>
    %123 = vector.shape_cast %122 : vector<2x1x4x8x96xbf16> to vector<2x4x8x96xbf16>
    %124 = vector.shape_cast %123 : vector<2x4x8x96xbf16> to vector<64x96xbf16>
    %c0_147 = arith.constant 0 : index
    %c0_148 = arith.constant 0 : index
    %c0_149 = arith.constant 0 : index
    %125 = vector.load %arg3[%c0_147, %c0_148, %c0_149] : memref<4x96x32xbf16, #tpu.memory_space<vmem>>, vector<1x96x32xbf16>
    %126 = vector.shape_cast %125 : vector<1x96x32xbf16> to vector<96x32xbf16>
    %cst_150 = arith.constant dense<0.000000e+00> : vector<64x32xf32>
    %127 = tpu.matmul %124, %126, %cst_150 {dimension_numbers = #tpu.dot_dimension_numbers<[1], [0], [0], [1], [0, 0, 1, 1], [], []>} : vector<64x96xbf16>, vector<96x32xbf16>, vector<64x32xf32> -> vector<64x32xf32>
    %128 = arith.addf %121, %127 : vector<64x32xf32>
    %c0_151 = arith.constant 0 : index
    %c2_152 = arith.constant 2 : index
    %c0_153 = arith.constant 0 : index
    %c1_154 = arith.constant 1 : index
    %c0_155 = arith.constant 0 : index
    %129 = vector.load %arg1[%c0_151, %c2_152, %c0_153, %c1_154, %c0_155] : memref<2x4x5x9x96xbf16, #tpu.memory_space<vmem>>, vector<2x1x4x8x96xbf16>
    %130 = vector.shape_cast %129 : vector<2x1x4x8x96xbf16> to vector<2x4x8x96xbf16>
    %131 = vector.shape_cast %130 : vector<2x4x8x96xbf16> to vector<64x96xbf16>
    %c1_156 = arith.constant 1 : index
    %c0_157 = arith.constant 0 : index
    %c0_158 = arith.constant 0 : index
    %132 = vector.load %arg3[%c1_156, %c0_157, %c0_158] : memref<4x96x32xbf16, #tpu.memory_space<vmem>>, vector<1x96x32xbf16>
    %133 = vector.shape_cast %132 : vector<1x96x32xbf16> to vector<96x32xbf16>
    %cst_159 = arith.constant dense<0.000000e+00> : vector<64x32xf32>
    %134 = tpu.matmul %131, %133, %cst_159 {dimension_numbers = #tpu.dot_dimension_numbers<[1], [0], [0], [1], [0, 0, 1, 1], [], []>} : vector<64x96xbf16>, vector<96x32xbf16>, vector<64x32xf32> -> vector<64x32xf32>
    %135 = arith.addf %128, %134 : vector<64x32xf32>
    %c0_160 = arith.constant 0 : index
    %c1_161 = arith.constant 1 : index
    %c1_162 = arith.constant 1 : index
    %c0_163 = arith.constant 0 : index
    %c0_164 = arith.constant 0 : index
    %136 = vector.load %arg1[%c0_160, %c1_161, %c1_162, %c0_163, %c0_164] : memref<2x4x5x9x96xbf16, #tpu.memory_space<vmem>>, vector<2x1x4x8x96xbf16>
    %137 = vector.shape_cast %136 : vector<2x1x4x8x96xbf16> to vector<2x4x8x96xbf16>
    %138 = vector.shape_cast %137 : vector<2x4x8x96xbf16> to vector<64x96xbf16>
    %c2_165 = arith.constant 2 : index
    %c0_166 = arith.constant 0 : index
    %c0_167 = arith.constant 0 : index
    %139 = vector.load %arg3[%c2_165, %c0_166, %c0_167] : memref<4x96x32xbf16, #tpu.memory_space<vmem>>, vector<1x96x32xbf16>
    %140 = vector.shape_cast %139 : vector<1x96x32xbf16> to vector<96x32xbf16>
    %cst_168 = arith.constant dense<0.000000e+00> : vector<64x32xf32>
    %141 = tpu.matmul %138, %140, %cst_168 {dimension_numbers = #tpu.dot_dimension_numbers<[1], [0], [0], [1], [0, 0, 1, 1], [], []>} : vector<64x96xbf16>, vector<96x32xbf16>, vector<64x32xf32> -> vector<64x32xf32>
    %142 = arith.addf %135, %141 : vector<64x32xf32>
    %c0_169 = arith.constant 0 : index
    %c0_170 = arith.constant 0 : index
    %c1_171 = arith.constant 1 : index
    %c1_172 = arith.constant 1 : index
    %c0_173 = arith.constant 0 : index
    %143 = vector.load %arg1[%c0_169, %c0_170, %c1_171, %c1_172, %c0_173] : memref<2x4x5x9x96xbf16, #tpu.memory_space<vmem>>, vector<2x1x4x8x96xbf16>
    %144 = vector.shape_cast %143 : vector<2x1x4x8x96xbf16> to vector<2x4x8x96xbf16>
    %145 = vector.shape_cast %144 : vector<2x4x8x96xbf16> to vector<64x96xbf16>
    %c3_174 = arith.constant 3 : index
    %c0_175 = arith.constant 0 : index
    %c0_176 = arith.constant 0 : index
    %146 = vector.load %arg3[%c3_174, %c0_175, %c0_176] : memref<4x96x32xbf16, #tpu.memory_space<vmem>>, vector<1x96x32xbf16>
    %147 = vector.shape_cast %146 : vector<1x96x32xbf16> to vector<96x32xbf16>
    %cst_177 = arith.constant dense<0.000000e+00> : vector<64x32xf32>
    %148 = tpu.matmul %145, %147, %cst_177 {dimension_numbers = #tpu.dot_dimension_numbers<[1], [0], [0], [1], [0, 0, 1, 1], [], []>} : vector<64x96xbf16>, vector<96x32xbf16>, vector<64x32xf32> -> vector<64x32xf32>
    %149 = arith.addf %142, %148 : vector<64x32xf32>
    %c0_178 = arith.constant 0 : index
    %c0_179 = arith.constant 0 : index
    %150 = vector.load %arg4[%c0_178, %c0_179] : memref<1x32xf32, #tpu.memory_space<vmem>>, vector<1x32xf32>
    %151 = vector.broadcast %150 : vector<1x32xf32> to vector<64x32xf32>
    %152 = arith.addf %149, %151 : vector<64x32xf32>
    %cst_180 = arith.constant 0.000000e+00 : f32
    %153 = vector.broadcast %cst_180 : f32 to vector<64x32xf32>
    %154 = arith.maximumf %152, %153 : vector<64x32xf32>
    %155 = arith.truncf %154 : vector<64x32xf32> to vector<64x32xbf16>
    %156 = vector.shape_cast %155 : vector<64x32xbf16> to vector<2x4x8x32xbf16>
    %c3_181 = arith.constant 3 : index
    %c0_182 = arith.constant 0 : index
    %c1_183 = arith.constant 1 : index
    %c1_184 = arith.constant 1 : index
    %c0_185 = arith.constant 0 : index
    %157 = vector.load %arg19[%c3_181, %c0_182, %c1_183, %c1_184, %c0_185] : memref<4x2x6x10x32xbf16, #tpu.memory_space<vmem>>, vector<1x2x4x8x32xbf16>
    %158 = vector.shape_cast %157 : vector<1x2x4x8x32xbf16> to vector<2x4x8x32xbf16>
    %159 = vector.shape_cast %156 : vector<2x4x8x32xbf16> to vector<1x2x4x8x32xbf16>
    tpu.vector_store %arg19[%c3_181, %c0_182, %c1_183, %c1_184, %c0_185], %159 {strides = array<i32>} : memref<4x2x6x10x32xbf16, #tpu.memory_space<vmem>>, vector<1x2x4x8x32xbf16>,
    %cst_186 = arith.constant 0.000000e+00 : f32
    %160 = vector.broadcast %cst_186 : f32 to vector<64x64xf32>
    %c3_187 = arith.constant 3 : index
    %c0_188 = arith.constant 0 : index
    %c0_189 = arith.constant 0 : index
    %c0_190 = arith.constant 0 : index
    %c0_191 = arith.constant 0 : index
    %161 = vector.load %arg19[%c3_187, %c0_188, %c0_189, %c0_190, %c0_191] : memref<4x2x6x10x32xbf16, #tpu.memory_space<vmem>>, vector<1x2x4x8x32xbf16>
    %162 = vector.shape_cast %161 : vector<1x2x4x8x32xbf16> to vector<2x4x8x32xbf16>
    %163 = vector.shape_cast %162 : vector<2x4x8x32xbf16> to vector<64x32xbf16>
    %c0_192 = arith.constant 0 : index
    %c0_193 = arith.constant 0 : index
    %c0_194 = arith.constant 0 : index
    %164 = vector.load %arg5[%c0_192, %c0_193, %c0_194] : memref<16x32x64xbf16, #tpu.memory_space<vmem>>, vector<1x32x64xbf16>
    %165 = vector.shape_cast %164 : vector<1x32x64xbf16> to vector<32x64xbf16>
    %cst_195 = arith.constant dense<0.000000e+00> : vector<64x64xf32>
    %166 = tpu.matmul %163, %165, %cst_195 {dimension_numbers = #tpu.dot_dimension_numbers<[1], [0], [0], [1], [0, 0, 1, 1], [], []>} : vector<64x32xbf16>, vector<32x64xbf16>, vector<64x64xf32> -> vector<64x64xf32>
    %167 = arith.addf %160, %166 : vector<64x64xf32>
    %c2_196 = arith.constant 2 : index
    %c0_197 = arith.constant 0 : index
    %c0_198 = arith.constant 0 : index
    %c1_199 = arith.constant 1 : index
    %c0_200 = arith.constant 0 : index
    %168 = vector.load %arg19[%c2_196, %c0_197, %c0_198, %c1_199, %c0_200] : memref<4x2x6x10x32xbf16, #tpu.memory_space<vmem>>, vector<1x2x4x8x32xbf16>
    %169 = vector.shape_cast %168 : vector<1x2x4x8x32xbf16> to vector<2x4x8x32xbf16>
    %170 = vector.shape_cast %169 : vector<2x4x8x32xbf16> to vector<64x32xbf16>
    %c1_201 = arith.constant 1 : index
    %c0_202 = arith.constant 0 : index
    %c0_203 = arith.constant 0 : index
    %171 = vector.load %arg5[%c1_201, %c0_202, %c0_203] : memref<16x32x64xbf16, #tpu.memory_space<vmem>>, vector<1x32x64xbf16>
    %172 = vector.shape_cast %171 : vector<1x32x64xbf16> to vector<32x64xbf16>
    %cst_204 = arith.constant dense<0.000000e+00> : vector<64x64xf32>
    %173 = tpu.matmul %170, %172, %cst_204 {dimension_numbers = #tpu.dot_dimension_numbers<[1], [0], [0], [1], [0, 0, 1, 1], [], []>} : vector<64x32xbf16>, vector<32x64xbf16>, vector<64x64xf32> -> vector<64x64xf32>
    %174 = arith.addf %167, %173 : vector<64x64xf32>
    %c3_205 = arith.constant 3 : index
    %c0_206 = arith.constant 0 : index
    %c0_207 = arith.constant 0 : index
    %c1_208 = arith.constant 1 : index
    %c0_209 = arith.constant 0 : index
    %175 = vector.load %arg19[%c3_205, %c0_206, %c0_207, %c1_208, %c0_209] : memref<4x2x6x10x32xbf16, #tpu.memory_space<vmem>>, vector<1x2x4x8x32xbf16>
    %176 = vector.shape_cast %175 : vector<1x2x4x8x32xbf16> to vector<2x4x8x32xbf16>
    %177 = vector.shape_cast %176 : vector<2x4x8x32xbf16> to vector<64x32xbf16>
    %c2_210 = arith.constant 2 : index
    %c0_211 = arith.constant 0 : index
    %c0_212 = arith.constant 0 : index
    %178 = vector.load %arg5[%c2_210, %c0_211, %c0_212] : memref<16x32x64xbf16, #tpu.memory_space<vmem>>, vector<1x32x64xbf16>
    %179 = vector.shape_cast %178 : vector<1x32x64xbf16> to vector<32x64xbf16>
    %cst_213 = arith.constant dense<0.000000e+00> : vector<64x64xf32>
    %180 = tpu.matmul %177, %179, %cst_213 {dimension_numbers = #tpu.dot_dimension_numbers<[1], [0], [0], [1], [0, 0, 1, 1], [], []>} : vector<64x32xbf16>, vector<32x64xbf16>, vector<64x64xf32> -> vector<64x64xf32>
    %181 = arith.addf %174, %180 : vector<64x64xf32>
    %c2_214 = arith.constant 2 : index
    %c0_215 = arith.constant 0 : index
    %c0_216 = arith.constant 0 : index
    %c2_217 = arith.constant 2 : index
    %c0_218 = arith.constant 0 : index
    %182 = vector.load %arg19[%c2_214, %c0_215, %c0_216, %c2_217, %c0_218] : memref<4x2x6x10x32xbf16, #tpu.memory_space<vmem>>, vector<1x2x4x8x32xbf16>
    %183 = vector.shape_cast %182 : vector<1x2x4x8x32xbf16> to vector<2x4x8x32xbf16>
    %184 = vector.shape_cast %183 : vector<2x4x8x32xbf16> to vector<64x32xbf16>
    %c3_219 = arith.constant 3 : index
    %c0_220 = arith.constant 0 : index
    %c0_221 = arith.constant 0 : index
    %185 = vector.load %arg5[%c3_219, %c0_220, %c0_221] : memref<16x32x64xbf16, #tpu.memory_space<vmem>>, vector<1x32x64xbf16>
    %186 = vector.shape_cast %185 : vector<1x32x64xbf16> to vector<32x64xbf16>
    %cst_222 = arith.constant dense<0.000000e+00> : vector<64x64xf32>
    %187 = tpu.matmul %184, %186, %cst_222 {dimension_numbers = #tpu.dot_dimension_numbers<[1], [0], [0], [1], [0, 0, 1, 1], [], []>} : vector<64x32xbf16>, vector<32x64xbf16>, vector<64x64xf32> -> vector<64x64xf32>
    %188 = arith.addf %181, %187 : vector<64x64xf32>
    %c1_223 = arith.constant 1 : index
    %c0_224 = arith.constant 0 : index
    %c1_225 = arith.constant 1 : index
    %c0_226 = arith.constant 0 : index
    %c0_227 = arith.constant 0 : index
    %189 = vector.load %arg19[%c1_223, %c0_224, %c1_225, %c0_226, %c0_227] : memref<4x2x6x10x32xbf16, #tpu.memory_space<vmem>>, vector<1x2x4x8x32xbf16>
    %190 = vector.shape_cast %189 : vector<1x2x4x8x32xbf16> to vector<2x4x8x32xbf16>
    %191 = vector.shape_cast %190 : vector<2x4x8x32xbf16> to vector<64x32xbf16>
    %c4 = arith.constant 4 : index
    %c0_228 = arith.constant 0 : index
    %c0_229 = arith.constant 0 : index
    %192 = vector.load %arg5[%c4, %c0_228, %c0_229] : memref<16x32x64xbf16, #tpu.memory_space<vmem>>, vector<1x32x64xbf16>
    %193 = vector.shape_cast %192 : vector<1x32x64xbf16> to vector<32x64xbf16>
    %cst_230 = arith.constant dense<0.000000e+00> : vector<64x64xf32>
    %194 = tpu.matmul %191, %193, %cst_230 {dimension_numbers = #tpu.dot_dimension_numbers<[1], [0], [0], [1], [0, 0, 1, 1], [], []>} : vector<64x32xbf16>, vector<32x64xbf16>, vector<64x64xf32> -> vector<64x64xf32>
    %195 = arith.addf %188, %194 : vector<64x64xf32>
    %c0_231 = arith.constant 0 : index
    %c0_232 = arith.constant 0 : index
    %c1_233 = arith.constant 1 : index
    %c1_234 = arith.constant 1 : index
    %c0_235 = arith.constant 0 : index
    %196 = vector.load %arg19[%c0_231, %c0_232, %c1_233, %c1_234, %c0_235] : memref<4x2x6x10x32xbf16, #tpu.memory_space<vmem>>, vector<1x2x4x8x32xbf16>
    %197 = vector.shape_cast %196 : vector<1x2x4x8x32xbf16> to vector<2x4x8x32xbf16>
    %198 = vector.shape_cast %197 : vector<2x4x8x32xbf16> to vector<64x32xbf16>
    %c5 = arith.constant 5 : index
    %c0_236 = arith.constant 0 : index
    %c0_237 = arith.constant 0 : index
    %199 = vector.load %arg5[%c5, %c0_236, %c0_237] : memref<16x32x64xbf16, #tpu.memory_space<vmem>>, vector<1x32x64xbf16>
    %200 = vector.shape_cast %199 : vector<1x32x64xbf16> to vector<32x64xbf16>
    %cst_238 = arith.constant dense<0.000000e+00> : vector<64x64xf32>
    %201 = tpu.matmul %198, %200, %cst_238 {dimension_numbers = #tpu.dot_dimension_numbers<[1], [0], [0], [1], [0, 0, 1, 1], [], []>} : vector<64x32xbf16>, vector<32x64xbf16>, vector<64x64xf32> -> vector<64x64xf32>
    %202 = arith.addf %195, %201 : vector<64x64xf32>
    %c1_239 = arith.constant 1 : index
    %c0_240 = arith.constant 0 : index
    %c1_241 = arith.constant 1 : index
    %c1_242 = arith.constant 1 : index
    %c0_243 = arith.constant 0 : index
    %203 = vector.load %arg19[%c1_239, %c0_240, %c1_241, %c1_242, %c0_243] : memref<4x2x6x10x32xbf16, #tpu.memory_space<vmem>>, vector<1x2x4x8x32xbf16>
    %204 = vector.shape_cast %203 : vector<1x2x4x8x32xbf16> to vector<2x4x8x32xbf16>
    %205 = vector.shape_cast %204 : vector<2x4x8x32xbf16> to vector<64x32xbf16>
    %c6 = arith.constant 6 : index
    %c0_244 = arith.constant 0 : index
    %c0_245 = arith.constant 0 : index
    %206 = vector.load %arg5[%c6, %c0_244, %c0_245] : memref<16x32x64xbf16, #tpu.memory_space<vmem>>, vector<1x32x64xbf16>
    %207 = vector.shape_cast %206 : vector<1x32x64xbf16> to vector<32x64xbf16>
    %cst_246 = arith.constant dense<0.000000e+00> : vector<64x64xf32>
    %208 = tpu.matmul %205, %207, %cst_246 {dimension_numbers = #tpu.dot_dimension_numbers<[1], [0], [0], [1], [0, 0, 1, 1], [], []>} : vector<64x32xbf16>, vector<32x64xbf16>, vector<64x64xf32> -> vector<64x64xf32>
    %209 = arith.addf %202, %208 : vector<64x64xf32>
    %c0_247 = arith.constant 0 : index
    %c0_248 = arith.constant 0 : index
    %c1_249 = arith.constant 1 : index
    %c2_250 = arith.constant 2 : index
    %c0_251 = arith.constant 0 : index
    %210 = vector.load %arg19[%c0_247, %c0_248, %c1_249, %c2_250, %c0_251] : memref<4x2x6x10x32xbf16, #tpu.memory_space<vmem>>, vector<1x2x4x8x32xbf16>
    %211 = vector.shape_cast %210 : vector<1x2x4x8x32xbf16> to vector<2x4x8x32xbf16>
    %212 = vector.shape_cast %211 : vector<2x4x8x32xbf16> to vector<64x32xbf16>
    %c7 = arith.constant 7 : index
    %c0_252 = arith.constant 0 : index
    %c0_253 = arith.constant 0 : index
    %213 = vector.load %arg5[%c7, %c0_252, %c0_253] : memref<16x32x64xbf16, #tpu.memory_space<vmem>>, vector<1x32x64xbf16>
    %214 = vector.shape_cast %213 : vector<1x32x64xbf16> to vector<32x64xbf16>
    %cst_254 = arith.constant dense<0.000000e+00> : vector<64x64xf32>
    %215 = tpu.matmul %212, %214, %cst_254 {dimension_numbers = #tpu.dot_dimension_numbers<[1], [0], [0], [1], [0, 0, 1, 1], [], []>} : vector<64x32xbf16>, vector<32x64xbf16>, vector<64x64xf32> -> vector<64x64xf32>
    %216 = arith.addf %209, %215 : vector<64x64xf32>
    %c3_255 = arith.constant 3 : index
    %c0_256 = arith.constant 0 : index
    %c1_257 = arith.constant 1 : index
    %c0_258 = arith.constant 0 : index
    %c0_259 = arith.constant 0 : index
    %217 = vector.load %arg19[%c3_255, %c0_256, %c1_257, %c0_258, %c0_259] : memref<4x2x6x10x32xbf16, #tpu.memory_space<vmem>>, vector<1x2x4x8x32xbf16>
    %218 = vector.shape_cast %217 : vector<1x2x4x8x32xbf16> to vector<2x4x8x32xbf16>
    %219 = vector.shape_cast %218 : vector<2x4x8x32xbf16> to vector<64x32xbf16>
    %c8 = arith.constant 8 : index
    %c0_260 = arith.constant 0 : index
    %c0_261 = arith.constant 0 : index
    %220 = vector.load %arg5[%c8, %c0_260, %c0_261] : memref<16x32x64xbf16, #tpu.memory_space<vmem>>, vector<1x32x64xbf16>
    %221 = vector.shape_cast %220 : vector<1x32x64xbf16> to vector<32x64xbf16>
    %cst_262 = arith.constant dense<0.000000e+00> : vector<64x64xf32>
    %222 = tpu.matmul %219, %221, %cst_262 {dimension_numbers = #tpu.dot_dimension_numbers<[1], [0], [0], [1], [0, 0, 1, 1], [], []>} : vector<64x32xbf16>, vector<32x64xbf16>, vector<64x64xf32> -> vector<64x64xf32>
    %223 = arith.addf %216, %222 : vector<64x64xf32>
    %c2_263 = arith.constant 2 : index
    %c0_264 = arith.constant 0 : index
    %c1_265 = arith.constant 1 : index
    %c1_266 = arith.constant 1 : index
    %c0_267 = arith.constant 0 : index
    %224 = vector.load %arg19[%c2_263, %c0_264, %c1_265, %c1_266, %c0_267] : memref<4x2x6x10x32xbf16, #tpu.memory_space<vmem>>, vector<1x2x4x8x32xbf16>
    %225 = vector.shape_cast %224 : vector<1x2x4x8x32xbf16> to vector<2x4x8x32xbf16>
    %226 = vector.shape_cast %225 : vector<2x4x8x32xbf16> to vector<64x32xbf16>
    %c9 = arith.constant 9 : index
    %c0_268 = arith.constant 0 : index
    %c0_269 = arith.constant 0 : index
    %227 = vector.load %arg5[%c9, %c0_268, %c0_269] : memref<16x32x64xbf16, #tpu.memory_space<vmem>>, vector<1x32x64xbf16>
    %228 = vector.shape_cast %227 : vector<1x32x64xbf16> to vector<32x64xbf16>
    %cst_270 = arith.constant dense<0.000000e+00> : vector<64x64xf32>
    %229 = tpu.matmul %226, %228, %cst_270 {dimension_numbers = #tpu.dot_dimension_numbers<[1], [0], [0], [1], [0, 0, 1, 1], [], []>} : vector<64x32xbf16>, vector<32x64xbf16>, vector<64x64xf32> -> vector<64x64xf32>
    %230 = arith.addf %223, %229 : vector<64x64xf32>
    %c3_271 = arith.constant 3 : index
    %c0_272 = arith.constant 0 : index
    %c1_273 = arith.constant 1 : index
    %c1_274 = arith.constant 1 : index
    %c0_275 = arith.constant 0 : index
    %231 = vector.load %arg19[%c3_271, %c0_272, %c1_273, %c1_274, %c0_275] : memref<4x2x6x10x32xbf16, #tpu.memory_space<vmem>>, vector<1x2x4x8x32xbf16>
    %232 = vector.shape_cast %231 : vector<1x2x4x8x32xbf16> to vector<2x4x8x32xbf16>
    %233 = vector.shape_cast %232 : vector<2x4x8x32xbf16> to vector<64x32xbf16>
    %c10 = arith.constant 10 : index
    %c0_276 = arith.constant 0 : index
    %c0_277 = arith.constant 0 : index
    %234 = vector.load %arg5[%c10, %c0_276, %c0_277] : memref<16x32x64xbf16, #tpu.memory_space<vmem>>, vector<1x32x64xbf16>
    %235 = vector.shape_cast %234 : vector<1x32x64xbf16> to vector<32x64xbf16>
    %cst_278 = arith.constant dense<0.000000e+00> : vector<64x64xf32>
    %236 = tpu.matmul %233, %235, %cst_278 {dimension_numbers = #tpu.dot_dimension_numbers<[1], [0], [0], [1], [0, 0, 1, 1], [], []>} : vector<64x32xbf16>, vector<32x64xbf16>, vector<64x64xf32> -> vector<64x64xf32>
    %237 = arith.addf %230, %236 : vector<64x64xf32>
    %c2_279 = arith.constant 2 : index
    %c0_280 = arith.constant 0 : index
    %c1_281 = arith.constant 1 : index
    %c2_282 = arith.constant 2 : index
    %c0_283 = arith.constant 0 : index
    %238 = vector.load %arg19[%c2_279, %c0_280, %c1_281, %c2_282, %c0_283] : memref<4x2x6x10x32xbf16, #tpu.memory_space<vmem>>, vector<1x2x4x8x32xbf16>
    %239 = vector.shape_cast %238 : vector<1x2x4x8x32xbf16> to vector<2x4x8x32xbf16>
    %240 = vector.shape_cast %239 : vector<2x4x8x32xbf16> to vector<64x32xbf16>
    %c11 = arith.constant 11 : index
    %c0_284 = arith.constant 0 : index
    %c0_285 = arith.constant 0 : index
    %241 = vector.load %arg5[%c11, %c0_284, %c0_285] : memref<16x32x64xbf16, #tpu.memory_space<vmem>>, vector<1x32x64xbf16>
    %242 = vector.shape_cast %241 : vector<1x32x64xbf16> to vector<32x64xbf16>
    %cst_286 = arith.constant dense<0.000000e+00> : vector<64x64xf32>
    %243 = tpu.matmul %240, %242, %cst_286 {dimension_numbers = #tpu.dot_dimension_numbers<[1], [0], [0], [1], [0, 0, 1, 1], [], []>} : vector<64x32xbf16>, vector<32x64xbf16>, vector<64x64xf32> -> vector<64x64xf32>
    %244 = arith.addf %237, %243 : vector<64x64xf32>
    %c1_287 = arith.constant 1 : index
    %c0_288 = arith.constant 0 : index
    %c2_289 = arith.constant 2 : index
    %c0_290 = arith.constant 0 : index
    %c0_291 = arith.constant 0 : index
    %245 = vector.load %arg19[%c1_287, %c0_288, %c2_289, %c0_290, %c0_291] : memref<4x2x6x10x32xbf16, #tpu.memory_space<vmem>>, vector<1x2x4x8x32xbf16>
    %246 = vector.shape_cast %245 : vector<1x2x4x8x32xbf16> to vector<2x4x8x32xbf16>
    %247 = vector.shape_cast %246 : vector<2x4x8x32xbf16> to vector<64x32xbf16>
    %c12 = arith.constant 12 : index
    %c0_292 = arith.constant 0 : index
    %c0_293 = arith.constant 0 : index
    %248 = vector.load %arg5[%c12, %c0_292, %c0_293] : memref<16x32x64xbf16, #tpu.memory_space<vmem>>, vector<1x32x64xbf16>
    %249 = vector.shape_cast %248 : vector<1x32x64xbf16> to vector<32x64xbf16>
    %cst_294 = arith.constant dense<0.000000e+00> : vector<64x64xf32>
    %250 = tpu.matmul %247, %249, %cst_294 {dimension_numbers = #tpu.dot_dimension_numbers<[1], [0], [0], [1], [0, 0, 1, 1], [], []>} : vector<64x32xbf16>, vector<32x64xbf16>, vector<64x64xf32> -> vector<64x64xf32>
    %251 = arith.addf %244, %250 : vector<64x64xf32>
    %c0_295 = arith.constant 0 : index
    %c0_296 = arith.constant 0 : index
    %c2_297 = arith.constant 2 : index
    %c1_298 = arith.constant 1 : index
    %c0_299 = arith.constant 0 : index
    %252 = vector.load %arg19[%c0_295, %c0_296, %c2_297, %c1_298, %c0_299] : memref<4x2x6x10x32xbf16, #tpu.memory_space<vmem>>, vector<1x2x4x8x32xbf16>
    %253 = vector.shape_cast %252 : vector<1x2x4x8x32xbf16> to vector<2x4x8x32xbf16>
    %254 = vector.shape_cast %253 : vector<2x4x8x32xbf16> to vector<64x32xbf16>
    %c13 = arith.constant 13 : index
    %c0_300 = arith.constant 0 : index
    %c0_301 = arith.constant 0 : index
    %255 = vector.load %arg5[%c13, %c0_300, %c0_301] : memref<16x32x64xbf16, #tpu.memory_space<vmem>>, vector<1x32x64xbf16>
    %256 = vector.shape_cast %255 : vector<1x32x64xbf16> to vector<32x64xbf16>
    %cst_302 = arith.constant dense<0.000000e+00> : vector<64x64xf32>
    %257 = tpu.matmul %254, %256, %cst_302 {dimension_numbers = #tpu.dot_dimension_numbers<[1], [0], [0], [1], [0, 0, 1, 1], [], []>} : vector<64x32xbf16>, vector<32x64xbf16>, vector<64x64xf32> -> vector<64x64xf32>
    %258 = arith.addf %251, %257 : vector<64x64xf32>
    %c1_303 = arith.constant 1 : index
    %c0_304 = arith.constant 0 : index
    %c2_305 = arith.constant 2 : index
    %c1_306 = arith.constant 1 : index
    %c0_307 = arith.constant 0 : index
    %259 = vector.load %arg19[%c1_303, %c0_304, %c2_305, %c1_306, %c0_307] : memref<4x2x6x10x32xbf16, #tpu.memory_space<vmem>>, vector<1x2x4x8x32xbf16>
    %260 = vector.shape_cast %259 : vector<1x2x4x8x32xbf16> to vector<2x4x8x32xbf16>
    %261 = vector.shape_cast %260 : vector<2x4x8x32xbf16> to vector<64x32xbf16>
    %c14 = arith.constant 14 : index
    %c0_308 = arith.constant 0 : index
    %c0_309 = arith.constant 0 : index
    %262 = vector.load %arg5[%c14, %c0_308, %c0_309] : memref<16x32x64xbf16, #tpu.memory_space<vmem>>, vector<1x32x64xbf16>
    %263 = vector.shape_cast %262 : vector<1x32x64xbf16> to vector<32x64xbf16>
    %cst_310 = arith.constant dense<0.000000e+00> : vector<64x64xf32>
    %264 = tpu.matmul %261, %263, %cst_310 {dimension_numbers = #tpu.dot_dimension_numbers<[1], [0], [0], [1], [0, 0, 1, 1], [], []>} : vector<64x32xbf16>, vector<32x64xbf16>, vector<64x64xf32> -> vector<64x64xf32>
    %265 = arith.addf %258, %264 : vector<64x64xf32>
    %c0_311 = arith.constant 0 : index
    %c0_312 = arith.constant 0 : index
    %c2_313 = arith.constant 2 : index
    %c2_314 = arith.constant 2 : index
    %c0_315 = arith.constant 0 : index
    %266 = vector.load %arg19[%c0_311, %c0_312, %c2_313, %c2_314, %c0_315] : memref<4x2x6x10x32xbf16, #tpu.memory_space<vmem>>, vector<1x2x4x8x32xbf16>
    %267 = vector.shape_cast %266 : vector<1x2x4x8x32xbf16> to vector<2x4x8x32xbf16>
    %268 = vector.shape_cast %267 : vector<2x4x8x32xbf16> to vector<64x32xbf16>
    %c15 = arith.constant 15 : index
    %c0_316 = arith.constant 0 : index
    %c0_317 = arith.constant 0 : index
    %269 = vector.load %arg5[%c15, %c0_316, %c0_317] : memref<16x32x64xbf16, #tpu.memory_space<vmem>>, vector<1x32x64xbf16>
    %270 = vector.shape_cast %269 : vector<1x32x64xbf16> to vector<32x64xbf16>
    %cst_318 = arith.constant dense<0.000000e+00> : vector<64x64xf32>
    %271 = tpu.matmul %268, %270, %cst_318 {dimension_numbers = #tpu.dot_dimension_numbers<[1], [0], [0], [1], [0, 0, 1, 1], [], []>} : vector<64x32xbf16>, vector<32x64xbf16>, vector<64x64xf32> -> vector<64x64xf32>
    %272 = arith.addf %265, %271 : vector<64x64xf32>
    %c0_319 = arith.constant 0 : index
    %c0_320 = arith.constant 0 : index
    %273 = vector.load %arg6[%c0_319, %c0_320] : memref<1x64xf32, #tpu.memory_space<vmem>>, vector<1x64xf32>
    %274 = vector.broadcast %273 : vector<1x64xf32> to vector<64x64xf32>
    %275 = arith.addf %272, %274 : vector<64x64xf32>
    %cst_321 = arith.constant 0.000000e+00 : f32
    %276 = vector.broadcast %cst_321 : f32 to vector<64x64xf32>
    %277 = arith.maximumf %275, %276 : vector<64x64xf32>
    %278 = arith.truncf %277 : vector<64x64xf32> to vector<64x64xbf16>
    %279 = vector.shape_cast %278 : vector<64x64xbf16> to vector<2x4x8x64xbf16>
    %c0_322 = arith.constant 0 : index
    %c1_323 = arith.constant 1 : index
    %c1_324 = arith.constant 1 : index
    %c0_325 = arith.constant 0 : index
    %280 = vector.load %arg20[%c0_322, %c1_323, %c1_324, %c0_325] : memref<2x6x10x64xbf16, #tpu.memory_space<vmem>>, vector<2x4x8x64xbf16>
    tpu.vector_store %arg20[%c0_322, %c1_323, %c1_324, %c0_325], %279 {strides = array<i32>} : memref<2x6x10x64xbf16, #tpu.memory_space<vmem>>, vector<2x4x8x64xbf16>,
    %cst_326 = arith.constant 0.000000e+00 : f32
    %281 = vector.broadcast %cst_326 : f32 to vector<64x64xf32>
    %c0_327 = arith.constant 0 : index
    %c0_328 = arith.constant 0 : index
    %c0_329 = arith.constant 0 : index
    %c0_330 = arith.constant 0 : index
    %282 = vector.load %arg20[%c0_327, %c0_328, %c0_329, %c0_330] : memref<2x6x10x64xbf16, #tpu.memory_space<vmem>>, vector<2x4x8x64xbf16>
    %283 = vector.shape_cast %282 : vector<2x4x8x64xbf16> to vector<64x64xbf16>
    %c0_331 = arith.constant 0 : index
    %c0_332 = arith.constant 0 : index
    %c0_333 = arith.constant 0 : index
    %284 = vector.load %arg7[%c0_331, %c0_332, %c0_333] : memref<9x64x64xbf16, #tpu.memory_space<vmem>>, vector<1x64x64xbf16>
    %285 = vector.shape_cast %284 : vector<1x64x64xbf16> to vector<64x64xbf16>
    %cst_334 = arith.constant dense<0.000000e+00> : vector<64x64xf32>
    %286 = tpu.matmul %283, %285, %cst_334 {dimension_numbers = #tpu.dot_dimension_numbers<[1], [0], [0], [1], [0, 0, 1, 1], [], []>} : vector<64x64xbf16>, vector<64x64xbf16>, vector<64x64xf32> -> vector<64x64xf32>
    %287 = arith.addf %281, %286 : vector<64x64xf32>
    %c0_335 = arith.constant 0 : index
    %c0_336 = arith.constant 0 : index
    %c1_337 = arith.constant 1 : index
    %c0_338 = arith.constant 0 : index
    %288 = vector.load %arg20[%c0_335, %c0_336, %c1_337, %c0_338] : memref<2x6x10x64xbf16, #tpu.memory_space<vmem>>, vector<2x4x8x64xbf16>
    %289 = vector.shape_cast %288 : vector<2x4x8x64xbf16> to vector<64x64xbf16>
    %c1_339 = arith.constant 1 : index
    %c0_340 = arith.constant 0 : index
    %c0_341 = arith.constant 0 : index
    %290 = vector.load %arg7[%c1_339, %c0_340, %c0_341] : memref<9x64x64xbf16, #tpu.memory_space<vmem>>, vector<1x64x64xbf16>
    %291 = vector.shape_cast %290 : vector<1x64x64xbf16> to vector<64x64xbf16>
    %cst_342 = arith.constant dense<0.000000e+00> : vector<64x64xf32>
    %292 = tpu.matmul %289, %291, %cst_342 {dimension_numbers = #tpu.dot_dimension_numbers<[1], [0], [0], [1], [0, 0, 1, 1], [], []>} : vector<64x64xbf16>, vector<64x64xbf16>, vector<64x64xf32> -> vector<64x64xf32>
    %293 = arith.addf %287, %292 : vector<64x64xf32>
    %c0_343 = arith.constant 0 : index
    %c0_344 = arith.constant 0 : index
    %c2_345 = arith.constant 2 : index
    %c0_346 = arith.constant 0 : index
    %294 = vector.load %arg20[%c0_343, %c0_344, %c2_345, %c0_346] : memref<2x6x10x64xbf16, #tpu.memory_space<vmem>>, vector<2x4x8x64xbf16>
    %295 = vector.shape_cast %294 : vector<2x4x8x64xbf16> to vector<64x64xbf16>
    %c2_347 = arith.constant 2 : index
    %c0_348 = arith.constant 0 : index
    %c0_349 = arith.constant 0 : index
    %296 = vector.load %arg7[%c2_347, %c0_348, %c0_349] : memref<9x64x64xbf16, #tpu.memory_space<vmem>>, vector<1x64x64xbf16>
    %297 = vector.shape_cast %296 : vector<1x64x64xbf16> to vector<64x64xbf16>
    %cst_350 = arith.constant dense<0.000000e+00> : vector<64x64xf32>
    %298 = tpu.matmul %295, %297, %cst_350 {dimension_numbers = #tpu.dot_dimension_numbers<[1], [0], [0], [1], [0, 0, 1, 1], [], []>} : vector<64x64xbf16>, vector<64x64xbf16>, vector<64x64xf32> -> vector<64x64xf32>
    %299 = arith.addf %293, %298 : vector<64x64xf32>
    %c0_351 = arith.constant 0 : index
    %c1_352 = arith.constant 1 : index
    %c0_353 = arith.constant 0 : index
    %c0_354 = arith.constant 0 : index
    %300 = vector.load %arg20[%c0_351, %c1_352, %c0_353, %c0_354] : memref<2x6x10x64xbf16, #tpu.memory_space<vmem>>, vector<2x4x8x64xbf16>
    %301 = vector.shape_cast %300 : vector<2x4x8x64xbf16> to vector<64x64xbf16>
    %c3_355 = arith.constant 3 : index
    %c0_356 = arith.constant 0 : index
    %c0_357 = arith.constant 0 : index
    %302 = vector.load %arg7[%c3_355, %c0_356, %c0_357] : memref<9x64x64xbf16, #tpu.memory_space<vmem>>, vector<1x64x64xbf16>
    %303 = vector.shape_cast %302 : vector<1x64x64xbf16> to vector<64x64xbf16>
    %cst_358 = arith.constant dense<0.000000e+00> : vector<64x64xf32>
    %304 = tpu.matmul %301, %303, %cst_358 {dimension_numbers = #tpu.dot_dimension_numbers<[1], [0], [0], [1], [0, 0, 1, 1], [], []>} : vector<64x64xbf16>, vector<64x64xbf16>, vector<64x64xf32> -> vector<64x64xf32>
    %305 = arith.addf %299, %304 : vector<64x64xf32>
    %c0_359 = arith.constant 0 : index
    %c1_360 = arith.constant 1 : index
    %c1_361 = arith.constant 1 : index
    %c0_362 = arith.constant 0 : index
    %306 = vector.load %arg20[%c0_359, %c1_360, %c1_361, %c0_362] : memref<2x6x10x64xbf16, #tpu.memory_space<vmem>>, vector<2x4x8x64xbf16>
    %307 = vector.shape_cast %306 : vector<2x4x8x64xbf16> to vector<64x64xbf16>
    %c4_363 = arith.constant 4 : index
    %c0_364 = arith.constant 0 : index
    %c0_365 = arith.constant 0 : index
    %308 = vector.load %arg7[%c4_363, %c0_364, %c0_365] : memref<9x64x64xbf16, #tpu.memory_space<vmem>>, vector<1x64x64xbf16>
    %309 = vector.shape_cast %308 : vector<1x64x64xbf16> to vector<64x64xbf16>
    %cst_366 = arith.constant dense<0.000000e+00> : vector<64x64xf32>
    %310 = tpu.matmul %307, %309, %cst_366 {dimension_numbers = #tpu.dot_dimension_numbers<[1], [0], [0], [1], [0, 0, 1, 1], [], []>} : vector<64x64xbf16>, vector<64x64xbf16>, vector<64x64xf32> -> vector<64x64xf32>
    %311 = arith.addf %305, %310 : vector<64x64xf32>
    %c0_367 = arith.constant 0 : index
    %c1_368 = arith.constant 1 : index
    %c2_369 = arith.constant 2 : index
    %c0_370 = arith.constant 0 : index
    %312 = vector.load %arg20[%c0_367, %c1_368, %c2_369, %c0_370] : memref<2x6x10x64xbf16, #tpu.memory_space<vmem>>, vector<2x4x8x64xbf16>
    %313 = vector.shape_cast %312 : vector<2x4x8x64xbf16> to vector<64x64xbf16>
    %c5_371 = arith.constant 5 : index
    %c0_372 = arith.constant 0 : index
    %c0_373 = arith.constant 0 : index
    %314 = vector.load %arg7[%c5_371, %c0_372, %c0_373] : memref<9x64x64xbf16, #tpu.memory_space<vmem>>, vector<1x64x64xbf16>
    %315 = vector.shape_cast %314 : vector<1x64x64xbf16> to vector<64x64xbf16>
    %cst_374 = arith.constant dense<0.000000e+00> : vector<64x64xf32>
    %316 = tpu.matmul %313, %315, %cst_374 {dimension_numbers = #tpu.dot_dimension_numbers<[1], [0], [0], [1], [0, 0, 1, 1], [], []>} : vector<64x64xbf16>, vector<64x64xbf16>, vector<64x64xf32> -> vector<64x64xf32>
    %317 = arith.addf %311, %316 : vector<64x64xf32>
    %c0_375 = arith.constant 0 : index
    %c2_376 = arith.constant 2 : index
    %c0_377 = arith.constant 0 : index
    %c0_378 = arith.constant 0 : index
    %318 = vector.load %arg20[%c0_375, %c2_376, %c0_377, %c0_378] : memref<2x6x10x64xbf16, #tpu.memory_space<vmem>>, vector<2x4x8x64xbf16>
    %319 = vector.shape_cast %318 : vector<2x4x8x64xbf16> to vector<64x64xbf16>
    %c6_379 = arith.constant 6 : index
    %c0_380 = arith.constant 0 : index
    %c0_381 = arith.constant 0 : index
    %320 = vector.load %arg7[%c6_379, %c0_380, %c0_381] : memref<9x64x64xbf16, #tpu.memory_space<vmem>>, vector<1x64x64xbf16>
    %321 = vector.shape_cast %320 : vector<1x64x64xbf16> to vector<64x64xbf16>
    %cst_382 = arith.constant dense<0.000000e+00> : vector<64x64xf32>
    %322 = tpu.matmul %319, %321, %cst_382 {dimension_numbers = #tpu.dot_dimension_numbers<[1], [0], [0], [1], [0, 0, 1, 1], [], []>} : vector<64x64xbf16>, vector<64x64xbf16>, vector<64x64xf32> -> vector<64x64xf32>
    %323 = arith.addf %317, %322 : vector<64x64xf32>
    %c0_383 = arith.constant 0 : index
    %c2_384 = arith.constant 2 : index
    %c1_385 = arith.constant 1 : index
    %c0_386 = arith.constant 0 : index
    %324 = vector.load %arg20[%c0_383, %c2_384, %c1_385, %c0_386] : memref<2x6x10x64xbf16, #tpu.memory_space<vmem>>, vector<2x4x8x64xbf16>
    %325 = vector.shape_cast %324 : vector<2x4x8x64xbf16> to vector<64x64xbf16>
    %c7_387 = arith.constant 7 : index
    %c0_388 = arith.constant 0 : index
    %c0_389 = arith.constant 0 : index
    %326 = vector.load %arg7[%c7_387, %c0_388, %c0_389] : memref<9x64x64xbf16, #tpu.memory_space<vmem>>, vector<1x64x64xbf16>
    %327 = vector.shape_cast %326 : vector<1x64x64xbf16> to vector<64x64xbf16>
    %cst_390 = arith.constant dense<0.000000e+00> : vector<64x64xf32>
    %328 = tpu.matmul %325, %327, %cst_390 {dimension_numbers = #tpu.dot_dimension_numbers<[1], [0], [0], [1], [0, 0, 1, 1], [], []>} : vector<64x64xbf16>, vector<64x64xbf16>, vector<64x64xf32> -> vector<64x64xf32>
    %329 = arith.addf %323, %328 : vector<64x64xf32>
    %c0_391 = arith.constant 0 : index
    %c2_392 = arith.constant 2 : index
    %c2_393 = arith.constant 2 : index
    %c0_394 = arith.constant 0 : index
    %330 = vector.load %arg20[%c0_391, %c2_392, %c2_393, %c0_394] : memref<2x6x10x64xbf16, #tpu.memory_space<vmem>>, vector<2x4x8x64xbf16>
    %331 = vector.shape_cast %330 : vector<2x4x8x64xbf16> to vector<64x64xbf16>
    %c8_395 = arith.constant 8 : index
    %c0_396 = arith.constant 0 : index
    %c0_397 = arith.constant 0 : index
    %332 = vector.load %arg7[%c8_395, %c0_396, %c0_397] : memref<9x64x64xbf16, #tpu.memory_space<vmem>>, vector<1x64x64xbf16>
    %333 = vector.shape_cast %332 : vector<1x64x64xbf16> to vector<64x64xbf16>
    %cst_398 = arith.constant dense<0.000000e+00> : vector<64x64xf32>
    %334 = tpu.matmul %331, %333, %cst_398 {dimension_numbers = #tpu.dot_dimension_numbers<[1], [0], [0], [1], [0, 0, 1, 1], [], []>} : vector<64x64xbf16>, vector<64x64xbf16>, vector<64x64xf32> -> vector<64x64xf32>
    %335 = arith.addf %329, %334 : vector<64x64xf32>
    %c0_399 = arith.constant 0 : index
    %c0_400 = arith.constant 0 : index
    %336 = vector.load %arg8[%c0_399, %c0_400] : memref<1x64xf32, #tpu.memory_space<vmem>>, vector<1x64xf32>
    %337 = vector.broadcast %336 : vector<1x64xf32> to vector<64x64xf32>
    %338 = arith.addf %335, %337 : vector<64x64xf32>
    %cst_401 = arith.constant 0.000000e+00 : f32
    %339 = vector.broadcast %cst_401 : f32 to vector<64x64xf32>
    %340 = arith.maximumf %338, %339 : vector<64x64xf32>
    %341 = arith.truncf %340 : vector<64x64xf32> to vector<64x64xbf16>
    %342 = vector.shape_cast %341 : vector<64x64xbf16> to vector<2x32x64xbf16>
    %cst_402 = arith.constant 0.000000e+00 : f32
    %343 = vector.broadcast %cst_402 : f32 to vector<2x128xf32>
    %344 = vector.extract_strided_slice %342 {offsets = [0, 0, 0], sizes = [2, 1, 64], strides = [1, 1, 1]} : vector<2x32x64xbf16> to vector<2x1x64xbf16>
    %345 = vector.shape_cast %344 : vector<2x1x64xbf16> to vector<2x64xbf16>
    %c0_403 = arith.constant 0 : index
    %c0_404 = arith.constant 0 : index
    %c0_405 = arith.constant 0 : index
    %346 = vector.load %arg9[%c0_403, %c0_404, %c0_405] : memref<32x64x128xbf16, #tpu.memory_space<vmem>>, vector<1x64x128xbf16>
    %347 = vector.shape_cast %346 : vector<1x64x128xbf16> to vector<64x128xbf16>
    %cst_406 = arith.constant dense<0.000000e+00> : vector<2x128xf32>
    %348 = tpu.matmul %345, %347, %cst_406 {dimension_numbers = #tpu.dot_dimension_numbers<[1], [0], [0], [1], [0, 0, 1, 1], [], []>} : vector<2x64xbf16>, vector<64x128xbf16>, vector<2x128xf32> -> vector<2x128xf32>
    %349 = arith.addf %343, %348 : vector<2x128xf32>
    %350 = vector.extract_strided_slice %342 {offsets = [0, 1, 0], sizes = [2, 1, 64], strides = [1, 1, 1]} : vector<2x32x64xbf16> to vector<2x1x64xbf16>
    %351 = vector.shape_cast %350 : vector<2x1x64xbf16> to vector<2x64xbf16>
    %c1_407 = arith.constant 1 : index
    %c0_408 = arith.constant 0 : index
    %c0_409 = arith.constant 0 : index
    %352 = vector.load %arg9[%c1_407, %c0_408, %c0_409] : memref<32x64x128xbf16, #tpu.memory_space<vmem>>, vector<1x64x128xbf16>
    %353 = vector.shape_cast %352 : vector<1x64x128xbf16> to vector<64x128xbf16>
    %cst_410 = arith.constant dense<0.000000e+00> : vector<2x128xf32>
    %354 = tpu.matmul %351, %353, %cst_410 {dimension_numbers = #tpu.dot_dimension_numbers<[1], [0], [0], [1], [0, 0, 1, 1], [], []>} : vector<2x64xbf16>, vector<64x128xbf16>, vector<2x128xf32> -> vector<2x128xf32>
    %355 = arith.addf %349, %354 : vector<2x128xf32>
    %356 = vector.extract_strided_slice %342 {offsets = [0, 2, 0], sizes = [2, 1, 64], strides = [1, 1, 1]} : vector<2x32x64xbf16> to vector<2x1x64xbf16>
    %357 = vector.shape_cast %356 : vector<2x1x64xbf16> to vector<2x64xbf16>
    %c2_411 = arith.constant 2 : index
    %c0_412 = arith.constant 0 : index
    %c0_413 = arith.constant 0 : index
    %358 = vector.load %arg9[%c2_411, %c0_412, %c0_413] : memref<32x64x128xbf16, #tpu.memory_space<vmem>>, vector<1x64x128xbf16>
    %359 = vector.shape_cast %358 : vector<1x64x128xbf16> to vector<64x128xbf16>
    %cst_414 = arith.constant dense<0.000000e+00> : vector<2x128xf32>
    %360 = tpu.matmul %357, %359, %cst_414 {dimension_numbers = #tpu.dot_dimension_numbers<[1], [0], [0], [1], [0, 0, 1, 1], [], []>} : vector<2x64xbf16>, vector<64x128xbf16>, vector<2x128xf32> -> vector<2x128xf32>
    %361 = arith.addf %355, %360 : vector<2x128xf32>
    %362 = vector.extract_strided_slice %342 {offsets = [0, 3, 0], sizes = [2, 1, 64], strides = [1, 1, 1]} : vector<2x32x64xbf16> to vector<2x1x64xbf16>
    %363 = vector.shape_cast %362 : vector<2x1x64xbf16> to vector<2x64xbf16>
    %c3_415 = arith.constant 3 : index
    %c0_416 = arith.constant 0 : index
    %c0_417 = arith.constant 0 : index
    %364 = vector.load %arg9[%c3_415, %c0_416, %c0_417] : memref<32x64x128xbf16, #tpu.memory_space<vmem>>, vector<1x64x128xbf16>
    %365 = vector.shape_cast %364 : vector<1x64x128xbf16> to vector<64x128xbf16>
    %cst_418 = arith.constant dense<0.000000e+00> : vector<2x128xf32>
    %366 = tpu.matmul %363, %365, %cst_418 {dimension_numbers = #tpu.dot_dimension_numbers<[1], [0], [0], [1], [0, 0, 1, 1], [], []>} : vector<2x64xbf16>, vector<64x128xbf16>, vector<2x128xf32> -> vector<2x128xf32>
    %367 = arith.addf %361, %366 : vector<2x128xf32>
    %368 = vector.extract_strided_slice %342 {offsets = [0, 4, 0], sizes = [2, 1, 64], strides = [1, 1, 1]} : vector<2x32x64xbf16> to vector<2x1x64xbf16>
    %369 = vector.shape_cast %368 : vector<2x1x64xbf16> to vector<2x64xbf16>
    %c4_419 = arith.constant 4 : index
    %c0_420 = arith.constant 0 : index
    %c0_421 = arith.constant 0 : index
    %370 = vector.load %arg9[%c4_419, %c0_420, %c0_421] : memref<32x64x128xbf16, #tpu.memory_space<vmem>>, vector<1x64x128xbf16>
    %371 = vector.shape_cast %370 : vector<1x64x128xbf16> to vector<64x128xbf16>
    %cst_422 = arith.constant dense<0.000000e+00> : vector<2x128xf32>
    %372 = tpu.matmul %369, %371, %cst_422 {dimension_numbers = #tpu.dot_dimension_numbers<[1], [0], [0], [1], [0, 0, 1, 1], [], []>} : vector<2x64xbf16>, vector<64x128xbf16>, vector<2x128xf32> -> vector<2x128xf32>
    %373 = arith.addf %367, %372 : vector<2x128xf32>
    %374 = vector.extract_strided_slice %342 {offsets = [0, 5, 0], sizes = [2, 1, 64], strides = [1, 1, 1]} : vector<2x32x64xbf16> to vector<2x1x64xbf16>
    %375 = vector.shape_cast %374 : vector<2x1x64xbf16> to vector<2x64xbf16>
    %c5_423 = arith.constant 5 : index
    %c0_424 = arith.constant 0 : index
    %c0_425 = arith.constant 0 : index
    %376 = vector.load %arg9[%c5_423, %c0_424, %c0_425] : memref<32x64x128xbf16, #tpu.memory_space<vmem>>, vector<1x64x128xbf16>
    %377 = vector.shape_cast %376 : vector<1x64x128xbf16> to vector<64x128xbf16>
    %cst_426 = arith.constant dense<0.000000e+00> : vector<2x128xf32>
    %378 = tpu.matmul %375, %377, %cst_426 {dimension_numbers = #tpu.dot_dimension_numbers<[1], [0], [0], [1], [0, 0, 1, 1], [], []>} : vector<2x64xbf16>, vector<64x128xbf16>, vector<2x128xf32> -> vector<2x128xf32>
    %379 = arith.addf %373, %378 : vector<2x128xf32>
    %380 = vector.extract_strided_slice %342 {offsets = [0, 6, 0], sizes = [2, 1, 64], strides = [1, 1, 1]} : vector<2x32x64xbf16> to vector<2x1x64xbf16>
    %381 = vector.shape_cast %380 : vector<2x1x64xbf16> to vector<2x64xbf16>
    %c6_427 = arith.constant 6 : index
    %c0_428 = arith.constant 0 : index
    %c0_429 = arith.constant 0 : index
    %382 = vector.load %arg9[%c6_427, %c0_428, %c0_429] : memref<32x64x128xbf16, #tpu.memory_space<vmem>>, vector<1x64x128xbf16>
    %383 = vector.shape_cast %382 : vector<1x64x128xbf16> to vector<64x128xbf16>
    %cst_430 = arith.constant dense<0.000000e+00> : vector<2x128xf32>
    %384 = tpu.matmul %381, %383, %cst_430 {dimension_numbers = #tpu.dot_dimension_numbers<[1], [0], [0], [1], [0, 0, 1, 1], [], []>} : vector<2x64xbf16>, vector<64x128xbf16>, vector<2x128xf32> -> vector<2x128xf32>
    %385 = arith.addf %379, %384 : vector<2x128xf32>
    %386 = vector.extract_strided_slice %342 {offsets = [0, 7, 0], sizes = [2, 1, 64], strides = [1, 1, 1]} : vector<2x32x64xbf16> to vector<2x1x64xbf16>
    %387 = vector.shape_cast %386 : vector<2x1x64xbf16> to vector<2x64xbf16>
    %c7_431 = arith.constant 7 : index
    %c0_432 = arith.constant 0 : index
    %c0_433 = arith.constant 0 : index
    %388 = vector.load %arg9[%c7_431, %c0_432, %c0_433] : memref<32x64x128xbf16, #tpu.memory_space<vmem>>, vector<1x64x128xbf16>
    %389 = vector.shape_cast %388 : vector<1x64x128xbf16> to vector<64x128xbf16>
    %cst_434 = arith.constant dense<0.000000e+00> : vector<2x128xf32>
    %390 = tpu.matmul %387, %389, %cst_434 {dimension_numbers = #tpu.dot_dimension_numbers<[1], [0], [0], [1], [0, 0, 1, 1], [], []>} : vector<2x64xbf16>, vector<64x128xbf16>, vector<2x128xf32> -> vector<2x128xf32>
    %391 = arith.addf %385, %390 : vector<2x128xf32>
    %392 = vector.extract_strided_slice %342 {offsets = [0, 8, 0], sizes = [2, 1, 64], strides = [1, 1, 1]} : vector<2x32x64xbf16> to vector<2x1x64xbf16>
    %393 = vector.shape_cast %392 : vector<2x1x64xbf16> to vector<2x64xbf16>
    %c8_435 = arith.constant 8 : index
    %c0_436 = arith.constant 0 : index
    %c0_437 = arith.constant 0 : index
    %394 = vector.load %arg9[%c8_435, %c0_436, %c0_437] : memref<32x64x128xbf16, #tpu.memory_space<vmem>>, vector<1x64x128xbf16>
    %395 = vector.shape_cast %394 : vector<1x64x128xbf16> to vector<64x128xbf16>
    %cst_438 = arith.constant dense<0.000000e+00> : vector<2x128xf32>
    %396 = tpu.matmul %393, %395, %cst_438 {dimension_numbers = #tpu.dot_dimension_numbers<[1], [0], [0], [1], [0, 0, 1, 1], [], []>} : vector<2x64xbf16>, vector<64x128xbf16>, vector<2x128xf32> -> vector<2x128xf32>
    %397 = arith.addf %391, %396 : vector<2x128xf32>
    %398 = vector.extract_strided_slice %342 {offsets = [0, 9, 0], sizes = [2, 1, 64], strides = [1, 1, 1]} : vector<2x32x64xbf16> to vector<2x1x64xbf16>
    %399 = vector.shape_cast %398 : vector<2x1x64xbf16> to vector<2x64xbf16>
    %c9_439 = arith.constant 9 : index
    %c0_440 = arith.constant 0 : index
    %c0_441 = arith.constant 0 : index
    %400 = vector.load %arg9[%c9_439, %c0_440, %c0_441] : memref<32x64x128xbf16, #tpu.memory_space<vmem>>, vector<1x64x128xbf16>
    %401 = vector.shape_cast %400 : vector<1x64x128xbf16> to vector<64x128xbf16>
    %cst_442 = arith.constant dense<0.000000e+00> : vector<2x128xf32>
    %402 = tpu.matmul %399, %401, %cst_442 {dimension_numbers = #tpu.dot_dimension_numbers<[1], [0], [0], [1], [0, 0, 1, 1], [], []>} : vector<2x64xbf16>, vector<64x128xbf16>, vector<2x128xf32> -> vector<2x128xf32>
    %403 = arith.addf %397, %402 : vector<2x128xf32>
    %404 = vector.extract_strided_slice %342 {offsets = [0, 10, 0], sizes = [2, 1, 64], strides = [1, 1, 1]} : vector<2x32x64xbf16> to vector<2x1x64xbf16>
    %405 = vector.shape_cast %404 : vector<2x1x64xbf16> to vector<2x64xbf16>
    %c10_443 = arith.constant 10 : index
    %c0_444 = arith.constant 0 : index
    %c0_445 = arith.constant 0 : index
    %406 = vector.load %arg9[%c10_443, %c0_444, %c0_445] : memref<32x64x128xbf16, #tpu.memory_space<vmem>>, vector<1x64x128xbf16>
    %407 = vector.shape_cast %406 : vector<1x64x128xbf16> to vector<64x128xbf16>
    %cst_446 = arith.constant dense<0.000000e+00> : vector<2x128xf32>
    %408 = tpu.matmul %405, %407, %cst_446 {dimension_numbers = #tpu.dot_dimension_numbers<[1], [0], [0], [1], [0, 0, 1, 1], [], []>} : vector<2x64xbf16>, vector<64x128xbf16>, vector<2x128xf32> -> vector<2x128xf32>
    %409 = arith.addf %403, %408 : vector<2x128xf32>
    %410 = vector.extract_strided_slice %342 {offsets = [0, 11, 0], sizes = [2, 1, 64], strides = [1, 1, 1]} : vector<2x32x64xbf16> to vector<2x1x64xbf16>
    %411 = vector.shape_cast %410 : vector<2x1x64xbf16> to vector<2x64xbf16>
    %c11_447 = arith.constant 11 : index
    %c0_448 = arith.constant 0 : index
    %c0_449 = arith.constant 0 : index
    %412 = vector.load %arg9[%c11_447, %c0_448, %c0_449] : memref<32x64x128xbf16, #tpu.memory_space<vmem>>, vector<1x64x128xbf16>
    %413 = vector.shape_cast %412 : vector<1x64x128xbf16> to vector<64x128xbf16>
    %cst_450 = arith.constant dense<0.000000e+00> : vector<2x128xf32>
    %414 = tpu.matmul %411, %413, %cst_450 {dimension_numbers = #tpu.dot_dimension_numbers<[1], [0], [0], [1], [0, 0, 1, 1], [], []>} : vector<2x64xbf16>, vector<64x128xbf16>, vector<2x128xf32> -> vector<2x128xf32>
    %415 = arith.addf %409, %414 : vector<2x128xf32>
    %416 = vector.extract_strided_slice %342 {offsets = [0, 12, 0], sizes = [2, 1, 64], strides = [1, 1, 1]} : vector<2x32x64xbf16> to vector<2x1x64xbf16>
    %417 = vector.shape_cast %416 : vector<2x1x64xbf16> to vector<2x64xbf16>
    %c12_451 = arith.constant 12 : index
    %c0_452 = arith.constant 0 : index
    %c0_453 = arith.constant 0 : index
    %418 = vector.load %arg9[%c12_451, %c0_452, %c0_453] : memref<32x64x128xbf16, #tpu.memory_space<vmem>>, vector<1x64x128xbf16>
    %419 = vector.shape_cast %418 : vector<1x64x128xbf16> to vector<64x128xbf16>
    %cst_454 = arith.constant dense<0.000000e+00> : vector<2x128xf32>
    %420 = tpu.matmul %417, %419, %cst_454 {dimension_numbers = #tpu.dot_dimension_numbers<[1], [0], [0], [1], [0, 0, 1, 1], [], []>} : vector<2x64xbf16>, vector<64x128xbf16>, vector<2x128xf32> -> vector<2x128xf32>
    %421 = arith.addf %415, %420 : vector<2x128xf32>
    %422 = vector.extract_strided_slice %342 {offsets = [0, 13, 0], sizes = [2, 1, 64], strides = [1, 1, 1]} : vector<2x32x64xbf16> to vector<2x1x64xbf16>
    %423 = vector.shape_cast %422 : vector<2x1x64xbf16> to vector<2x64xbf16>
    %c13_455 = arith.constant 13 : index
    %c0_456 = arith.constant 0 : index
    %c0_457 = arith.constant 0 : index
    %424 = vector.load %arg9[%c13_455, %c0_456, %c0_457] : memref<32x64x128xbf16, #tpu.memory_space<vmem>>, vector<1x64x128xbf16>
    %425 = vector.shape_cast %424 : vector<1x64x128xbf16> to vector<64x128xbf16>
    %cst_458 = arith.constant dense<0.000000e+00> : vector<2x128xf32>
    %426 = tpu.matmul %423, %425, %cst_458 {dimension_numbers = #tpu.dot_dimension_numbers<[1], [0], [0], [1], [0, 0, 1, 1], [], []>} : vector<2x64xbf16>, vector<64x128xbf16>, vector<2x128xf32> -> vector<2x128xf32>
    %427 = arith.addf %421, %426 : vector<2x128xf32>
    %428 = vector.extract_strided_slice %342 {offsets = [0, 14, 0], sizes = [2, 1, 64], strides = [1, 1, 1]} : vector<2x32x64xbf16> to vector<2x1x64xbf16>
    %429 = vector.shape_cast %428 : vector<2x1x64xbf16> to vector<2x64xbf16>
    %c14_459 = arith.constant 14 : index
    %c0_460 = arith.constant 0 : index
    %c0_461 = arith.constant 0 : index
    %430 = vector.load %arg9[%c14_459, %c0_460, %c0_461] : memref<32x64x128xbf16, #tpu.memory_space<vmem>>, vector<1x64x128xbf16>
    %431 = vector.shape_cast %430 : vector<1x64x128xbf16> to vector<64x128xbf16>
    %cst_462 = arith.constant dense<0.000000e+00> : vector<2x128xf32>
    %432 = tpu.matmul %429, %431, %cst_462 {dimension_numbers = #tpu.dot_dimension_numbers<[1], [0], [0], [1], [0, 0, 1, 1], [], []>} : vector<2x64xbf16>, vector<64x128xbf16>, vector<2x128xf32> -> vector<2x128xf32>
    %433 = arith.addf %427, %432 : vector<2x128xf32>
    %434 = vector.extract_strided_slice %342 {offsets = [0, 15, 0], sizes = [2, 1, 64], strides = [1, 1, 1]} : vector<2x32x64xbf16> to vector<2x1x64xbf16>
    %435 = vector.shape_cast %434 : vector<2x1x64xbf16> to vector<2x64xbf16>
    %c15_463 = arith.constant 15 : index
    %c0_464 = arith.constant 0 : index
    %c0_465 = arith.constant 0 : index
    %436 = vector.load %arg9[%c15_463, %c0_464, %c0_465] : memref<32x64x128xbf16, #tpu.memory_space<vmem>>, vector<1x64x128xbf16>
    %437 = vector.shape_cast %436 : vector<1x64x128xbf16> to vector<64x128xbf16>
    %cst_466 = arith.constant dense<0.000000e+00> : vector<2x128xf32>
    %438 = tpu.matmul %435, %437, %cst_466 {dimension_numbers = #tpu.dot_dimension_numbers<[1], [0], [0], [1], [0, 0, 1, 1], [], []>} : vector<2x64xbf16>, vector<64x128xbf16>, vector<2x128xf32> -> vector<2x128xf32>
    %439 = arith.addf %433, %438 : vector<2x128xf32>
    %440 = vector.extract_strided_slice %342 {offsets = [0, 16, 0], sizes = [2, 1, 64], strides = [1, 1, 1]} : vector<2x32x64xbf16> to vector<2x1x64xbf16>
    %441 = vector.shape_cast %440 : vector<2x1x64xbf16> to vector<2x64xbf16>
    %c16 = arith.constant 16 : index
    %c0_467 = arith.constant 0 : index
    %c0_468 = arith.constant 0 : index
    %442 = vector.load %arg9[%c16, %c0_467, %c0_468] : memref<32x64x128xbf16, #tpu.memory_space<vmem>>, vector<1x64x128xbf16>
    %443 = vector.shape_cast %442 : vector<1x64x128xbf16> to vector<64x128xbf16>
    %cst_469 = arith.constant dense<0.000000e+00> : vector<2x128xf32>
    %444 = tpu.matmul %441, %443, %cst_469 {dimension_numbers = #tpu.dot_dimension_numbers<[1], [0], [0], [1], [0, 0, 1, 1], [], []>} : vector<2x64xbf16>, vector<64x128xbf16>, vector<2x128xf32> -> vector<2x128xf32>
    %445 = arith.addf %439, %444 : vector<2x128xf32>
    %446 = vector.extract_strided_slice %342 {offsets = [0, 17, 0], sizes = [2, 1, 64], strides = [1, 1, 1]} : vector<2x32x64xbf16> to vector<2x1x64xbf16>
    %447 = vector.shape_cast %446 : vector<2x1x64xbf16> to vector<2x64xbf16>
    %c17 = arith.constant 17 : index
    %c0_470 = arith.constant 0 : index
    %c0_471 = arith.constant 0 : index
    %448 = vector.load %arg9[%c17, %c0_470, %c0_471] : memref<32x64x128xbf16, #tpu.memory_space<vmem>>, vector<1x64x128xbf16>
    %449 = vector.shape_cast %448 : vector<1x64x128xbf16> to vector<64x128xbf16>
    %cst_472 = arith.constant dense<0.000000e+00> : vector<2x128xf32>
    %450 = tpu.matmul %447, %449, %cst_472 {dimension_numbers = #tpu.dot_dimension_numbers<[1], [0], [0], [1], [0, 0, 1, 1], [], []>} : vector<2x64xbf16>, vector<64x128xbf16>, vector<2x128xf32> -> vector<2x128xf32>
    %451 = arith.addf %445, %450 : vector<2x128xf32>
    %452 = vector.extract_strided_slice %342 {offsets = [0, 18, 0], sizes = [2, 1, 64], strides = [1, 1, 1]} : vector<2x32x64xbf16> to vector<2x1x64xbf16>
    %453 = vector.shape_cast %452 : vector<2x1x64xbf16> to vector<2x64xbf16>
    %c18 = arith.constant 18 : index
    %c0_473 = arith.constant 0 : index
    %c0_474 = arith.constant 0 : index
    %454 = vector.load %arg9[%c18, %c0_473, %c0_474] : memref<32x64x128xbf16, #tpu.memory_space<vmem>>, vector<1x64x128xbf16>
    %455 = vector.shape_cast %454 : vector<1x64x128xbf16> to vector<64x128xbf16>
    %cst_475 = arith.constant dense<0.000000e+00> : vector<2x128xf32>
    %456 = tpu.matmul %453, %455, %cst_475 {dimension_numbers = #tpu.dot_dimension_numbers<[1], [0], [0], [1], [0, 0, 1, 1], [], []>} : vector<2x64xbf16>, vector<64x128xbf16>, vector<2x128xf32> -> vector<2x128xf32>
    %457 = arith.addf %451, %456 : vector<2x128xf32>
    %458 = vector.extract_strided_slice %342 {offsets = [0, 19, 0], sizes = [2, 1, 64], strides = [1, 1, 1]} : vector<2x32x64xbf16> to vector<2x1x64xbf16>
    %459 = vector.shape_cast %458 : vector<2x1x64xbf16> to vector<2x64xbf16>
    %c19 = arith.constant 19 : index
    %c0_476 = arith.constant 0 : index
    %c0_477 = arith.constant 0 : index
    %460 = vector.load %arg9[%c19, %c0_476, %c0_477] : memref<32x64x128xbf16, #tpu.memory_space<vmem>>, vector<1x64x128xbf16>
    %461 = vector.shape_cast %460 : vector<1x64x128xbf16> to vector<64x128xbf16>
    %cst_478 = arith.constant dense<0.000000e+00> : vector<2x128xf32>
    %462 = tpu.matmul %459, %461, %cst_478 {dimension_numbers = #tpu.dot_dimension_numbers<[1], [0], [0], [1], [0, 0, 1, 1], [], []>} : vector<2x64xbf16>, vector<64x128xbf16>, vector<2x128xf32> -> vector<2x128xf32>
    %463 = arith.addf %457, %462 : vector<2x128xf32>
    %464 = vector.extract_strided_slice %342 {offsets = [0, 20, 0], sizes = [2, 1, 64], strides = [1, 1, 1]} : vector<2x32x64xbf16> to vector<2x1x64xbf16>
    %465 = vector.shape_cast %464 : vector<2x1x64xbf16> to vector<2x64xbf16>
    %c20 = arith.constant 20 : index
    %c0_479 = arith.constant 0 : index
    %c0_480 = arith.constant 0 : index
    %466 = vector.load %arg9[%c20, %c0_479, %c0_480] : memref<32x64x128xbf16, #tpu.memory_space<vmem>>, vector<1x64x128xbf16>
    %467 = vector.shape_cast %466 : vector<1x64x128xbf16> to vector<64x128xbf16>
    %cst_481 = arith.constant dense<0.000000e+00> : vector<2x128xf32>
    %468 = tpu.matmul %465, %467, %cst_481 {dimension_numbers = #tpu.dot_dimension_numbers<[1], [0], [0], [1], [0, 0, 1, 1], [], []>} : vector<2x64xbf16>, vector<64x128xbf16>, vector<2x128xf32> -> vector<2x128xf32>
    %469 = arith.addf %463, %468 : vector<2x128xf32>
    %470 = vector.extract_strided_slice %342 {offsets = [0, 21, 0], sizes = [2, 1, 64], strides = [1, 1, 1]} : vector<2x32x64xbf16> to vector<2x1x64xbf16>
    %471 = vector.shape_cast %470 : vector<2x1x64xbf16> to vector<2x64xbf16>
    %c21 = arith.constant 21 : index
    %c0_482 = arith.constant 0 : index
    %c0_483 = arith.constant 0 : index
    %472 = vector.load %arg9[%c21, %c0_482, %c0_483] : memref<32x64x128xbf16, #tpu.memory_space<vmem>>, vector<1x64x128xbf16>
    %473 = vector.shape_cast %472 : vector<1x64x128xbf16> to vector<64x128xbf16>
    %cst_484 = arith.constant dense<0.000000e+00> : vector<2x128xf32>
    %474 = tpu.matmul %471, %473, %cst_484 {dimension_numbers = #tpu.dot_dimension_numbers<[1], [0], [0], [1], [0, 0, 1, 1], [], []>} : vector<2x64xbf16>, vector<64x128xbf16>, vector<2x128xf32> -> vector<2x128xf32>
    %475 = arith.addf %469, %474 : vector<2x128xf32>
    %476 = vector.extract_strided_slice %342 {offsets = [0, 22, 0], sizes = [2, 1, 64], strides = [1, 1, 1]} : vector<2x32x64xbf16> to vector<2x1x64xbf16>
    %477 = vector.shape_cast %476 : vector<2x1x64xbf16> to vector<2x64xbf16>
    %c22 = arith.constant 22 : index
    %c0_485 = arith.constant 0 : index
    %c0_486 = arith.constant 0 : index
    %478 = vector.load %arg9[%c22, %c0_485, %c0_486] : memref<32x64x128xbf16, #tpu.memory_space<vmem>>, vector<1x64x128xbf16>
    %479 = vector.shape_cast %478 : vector<1x64x128xbf16> to vector<64x128xbf16>
    %cst_487 = arith.constant dense<0.000000e+00> : vector<2x128xf32>
    %480 = tpu.matmul %477, %479, %cst_487 {dimension_numbers = #tpu.dot_dimension_numbers<[1], [0], [0], [1], [0, 0, 1, 1], [], []>} : vector<2x64xbf16>, vector<64x128xbf16>, vector<2x128xf32> -> vector<2x128xf32>
    %481 = arith.addf %475, %480 : vector<2x128xf32>
    %482 = vector.extract_strided_slice %342 {offsets = [0, 23, 0], sizes = [2, 1, 64], strides = [1, 1, 1]} : vector<2x32x64xbf16> to vector<2x1x64xbf16>
    %483 = vector.shape_cast %482 : vector<2x1x64xbf16> to vector<2x64xbf16>
    %c23 = arith.constant 23 : index
    %c0_488 = arith.constant 0 : index
    %c0_489 = arith.constant 0 : index
    %484 = vector.load %arg9[%c23, %c0_488, %c0_489] : memref<32x64x128xbf16, #tpu.memory_space<vmem>>, vector<1x64x128xbf16>
    %485 = vector.shape_cast %484 : vector<1x64x128xbf16> to vector<64x128xbf16>
    %cst_490 = arith.constant dense<0.000000e+00> : vector<2x128xf32>
    %486 = tpu.matmul %483, %485, %cst_490 {dimension_numbers = #tpu.dot_dimension_numbers<[1], [0], [0], [1], [0, 0, 1, 1], [], []>} : vector<2x64xbf16>, vector<64x128xbf16>, vector<2x128xf32> -> vector<2x128xf32>
    %487 = arith.addf %481, %486 : vector<2x128xf32>
    %488 = vector.extract_strided_slice %342 {offsets = [0, 24, 0], sizes = [2, 1, 64], strides = [1, 1, 1]} : vector<2x32x64xbf16> to vector<2x1x64xbf16>
    %489 = vector.shape_cast %488 : vector<2x1x64xbf16> to vector<2x64xbf16>
    %c24 = arith.constant 24 : index
    %c0_491 = arith.constant 0 : index
    %c0_492 = arith.constant 0 : index
    %490 = vector.load %arg9[%c24, %c0_491, %c0_492] : memref<32x64x128xbf16, #tpu.memory_space<vmem>>, vector<1x64x128xbf16>
    %491 = vector.shape_cast %490 : vector<1x64x128xbf16> to vector<64x128xbf16>
    %cst_493 = arith.constant dense<0.000000e+00> : vector<2x128xf32>
    %492 = tpu.matmul %489, %491, %cst_493 {dimension_numbers = #tpu.dot_dimension_numbers<[1], [0], [0], [1], [0, 0, 1, 1], [], []>} : vector<2x64xbf16>, vector<64x128xbf16>, vector<2x128xf32> -> vector<2x128xf32>
    %493 = arith.addf %487, %492 : vector<2x128xf32>
    %494 = vector.extract_strided_slice %342 {offsets = [0, 25, 0], sizes = [2, 1, 64], strides = [1, 1, 1]} : vector<2x32x64xbf16> to vector<2x1x64xbf16>
    %495 = vector.shape_cast %494 : vector<2x1x64xbf16> to vector<2x64xbf16>
    %c25 = arith.constant 25 : index
    %c0_494 = arith.constant 0 : index
    %c0_495 = arith.constant 0 : index
    %496 = vector.load %arg9[%c25, %c0_494, %c0_495] : memref<32x64x128xbf16, #tpu.memory_space<vmem>>, vector<1x64x128xbf16>
    %497 = vector.shape_cast %496 : vector<1x64x128xbf16> to vector<64x128xbf16>
    %cst_496 = arith.constant dense<0.000000e+00> : vector<2x128xf32>
    %498 = tpu.matmul %495, %497, %cst_496 {dimension_numbers = #tpu.dot_dimension_numbers<[1], [0], [0], [1], [0, 0, 1, 1], [], []>} : vector<2x64xbf16>, vector<64x128xbf16>, vector<2x128xf32> -> vector<2x128xf32>
    %499 = arith.addf %493, %498 : vector<2x128xf32>
    %500 = vector.extract_strided_slice %342 {offsets = [0, 26, 0], sizes = [2, 1, 64], strides = [1, 1, 1]} : vector<2x32x64xbf16> to vector<2x1x64xbf16>
    %501 = vector.shape_cast %500 : vector<2x1x64xbf16> to vector<2x64xbf16>
    %c26 = arith.constant 26 : index
    %c0_497 = arith.constant 0 : index
    %c0_498 = arith.constant 0 : index
    %502 = vector.load %arg9[%c26, %c0_497, %c0_498] : memref<32x64x128xbf16, #tpu.memory_space<vmem>>, vector<1x64x128xbf16>
    %503 = vector.shape_cast %502 : vector<1x64x128xbf16> to vector<64x128xbf16>
    %cst_499 = arith.constant dense<0.000000e+00> : vector<2x128xf32>
    %504 = tpu.matmul %501, %503, %cst_499 {dimension_numbers = #tpu.dot_dimension_numbers<[1], [0], [0], [1], [0, 0, 1, 1], [], []>} : vector<2x64xbf16>, vector<64x128xbf16>, vector<2x128xf32> -> vector<2x128xf32>
    %505 = arith.addf %499, %504 : vector<2x128xf32>
    %506 = vector.extract_strided_slice %342 {offsets = [0, 27, 0], sizes = [2, 1, 64], strides = [1, 1, 1]} : vector<2x32x64xbf16> to vector<2x1x64xbf16>
    %507 = vector.shape_cast %506 : vector<2x1x64xbf16> to vector<2x64xbf16>
    %c27 = arith.constant 27 : index
    %c0_500 = arith.constant 0 : index
    %c0_501 = arith.constant 0 : index
    %508 = vector.load %arg9[%c27, %c0_500, %c0_501] : memref<32x64x128xbf16, #tpu.memory_space<vmem>>, vector<1x64x128xbf16>
    %509 = vector.shape_cast %508 : vector<1x64x128xbf16> to vector<64x128xbf16>
    %cst_502 = arith.constant dense<0.000000e+00> : vector<2x128xf32>
    %510 = tpu.matmul %507, %509, %cst_502 {dimension_numbers = #tpu.dot_dimension_numbers<[1], [0], [0], [1], [0, 0, 1, 1], [], []>} : vector<2x64xbf16>, vector<64x128xbf16>, vector<2x128xf32> -> vector<2x128xf32>
    %511 = arith.addf %505, %510 : vector<2x128xf32>
    %512 = vector.extract_strided_slice %342 {offsets = [0, 28, 0], sizes = [2, 1, 64], strides = [1, 1, 1]} : vector<2x32x64xbf16> to vector<2x1x64xbf16>
    %513 = vector.shape_cast %512 : vector<2x1x64xbf16> to vector<2x64xbf16>
    %c28 = arith.constant 28 : index
    %c0_503 = arith.constant 0 : index
    %c0_504 = arith.constant 0 : index
    %514 = vector.load %arg9[%c28, %c0_503, %c0_504] : memref<32x64x128xbf16, #tpu.memory_space<vmem>>, vector<1x64x128xbf16>
    %515 = vector.shape_cast %514 : vector<1x64x128xbf16> to vector<64x128xbf16>
    %cst_505 = arith.constant dense<0.000000e+00> : vector<2x128xf32>
    %516 = tpu.matmul %513, %515, %cst_505 {dimension_numbers = #tpu.dot_dimension_numbers<[1], [0], [0], [1], [0, 0, 1, 1], [], []>} : vector<2x64xbf16>, vector<64x128xbf16>, vector<2x128xf32> -> vector<2x128xf32>
    %517 = arith.addf %511, %516 : vector<2x128xf32>
    %518 = vector.extract_strided_slice %342 {offsets = [0, 29, 0], sizes = [2, 1, 64], strides = [1, 1, 1]} : vector<2x32x64xbf16> to vector<2x1x64xbf16>
    %519 = vector.shape_cast %518 : vector<2x1x64xbf16> to vector<2x64xbf16>
    %c29 = arith.constant 29 : index
    %c0_506 = arith.constant 0 : index
    %c0_507 = arith.constant 0 : index
    %520 = vector.load %arg9[%c29, %c0_506, %c0_507] : memref<32x64x128xbf16, #tpu.memory_space<vmem>>, vector<1x64x128xbf16>
    %521 = vector.shape_cast %520 : vector<1x64x128xbf16> to vector<64x128xbf16>
    %cst_508 = arith.constant dense<0.000000e+00> : vector<2x128xf32>
    %522 = tpu.matmul %519, %521, %cst_508 {dimension_numbers = #tpu.dot_dimension_numbers<[1], [0], [0], [1], [0, 0, 1, 1], [], []>} : vector<2x64xbf16>, vector<64x128xbf16>, vector<2x128xf32> -> vector<2x128xf32>
    %523 = arith.addf %517, %522 : vector<2x128xf32>
    %524 = vector.extract_strided_slice %342 {offsets = [0, 30, 0], sizes = [2, 1, 64], strides = [1, 1, 1]} : vector<2x32x64xbf16> to vector<2x1x64xbf16>
    %525 = vector.shape_cast %524 : vector<2x1x64xbf16> to vector<2x64xbf16>
    %c30 = arith.constant 30 : index
    %c0_509 = arith.constant 0 : index
    %c0_510 = arith.constant 0 : index
    %526 = vector.load %arg9[%c30, %c0_509, %c0_510] : memref<32x64x128xbf16, #tpu.memory_space<vmem>>, vector<1x64x128xbf16>
    %527 = vector.shape_cast %526 : vector<1x64x128xbf16> to vector<64x128xbf16>
    %cst_511 = arith.constant dense<0.000000e+00> : vector<2x128xf32>
    %528 = tpu.matmul %525, %527, %cst_511 {dimension_numbers = #tpu.dot_dimension_numbers<[1], [0], [0], [1], [0, 0, 1, 1], [], []>} : vector<2x64xbf16>, vector<64x128xbf16>, vector<2x128xf32> -> vector<2x128xf32>
    %529 = arith.addf %523, %528 : vector<2x128xf32>
    %530 = vector.extract_strided_slice %342 {offsets = [0, 31, 0], sizes = [2, 1, 64], strides = [1, 1, 1]} : vector<2x32x64xbf16> to vector<2x1x64xbf16>
    %531 = vector.shape_cast %530 : vector<2x1x64xbf16> to vector<2x64xbf16>
    %c31 = arith.constant 31 : index
    %c0_512 = arith.constant 0 : index
    %c0_513 = arith.constant 0 : index
    %532 = vector.load %arg9[%c31, %c0_512, %c0_513] : memref<32x64x128xbf16, #tpu.memory_space<vmem>>, vector<1x64x128xbf16>
    %533 = vector.shape_cast %532 : vector<1x64x128xbf16> to vector<64x128xbf16>
    %cst_514 = arith.constant dense<0.000000e+00> : vector<2x128xf32>
    %534 = tpu.matmul %531, %533, %cst_514 {dimension_numbers = #tpu.dot_dimension_numbers<[1], [0], [0], [1], [0, 0, 1, 1], [], []>} : vector<2x64xbf16>, vector<64x128xbf16>, vector<2x128xf32> -> vector<2x128xf32>
    %535 = arith.addf %529, %534 : vector<2x128xf32>
    %c0_515 = arith.constant 0 : index
    %c0_516 = arith.constant 0 : index
    %536 = vector.load %arg10[%c0_515, %c0_516] : memref<1x128xf32, #tpu.memory_space<vmem>>, vector<1x128xf32>
    %537 = vector.broadcast %536 : vector<1x128xf32> to vector<2x128xf32>
    %538 = arith.addf %535, %537 : vector<2x128xf32>
    %cst_517 = arith.constant 0.000000e+00 : f32
    %539 = vector.broadcast %cst_517 : f32 to vector<2x128xf32>
    %540 = arith.maximumf %538, %539 : vector<2x128xf32>
    %541 = arith.truncf %540 : vector<2x128xf32> to vector<2x128xbf16>
    %c0_518 = arith.constant 0 : index
    %c0_519 = arith.constant 0 : index
    %542 = vector.load %arg11[%c0_518, %c0_519] : memref<128x256xbf16, #tpu.memory_space<vmem>>, vector<128x256xbf16>
    %cst_520 = arith.constant dense<0.000000e+00> : vector<2x256xf32>
    %543 = tpu.matmul %541, %542, %cst_520 {dimension_numbers = #tpu.dot_dimension_numbers<[1], [0], [0], [1], [0, 0, 1, 1], [], []>} : vector<2x128xbf16>, vector<128x256xbf16>, vector<2x256xf32> -> vector<2x256xf32>
    %c0_521 = arith.constant 0 : index
    %c0_522 = arith.constant 0 : index
    %544 = vector.load %arg2[%c0_521, %c0_522] : memref<2x8xf32, #tpu.memory_space<vmem>>, vector<2x8xf32>
    %c0_523 = arith.constant 0 : index
    %c0_524 = arith.constant 0 : index
    %545 = vector.load %arg12[%c0_523, %c0_524] : memref<8x256xf32, #tpu.memory_space<vmem>>, vector<8x256xf32>
    %cst_525 = arith.constant dense<0.000000e+00> : vector<2x256xf32>
    %546 = tpu.matmul %544, %545, %cst_525 {dimension_numbers = #tpu.dot_dimension_numbers<[1], [0], [0], [1], [0, 0, 1, 1], [], []>} : vector<2x8xf32>, vector<8x256xf32>, vector<2x256xf32> -> vector<2x256xf32>
    %547 = arith.addf %543, %546 : vector<2x256xf32>
    %c0_526 = arith.constant 0 : index
    %c0_527 = arith.constant 0 : index
    %548 = vector.load %arg13[%c0_526, %c0_527] : memref<1x256xf32, #tpu.memory_space<vmem>>, vector<1x256xf32>
    %549 = vector.broadcast %548 : vector<1x256xf32> to vector<2x256xf32>
    %550 = arith.addf %547, %549 : vector<2x256xf32>
    %cst_528 = arith.constant 0.000000e+00 : f32
    %551 = vector.broadcast %cst_528 : f32 to vector<2x256xf32>
    %552 = arith.maximumf %550, %551 : vector<2x256xf32>
    %553 = arith.truncf %552 : vector<2x256xf32> to vector<2x256xbf16>
    %c0_529 = arith.constant 0 : index
    %c0_530 = arith.constant 0 : index
    %554 = vector.load %arg14[%c0_529, %c0_530] : memref<256x128xbf16, #tpu.memory_space<vmem>>, vector<256x128xbf16>
    %cst_531 = arith.constant dense<0.000000e+00> : vector<2x128xf32>
    %555 = tpu.matmul %553, %554, %cst_531 {dimension_numbers = #tpu.dot_dimension_numbers<[1], [0], [0], [1], [0, 0, 1, 1], [], []>} : vector<2x256xbf16>, vector<256x128xbf16>, vector<2x128xf32> -> vector<2x128xf32>
    %c0_532 = arith.constant 0 : index
    %c0_533 = arith.constant 0 : index
    %556 = vector.load %arg15[%c0_532, %c0_533] : memref<1x128xf32, #tpu.memory_space<vmem>>, vector<1x128xf32>
    %557 = vector.broadcast %556 : vector<1x128xf32> to vector<2x128xf32>
    %558 = arith.addf %555, %557 : vector<2x128xf32>
    %cst_534 = arith.constant 0.000000e+00 : f32
    %559 = vector.broadcast %cst_534 : f32 to vector<2x128xf32>
    %560 = arith.maximumf %558, %559 : vector<2x128xf32>
    %561 = arith.truncf %560 : vector<2x128xf32> to vector<2x128xbf16>
    %c0_535 = arith.constant 0 : index
    %c0_536 = arith.constant 0 : index
    %562 = vector.load %arg16[%c0_535, %c0_536] : memref<128x128xbf16, #tpu.memory_space<vmem>>, vector<128x128xbf16>
    %cst_537 = arith.constant dense<0.000000e+00> : vector<2x128xf32>
    %563 = tpu.matmul %561, %562, %cst_537 {dimension_numbers = #tpu.dot_dimension_numbers<[1], [0], [0], [1], [0, 0, 1, 1], [], []>} : vector<2x128xbf16>, vector<128x128xbf16>, vector<2x128xf32> -> vector<2x128xf32>
    %c0_538 = arith.constant 0 : index
    %c0_539 = arith.constant 0 : index
    %564 = vector.load %arg17[%c0_538, %c0_539] : memref<1x128xf32, #tpu.memory_space<vmem>>, vector<1x128xf32>
    %565 = vector.broadcast %564 : vector<1x128xf32> to vector<2x128xf32>
    %566 = arith.addf %563, %565 : vector<2x128xf32>
    %c0_540 = arith.constant 0 : index
    %c0_541 = arith.constant 0 : index
    %567 = vector.load %arg18[%c0_540, %c0_541] : memref<2x128xf32, #tpu.memory_space<vmem>>, vector<2x128xf32>
    tpu.vector_store %arg18[%c0_540, %c0_541], %566 {strides = array<i32>} : memref<2x128xf32, #tpu.memory_space<vmem>>, vector<2x128xf32>,
    return
  }
  func.func @transform_0(%arg0: i32) -> (i32, i32, i32, i32, i32) {
    %c0_i32 = arith.constant 0 : i32
    %c0_i32_0 = arith.constant 0 : i32
    %c0_i32_1 = arith.constant 0 : i32
    %c0_i32_2 = arith.constant 0 : i32
    %c0_i32_3 = arith.constant 0 : i32
    return %arg0, %c0_i32, %c0_i32_0, %c0_i32_1, %c0_i32_2 : i32, i32, i32, i32, i32
  }
  func.func @transform_1(%arg0: i32) -> (i32, i32) {
    %c0_i32 = arith.constant 0 : i32
    %c0_i32_0 = arith.constant 0 : i32
    return %arg0, %c0_i32 : i32, i32
  }
  func.func @transform_2(%arg0: i32) -> (i32, i32, i32) {
    %c0_i32 = arith.constant 0 : i32
    %c0_i32_0 = arith.constant 0 : i32
    %c0_i32_1 = arith.constant 0 : i32
    %c0_i32_2 = arith.constant 0 : i32
    return %c0_i32, %c0_i32_0, %c0_i32_1 : i32, i32, i32
  }
  func.func @transform_3(%arg0: i32) -> (i32, i32) {
    %c0_i32 = arith.constant 0 : i32
    %c0_i32_0 = arith.constant 0 : i32
    %c0_i32_1 = arith.constant 0 : i32
    return %c0_i32, %c0_i32_0 : i32, i32
  }
  func.func @transform_4(%arg0: i32) -> (i32, i32, i32) {
    %c0_i32 = arith.constant 0 : i32
    %c0_i32_0 = arith.constant 0 : i32
    %c0_i32_1 = arith.constant 0 : i32
    %c0_i32_2 = arith.constant 0 : i32
    return %c0_i32, %c0_i32_0, %c0_i32_1 : i32, i32, i32
  }
  func.func @transform_5(%arg0: i32) -> (i32, i32) {
    %c0_i32 = arith.constant 0 : i32
    %c0_i32_0 = arith.constant 0 : i32
    %c0_i32_1 = arith.constant 0 : i32
    return %c0_i32, %c0_i32_0 : i32, i32
  }
  func.func @transform_6(%arg0: i32) -> (i32, i32, i32) {
    %c0_i32 = arith.constant 0 : i32
    %c0_i32_0 = arith.constant 0 : i32
    %c0_i32_1 = arith.constant 0 : i32
    %c0_i32_2 = arith.constant 0 : i32
    return %c0_i32, %c0_i32_0, %c0_i32_1 : i32, i32, i32
  }
  func.func @transform_7(%arg0: i32) -> (i32, i32) {
    %c0_i32 = arith.constant 0 : i32
    %c0_i32_0 = arith.constant 0 : i32
    %c0_i32_1 = arith.constant 0 : i32
    return %c0_i32, %c0_i32_0 : i32, i32
  }
  func.func @transform_8(%arg0: i32) -> (i32, i32, i32) {
    %c0_i32 = arith.constant 0 : i32
    %c0_i32_0 = arith.constant 0 : i32
    %c0_i32_1 = arith.constant 0 : i32
    %c0_i32_2 = arith.constant 0 : i32
    return %c0_i32, %c0_i32_0, %c0_i32_1 : i32, i32, i32
  }
  func.func @transform_9(%arg0: i32) -> (i32, i32) {
    %c0_i32 = arith.constant 0 : i32
    %c0_i32_0 = arith.constant 0 : i32
    %c0_i32_1 = arith.constant 0 : i32
    return %c0_i32, %c0_i32_0 : i32, i32
  }
  func.func @transform_10(%arg0: i32) -> (i32, i32) {
    %c0_i32 = arith.constant 0 : i32
    %c0_i32_0 = arith.constant 0 : i32
    %c0_i32_1 = arith.constant 0 : i32
    return %c0_i32, %c0_i32_0 : i32, i32
  }
  func.func @transform_11(%arg0: i32) -> (i32, i32) {
    %c0_i32 = arith.constant 0 : i32
    %c0_i32_0 = arith.constant 0 : i32
    %c0_i32_1 = arith.constant 0 : i32
    return %c0_i32, %c0_i32_0 : i32, i32
  }
  func.func @transform_12(%arg0: i32) -> (i32, i32) {
    %c0_i32 = arith.constant 0 : i32
    %c0_i32_0 = arith.constant 0 : i32
    %c0_i32_1 = arith.constant 0 : i32
    return %c0_i32, %c0_i32_0 : i32, i32
  }
  func.func @transform_13(%arg0: i32) -> (i32, i32) {
    %c0_i32 = arith.constant 0 : i32
    %c0_i32_0 = arith.constant 0 : i32
    %c0_i32_1 = arith.constant 0 : i32
    return %c0_i32, %c0_i32_0 : i32, i32
  }
  func.func @transform_14(%arg0: i32) -> (i32, i32) {
    %c0_i32 = arith.constant 0 : i32
    %c0_i32_0 = arith.constant 0 : i32
    %c0_i32_1 = arith.constant 0 : i32
    return %c0_i32, %c0_i32_0 : i32, i32
  }
  func.func @transform_15(%arg0: i32) -> (i32, i32) {
    %c0_i32 = arith.constant 0 : i32
    %c0_i32_0 = arith.constant 0 : i32
    %c0_i32_1 = arith.constant 0 : i32
    return %c0_i32, %c0_i32_0 : i32, i32
  }
  func.func @transform_16(%arg0: i32) -> (i32, i32) {
    %c0_i32 = arith.constant 0 : i32
    %c0_i32_0 = arith.constant 0 : i32
    %c0_i32_1 = arith.constant 0 : i32
    return %c0_i32, %c0_i32_0 : i32, i32
  }
  func.func @transform_17(%arg0: i32) -> (i32, i32) {
    %c0_i32 = arith.constant 0 : i32
    %c0_i32_0 = arith.constant 0 : i32
    return %arg0, %c0_i32 : i32, i32
  }
}

</mosaic_0001>

<bundles_post_ra>
// kernel: ppo_value_forward.1
= control target key start
LH: loop header
LB: loop body
LE: loop exit
PB: predicated region body
PF: predicated region fallthrough
CT: control target
= control target key end

     0   :  { %vm279_vm0 = vcmask 785408   ;;  %vm1034_vm1 = vsmask.f32 3328  ;;  %vm1035_vm2 = vsmask.f32 7440  ;;  %vm57_vm4 = vcmask 257024   ;;  %s19845_s2 = inlined_call_operand.vmem [shape: bf16[4,96,32], index: 2, kind: input, shape index: {}]   ;;  %s19846_s0 = inlined_call_operand.vmem [shape: bf16[2,4,5,9,96], index: 0, kind: input, shape index: {}]   ;;  %s19847_s3 = inlined_call_operand.vmem [shape: f32[1,32], index: 3, kind: input, shape index: {}]   ;;  %s19848_s4 = inlined_call_operand.vmem [shape: bf16[16,32,64], index: 4, kind: input, shape index: {}]   ;;  %s19849_s6 = inlined_call_operand.vmem [shape: bf16[9,64,64], index: 6, kind: input, shape index: {}]   ;;  %s19850_s5 = inlined_call_operand.vmem [shape: f32[1,64], index: 5, kind: input, shape index: {}]   ;;  %s19851_s8 = inlined_call_operand.vmem [shape: bf16[32,64,128], index: 8, kind: input, shape index: {}]   ;;  %s19852_s7 = inlined_call_operand.vmem [shape: f32[1,64], index: 7, kind: input, shape index: {}]   ;;  %s19853_s11 = inlined_call_operand.vmem [shape: f32[8,256], index: 11, kind: input, shape index: {}]   ;;  %s19854_s1 = inlined_call_operand.vmem [shape: f32[2,8], index: 1, kind: input, shape index: {}]   ;;  %s19855_s10 = inlined_call_operand.vmem [shape: bf16[128,256], index: 10, kind: input, shape index: {}]   ;;  %s19856_s13 = inlined_call_operand.vmem [shape: bf16[256,128], index: 13, kind: input, shape index: {}]   ;;  %s19857_s9 = inlined_call_operand.vmem [shape: f32[1,128], index: 9, kind: input, shape index: {}]   ;;  %s19858_s15 = inlined_call_operand.vmem [shape: bf16[128,128], index: 15, kind: input, shape index: {}]   ;;  %s19859_s12 = inlined_call_operand.vmem [shape: f32[1,256], index: 12, kind: input, shape index: {}]   ;;  %s19860_s14 = inlined_call_operand.vmem [shape: f32[1,128], index: 14, kind: input, shape index: {}]   ;;  %s19861_s16 = inlined_call_operand.vmem [shape: f32[1,128], index: 16, kind: input, shape index: {}]   ;;  %s19862_s17 = inlined_call_operand.vmem [shape: f32[2,128], index: 17, kind: output, shape index: {}]  }
   0x1   :  { %19883 = sst [smem:[#allocation34_spill]] %s19845_s2  ;;  %vm15867_vm3 = vmor %vm1034_vm1, %vm1035_vm2  ;;  %vm59_vm5 = vcmask 253952   ;;  %vm945_vm6 = vsmask.f32 7938  ;;  %vm951_vm7 = vsmask.f32 256 }
   0x2   :  { %19884 = sst [smem:[#allocation35_spill]] %s19846_s0  ;;  %vm16668_vm8 = vmand %vm57_vm4, %vm945_vm6  ;;  %vm4487_vm10 = vcmask 1042432   ;;  %vm4488_vm11 = vcmask 1046532   ;;  %vm4034_vm13 = vcmask 261120   ;;  %vm155_vm14 = vcmask 519168  }
   0x3   :  { %s19885_s26 = sld [smem:[#allocation34_spill]]  ;;  %vm16674_vm9 = vmand %vm59_vm5, %vm951_vm7  ;;  %vm157_vm15 = vcmask 516096   ;;  %vm7351_vm2 = vcmask 523264  }
   0x4   :  { %s19886_s19 = sld [smem:[#allocation35_spill]]  ;;  %vm16875_vm12 = vmor %vm4487_vm10, %vm4488_vm11 }
   0x5   :  { %vm18385_vm1 = vmand %vm157_vm15, %vm951_vm7 }
   0x9   :  { %v15158_v0 = vld [vmem:[%s19885_s26 + $0x58] sm:$0xff]   ;;  %v15159_v1 = vld [vmem:[%s19885_s26 + $0x28] sm:$0xff]   ;;  %v15160_v2 = vld [vmem:[%s19885_s26 + $0x50] sm:$0xff]  }
   0xa   :  { %14083 = vmatprep.subr.bf16.mxu0 %v15158_v0  ;;  %14103 = vmatprep.subr.bf16.mxu1 %v15159_v1  ;;  %v15161_v3 = vld [vmem:[%s19885_s26 + $0x20] sm:$0xff]   ;;  %v15162_v4 = vld [vmem:[%s19885_s26 + $0x48] sm:$0xff]   ;;  %v15163_v5 = vld [vmem:[%s19885_s26 + $0x18] sm:$0xff]  }
   0xb   :  { %14084 = vmatpush3.bf16.msra.mxu0 %v15158_v0  ;;  %14104 = vmatpush3.bf16.msra.mxu1 %v15159_v1  ;;  %v15164_v6 = vld [vmem:[%s19885_s26 + $0x40] sm:$0xff]   ;;  %v15165_v7 = vld [vmem:[%s19885_s26 + $0x10] sm:$0xff]   ;;  %v15166_v8 = vld [vmem:[%s19885_s26 + $0x38] sm:$0xff]  }
   0xc   :  { %14085 = vmatprep.subr.bf16.mxu0 %v15160_v2  ;;  %14105 = vmatprep.subr.bf16.mxu1 %v15161_v3  ;;  %v15167_v9 = vld [vmem:[%s19885_s26 + $0x8] sm:$0xff]   ;;  %v15168_v12 = vld [vmem:[%s19885_s26 + $0x30] sm:$0xff]   ;;  %v15169_v13 = vld [vmem:[%s19885_s26] sm:$0xff]  }
   0xd   :  { %v15170_v10 = vld [vmem:[%s19886_s19 + $0x28] ss:$8 sps:$4 sm:$0xff]   ;;  %v15172_v14 = vld [vmem:[%s19886_s19 + $0x38] ss:$8 sps:$4 sm:$0xff]   ;;  %v1019_v46 = vld [vmem:[%s19886_s19 + $0x4] sm:$0x1] }
   0xe   :  { %v15171_v11 = vld [vmem:[%s19886_s19] ss:$8 sps:$4 sm:$0xff]   ;;  %14095 = vmatprep.mubr.msk.bf16.mxu0 %vm279_vm0, %v15170_v10  ;;  %v15175_v16 = vld [vmem:[%s19885_s26 + $0xb8] sm:$0xff]   ;;  %v15177_v19 = vld [vmem:[%s19885_s26 + $0xb0] sm:$0xff]   ;;  %v1047_v52 = vshll.u32 %v1019_v46, 16 }
   0xf   :  { %14086 = vmatpush3.bf16.msra.mxu0 %v15160_v2  ;;  %14106 = vmatpush3.bf16.msra.mxu1 %v15161_v3  ;;  %v15174_v15 = vld [vmem:[%s19885_s26 + $0x88] sm:$0xff]   ;;  %v15173_v17 = vld [vmem:[%s19886_s19 + $0x10] ss:$8 sps:$4 sm:$0xff]   ;;  %v15176_v18 = vld [vmem:[%s19885_s26 + $0x80] sm:$0xff]  }
  0x10   :  { %14087 = vmatprep.subr.bf16.mxu0 %v15162_v4  ;;  %14107 = vmatprep.subr.bf16.mxu1 %v15163_v5  ;;  %v15180_v20 = vld [vmem:[%s19886_s19 + $0xc8] ss:$8 sps:$4 sm:$0xff]   ;;  %v15178_v22 = vld [vmem:[%s19885_s26 + $0x78] sm:$0xff]   ;;  %v15185_v27 = vld [vmem:[%s19885_s26 + $0xa0] sm:$0xff]   ;;  %v1049_v60 = vrot.slane %v1047_v52, 5 }
  0x11   :  { %14115 = vmatprep.mubr.msk.bf16.mxu1 %vm279_vm0, %v15171_v11  ;;  %v15181_v21 = vld [vmem:[%s19886_s19 + $0xa0] ss:$8 sps:$4 sm:$0xff]   ;;  %v15183_v25 = vld [vmem:[%s19886_s19 + $0xb0] ss:$8 sps:$4 sm:$0xff]   ;;  %v1021_v49 = vld [vmem:[%s19886_s19 + $0xc] sm:$0x1] }
  0x12   :  { %v15179_v23 = vld [vmem:[%s19885_s26 + $0xa8] sm:$0xff]   ;;  %v15182_v24 = vld [vmem:[%s19886_s19 + $0xd8] ss:$8 sps:$4 sm:$0xff]   ;;  %v15184_v26 = vld [vmem:[%s19885_s26 + $0x70] sm:$0xff]   ;;  %v1061_v56 = vshll.u32 %v1021_v49, 16 }
  0x13   :  { %14088 = vmatpush3.bf16.msra.mxu0 %v15162_v4  ;;  %14108 = vmatpush3.bf16.msra.mxu1 %v15163_v5  ;;  %v15190_v28 = vld [vmem:[%s19886_s19 + $0x50] ss:$8 sps:$4 sm:$0xff]   ;;  %v15186_v30 = vld [vmem:[%s19885_s26 + $0x68] sm:$0xff]   ;;  %v15188_v32 = vld [vmem:[%s19885_s26 + $0x60] sm:$0xff]  }
  0x14   :  { %14089 = vmatprep.subr.bf16.mxu0 %v15164_v6  ;;  %14109 = vmatprep.subr.bf16.mxu1 %v15165_v7  ;;  %v15192_v29 = vld [vmem:[%s19886_s19 + $0x78] ss:$8 sps:$4 sm:$0xff]   ;;  %v15189_v33 = vld [vmem:[%s19885_s26 + $0x90] sm:$0xff]   ;;  %v15194_v36 = vld [vmem:[%s19885_s26 + $0x28] sm:$0xff]   ;;  %v1063_v0 = vrot.slane %v1061_v56, 5 }
  0x15   :  { %v15187_v31 = vld [vmem:[%s19885_s26 + $0x98] sm:$0xff]   ;;  %v15191_v34 = vld [vmem:[%s19886_s19 + $0x60] ss:$8 sps:$4 sm:$0xff]   ;;  %v15196_v38 = vld [vmem:[%s19885_s26 + $0x50] sm:$0xff]  }
  0x16   :  { %v15193_v35 = vld [vmem:[%s19885_s26 + $0x58] sm:$0xff]   ;;  %v15195_v37 = vld [vmem:[%s19886_s19 + $0x88] ss:$8 sps:$4 sm:$0xff]   ;;  %v15197_v39 = vld [vmem:[%s19885_s26 + $0x20] sm:$0xff]  }
  0x17   :  { %14090 = vmatpush3.bf16.msra.mxu0 %v15164_v6  ;;  %14110 = vmatpush3.bf16.msra.mxu1 %v15165_v7  ;;  %v15198_v40 = vld [vmem:[%s19886_s19 + $0xf0] ss:$8 sps:$4 sm:$0xff]   ;;  %v15200_v41 = vld [vmem:[%s19885_s26 + $0x48] sm:$0xff]   ;;  %v1018_v45 = vld [vmem:[%s19886_s19] sm:$0xf] }
  0x18   :  { %14091 = vmatprep.subr.bf16.mxu0 %v15166_v8  ;;  %14111 = vmatprep.subr.bf16.mxu1 %v15167_v9  ;;  %v15202_v42 = vld [vmem:[%s19886_s19 + $0x118] ss:$8 sps:$4 sm:$0xff]   ;;  %v1020_v47 = vld [vmem:[%s19886_s19 + $0x8] sm:$0xf]  ;;  %v1038_v50 = vshrl.u32 %v1018_v45, 16  ;;  %v1041_v51 = vshll.u32 %v1018_v45, 16 }
  0x19   :  { %v15201_v43 = vld [vmem:[%s19885_s26 + $0x18] sm:$0xff]   ;;  %v15199_v44 = vld [vmem:[%s19886_s19 + $0x100] ss:$8 sps:$4 sm:$0xff]   ;;  %v1052_v53 = vshrl.u32 %v1020_v47, 16  ;;  %v1055_v55 = vshll.u32 %v1020_v47, 16  ;;  %v15205_v57 = vld [vmem:[%s19885_s26 + $0x10] sm:$0xff]  }
  0x1a   :  { %v15203_v48 = vld [vmem:[%s19886_s19 + $0x128] ss:$8 sps:$4 sm:$0xff]   ;;  %v15204_v54 = vld [vmem:[%s19885_s26 + $0x40] sm:$0xff]   ;;  %v1040_v58 = vrot.slane %v1038_v50, 4  ;;  %v1043_v59 = vrot.slane %v1041_v51, 5  ;;  %v15213_v46 = vld [vmem:[%s19885_s26 + $0xb8] sm:$0xff]  }
  0x1b   :  { %14092 = vmatpush3.bf16.msra.mxu0 %v15166_v8  ;;  %14112 = vmatpush3.bf16.msra.mxu1 %v15167_v9  ;;  %v1054_v61 = vrot.slane %v1052_v53, 4  ;;  %v15210_v62 = vld [vmem:[%s19886_s19 + $0x28] ss:$8 sps:$4 sm:$0xff]   ;;  %v1057_v63 = vrot.slane %v1055_v55, 5  ;;  %v1023_v2 = vld [vmem:[%s19886_s19 + $0x14] sm:$0x1] }
  0x1c   :  { %14093 = vmatprep.subr.bf16.mxu0 %v15168_v12  ;;  %14113 = vmatprep.subr.bf16.mxu1 %v15169_v13  ;;  %v1022_v1 = vld [vmem:[%s19886_s19 + $0x10] sm:$0xf]  ;;  %v1044_v3 = vor.u32 %v1043_v59, %v1040_v58  ;;  %v1024_v4 = vld [vmem:[%s19886_s19 + $0x18] sm:$0xf]  ;;  %v1025_v5 = vld [vmem:[%s19886_s19 + $0x1c] sm:$0x1] }
  0x1d   :  { %v1066_v6 = vshrl.u32 %v1022_v1, 16  ;;  %v1069_v7 = vshll.u32 %v1022_v1, 16  ;;  %v1058_v9 = vor.u32 %v1057_v63, %v1054_v61  ;;  %v1075_v10 = vshll.u32 %v1023_v2, 16  ;;  %v15211_v45 = vld [vmem:[%s19886_s19 + $0x38] ss:$8 sps:$4 sm:$0xff]   ;;  %v15215_v1 = vld [vmem:[%s19885_s26 + $0xb0] sm:$0xff]  }
  0x1e   :  { %v1080_v11 = vshrl.u32 %v1024_v4, 16  ;;  %v1030_v53 = vld [vmem:[%s19886_s19 + $0xb0] sm:$0xf]  ;;  %v1032_v58 = vld [vmem:[%s19886_s19 + $0xb8] sm:$0xf]  ;;  %v15214_v59 = vld [vmem:[%s19885_s26 + $0x80] sm:$0xff]  }
  0x1f   :  { %14094 = vmatpush3.bf16.msra.mxu0 %v15168_v12  ;;  %14114 = vmatpush3.bf16.msra.mxu1 %v15169_v13  ;;  %v1083_v12 = vshll.u32 %v1024_v4, 16  ;;  %v1045_v13 = vrot.slane %v1044_v3, 4  ;;  %v15218_v56 = vld [vmem:[%s19886_s19 + $0xc8] ss:$8 sps:$4 sm:$0xff]   ;;  %v1033_v61 = vld [vmem:[%s19886_s19 + $0xbc] sm:$0x1] }
  0x20   :  { %14123 = vmatprep.subr.bf16.mxu0 %v15174_v15  ;;  %14143 = vmatprep.subr.bf16.mxu1 %v15175_v16  ;;  %v1125_v63 = vshll.u32 %v1030_v53, 16  ;;  %v1136_v3 = vshrl.u32 %v1032_v58, 16  ;;  %v1139_v4 = vshll.u32 %v1032_v58, 16  ;;  %v15395_v8 = vld [vmem:[%s19849_s6 + $0x108] sm:$0xff]  }
  0x22   :  { %14096 = vmatmul.mubr.msk.bf16.vlgmr.msra.gmra.mxu0 %vm279_vm0, %v15172_v14  ;;  %14116 = vmatmul.mubr.msk.bf16.vlgmr.msra.gmra.mxu1 %vm279_vm0, %v15173_v17  ;;  %v1068_v14 = vrot.slane %v1066_v6, 4  ;;  %v15206_v17 = vld [vmem:[%s19885_s26 + $0x38] sm:$0xff]  }
  0x23   :  { %14124 = vmatpush3.bf16.msra.mxu0 %v15174_v15  ;;  %14144 = vmatpush3.bf16.msra.mxu1 %v15175_v16  ;;  %v1071_v15 = vrot.slane %v1069_v7, 5  ;;  %v1089_v16 = vshll.u32 %v1025_v5, 16  ;;  %v1145_v5 = vshll.u32 %v1033_v61, 16 }
  0x24   :  { %14125 = vmatprep.subr.bf16.mxu0 %v15176_v18  ;;  %14145 = vmatprep.subr.bf16.mxu1 %v15177_v19 }
  0x25   :  { %14099 = vmatprep.mubr.msk.bf16.mxu0 %vm279_vm0, %v15180_v20  ;;  %14119 = vmatprep.mubr.msk.bf16.mxu1 %vm279_vm0, %v15181_v21  ;;  %v1082_v20 = vrot.slane %v1080_v11, 4  ;;  %v1085_v21 = vrot.slane %v1083_v12, 5  ;;  %v15216_v11 = vld [vmem:[%s19885_s26 + $0x78] sm:$0xff]   ;;  %v15217_v12 = vld [vmem:[%s19885_s26 + $0xa8] sm:$0xff]  }
  0x27   :  { %14126 = vmatpush3.bf16.msra.mxu0 %v15176_v18  ;;  %14146 = vmatpush3.bf16.msra.mxu1 %v15177_v19  ;;  %v15207_v18 = vld [vmem:[%s19885_s26 + $0x8] sm:$0xff]   ;;  %v1059_v19 = vrot.slane %v1058_v9, 4  ;;  %v1127_v9 = vrot.slane %v1125_v63, 5 }
  0x28   :  { %14127 = vmatprep.subr.bf16.mxu0 %v15178_v22  ;;  %14147 = vmatprep.subr.bf16.mxu1 %v15179_v23 }
  0x2a   :  { %14100 = vmatmul.mubr.msk.bf16.gmra.mxu0 %vm279_vm0, %v15182_v24  ;;  %14120 = vmatmul.mubr.msk.bf16.gmra.mxu1 %vm279_vm0, %v15183_v25  ;;  %v1077_v24 = vrot.slane %v1075_v10, 5  ;;  %v1091_v25 = vrot.slane %v1089_v16, 5  ;;  %v1147_v16 = vrot.slane %v1145_v5, 5  ;;  %v15228_v5 = vld [vmem:[%s19885_s26 + $0x58] sm:$0xff]  }
  0x2b   :  { %14128 = vmatpush3.bf16.msra.mxu0 %v15178_v22  ;;  %14148 = vmatpush3.bf16.msra.mxu1 %v15179_v23  ;;  %v1050_v22 = vsel %vm15867_vm3, %v1045_v13, %v1049_v60  ;;  %v1072_v23 = vor.u32 %v1071_v15, %v1068_v14  ;;  %v1138_v14 = vrot.slane %v1136_v3, 4  ;;  %v1141_v15 = vrot.slane %v1139_v4, 5  ;;  %v15227_v3 = vld [vmem:[%s19886_s19 + $0x88] ss:$8 sps:$4 sm:$0xff]  }
  0x2c   :  { %14129 = vmatprep.subr.bf16.mxu0 %v15184_v26  ;;  %14149 = vmatprep.subr.bf16.mxu1 %v15185_v27 }
  0x2d   :  { %14135 = vmatprep.mubr.msk.bf16.mxu0 %vm279_vm0, %v15190_v28  ;;  %14155 = vmatprep.mubr.msk.bf16.mxu1 %vm279_vm0, %v15192_v29  ;;  %v1073_v29 = vrot.slane %v1072_v23, 4 }
  0x2f   :  { %14130 = vmatpush3.bf16.msra.mxu0 %v15184_v26  ;;  %14150 = vmatpush3.bf16.msra.mxu1 %v15185_v27  ;;  %v1064_v26 = vsel %vm15867_vm3, %v1059_v19, %v1063_v0  ;;  %v1086_v27 = vor.u32 %v1085_v21, %v1082_v20  ;;  %v1142_v20 = vor.u32 %v1141_v15, %v1138_v14  ;;  %v15219_v21 = vld [vmem:[%s19886_s19 + $0xd8] ss:$8 sps:$4 sm:$0xff]  }
  0x30   :  { %14131 = vmatprep.subr.bf16.mxu0 %v15186_v30  ;;  %14151 = vmatprep.subr.bf16.mxu1 %v15187_v31  ;;  %v12219_v28 = vcombine.low %v1050_v22, %v1064_v26  ;;  %v15220_v26 = vld [vmem:[%s19885_s26 + $0x70] sm:$0xff]  }
  0x33   :  { %14132 = vmatpush3.bf16.msra.mxu0 %v15186_v30  ;;  %14152 = vmatpush3.bf16.msra.mxu1 %v15187_v31  ;;  %v15208_v30 = vld [vmem:[%s19885_s26 + $0x30] sm:$0xff]   ;;  %v1087_v31 = vrot.slane %v1086_v27, 4 }
  0x34   :  { %14133 = vmatprep.subr.bf16.mxu0 %v15188_v32  ;;  %14153 = vmatprep.subr.bf16.mxu1 %v15189_v33 }
  0x37   :  { %14134 = vmatpush3.bf16.msra.mxu0 %v15188_v32  ;;  %14154 = vmatpush3.bf16.msra.mxu1 %v15189_v33  ;;  %v15209_v32 = vld [vmem:[%s19885_s26] sm:$0xff]   ;;  %v1078_v33 = vsel %vm15867_vm3, %v1073_v29, %v1077_v24  ;;  %v1143_v24 = vrot.slane %v1142_v20, 4 }
  0x38   :  { %14163 = vmatprep.subr.bf16.mxu0 %v15193_v35  ;;  %14183 = vmatprep.subr.bf16.mxu1 %v15194_v36 }
  0x39   :  { %v1148_v27 = vsel %vm15867_vm3, %v1143_v24, %v1147_v16  ;;  %v12290_v24 = vld [vmem:[%s19886_s19 + $0xf4] sm:$0x1] }
  0x3a   :  { %14136 = vmatmul.mubr.msk.bf16.vlgmr.msra.gmra.mxu0 %vm279_vm0, %v15191_v34  ;;  %14156 = vmatmul.mubr.msk.bf16.vlgmr.msra.gmra.mxu1 %vm279_vm0, %v15195_v37  ;;  %v1092_v34 = vsel %vm15867_vm3, %v1087_v31, %v1091_v25  ;;  %v1027_v37 = vld [vmem:[%s19886_s19 + $0xa4] sm:$0x1]  ;;  %v15226_v31 = vld [vmem:[%s19886_s19 + $0x78] ss:$8 sps:$4 sm:$0xff]  }
  0x3b   :  { %14164 = vmatpush3.bf16.msra.mxu0 %v15193_v35  ;;  %14184 = vmatpush3.bf16.msra.mxu1 %v15194_v36  ;;  %v15212_v35 = vld [vmem:[%s19885_s26 + $0x88] sm:$0xff]   ;;  %v1026_v36 = vld [vmem:[%s19886_s19 + $0xa0] sm:$0xf] }
  0x3c   :  { %14165 = vmatprep.subr.bf16.mxu0 %v15196_v38  ;;  %14185 = vmatprep.subr.bf16.mxu1 %v15197_v39 }
  0x3d   :  { %14139 = vmatprep.mubr.msk.bf16.mxu0 %vm279_vm0, %v15198_v40  ;;  %14159 = vmatprep.mubr.msk.bf16.mxu1 %vm279_vm0, %v15202_v42  ;;  %v1094_v40 = vshrl.u32 %v1026_v36, 16  ;;  %v1103_v42 = vshll.u32 %v1027_v37, 16 }
  0x3f   :  { %14166 = vmatpush3.bf16.msra.mxu0 %v15196_v38  ;;  %14186 = vmatpush3.bf16.msra.mxu1 %v15197_v39  ;;  %v1028_v38 = vld [vmem:[%s19886_s19 + $0xa8] sm:$0xf]  ;;  %v1029_v39 = vld [vmem:[%s19886_s19 + $0xac] sm:$0x1]  ;;  %v1096_v49 = vrot.slane %v1094_v40, 4  ;;  %v1105_v51 = vrot.slane %v1103_v42, 5 }
  0x40   :  { %14167 = vmatprep.subr.bf16.mxu0 %v15200_v41  ;;  %14187 = vmatprep.subr.bf16.mxu1 %v15201_v43  ;;  %v1111_v47 = vshll.u32 %v1028_v38, 16 }
  0x42   :  { %14140 = vmatmul.mubr.msk.bf16.gmra.mxu0 %vm279_vm0, %v15199_v44  ;;  %14160 = vmatmul.mubr.msk.bf16.gmra.mxu1 %vm279_vm0, %v15203_v48  ;;  %v12220_v44 = vcombine.low %v1078_v33, %v1092_v34  ;;  %v1117_v48 = vshll.u32 %v1029_v39, 16  ;;  %v12281_v33 = vld [vmem:[%s19886_s19 + $0x50] sm:$0xf]  ;;  %v12282_v34 = vld [vmem:[%s19886_s19 + $0x54] sm:$0x1] }
  0x43   :  { %14168 = vmatpush3.bf16.msra.mxu0 %v15200_v41  ;;  %14188 = vmatpush3.bf16.msra.mxu1 %v15201_v43  ;;  %v1097_v41 = vshll.u32 %v1026_v36, 16  ;;  %v1108_v43 = vshrl.u32 %v1028_v38, 16  ;;  %v12284_v36 = vld [vmem:[%s19886_s19 + $0x5c] sm:$0x1]  ;;  %v1597_v37 = vshrl.u32 %v12281_v33, 16  ;;  %v1600_v38 = vshll.u32 %v12281_v33, 16 }
  0x44   :  { %14169 = vmatprep.subr.bf16.mxu0 %v15204_v54  ;;  %14189 = vmatprep.subr.bf16.mxu1 %v15205_v57  ;;  %v1119_v55 = vrot.slane %v1117_v48, 5  ;;  %v1606_v39 = vshll.u32 %v12282_v34, 16  ;;  %v1620_v42 = vshll.u32 %v12284_v36, 16  ;;  %v15233_v33 = vld [vmem:[%s19886_s19 + $0x128] ss:$8 sps:$4 sm:$0xff]  }
  0x45   :  { %14195 = vmatprep.mubr.msk.bf16.mxu1 %vm279_vm0, %v15210_v62  ;;  %14175 = vmatprep.mubr.msk.bf16.mxu0 %vm279_vm0, %v12219_v28  ;;  %v1099_v50 = vrot.slane %v1097_v41, 5  ;;  %v1110_v52 = vrot.slane %v1108_v43, 4  ;;  %v1122_v62 = vshrl.u32 %v1030_v53, 16  ;;  %v15221_v28 = vld [vmem:[%s19885_s26 + $0xa0] sm:$0xff]  }
  0x46   :  { %v15224_v43 = vld [vmem:[%s19885_s26 + $0x60] sm:$0xff]  }
  0x47   :  { %14170 = vmatpush3.bf16.msra.mxu0 %v15204_v54  ;;  %14190 = vmatpush3.bf16.msra.mxu1 %v15205_v57  ;;  %v1113_v54 = vrot.slane %v1111_v47, 5  ;;  %v1031_v57 = vld [vmem:[%s19886_s19 + $0xb4] sm:$0x1]  ;;  %v1100_v60 = vor.u32 %v1099_v50, %v1096_v49  ;;  %v1124_v7 = vrot.slane %v1122_v62, 4  ;;  %v1608_v47 = vrot.slane %v1606_v39, 5  ;;  %v15235_v39 = vld [vmem:[%s19885_s26 + $0x18] sm:$0xff]  }
  0x48   :  { %14171 = vmatprep.subr.bf16.mxu0 %v15206_v17  ;;  %14191 = vmatprep.subr.bf16.mxu1 %v15207_v18  ;;  %v1131_v0 = vshll.u32 %v1031_v57, 16  ;;  %v1622_v50 = vrot.slane %v1620_v42, 5  ;;  %v12286_v53 = vld [vmem:[%s19886_s19 + $0x64] sm:$0x1] }
  0x49   :  { %v1114_v2 = vor.u32 %v1113_v54, %v1110_v52  ;;  %v1101_v6 = vrot.slane %v1100_v60, 4  ;;  %v12285_v52 = vld [vmem:[%s19886_s19 + $0x60] sm:$0xf]  ;;  %v1634_v60 = vshll.u32 %v12286_v53, 16 }
  0x4a   :  { %v1133_v10 = vrot.slane %v1131_v0, 5  ;;  %v1625_v57 = vshrl.u32 %v12285_v52, 16  ;;  %v1628_v58 = vshll.u32 %v12285_v52, 16 }
  0x4b   :  { %14172 = vmatpush3.bf16.msra.mxu0 %v15206_v17  ;;  %14192 = vmatpush3.bf16.msra.mxu1 %v15207_v18  ;;  %v1115_v13 = vrot.slane %v1114_v2, 4  ;;  %v1106_v17 = vsel %vm15867_vm3, %v1101_v6, %v1105_v51  ;;  %v1128_v18 = vor.u32 %v1127_v9, %v1124_v7 }
  0x4c   :  { %14173 = vmatprep.subr.bf16.mxu0 %v15208_v30  ;;  %14193 = vmatprep.subr.bf16.mxu1 %v15209_v32  ;;  %v1627_v0 = vrot.slane %v1625_v57, 4 }
  0x4d   :  { %v1120_v19 = vsel %vm15867_vm3, %v1115_v13, %v1119_v55  ;;  %v1129_v23 = vrot.slane %v1128_v18, 4  ;;  %v12287_v55 = vld [vmem:[%s19886_s19 + $0x68] sm:$0xf] }
  0x4e   :  { %v12221_v22 = vcombine.low %v1106_v17, %v1120_v19  ;;  %v1639_v61 = vshrl.u32 %v12287_v55, 16  ;;  %v1642_v62 = vshll.u32 %v12287_v55, 16  ;;  %v15232_v17 = vld [vmem:[%s19886_s19 + $0x118] ss:$8 sps:$4 sm:$0xff]   ;;  %v15230_v19 = vld [vmem:[%s19885_s26 + $0x50] sm:$0xff]  }
  0x4f   :  { %14174 = vmatpush3.bf16.msra.mxu0 %v15208_v30  ;;  %14194 = vmatpush3.bf16.msra.mxu1 %v15209_v32  ;;  %v1134_v25 = vsel %vm15867_vm3, %v1129_v23, %v1133_v10  ;;  %v15222_v30 = vld [vmem:[%s19885_s26 + $0x68] sm:$0xff]   ;;  %v15223_v32 = vld [vmem:[%s19885_s26 + $0x98] sm:$0xff]  }
  0x50   :  { %14203 = vmatprep.subr.bf16.mxu0 %v15212_v35  ;;  %14223 = vmatprep.subr.bf16.mxu1 %v15213_v46  ;;  %v12222_v29 = vcombine.low %v1134_v25, %v1148_v27  ;;  %v1641_v6 = vrot.slane %v1639_v61, 4  ;;  %v1644_v7 = vrot.slane %v1642_v62, 5  ;;  %v15229_v10 = vld [vmem:[%s19885_s26 + $0x28] sm:$0xff]   ;;  %v12291_v25 = vld [vmem:[%s19886_s19 + $0xf8] sm:$0xf] }
  0x51   :  { %v1667_v34 = vshrl.u32 %v12291_v25, 16 }
  0x52   :  { %14176 = vmatmul.mubr.msk.bf16.vlgmr.msra.gmra.mxu0 %vm279_vm0, %v12220_v44  ;;  %14196 = vmatmul.mubr.msk.bf16.vlgmr.msra.gmra.mxu1 %vm279_vm0, %v15211_v45  ;;  %v1599_v44 = vrot.slane %v1597_v37, 4  ;;  %v1602_v45 = vrot.slane %v1600_v38, 5  ;;  %v1645_v14 = vor.u32 %v1644_v7, %v1641_v6  ;;  %v12294_v37 = vld [vmem:[%s19886_s19 + $0x104] sm:$0x1]  ;;  %v15238_v7 = vld [vmem:[%s19885_s26 + $0x38] sm:$0xff]  }
  0x53   :  { %14204 = vmatpush3.bf16.msra.mxu0 %v15212_v35  ;;  %14224 = vmatpush3.bf16.msra.mxu1 %v15213_v46  ;;  %v12283_v35 = vld [vmem:[%s19886_s19 + $0x58] sm:$0xf]  ;;  %v15225_v46 = vld [vmem:[%s19885_s26 + $0x90] sm:$0xff]   ;;  %v1690_v52 = vshll.u32 %v12294_v37, 16  ;;  %v15260_v37 = vld [vmem:[%s19885_s26 + $0x60] sm:$0xff]  }
  0x54   :  { %14205 = vmatprep.subr.bf16.mxu0 %v15214_v59  ;;  %14225 = vmatprep.subr.bf16.mxu1 %v15215_v1  ;;  %v1611_v40 = vshrl.u32 %v12283_v35, 16  ;;  %v1614_v41 = vshll.u32 %v12283_v35, 16  ;;  %v1603_v51 = vor.u32 %v1602_v45, %v1599_v44  ;;  %v1646_v18 = vrot.slane %v1645_v14, 4  ;;  %v15243_v14 = vld [vmem:[%s19886_s19 + $0x50] ss:$8 sps:$4 sm:$0xff]  }
  0x55   :  { %14199 = vmatprep.mubr.msk.bf16.mxu1 %vm279_vm0, %v15218_v56  ;;  %14179 = vmatprep.mubr.msk.bf16.mxu0 %vm279_vm0, %v12221_v22  ;;  %v12288_v56 = vld [vmem:[%s19886_s19 + $0x6c] sm:$0x1]  ;;  %v12289_v22 = vld [vmem:[%s19886_s19 + $0xf0] sm:$0xf]  ;;  %v1670_v35 = vshll.u32 %v12291_v25, 16  ;;  %v1669_v45 = vrot.slane %v1667_v34, 4 }
  0x56   :  { %v1613_v48 = vrot.slane %v1611_v40, 4  ;;  %v1616_v49 = vrot.slane %v1614_v41, 5  ;;  %v1648_v2 = vshll.u32 %v12288_v56, 16  ;;  %v1692_v62 = vrot.slane %v1690_v52, 5  ;;  %v15253_v25 = vld [vmem:[%s19886_s19 + $0xf0] ss:$8 sps:$4 sm:$0xff]  }
  0x57   :  { %14206 = vmatpush3.bf16.msra.mxu0 %v15214_v59  ;;  %14226 = vmatpush3.bf16.msra.mxu1 %v15215_v1  ;;  %v1604_v59 = vrot.slane %v1603_v51, 4  ;;  %v1630_v1 = vrot.slane %v1628_v58, 5  ;;  %v15264_v34 = vld [vmem:[%s19886_s19 + $0x30] ss:$8 sps:$4 sm:$0xff]  }
  0x58   :  { %14207 = vmatprep.subr.bf16.mxu0 %v15216_v11  ;;  %14227 = vmatprep.subr.bf16.mxu1 %v15217_v12  ;;  %v1617_v54 = vor.u32 %v1616_v49, %v1613_v48  ;;  %v1650_v15 = vrot.slane %v1648_v2, 5  ;;  %v12296_v48 = vld [vmem:[%s19886_s19 + $0x10c] sm:$0x1]  ;;  %v12475_v52 = vld [vmem:[%s19886_s19 + $0x58] sm:$0xf] }
  0x59   :  { %v1609_v4 = vsel %vm15867_vm3, %v1604_v59, %v1608_v47  ;;  %v1704_v57 = vshll.u32 %v12296_v48, 16  ;;  %v15271_v48 = vld [vmem:[%s19886_s19 + $0xb8] ss:$8 sps:$4 sm:$0xff]  }
  0x5a   :  { %14200 = vmatmul.mubr.msk.bf16.gmra.mxu1 %vm279_vm0, %v15219_v21  ;;  %14180 = vmatmul.mubr.msk.bf16.gmra.mxu0 %vm279_vm0, %v12222_v29  ;;  %v1618_v63 = vrot.slane %v1617_v54, 4  ;;  %v15231_v21 = vld [vmem:[%s19885_s26 + $0x20] sm:$0xff]   ;;  %v1651_v23 = vsel %vm15867_vm3, %v1646_v18, %v1650_v15  ;;  %v1653_v29 = vshrl.u32 %v12289_v22, 16  ;;  %v16110_v18 = vld [vmem:[%s19886_s19 + $0x88] ss:$8 sps:$4 sm:$0xff]  }
  0x5b   :  { %14208 = vmatpush3.bf16.msra.mxu0 %v15216_v11  ;;  %14228 = vmatpush3.bf16.msra.mxu1 %v15217_v12  ;;  %v1631_v11 = vor.u32 %v1630_v1, %v1627_v0  ;;  %v1636_v12 = vrot.slane %v1634_v60, 5  ;;  %v15236_v54 = vld [vmem:[%s19885_s26 + $0x40] sm:$0xff]   ;;  %v15237_v0 = vld [vmem:[%s19885_s26 + $0x10] sm:$0xff]  }
  0x5c   :  { %14209 = vmatprep.subr.bf16.mxu0 %v15220_v26  ;;  %14229 = vmatprep.subr.bf16.mxu1 %v15221_v28  ;;  %v1623_v9 = vsel %vm15867_vm3, %v1618_v63, %v1622_v50  ;;  %v1655_v40 = vrot.slane %v1653_v29, 4  ;;  %v15254_v29 = vld [vmem:[%s19886_s19 + $0x128] ss:$8 sps:$4 sm:$0xff]  }
  0x5d   :  { %14215 = vmatprep.mubr.msk.bf16.mxu0 %vm279_vm0, %v15226_v31  ;;  %v12309_v13 = vcombine.low %v1609_v4, %v1623_v9  ;;  %v1632_v16 = vrot.slane %v1631_v11, 4  ;;  %v1662_v31 = vshll.u32 %v12290_v24, 16  ;;  %v15239_v11 = vld [vmem:[%s19885_s26 + $0x8] sm:$0xff]   ;;  %v15248_v24 = vld [vmem:[%s19885_s26 + $0x80] sm:$0xff]  }
  0x5f   :  { %14210 = vmatpush3.bf16.msra.mxu0 %v15220_v26  ;;  %14230 = vmatpush3.bf16.msra.mxu1 %v15221_v28  ;;  %v1637_v20 = vsel %vm15867_vm3, %v1632_v16, %v1636_v12  ;;  %v12292_v26 = vld [vmem:[%s19886_s19 + $0xfc] sm:$0x1]  ;;  %v15234_v28 = vld [vmem:[%s19885_s26 + $0x48] sm:$0xff]   ;;  %v1664_v42 = vrot.slane %v1662_v31, 5  ;;  %v15242_v12 = vld [vmem:[%s19886_s19 + $0x78] ss:$8 sps:$4 sm:$0xff]  }
  0x60   :  { %14211 = vmatprep.subr.bf16.mxu0 %v15222_v30  ;;  %14231 = vmatprep.subr.bf16.mxu1 %v15223_v32  ;;  %v12310_v27 = vcombine.low %v1637_v20, %v1651_v23  ;;  %v1676_v36 = vshll.u32 %v12292_v26, 16  ;;  %v15240_v16 = vld [vmem:[%s19885_s26 + $0x30] sm:$0xff]   ;;  %v16121_v20 = vld [vmem:[%s19886_s19 + $0x60] ss:$8 sps:$4 sm:$0xff]  }
  0x61   :  { %14235 = vmatprep.mubr.msk.bf16.mxu1 %vm279_vm0, %v12309_v13  ;;  %v15252_v23 = vld [vmem:[%s19886_s19 + $0x118] ss:$8 sps:$4 sm:$0xff]   ;;  %v15249_v26 = vld [vmem:[%s19885_s26 + $0xb0] sm:$0xff]  }
  0x62   :  { %v1678_v47 = vrot.slane %v1676_v36, 5  ;;  %v15256_v31 = vld [vmem:[%s19885_s26 + $0x70] sm:$0xff]   ;;  %v15259_v36 = vld [vmem:[%s19885_s26 + $0x98] sm:$0xff]  }
  0x63   :  { %14212 = vmatpush3.bf16.msra.mxu0 %v15222_v30  ;;  %14232 = vmatpush3.bf16.msra.mxu1 %v15223_v32  ;;  %v1656_v30 = vshll.u32 %v12289_v22, 16  ;;  %v12293_v32 = vld [vmem:[%s19886_s19 + $0x100] sm:$0xf]  ;;  %v19865_v22 = vmov 0  }
  0x64   :  { %14213 = vmatprep.subr.bf16.mxu0 %v15224_v43  ;;  %14233 = vmatprep.subr.bf16.mxu1 %v15225_v46  ;;  %v1681_v38 = vshrl.u32 %v12293_v32, 16  ;;  %v1684_v44 = vshll.u32 %v12293_v32, 16  ;;  %65 = vst.msk [vmem:[#allocation2 + $0x18] sm:$0xf] %vm57_vm4, %v19865_v22  ;;  %61 = vst.msk [vmem:[#allocation2 + $0x8] sm:$0xf] %vm57_vm4, %v19865_v22 }
  0x65   :  { %v1658_v41 = vrot.slane %v1656_v30, 5  ;;  %63 = vst.msk [vmem:[#allocation2 + $0x10] sm:$0xf] %vm57_vm4, %v19865_v22  ;;  %67 = vst.msk [vmem:[#allocation2 + $0x20] sm:$0xf] %vm57_vm4, %v19865_v22 }
  0x66   :  { %v1683_v49 = vrot.slane %v1681_v38, 4  ;;  %v1686_v51 = vrot.slane %v1684_v44, 5  ;;  %69 = vst.msk [vmem:[#allocation2 + $0x28] sm:$0xf] %vm57_vm4, %v19865_v22  ;;  %73 = vst.msk [vmem:[#allocation2 + $0x38] sm:$0xf] %vm57_vm4, %v19865_v22 }
  0x67   :  { %14214 = vmatpush3.bf16.msra.mxu0 %v15224_v43  ;;  %14234 = vmatpush3.bf16.msra.mxu1 %v15225_v46  ;;  %v12295_v43 = vld [vmem:[%s19886_s19 + $0x108] sm:$0xf]  ;;  %v1672_v46 = vrot.slane %v1670_v35, 5  ;;  %v1659_v50 = vor.u32 %v1658_v41, %v1655_v40  ;;  %75 = vst.msk [vmem:[#allocation2 + $0x40] sm:$0xf] %vm57_vm4, %v19865_v22  ;;  %v15261_v38 = vld [vmem:[%s19885_s26 + $0x90] sm:$0xff]  }
  0x68   :  { %14243 = vmatprep.subr.bf16.mxu0 %v15228_v5  ;;  %14263 = vmatprep.subr.bf16.mxu1 %v15229_v10  ;;  %v1695_v53 = vshrl.u32 %v12295_v43, 16  ;;  %v1698_v56 = vshll.u32 %v12295_v43, 16  ;;  %v1687_v59 = vor.u32 %v1686_v51, %v1683_v49  ;;  %77 = vst.msk [vmem:[#allocation2 + $0x48] sm:$0xf] %vm57_vm4, %v19865_v22  ;;  %79 = vst.msk [vmem:[#allocation2 + $0x50] sm:$0xf] %vm57_vm4, %v19865_v22 }
  0x69   :  { %v1673_v55 = vor.u32 %v1672_v46, %v1669_v45  ;;  %v1660_v58 = vrot.slane %v1659_v50, 4  ;;  %81 = vst.msk [vmem:[#allocation2 + $0x58] sm:$0xf] %vm57_vm4, %v19865_v22  ;;  %85 = vst.msk [vmem:[#allocation2 + $0x68] sm:$0xf] %vm57_vm4, %v19865_v22  ;;  %v15258_v35 = vld [vmem:[%s19885_s26 + $0x68] sm:$0xff]  }
  0x6a   :  { %14216 = vmatmul.mubr.msk.bf16.vlgmr.msra.gmra.mxu0 %vm279_vm0, %v15227_v3  ;;  %14236 = vmatmul.mubr.msk.bf16.vlgmr.msra.gmra.mxu1 %vm279_vm0, %v12310_v27  ;;  %v1697_v60 = vrot.slane %v1695_v53, 4  ;;  %v1700_v63 = vrot.slane %v1698_v56, 5  ;;  %v1688_v2 = vrot.slane %v1687_v59, 4  ;;  %v1706_v3 = vrot.slane %v1704_v57, 5  ;;  %87 = vst.msk [vmem:[#allocation2 + $0x70] sm:$0xf] %vm57_vm4, %v19865_v22 }
  0x6b   :  { %14244 = vmatpush3.bf16.msra.mxu0 %v15228_v5  ;;  %14219 = vmatprep.mubr.msk.bf16.mxu0 %vm279_vm0, %v15232_v17  ;;  %v1674_v61 = vrot.slane %v1673_v55, 4  ;;  %v1665_v1 = vsel %vm15867_vm3, %v1660_v58, %v1664_v42  ;;  %v16104_v17 = vld [vmem:[%s19885_s26] sm:$0xff]   ;;  %89 = vst.msk [vmem:[#allocation2 + $0x78] sm:$0xf] %vm57_vm4, %v19865_v22  ;;  %91 = vst.msk [vmem:[#allocation2 + $0x80] sm:$0xf] %vm57_vm4, %v19865_v22 }
  0x6c   :  { %14245 = vmatprep.subr.bf16.mxu0 %v15230_v19  ;;  %14264 = vmatpush3.bf16.msra.mxu1 %v15229_v10  ;;  %v1701_v5 = vor.u32 %v1700_v63, %v1697_v60  ;;  %v1693_v9 = vsel %vm15867_vm3, %v1688_v2, %v1692_v62  ;;  %93 = vst.msk [vmem:[#allocation2 + $0x88] sm:$0xf] %vm57_vm4, %v19865_v22  ;;  %97 = vst.msk [vmem:[#allocation2 + $0x98] sm:$0xf] %vm57_vm4, %v19865_v22  ;;  %v15250_v27 = vld [vmem:[%s19885_s26 + $0x78] sm:$0xff]   ;;  %v15266_v41 = vld [vmem:[%s19885_s26 + $0x28] sm:$0xff]  }
  0x6d   :  { %14265 = vmatprep.subr.bf16.mxu1 %v15231_v21  ;;  %v1679_v4 = vsel %vm15867_vm3, %v1674_v61, %v1678_v47  ;;  %99 = vst.msk [vmem:[#allocation2 + $0xa0] sm:$0xf] %vm57_vm4, %v19865_v22  ;;  %101 = vst.msk [vmem:[#allocation2 + $0xa8] sm:$0xf] %vm57_vm4, %v19865_v22  ;;  %v15255_v30 = vld [vmem:[%s19886_s19 + $0x100] ss:$8 sps:$4 sm:$0xff]  }
  0x6e   :  { %v12311_v6 = vcombine.low %v1665_v1, %v1679_v4  ;;  %v1702_v10 = vrot.slane %v1701_v5, 4  ;;  %103 = vst.msk [vmem:[#allocation2 + $0xb0] sm:$0xf] %vm57_vm4, %v19865_v22  ;;  %105 = vst.msk [vmem:[#allocation2 + $0xb8] sm:$0xf] %vm57_vm4, %v19865_v22  ;;  %v15265_v40 = vld [vmem:[%s19885_s26 + $0x58] sm:$0xff]  }
  0x6f   :  { %14246 = vmatpush3.bf16.msra.mxu0 %v15230_v19  ;;  %v16115_v19 = vld [vmem:[%s19885_s26 + $0x88] sm:$0xff]   ;;  %107 = vst.msk [vmem:[#allocation2 + $0xc0] sm:$0xf] %vm57_vm4, %v19865_v22  ;;  %109 = vst.msk [vmem:[#allocation2 + $0xc8] sm:$0xf] %vm57_vm4, %v19865_v22  ;;  %v15268_v44 = vld [vmem:[%s19885_s26 + $0x50] sm:$0xff]  }
  0x70   :  { %14247 = vmatprep.subr.bf16.mxu0 %v15234_v28  ;;  %14266 = vmatpush3.bf16.msra.mxu1 %v15231_v21  ;;  %v1707_v13 = vsel %vm15867_vm3, %v1702_v10, %v1706_v3  ;;  %v16126_v21 = vld [vmem:[%s19885_s26 + $0xb8] sm:$0xff]   ;;  %111 = vst.msk [vmem:[#allocation2 + $0xd0] sm:$0xf] %vm57_vm4, %v19865_v22  ;;  %113 = vst.msk [vmem:[#allocation2 + $0xd8] sm:$0xf] %vm57_vm4, %v19865_v22  ;;  %v15269_v46 = vld [vmem:[%s19885_s26 + $0x20] sm:$0xff]  }
  0x71   :  { %14267 = vmatprep.subr.bf16.mxu1 %v15235_v39  ;;  %14239 = vmatprep.mubr.msk.bf16.mxu1 %vm279_vm0, %v12311_v6  ;;  %v12312_v15 = vcombine.low %v1693_v9, %v1707_v13  ;;  %115 = vst.msk [vmem:[#allocation2 + $0xe0] sm:$0xf] %vm57_vm4, %v19865_v22  ;;  %119 = vst.msk [vmem:[#allocation2 + $0xf0] sm:$0xf] %vm57_vm4, %v19865_v22  ;;  %v15262_v32 = vld [vmem:[%s19886_s19 + $0x8] ss:$8 sps:$4 sm:$0xff]  }
  0x72   :  { %14220 = vmatmul.mubr.msk.bf16.gmra.mxu0 %vm279_vm0, %v15233_v33  ;;  %121 = vst.msk [vmem:[#allocation2 + $0xf8] sm:$0xf] %vm57_vm4, %v19865_v22  ;;  %123 = vst.msk [vmem:[#allocation2 + $0x100] sm:$0xf] %vm57_vm4, %v19865_v22  ;;  %v15257_v33 = vld [vmem:[%s19885_s26 + $0xa0] sm:$0xff]   ;;  %v15272_v47 = vld [vmem:[%s19885_s26 + $0x48] sm:$0xff]  }
  0x73   :  { %14248 = vmatpush3.bf16.msra.mxu0 %v15234_v28  ;;  %14255 = vmatprep.mubr.msk.bf16.mxu0 %vm279_vm0, %v15242_v12  ;;  %125 = vst.msk [vmem:[#allocation2 + $0x108] sm:$0xf] %vm57_vm4, %v19865_v22  ;;  %127 = vst.msk [vmem:[#allocation2 + $0x110] sm:$0xf] %vm57_vm4, %v19865_v22  ;;  %v15251_v28 = vld [vmem:[%s19885_s26 + $0xa8] sm:$0xff]   ;;  %v15273_v49 = vld [vmem:[%s19885_s26 + $0x18] sm:$0xff]  }
  0x74   :  { %14249 = vmatprep.subr.bf16.mxu0 %v15236_v54  ;;  %14268 = vmatpush3.bf16.msra.mxu1 %v15235_v39  ;;  %131 = vst.msk [vmem:[#allocation2 + $0x120] sm:$0xf] %vm57_vm4, %v19865_v22  ;;  %133 = vst.msk [vmem:[#allocation2 + $0x128] sm:$0xf] %vm57_vm4, %v19865_v22  ;;  %v15263_v39 = vld [vmem:[%s19886_s19 + $0x18] ss:$8 sps:$4 sm:$0xff]  }
  0x75   :  { %14269 = vmatprep.subr.bf16.mxu1 %v15237_v0  ;;  %14240 = vmatmul.mubr.msk.bf16.gmra.mxu1 %vm279_vm0, %v12312_v15  ;;  %135 = vst.msk [vmem:[#allocation2 + $0x130] sm:$0xf] %vm57_vm4, %v19865_v22  ;;  %137 = vst.msk [vmem:[#allocation2 + $0x138] sm:$0xf] %vm57_vm4, %v19865_v22  ;;  %v15267_v42 = vld [vmem:[%s19886_s19 + $0x40] ss:$8 sps:$4 sm:$0xff]  }
  0x76   :  { %14275 = vmatprep.mubr.msk.bf16.mxu1 %vm279_vm0, %v15243_v14  ;;  %139 = vst.msk [vmem:[#allocation2 + $0x140] sm:$0xf] %vm57_vm4, %v19865_v22  ;;  %143 = vst.msk [vmem:[#allocation2 + $0x150] sm:$0xf] %vm57_vm4, %v19865_v22  ;;  %v15270_v43 = vld [vmem:[%s19886_s19 + $0xa8] ss:$8 sps:$4 sm:$0xff]  }
  0x77   :  { %14250 = vmatpush3.bf16.msra.mxu0 %v15236_v54  ;;  %145 = vst.msk [vmem:[#allocation2 + $0x158] sm:$0xf] %vm57_vm4, %v19865_v22  ;;  %147 = vst.msk [vmem:[#allocation2 + $0x160] sm:$0xf] %vm57_vm4, %v19865_v22  ;;  %v15274_v45 = vld [vmem:[%s19886_s19 + $0xd0] ss:$8 sps:$4 sm:$0xff]  }
  0x78   :  { %14251 = vmatprep.subr.bf16.mxu0 %v15238_v7  ;;  %14270 = vmatpush3.bf16.msra.mxu1 %v15237_v0  ;;  %149 = vst.msk [vmem:[#allocation2 + $0x168] sm:$0xf] %vm57_vm4, %v19865_v22  ;;  %151 = vst.msk [vmem:[#allocation2 + $0x170] sm:$0xf] %vm57_vm4, %v19865_v22  ;;  %v12473_v50 = vld [vmem:[%s19886_s19 + $0x50] sm:$0xf] }
  0x79   :  { %14271 = vmatprep.subr.bf16.mxu1 %v15239_v11  ;;  %66 = vst.msk [vmem:[#allocation2 + $0x1c] sm:$0x1] %vm59_vm5, %v19865_v22  ;;  %62 = vst.msk [vmem:[#allocation2 + $0xc] sm:$0x1] %vm59_vm5, %v19865_v22  ;;  %v12474_v51 = vld [vmem:[%s19886_s19 + $0x54] sm:$0x1] }
  0x7a   :  { %64 = vst.msk [vmem:[#allocation2 + $0x14] sm:$0x1] %vm59_vm5, %v19865_v22  ;;  %68 = vst.msk [vmem:[#allocation2 + $0x24] sm:$0x1] %vm59_vm5, %v19865_v22  ;;  %v15275_v53 = vld [vmem:[%s19886_s19 + $0xe0] ss:$8 sps:$4 sm:$0xff]  }
  0x7b   :  { %14252 = vmatpush3.bf16.msra.mxu0 %v15238_v7  ;;  %70 = vst.msk [vmem:[#allocation2 + $0x2c] sm:$0x1] %vm59_vm5, %v19865_v22  ;;  %74 = vst.msk [vmem:[#allocation2 + $0x3c] sm:$0x1] %vm59_vm5, %v19865_v22  ;;  %v15276_v54 = vld [vmem:[%s19885_s26 + $0x40] sm:$0xff]   ;;  %v2872_v56 = vshrl.u32 %v12473_v50, 16 }
  0x7c   :  { %14253 = vmatprep.subr.bf16.mxu0 %v15240_v16  ;;  %14272 = vmatpush3.bf16.msra.mxu1 %v15239_v11  ;;  %76 = vst.msk [vmem:[#allocation2 + $0x44] sm:$0x1] %vm59_vm5, %v19865_v22  ;;  %78 = vst.msk [vmem:[#allocation2 + $0x4c] sm:$0x1] %vm59_vm5, %v19865_v22  ;;  %v12476_v55 = vld [vmem:[%s19886_s19 + $0x5c] sm:$0x1] }
  0x7d   :  { %14273 = vmatprep.subr.bf16.mxu1 %v16104_v17  ;;  %80 = vst.msk [vmem:[#allocation2 + $0x54] sm:$0x1] %vm59_vm5, %v19865_v22  ;;  %82 = vst.msk [vmem:[#allocation2 + $0x5c] sm:$0x1] %vm59_vm5, %v19865_v22  ;;  %v2875_v57 = vshll.u32 %v12473_v50, 16  ;;  %v2881_v58 = vshll.u32 %v12474_v51, 16 }
  0x7e   :  { %86 = vst.msk [vmem:[#allocation2 + $0x6c] sm:$0x1] %vm59_vm5, %v19865_v22  ;;  %88 = vst.msk [vmem:[#allocation2 + $0x74] sm:$0x1] %vm59_vm5, %v19865_v22  ;;  %v2886_v59 = vshrl.u32 %v12475_v52, 16  ;;  %v2889_v60 = vshll.u32 %v12475_v52, 16 }
  0x7f   :  { %14254 = vmatpush3.bf16.msra.mxu0 %v15240_v16  ;;  %90 = vst.msk [vmem:[#allocation2 + $0x7c] sm:$0x1] %vm59_vm5, %v19865_v22  ;;  %92 = vst.msk [vmem:[#allocation2 + $0x84] sm:$0x1] %vm59_vm5, %v19865_v22  ;;  %v2895_v61 = vshll.u32 %v12476_v55, 16  ;;  %v15277_v62 = vld [vmem:[%s19885_s26 + $0x10] sm:$0xff]  }
  0x80   :  { %94 = vst.msk [vmem:[#allocation2 + $0x8c] sm:$0x1] %vm59_vm5, %v19865_v22  ;;  %98 = vst.msk [vmem:[#allocation2 + $0x9c] sm:$0x1] %vm59_vm5, %v19865_v22  ;;  %14283 = vmatprep.subr.bf16.mxu0 %v16115_v19  ;;  %14274 = vmatpush3.bf16.msra.mxu1 %v16104_v17  ;;  %v2874_v63 = vrot.slane %v2872_v56, 4  ;;  %v2877_v0 = vrot.slane %v2875_v57, 5 }
  0x81   :  { %100 = vst.msk [vmem:[#allocation2 + $0xa4] sm:$0x1] %vm59_vm5, %v19865_v22  ;;  %102 = vst.msk [vmem:[#allocation2 + $0xac] sm:$0x1] %vm59_vm5, %v19865_v22  ;;  %14303 = vmatprep.subr.bf16.mxu1 %v16126_v21  ;;  %v2883_v1 = vrot.slane %v2881_v58, 5  ;;  %v2888_v2 = vrot.slane %v2886_v59, 4 }
  0x82   :  { %104 = vst.msk [vmem:[#allocation2 + $0xb4] sm:$0x1] %vm59_vm5, %v19865_v22  ;;  %106 = vst.msk [vmem:[#allocation2 + $0xbc] sm:$0x1] %vm59_vm5, %v19865_v22  ;;  %14256 = vmatmul.mubr.msk.bf16.vlgmr.msra.gmra.mxu0 %vm279_vm0, %v16110_v18  ;;  %v15282_v3 = vld [vmem:[%s19886_s19 + $0x78] ss:$8 sps:$4 sm:$0xff]   ;;  %v2878_v9 = vor.u32 %v2877_v0, %v2874_v63 }
  0x83   :  { %108 = vst.msk [vmem:[#allocation2 + $0xc4] sm:$0x1] %vm59_vm5, %v19865_v22  ;;  %110 = vst.msk [vmem:[#allocation2 + $0xcc] sm:$0x1] %vm59_vm5, %v19865_v22  ;;  %14284 = vmatpush3.bf16.msra.mxu0 %v16115_v19  ;;  %14259 = vmatprep.mubr.msk.bf16.mxu0 %vm279_vm0, %v15252_v23  ;;  %v2891_v4 = vrot.slane %v2889_v60, 5  ;;  %v2897_v5 = vrot.slane %v2895_v61, 5 }
  0x84   :  { %112 = vst.msk [vmem:[#allocation2 + $0xd4] sm:$0x1] %vm59_vm5, %v19865_v22  ;;  %114 = vst.msk [vmem:[#allocation2 + $0xdc] sm:$0x1] %vm59_vm5, %v19865_v22  ;;  %14276 = vmatmul.mubr.msk.bf16.vlgmr.msra.gmra.mxu1 %vm279_vm0, %v16121_v20  ;;  %14285 = vmatprep.subr.bf16.mxu0 %v15248_v24  ;;  %v12477_v6 = vld [vmem:[%s19886_s19 + $0x60] sm:$0xf] }
  0x85   :  { %116 = vst.msk [vmem:[#allocation2 + $0xe4] sm:$0x1] %vm59_vm5, %v19865_v22  ;;  %120 = vst.msk [vmem:[#allocation2 + $0xf4] sm:$0x1] %vm59_vm5, %v19865_v22  ;;  %14304 = vmatpush3.bf16.msra.mxu1 %v16126_v21  ;;  %14279 = vmatprep.mubr.msk.bf16.mxu1 %vm279_vm0, %v15253_v25  ;;  %v12478_v7 = vld [vmem:[%s19886_s19 + $0x64] sm:$0x1]  ;;  %v2892_v15 = vor.u32 %v2891_v4, %v2888_v2 }
  0x86   :  { %122 = vst.msk [vmem:[#allocation2 + $0xfc] sm:$0x1] %vm59_vm5, %v19865_v22  ;;  %124 = vst.msk [vmem:[#allocation2 + $0x104] sm:$0x1] %vm59_vm5, %v19865_v22  ;;  %14305 = vmatprep.subr.bf16.mxu1 %v15249_v26  ;;  %v12479_v10 = vld [vmem:[%s19886_s19 + $0x68] sm:$0xf] }
  0x87   :  { %126 = vst.msk [vmem:[#allocation2 + $0x10c] sm:$0x1] %vm59_vm5, %v19865_v22  ;;  %128 = vst.msk [vmem:[#allocation2 + $0x114] sm:$0x1] %vm59_vm5, %v19865_v22  ;;  %14286 = vmatpush3.bf16.msra.mxu0 %v15248_v24  ;;  %v12480_v11 = vld [vmem:[%s19886_s19 + $0x6c] sm:$0x1] }
  0x88   :  { %132 = vst.msk [vmem:[#allocation2 + $0x124] sm:$0x1] %vm59_vm5, %v19865_v22  ;;  %134 = vst.msk [vmem:[#allocation2 + $0x12c] sm:$0x1] %vm59_vm5, %v19865_v22  ;;  %14287 = vmatprep.subr.bf16.mxu0 %v15250_v27  ;;  %v2900_v12 = vshrl.u32 %v12477_v6, 16  ;;  %v2903_v13 = vshll.u32 %v12477_v6, 16 }
  0x89   :  { %136 = vst.msk [vmem:[#allocation2 + $0x134] sm:$0x1] %vm59_vm5, %v19865_v22  ;;  %138 = vst.msk [vmem:[#allocation2 + $0x13c] sm:$0x1] %vm59_vm5, %v19865_v22  ;;  %14306 = vmatpush3.bf16.msra.mxu1 %v15249_v26  ;;  %v15278_v14 = vld [vmem:[%s19885_s26 + $0x38] sm:$0xff]   ;;  %v2909_v16 = vshll.u32 %v12478_v7, 16 }
  0x8a   :  { %140 = vst.msk [vmem:[#allocation2 + $0x144] sm:$0x1] %vm59_vm5, %v19865_v22  ;;  %144 = vst.msk [vmem:[#allocation2 + $0x154] sm:$0x1] %vm59_vm5, %v19865_v22  ;;  %14307 = vmatprep.subr.bf16.mxu1 %v15251_v28  ;;  %14260 = vmatmul.mubr.msk.bf16.gmra.mxu0 %vm279_vm0, %v15254_v29  ;;  %v2914_v17 = vshrl.u32 %v12479_v10, 16  ;;  %v2917_v18 = vshll.u32 %v12479_v10, 16 }
  0x8b   :  { %146 = vst.msk [vmem:[#allocation2 + $0x15c] sm:$0x1] %vm59_vm5, %v19865_v22  ;;  %148 = vst.msk [vmem:[#allocation2 + $0x164] sm:$0x1] %vm59_vm5, %v19865_v22  ;;  %14288 = vmatpush3.bf16.msra.mxu0 %v15250_v27  ;;  %14295 = vmatprep.mubr.msk.bf16.mxu0 %vm279_vm0, %v15262_v32  ;;  %v2879_v19 = vrot.slane %v2878_v9, 4  ;;  %v2902_v20 = vrot.slane %v2900_v12, 4 }
  0x8c   :  { %150 = vst.msk [vmem:[#allocation2 + $0x16c] sm:$0x1] %vm59_vm5, %v19865_v22  ;;  %152 = vst.msk [vmem:[#allocation2 + $0x174] sm:$0x1] %vm59_vm5, %v19865_v22  ;;  %14280 = vmatmul.mubr.msk.bf16.gmra.mxu1 %vm279_vm0, %v15255_v30  ;;  %14289 = vmatprep.subr.bf16.mxu0 %v15256_v31  ;;  %v2905_v21 = vrot.slane %v2903_v13, 5  ;;  %v2923_v23 = vshll.u32 %v12480_v11, 16 }
  0x8d   :  { %14308 = vmatpush3.bf16.msra.mxu1 %v15251_v28  ;;  %14315 = vmatprep.mubr.msk.bf16.mxu1 %vm279_vm0, %v15264_v34  ;;  %v15279_v24 = vld [vmem:[%s19885_s26 + $0x8] sm:$0xff]   ;;  %v2893_v25 = vrot.slane %v2892_v15, 4  ;;  %v2916_v26 = vrot.slane %v2914_v17, 4  ;;  %v2919_v27 = vrot.slane %v2917_v18, 5  ;;  %v2884_v28 = vsel %vm15867_vm3, %v2879_v19, %v2883_v1  ;;  %v15280_v34 = vld [vmem:[%s19885_s26 + $0x30] sm:$0xff]   ;;  %v16466_v58 = vld [vmem:[%s19885_s26 + $0xb8] sm:$0xff]  }
  0x8e   :  { %14309 = vmatprep.subr.bf16.mxu1 %v15257_v33  ;;  %v2906_v29 = vor.u32 %v2905_v21, %v2902_v20  ;;  %v2911_v30 = vrot.slane %v2909_v16, 5  ;;  %v15284_v52 = vld [vmem:[%s19885_s26 + $0x88] sm:$0xff]   ;;  %v15285_v61 = vld [vmem:[%s19885_s26 + $0x80] sm:$0xff]   ;;  %v15286_v16 = vld [vmem:[%s19885_s26 + $0x78] sm:$0xff]   ;;  %vm8966_vm4 = vcmask 1041409   ;;  %vm11567_vm5 = vcmask 64512  }
  0x8f   :  { %14290 = vmatpush3.bf16.msra.mxu0 %v15256_v31  ;;  %v2925_v31 = vrot.slane %v2923_v23, 5  ;;  %v2898_v32 = vsel %vm15867_vm3, %v2893_v25, %v2897_v5  ;;  %v15283_v60 = vld [vmem:[%s19886_s19 + $0x88] ss:$8 sps:$4 sm:$0xff]   ;;  %v12485_v63 = vld [vmem:[%s19886_s19 + $0x100] sm:$0xf] }
  0x90   :  { %14291 = vmatprep.subr.bf16.mxu0 %v15258_v35  ;;  %v12486_v0 = vld [vmem:[%s19886_s19 + $0x104] sm:$0x1]  ;;  %v15287_v2 = vld [vmem:[%s19886_s19 + $0x118] ss:$8 sps:$4 sm:$0xff]   ;;  %v12488_v4 = vld [vmem:[%s19886_s19 + $0x10c] sm:$0x1] }
  0x91   :  { %14310 = vmatpush3.bf16.msra.mxu1 %v15257_v33  ;;  %v2920_v33 = vor.u32 %v2919_v27, %v2916_v26  ;;  %v2956_v5 = vshrl.u32 %v12485_v63, 16  ;;  %v2959_v6 = vshll.u32 %v12485_v63, 16  ;;  %v2965_v9 = vshll.u32 %v12486_v0, 16  ;;  %v16499_v20 = vld [vmem:[%s19885_s26 + $0xb0] sm:$0xff]  }
  0x92   :  { %14311 = vmatprep.subr.bf16.mxu1 %v15259_v36  ;;  %v2979_v15 = vshll.u32 %v12488_v4, 16 }
  0x93   :  { %14292 = vmatpush3.bf16.msra.mxu0 %v15258_v35  ;;  %v12501_v35 = vcombine.low %v2884_v28, %v2898_v32  ;;  %v2958_v13 = vrot.slane %v2956_v5, 4  ;;  %v15290_v32 = vld [vmem:[%s19885_s26 + $0x70] sm:$0xff]   ;;  %v12563_v5 = vld [vmem:[%s19886_s19 + $0x8] sm:$0xf] }
  0x94   :  { %14293 = vmatprep.subr.bf16.mxu0 %v15260_v37  ;;  %v2981_v25 = vrot.slane %v2979_v15, 5 }
  0x95   :  { %14312 = vmatpush3.bf16.msra.mxu1 %v15259_v36  ;;  %v2907_v36 = vrot.slane %v2906_v29, 4 }
  0x96   :  { %14313 = vmatprep.subr.bf16.mxu1 %v15261_v38 }
  0x97   :  { %14294 = vmatpush3.bf16.msra.mxu0 %v15260_v37  ;;  %v12481_v37 = vld [vmem:[%s19886_s19 + $0xf0] sm:$0xf] }
  0x98   :  { %14323 = vmatprep.subr.bf16.mxu0 %v15265_v40 }
  0x99   :  { %14314 = vmatpush3.bf16.msra.mxu1 %v15261_v38  ;;  %v2921_v38 = vrot.slane %v2920_v33, 4 }
  0x9a   :  { %14296 = vmatmul.mubr.msk.bf16.vlgmr.msra.gmra.mxu0 %vm279_vm0, %v15263_v39  ;;  %14343 = vmatprep.subr.bf16.mxu1 %v15266_v41  ;;  %v12482_v39 = vld [vmem:[%s19886_s19 + $0xf4] sm:$0x1] }
  0x9b   :  { %14324 = vmatpush3.bf16.msra.mxu0 %v15265_v40  ;;  %14299 = vmatprep.mubr.msk.bf16.mxu0 %vm279_vm0, %v15270_v43  ;;  %v12483_v40 = vld [vmem:[%s19886_s19 + $0xf8] sm:$0xf]  ;;  %v2912_v43 = vsel %vm15867_vm3, %v2907_v36, %v2911_v30  ;;  %v16511_v30 = vld [vmem:[%s19885_s26 + $0xa8] sm:$0xff]   ;;  %v16527_v36 = vld [vmem:[%s19885_s26 + $0xa0] sm:$0xff]  }
  0x9c   :  { %14316 = vmatmul.mubr.msk.bf16.vlgmr.msra.gmra.mxu1 %vm279_vm0, %v15267_v42  ;;  %14325 = vmatprep.subr.bf16.mxu0 %v15268_v44  ;;  %v15281_v42 = vld [vmem:[%s19885_s26] sm:$0xff]   ;;  %v2945_v50 = vshll.u32 %v12483_v40, 16 }
  0x9d   :  { %14344 = vmatpush3.bf16.msra.mxu1 %v15266_v41  ;;  %14319 = vmatprep.mubr.msk.bf16.mxu1 %vm279_vm0, %v15274_v45  ;;  %v2928_v41 = vshrl.u32 %v12481_v37, 16  ;;  %v2931_v45 = vshll.u32 %v12481_v37, 16  ;;  %v15296_v37 = vld [vmem:[%s19886_s19 + $0x30] ss:$8 sps:$4 sm:$0xff]  }
  0x9e   :  { %14345 = vmatprep.subr.bf16.mxu1 %v15269_v46  ;;  %v2947_v56 = vrot.slane %v2945_v50, 5 }
  0x9f   :  { %14326 = vmatpush3.bf16.msra.mxu0 %v15268_v44  ;;  %v12484_v44 = vld [vmem:[%s19886_s19 + $0xfc] sm:$0x1] }
  0xa0   :  { %14327 = vmatprep.subr.bf16.mxu0 %v15272_v47  ;;  %v2951_v51 = vshll.u32 %v12484_v44, 16  ;;  %v12574_v44 = vld [vmem:[%s19886_s19 + $0xb4] sm:$0x1] }
  0xa1   :  { %14346 = vmatpush3.bf16.msra.mxu1 %v15269_v46  ;;  %v2937_v46 = vshll.u32 %v12482_v39, 16  ;;  %v16542_v39 = vld [vmem:[%s19885_s26 + $0x98] sm:$0xff]  }
  0xa2   :  { %14300 = vmatmul.mubr.msk.bf16.gmra.mxu0 %vm279_vm0, %v15271_v48  ;;  %14347 = vmatprep.subr.bf16.mxu1 %v15273_v49  ;;  %v2926_v48 = vsel %vm15867_vm3, %v2921_v38, %v2925_v31  ;;  %v2953_v57 = vrot.slane %v2951_v51, 5  ;;  %v15292_v38 = vld [vmem:[%s19885_s26 + $0x68] sm:$0xff]   ;;  %v3510_v51 = vshll.u32 %v12574_v44, 16 }
  0xa3   :  { %14328 = vmatpush3.bf16.msra.mxu0 %v15272_v47  ;;  %14335 = vmatprep.mubr.msk.bf16.mxu0 %vm279_vm0, %v12501_v35  ;;  %v2942_v47 = vshrl.u32 %v12483_v40, 16  ;;  %v2939_v55 = vrot.slane %v2937_v46, 5  ;;  %v12502_v59 = vcombine.low %v2912_v43, %v2926_v48  ;;  %v15294_v40 = vld [vmem:[%s19885_s26 + $0x60] sm:$0xff]   ;;  %v12573_v43 = vld [vmem:[%s19886_s19 + $0xb0] sm:$0xf] }
  0xa4   :  { %14320 = vmatmul.mubr.msk.bf16.gmra.mxu1 %vm279_vm0, %v15275_v53  ;;  %14329 = vmatprep.subr.bf16.mxu0 %v15276_v54  ;;  %v2933_v53 = vrot.slane %v2931_v45, 5  ;;  %v3501_v48 = vshrl.u32 %v12573_v43, 16  ;;  %v3504_v50 = vshll.u32 %v12573_v43, 16 }
  0xa5   :  { %14348 = vmatpush3.bf16.msra.mxu1 %v15273_v49  ;;  %14355 = vmatprep.mubr.msk.bf16.mxu1 %vm279_vm0, %v15282_v3  ;;  %v2930_v49 = vrot.slane %v2928_v41, 4  ;;  %v12487_v3 = vld [vmem:[%s19886_s19 + $0x108] sm:$0xf] }
  0xa6   :  { %14349 = vmatprep.subr.bf16.mxu1 %v15277_v62  ;;  %v2970_v10 = vshrl.u32 %v12487_v3, 16  ;;  %v2973_v11 = vshll.u32 %v12487_v3, 16  ;;  %v12571_v41 = vld [vmem:[%s19886_s19 + $0xa8] sm:$0xf] }
  0xa7   :  { %14330 = vmatpush3.bf16.msra.mxu0 %v15276_v54  ;;  %v2944_v54 = vrot.slane %v2942_v47, 4  ;;  %v3487_v45 = vshrl.u32 %v12571_v41, 16  ;;  %v3490_v46 = vshll.u32 %v12571_v41, 16 }
  0xa8   :  { %14331 = vmatprep.subr.bf16.mxu0 %v15278_v14  ;;  %v2972_v18 = vrot.slane %v2970_v10, 4  ;;  %v2975_v19 = vrot.slane %v2973_v11, 5  ;;  %v12564_v11 = vld [vmem:[%s19886_s19 + $0xc] sm:$0x1] }
  0xa9   :  { %14350 = vmatpush3.bf16.msra.mxu1 %v15277_v62  ;;  %v2934_v62 = vor.u32 %v2933_v53, %v2930_v49  ;;  %v2948_v1 = vor.u32 %v2947_v56, %v2944_v54  ;;  %v16564_v49 = vld [vmem:[%s19885_s26 + $0x90] sm:$0xff]   ;;  %v12576_v53 = vld [vmem:[%s19886_s19 + $0xbc] sm:$0x1]  ;;  %v3489_v54 = vrot.slane %v3487_v45, 4  ;;  %v12569_v45 = vld [vmem:[%s19886_s19 + $0x20] sm:$0xf] }
  0xaa   :  { %14351 = vmatprep.subr.bf16.mxu1 %v15279_v24  ;;  %v2976_v27 = vor.u32 %v2975_v19, %v2972_v18 }
  0xab   :  { %14332 = vmatpush3.bf16.msra.mxu0 %v15278_v14  ;;  %v2935_v7 = vrot.slane %v2934_v62, 4  ;;  %v2949_v12 = vrot.slane %v2948_v1, 4  ;;  %v2961_v14 = vrot.slane %v2959_v6, 5  ;;  %v12578_v62 = vld [vmem:[%s19886_s19 + $0xc4] sm:$0x1] }
  0xac   :  { %14333 = vmatprep.subr.bf16.mxu0 %v15280_v34  ;;  %v2977_v29 = vrot.slane %v2976_v27, 4  ;;  %v3538_v10 = vshll.u32 %v12578_v62, 16  ;;  %v12566_v27 = vld [vmem:[%s19886_s19 + $0x14] sm:$0x1] }
  0xad   :  { %14352 = vmatpush3.bf16.msra.mxu1 %v15279_v24  ;;  %v2940_v17 = vsel %vm15867_vm3, %v2935_v7, %v2939_v55  ;;  %v2954_v21 = vsel %vm15867_vm3, %v2949_v12, %v2953_v57  ;;  %v2962_v23 = vor.u32 %v2961_v14, %v2958_v13  ;;  %v2967_v24 = vrot.slane %v2965_v9, 5 }
  0xae   :  { %14353 = vmatprep.subr.bf16.mxu1 %v15281_v42  ;;  %v12503_v26 = vcombine.low %v2940_v17, %v2954_v21  ;;  %v2982_v33 = vsel %vm15867_vm3, %v2977_v29, %v2981_v25  ;;  %v3492_v55 = vrot.slane %v3490_v46, 5  ;;  %v3503_v57 = vrot.slane %v3501_v48, 4  ;;  %v15297_v17 = vld [vmem:[%s19886_s19 + $0x40] ss:$8 sps:$4 sm:$0xff]  }
  0xaf   :  { %14334 = vmatpush3.bf16.msra.mxu0 %v15280_v34  ;;  %v2963_v28 = vrot.slane %v2962_v23, 4  ;;  %v15289_v34 = vld [vmem:[%s19886_s19 + $0x128] ss:$8 sps:$4 sm:$0xff]   ;;  %v3540_v21 = vrot.slane %v3538_v10, 5  ;;  %v3431_v23 = vshrl.u32 %v12563_v5, 16  ;;  %v3440_v29 = vshll.u32 %v12564_v11, 16 }
  0xb0   :  { %14363 = vmatprep.subr.bf16.mxu0 %v15284_v52  ;;  %v3493_v1 = vor.u32 %v3492_v55, %v3489_v54  ;;  %v3454_v44 = vshll.u32 %v12566_v27, 16  ;;  %v3473_v55 = vshrl.u32 %v12569_v45, 16 }
  0xb1   :  { %14354 = vmatpush3.bf16.msra.mxu1 %v15281_v42  ;;  %v2968_v31 = vsel %vm15867_vm3, %v2963_v28, %v2967_v24  ;;  %v12572_v42 = vld [vmem:[%s19886_s19 + $0xac] sm:$0x1]  ;;  %v15300_v24 = vld [vmem:[%s19886_s19 + $0xd0] ss:$8 sps:$4 sm:$0xff]   ;;  %v3434_v28 = vshll.u32 %v12563_v5, 16 }
  0xb2   :  { %14336 = vmatmul.mubr.msk.bf16.vlgmr.msra.gmra.mxu0 %vm279_vm0, %v12502_v59  ;;  %15143 = vmatprep.subr.bf16.mxu1 %v16466_v58  ;;  %v12504_v35 = vcombine.low %v2968_v31, %v2982_v33  ;;  %v3496_v47 = vshll.u32 %v12572_v42, 16  ;;  %v12577_v59 = vld [vmem:[%s19886_s19 + $0xc0] sm:$0xf]  ;;  %v3494_v12 = vrot.slane %v3493_v1, 4  ;;  %v3433_v33 = vrot.slane %v3431_v23, 4 }
  0xb3   :  { %14364 = vmatpush3.bf16.msra.mxu0 %v15284_v52  ;;  %14339 = vmatprep.mubr.msk.bf16.mxu0 %vm279_vm0, %v12503_v26  ;;  %v12575_v52 = vld [vmem:[%s19886_s19 + $0xb8] sm:$0xf]  ;;  %v3529_v3 = vshrl.u32 %v12577_v59, 16  ;;  %v3532_v4 = vshll.u32 %v12577_v59, 16  ;;  %v3476_v59 = vshll.u32 %v12569_v45, 16 }
  0xb4   :  { %14356 = vmatmul.mubr.msk.bf16.vlgmr.msra.gmra.mxu1 %vm279_vm0, %v15283_v60  ;;  %14365 = vmatprep.subr.bf16.mxu0 %v15285_v61  ;;  %v3498_v56 = vrot.slane %v3496_v47, 5  ;;  %v3506_v60 = vrot.slane %v3504_v50, 5  ;;  %v3515_v63 = vshrl.u32 %v12575_v52, 16  ;;  %v3518_v0 = vshll.u32 %v12575_v52, 16 }
  0xb5   :  { %14359 = vmatprep.mubr.msk.bf16.mxu1 %vm279_vm0, %v15287_v2  ;;  %15149 = vmatpush3.bf16.msra.mxu1 %v16466_v58  ;;  %v3524_v2 = vshll.u32 %v12576_v53, 16  ;;  %v3531_v14 = vrot.slane %v3529_v3, 4  ;;  %v3534_v15 = vrot.slane %v3532_v4, 5  ;;  %v3442_v52 = vrot.slane %v3440_v29, 5 }
  0xb6   :  { %15144 = vmatprep.subr.bf16.mxu1 %v16499_v20  ;;  %v3507_v6 = vor.u32 %v3506_v60, %v3503_v57  ;;  %v3517_v7 = vrot.slane %v3515_v63, 4  ;;  %v3520_v9 = vrot.slane %v3518_v0, 5  ;;  %v3499_v25 = vsel %vm15867_vm3, %v3494_v12, %v3498_v56  ;;  %v12568_v60 = vld [vmem:[%s19886_s19 + $0x1c] sm:$0x1] }
  0xb7   :  { %14366 = vmatpush3.bf16.msra.mxu0 %v15285_v61  ;;  %v3512_v61 = vrot.slane %v3510_v51, 5  ;;  %v3526_v13 = vrot.slane %v3524_v2, 5  ;;  %v3535_v26 = vor.u32 %v3534_v15, %v3531_v14  ;;  %v3456_v57 = vrot.slane %v3454_v44, 5  ;;  %v12570_v2 = vld [vmem:[%s19886_s19 + $0x24] sm:$0x1] }
  0xb8   :  { %14367 = vmatprep.subr.bf16.mxu0 %v15286_v16  ;;  %v3508_v18 = vrot.slane %v3507_v6, 4  ;;  %v3521_v19 = vor.u32 %v3520_v9, %v3517_v7  ;;  %v3475_v63 = vrot.slane %v3473_v55, 4  ;;  %v3478_v3 = vrot.slane %v3476_v59, 5  ;;  %v15302_v59 = vld [vmem:[%s19848_s4 + $0x18] sm:$0xff]  }
  0xb9   :  { %15150 = vmatpush3.bf16.msra.mxu1 %v16499_v20  ;;  %v3468_v4 = vshll.u32 %v12568_v60, 16  ;;  %v3482_v9 = vshll.u32 %v12570_v2, 16 }
  0xba   :  { %15145 = vmatprep.subr.bf16.mxu1 %v16511_v30  ;;  %14340 = vmatmul.mubr.msk.bf16.gmra.mxu0 %vm279_vm0, %v12504_v35  ;;  %v3513_v31 = vsel %vm15867_vm3, %v3508_v18, %v3512_v61  ;;  %v12567_v35 = vld [vmem:[%s19886_s19 + $0x18] sm:$0xf]  ;;  %v3479_v7 = vor.u32 %v3478_v3, %v3475_v63 }
  0xbb   :  { %14368 = vmatpush3.bf16.msra.mxu0 %v15286_v16  ;;  %14375 = vmatprep.mubr.msk.bf16.mxu0 %vm279_vm0, %v15296_v37  ;;  %v12565_v16 = vld [vmem:[%s19886_s19 + $0x10] sm:$0xf]  ;;  %v12593_v37 = vcombine.low %v3499_v25, %v3513_v31  ;;  %v3459_v48 = vshrl.u32 %v12567_v35, 16  ;;  %v3462_v50 = vshll.u32 %v12567_v35, 16  ;;  %v3470_v11 = vrot.slane %v3468_v4, 5 }
  0xbc   :  { %14360 = vmatmul.mubr.msk.bf16.gmra.mxu1 %vm279_vm0, %v15289_v34  ;;  %14369 = vmatprep.subr.bf16.mxu0 %v15290_v32  ;;  %v3445_v34 = vshrl.u32 %v12565_v16, 16  ;;  %v3448_v43 = vshll.u32 %v12565_v16, 16  ;;  %v3480_v12 = vrot.slane %v3479_v7, 4 }
  0xbd   :  { %15151 = vmatpush3.bf16.msra.mxu1 %v16511_v30  ;;  %14399 = vmatprep.mubr.msk.bf16.mxu1 %vm279_vm0, %v12593_v37  ;;  %v3461_v61 = vrot.slane %v3459_v48, 4  ;;  %v3464_v62 = vrot.slane %v3462_v50, 5 }
  0xbe   :  { %15146 = vmatprep.subr.bf16.mxu1 %v16527_v36  ;;  %v3447_v42 = vrot.slane %v3445_v34, 4  ;;  %v3450_v53 = vrot.slane %v3448_v43, 5 }
  0xbf   :  { %14370 = vmatpush3.bf16.msra.mxu0 %v15290_v32  ;;  %v3522_v32 = vrot.slane %v3521_v19, 4  ;;  %v3465_v6 = vor.u32 %v3464_v62, %v3461_v61  ;;  %v15303_v61 = vld [vmem:[%s19848_s4 + $0x10] sm:$0xff]  }
  0xc0   :  { %14371 = vmatprep.subr.bf16.mxu0 %v15292_v38  ;;  %v3451_v56 = vor.u32 %v3450_v53, %v3447_v42 }
  0xc1   :  { %15152 = vmatpush3.bf16.msra.mxu1 %v16527_v36  ;;  %v3527_v41 = vsel %vm15867_vm3, %v3522_v32, %v3526_v13  ;;  %v3466_v10 = vrot.slane %v3465_v6, 4  ;;  %v3484_v13 = vrot.slane %v3482_v9, 5 }
  0xc2   :  { %15147 = vmatprep.subr.bf16.mxu1 %v16542_v39  ;;  %v3452_v1 = vrot.slane %v3451_v56, 4 }
  0xc3   :  { %14372 = vmatpush3.bf16.msra.mxu0 %v15292_v38  ;;  %v3536_v38 = vrot.slane %v3535_v26, 4  ;;  %v3485_v14 = vsel %vm15867_vm3, %v3480_v12, %v3484_v13  ;;  %v962_v13 = vld [vmem:[#allocation2 + $0x18] sm:$0xf] }
  0xc4   :  { %14373 = vmatprep.subr.bf16.mxu0 %v15294_v40 }
  0xc5   :  { %15153 = vmatpush3.bf16.msra.mxu1 %v16542_v39  ;;  %v3541_v46 = vsel %vm15867_vm3, %v3536_v38, %v3540_v21 }
  0xc6   :  { %15148 = vmatprep.subr.bf16.mxu1 %v16564_v49  ;;  %v12594_v51 = vcombine.low %v3527_v41, %v3541_v46 }
  0xc7   :  { %14374 = vmatpush3.bf16.msra.mxu0 %v15294_v40  ;;  %v3436_v40 = vrot.slane %v3434_v28, 5 }
  0xc8   :  { %14383 = vmatprep.subr.bf16.mxu0 %v16466_v58 }
  0xc9   :  { %15154 = vmatpush3.bf16.msra.mxu1 %v16564_v49  ;;  %v3437_v47 = vor.u32 %v3436_v40, %v3433_v33  ;;  %v16654_v40 = vld [vmem:[%s19847_s3] ss:$0 sm:$0xff] }
  0xca   :  { %14376 = vmatmul.mubr.msk.bf16.vlgmr.msra.gmra.mxu0 %vm279_vm0, %v15297_v17 }
  0xcb   :  { %14384 = vmatpush3.bf16.msra.mxu0 %v16466_v58  ;;  %14379 = vmatprep.mubr.msk.bf16.mxu0 %vm279_vm0, %v15300_v24  ;;  %v3438_v54 = vrot.slane %v3437_v47, 4  ;;  %v15301_v58 = vld [vmem:[%s19886_s19 + $0xe0] ss:$8 sps:$4 sm:$0xff]  }
  0xcc   :  { %14385 = vmatprep.subr.bf16.mxu0 %v16499_v20  ;;  %14400 = vmatmul.mubr.msk.bf16.vlgmr.msra.gmra.mxu1 %vm279_vm0, %v12594_v51 }
  0xcd   :  { %v3443_v0 = vsel %vm15867_vm3, %v3438_v54, %v3442_v52 }
  0xcf   :  { %14386 = vmatpush3.bf16.msra.mxu0 %v16499_v20  ;;  %v3457_v20 = vsel %vm15867_vm3, %v3452_v1, %v3456_v57 }
  0xd0   :  { %14387 = vmatprep.subr.bf16.mxu0 %v16511_v30  ;;  %v12591_v5 = vcombine.low %v3443_v0, %v3457_v20 }
  0xd2   :  { %14380 = vmatmul.mubr.msk.bf16.gmra.mxu0 %vm279_vm0, %v15301_v58 }
  0xd3   :  { %14388 = vmatpush3.bf16.msra.mxu0 %v16511_v30  ;;  %14395 = vmatprep.mubr.msk.bf16.mxu0 %vm279_vm0, %v12591_v5  ;;  %v3471_v30 = vsel %vm15867_vm3, %v3466_v10, %v3470_v11 }
  0xd4   :  { %14389 = vmatprep.subr.bf16.mxu0 %v16527_v36  ;;  %v12592_v15 = vcombine.low %v3471_v30, %v3485_v14  ;;  %v965_v30 = vld [vmem:[#allocation2 + $0x1c] sm:$0x1] }
  0xd7   :  { %14390 = vmatpush3.bf16.msra.mxu0 %v16527_v36 }
  0xd8   :  { %14391 = vmatprep.subr.bf16.mxu0 %v16542_v39 }
  0xdb   :  { %14392 = vmatpush3.bf16.msra.mxu0 %v16542_v39 }
  0xdc   :  { %14393 = vmatprep.subr.bf16.mxu0 %v16564_v49 }
  0xdf   :  { %14394 = vmatpush3.bf16.msra.mxu0 %v16564_v49 }
  0xe0   :  { %14403 = vmatprep.subr.bf16.mxu0 %v15302_v59 }
  0xe2   :  { %v14097_v36 = vpop.f32.mrf.mxu0  ;;  %v14117_v16 = vpop.f32.mrf.mxu1  ;;  %14396 = vmatmul.mubr.msk.bf16.vlgmr.msra.gmra.mxu0 %vm279_vm0, %v12592_v15  ;;  %vm18379_vm0 = vmand %vm155_vm14, %vm945_vm6 }
  0xe3   :  { %v468_v32 = vadd.f32 %v14117_v16, %v14097_v36  ;;  %14404 = vmatpush3.bf16.msra.mxu0 %v15302_v59 }
  0xe4   :  { %v326_v17 = vpop.f32.mrf.mxu0  ;;  %v459_v18 = vpop.f32.mrf.mxu1  ;;  %14405 = vmatprep.subr.bf16.mxu0 %v15303_v61 }
  0xe5   :  { %v460_v34 = vadd.f32 %v459_v18, %v326_v17 }
  0xe6   :  { %v14098_v19 = vpop.f32.mrf.mxu0  ;;  %v14118_v21 = vpop.f32.mrf.mxu1 }
  0xe7   :  { %v471_v41 = vadd.f32 %v14118_v21, %v14098_v19  ;;  %14406 = vmatpush3.bf16.msra.mxu0 %v15303_v61 }
  0xe8   :  { %v329_v39 = vpop.f32.mrf.mxu0  ;;  %v462_v23 = vpop.f32.mrf.mxu1 }
  0xe9   :  { %v463_v46 = vadd.f32 %v462_v23, %v329_v39 }
  0xea   :  { %v14101_v24 = vpop.f32.mrf.mxu0  ;;  %v14121_v25 = vpop.f32.mrf.mxu1 }
  0xeb   :  { %v484_v52 = vadd.f32 %v14121_v25, %v14101_v24 }
  0xec   :  { %v342_v26 = vpop.f32.mrf.mxu0  ;;  %v475_v27 = vpop.f32.mrf.mxu1 }
  0xed   :  { %v476_v3 = vadd.f32 %v475_v27, %v342_v26 }
  0xee   :  { %v14102_v28 = vpop.f32.mrf.mxu0  ;;  %v14122_v29 = vpop.f32.mrf.mxu1 }
  0xef   :  { %v487_v20 = vadd.f32 %v14122_v29, %v14102_v28 }
  0xf0   :  { %v345_v31 = vpop.f32.mrf.mxu0  ;;  %v478_v33 = vpop.f32.mrf.mxu1 }
  0xf1   :  { %v479_v12 = vadd.f32 %v478_v33, %v345_v31 }
  0xfa   :  { %v14137_v49 = vpop.f32.mrf.mxu0  ;;  %v14157_v37 = vpop.f32.mrf.mxu1 }
  0xfb   :  { %v647_v35 = vadd.f32 %v14137_v49, %v468_v32  ;;  %v947_v49 = vld [vmem:[#allocation2 + $0x8] sm:$0xf] }
  0xfc   :  { %v614_v38 = vpop.f32.mrf.mxu0  ;;  %v777_v44 = vpop.f32.mrf.mxu1 }
  0xfd   :  { %v645_v42 = vadd.f32 %v614_v38, %v460_v34  ;;  %v810_v43 = vadd.f32 %v14157_v37, %v647_v35  ;;  %v953_v34 = vld [vmem:[#allocation2 + $0xc] sm:$0x1] }
  0xfe   :  { %v14138_v45 = vpop.f32.mrf.mxu0  ;;  %v14158_v51 = vpop.f32.mrf.mxu1 }
  0xff   :  { %v825_v47 = vadd.f32 %v16654_v40, %v810_v43  ;;  %v648_v48 = vadd.f32 %v14138_v45, %v471_v41  ;;  %v808_v50 = vadd.f32 %v777_v44, %v645_v42 }
 0x100   :  { %v617_v53 = vpop.f32.mrf.mxu0  ;;  %v780_v57 = vpop.f32.mrf.mxu1 }
 0x101   :  { %v833_v54 = vmax.f32 %v825_v47, 0.0  ;;  %v823_v55 = vadd.f32 %v16654_v40, %v808_v50  ;;  %v646_v58 = vadd.f32 %v617_v53, %v463_v46  ;;  %v811_v56 = vadd.f32 %v14158_v51, %v648_v48  ;;  %v968_v47 = vld [vmem:[#allocation2 + $0x20] sm:$0xf]  ;;  %v971_v48 = vld [vmem:[#allocation2 + $0x24] sm:$0x1] }
 0x102   :  { %v14141_v60 = vpop.f32.mrf.mxu0  ;;  %v14161_v2 = vpop.f32.mrf.mxu1 }
 0x103   :  { %v13526_v62 = vpack.c.bf16 %v833_v54, %v833_v54  ;;  %v831_v63 = vmax.f32 %v823_v55, 0.0  ;;  %v826_v0 = vadd.f32 %v16654_v40, %v811_v56  ;;  %v651_v1 = vadd.f32 %v14141_v60, %v484_v52  ;;  %v956_v56 = vld [vmem:[#allocation2 + $0x10] sm:$0xf] }
 0x104   :  { %v809_v4 = vadd.f32 %v780_v57, %v646_v58  ;;  %v630_v5 = vpop.f32.mrf.mxu0  ;;  %v793_v11 = vpop.f32.mrf.mxu1 }
 0x105   :  { %v880_v6 = vshrl.u32 %v13526_v62, 16  ;;  %v883_v7 = vshll.u32 %v13526_v62, 16  ;;  %v13524_v9 = vpack.c.bf16 %v831_v63, %v831_v63  ;;  %v834_v10 = vmax.f32 %v826_v0, 0.0  ;;  %v959_v0 = vld [vmem:[#allocation2 + $0x14] sm:$0x1] }
 0x106   :  { %v824_v14 = vadd.f32 %v16654_v40, %v809_v4  ;;  %v649_v15 = vadd.f32 %v630_v5, %v476_v3  ;;  %v814_v36 = vadd.f32 %v14161_v2, %v651_v1  ;;  %v14142_v16 = vpop.f32.mrf.mxu0  ;;  %v14162_v28 = vpop.f32.mrf.mxu1 }
 0x107   :  { %v882_v17 = vrot.slane %v880_v6, 7  ;;  %v864_v19 = vshrl.u32 %v13524_v9, 16  ;;  %v867_v21 = vshll.u32 %v13524_v9, 16  ;;  %v13527_v39 = vpack.c.bf16 %v834_v10, %v834_v10  ;;  %v989_v9 = vld [vmem:[#allocation2 + $0x4c] sm:$0x1] }
 0x108   :  { %v832_v24 = vmax.f32 %v824_v14, 0.0  ;;  %v829_v25 = vadd.f32 %v16654_v40, %v814_v36  ;;  %v652_v26 = vadd.f32 %v14142_v16, %v487_v20  ;;  %v812_v27 = vadd.f32 %v793_v11, %v649_v15  ;;  %v633_v42 = vpop.f32.mrf.mxu0  ;;  %v796_v54 = vpop.f32.mrf.mxu1 }
 0x109   :  { %v885_v29 = vor.u32 %v883_v7, %v882_v17  ;;  %v886_v31 = vrot.slane %v882_v17, 4  ;;  %v866_v32 = vrot.slane %v864_v19, 7  ;;  %v888_v33 = vshrl.u32 %v13527_v39, 16  ;;  %v986_v7 = vld [vmem:[#allocation2 + $0x48] sm:$0xf] }
 0x10a   :  { %v891_v35 = vshll.u32 %v13527_v39, 16  ;;  %v13525_v37 = vpack.c.bf16 %v832_v24, %v832_v24  ;;  %v837_v38 = vmax.f32 %v829_v25, 0.0  ;;  %v827_v41 = vadd.f32 %v16654_v40, %v812_v27  ;;  %v974_v25 = vld [vmem:[#allocation2 + $0x38] sm:$0xf] }
 0x10b   :  { %v963_v43 = vsel %vm16668_vm8, %v885_v29, %v962_v13  ;;  %v966_v44 = vsel %vm16674_vm9, %v886_v31, %v965_v30  ;;  %v869_v45 = vor.u32 %v867_v21, %v866_v32  ;;  %v870_v46 = vrot.slane %v866_v32, 4 }
 0x10c   :  { %964 = vst [vmem:[#allocation2 + $0x18] sm:$0xf] %v963_v43  ;;  %967 = vst [vmem:[#allocation2 + $0x1c] sm:$0x1] %v966_v44  ;;  %v890_v50 = vrot.slane %v888_v33, 7  ;;  %v872_v51 = vshrl.u32 %v13525_v37, 16  ;;  %v13530_v53 = vpack.c.bf16 %v837_v38, %v837_v38  ;;  %v650_v59 = vadd.f32 %v633_v42, %v479_v12 }
 0x10d   :  { %v875_v52 = vshll.u32 %v13525_v37, 16  ;;  %v948_v55 = vsel %vm16668_vm8, %v869_v45, %v947_v49  ;;  %v954_v58 = vsel %vm16674_vm9, %v870_v46, %v953_v34  ;;  %v835_v57 = vmax.f32 %v827_v41, 0.0 }
 0x10e   :  { %949 = vst [vmem:[#allocation2 + $0x8] sm:$0xf] %v948_v55  ;;  %955 = vst [vmem:[#allocation2 + $0xc] sm:$0x1] %v954_v58  ;;  %v893_v60 = vor.u32 %v891_v35, %v890_v50  ;;  %v894_v61 = vrot.slane %v890_v50, 4  ;;  %v874_v62 = vrot.slane %v872_v51, 7  ;;  %v815_v2 = vadd.f32 %v14162_v28, %v652_v26 }
 0x10f   :  { %v912_v63 = vshrl.u32 %v13530_v53, 16  ;;  %v13528_v1 = vpack.c.bf16 %v835_v57, %v835_v57  ;;  %v813_v3 = vadd.f32 %v796_v54, %v650_v59  ;;  %v915_v11 = vshll.u32 %v13530_v53, 16  ;;  %v977_v26 = vld [vmem:[#allocation2 + $0x3c] sm:$0x1]  ;;  %v980_v53 = vld [vmem:[#allocation2 + $0x40] sm:$0xf] }
 0x110   :  { %v969_v20 = vsel %vm16668_vm8, %v893_v60, %v968_v47  ;;  %v972_v4 = vsel %vm16674_vm9, %v894_v61, %v971_v48  ;;  %v877_v5 = vor.u32 %v875_v52, %v874_v62  ;;  %v878_v6 = vrot.slane %v874_v62, 4  ;;  %v992_v47 = vld [vmem:[#allocation2 + $0x50] sm:$0xf]  ;;  %v995_v52 = vld [vmem:[#allocation2 + $0x54] sm:$0x1] }
 0x111   :  { %970 = vst [vmem:[#allocation2 + $0x20] sm:$0xf] %v969_v20  ;;  %973 = vst [vmem:[#allocation2 + $0x24] sm:$0x1] %v972_v4  ;;  %v914_v10 = vrot.slane %v912_v63, 7  ;;  %v896_v12 = vshrl.u32 %v13528_v1, 16  ;;  %v830_v13 = vadd.f32 %v16654_v40, %v815_v2  ;;  %v828_v36 = vadd.f32 %v16654_v40, %v813_v3 }
 0x112   :  { %v957_v30 = vsel %vm16668_vm8, %v877_v5, %v956_v56  ;;  %v960_v14 = vsel %vm16674_vm9, %v878_v6, %v959_v0  ;;  %v899_v15 = vshll.u32 %v13528_v1, 16  ;;  %v14177_v16 = vpop.f32.mrf.mxu0  ;;  %v14197_v24 = vpop.f32.mrf.mxu1  ;;  %v983_v54 = vld [vmem:[#allocation2 + $0x44] sm:$0x1]  ;;  %v3877_v20 = vld [vmem:[#allocation2 + $0xc0] sm:$0xf] }
 0x113   :  { %958 = vst [vmem:[#allocation2 + $0x10] sm:$0xf] %v957_v30  ;;  %961 = vst [vmem:[#allocation2 + $0x14] sm:$0x1] %v960_v14  ;;  %v917_v17 = vor.u32 %v915_v11, %v914_v10  ;;  %v918_v19 = vrot.slane %v914_v10, 4  ;;  %v898_v21 = vrot.slane %v896_v12, 7  ;;  %v1397_v10 = vadd.f32 %v14197_v24, %v14177_v16 }
 0x114   :  { %v838_v39 = vmax.f32 %v830_v13, 0.0  ;;  %v836_v27 = vmax.f32 %v828_v36, 0.0  ;;  %v1255_v28 = vpop.f32.mrf.mxu0  ;;  %v1388_v49 = vpop.f32.mrf.mxu1  ;;  %v3894_v5 = vshrl.u32 %v3877_v20, 16  ;;  %v3897_v6 = vshll.u32 %v3877_v20, 16  ;;  %v16715_v24 = vld [vmem:[#allocation2 + $0xc4] sm:$0x1] }
 0x115   :  { %v987_v29 = vsel %vm16668_vm8, %v917_v17, %v986_v7  ;;  %v990_v31 = vsel %vm16674_vm9, %v918_v19, %v989_v9  ;;  %v901_v32 = vor.u32 %v899_v15, %v898_v21  ;;  %v902_v33 = vrot.slane %v898_v21, 4 }
 0x116   :  { %988 = vst [vmem:[#allocation2 + $0x48] sm:$0xf] %v987_v29  ;;  %991 = vst [vmem:[#allocation2 + $0x4c] sm:$0x1] %v990_v31  ;;  %v13531_v34 = vpack.c.bf16 %v838_v39, %v838_v39  ;;  %v13529_v35 = vpack.c.bf16 %v836_v27, %v836_v27  ;;  %v14178_v37 = vpop.f32.mrf.mxu0  ;;  %v14198_v44 = vpop.f32.mrf.mxu1  ;;  %v3896_v12 = vrot.slane %v3894_v5, 4  ;;  %v3899_v13 = vrot.slane %v3897_v6, 5 }
 0x117   :  { %v975_v38 = vsel %vm16668_vm8, %v901_v32, %v974_v25  ;;  %v978_v41 = vsel %vm16674_vm9, %v902_v33, %v977_v26  ;;  %v1389_v30 = vadd.f32 %v1388_v49, %v1255_v28  ;;  %v1400_v17 = vadd.f32 %v14198_v44, %v14178_v37 }
 0x118   :  { %976 = vst [vmem:[#allocation2 + $0x38] sm:$0xf] %v975_v38  ;;  %979 = vst [vmem:[#allocation2 + $0x3c] sm:$0x1] %v978_v41  ;;  %v920_v42 = vshrl.u32 %v13531_v34, 16  ;;  %v904_v43 = vshrl.u32 %v13529_v35, 16  ;;  %v1258_v51 = vpop.f32.mrf.mxu0  ;;  %v1391_v60 = vpop.f32.mrf.mxu1  ;;  %v3900_v26 = vor.u32 %v3899_v13, %v3896_v12 }
 0x119   :  { %v923_v46 = vshll.u32 %v13531_v34, 16  ;;  %v907_v50 = vshll.u32 %v13529_v35, 16  ;;  %v1392_v27 = vadd.f32 %v1391_v60, %v1258_v51  ;;  %v3903_v49 = vshll.u32 %v16715_v24, 16 }
 0x11a   :  { %v922_v45 = vrot.slane %v920_v42, 7  ;;  %v906_v48 = vrot.slane %v904_v43, 7  ;;  %v14181_v59 = vpop.f32.mrf.mxu0  ;;  %v14201_v1 = vpop.f32.mrf.mxu1  ;;  %v16719_v42 = vrot.slane %v3900_v26, 4  ;;  %v16721_v43 = vld [vmem:[#allocation2 + $0xf0] sm:$0xf]  ;;  %v15305_v26 = vld [vmem:[%s19848_s4] sm:$0xff]  }
 0x11c   :  { %v925_v55 = vor.u32 %v923_v46, %v922_v45  ;;  %v926_v58 = vrot.slane %v922_v45, 4  ;;  %v909_v56 = vor.u32 %v907_v50, %v906_v48  ;;  %v910_v57 = vrot.slane %v906_v48, 4  ;;  %v1271_v2 = vpop.f32.mrf.mxu0  ;;  %v1404_v3 = vpop.f32.mrf.mxu1  ;;  %v16723_v45 = vld [vmem:[#allocation2 + $0x8] sm:$0xf] }
 0x11d   :  { %v4783_v5 = vshrl.u32 %v16723_v45, 16 }
 0x11e   :  { %v993_v61 = vsel %vm16668_vm8, %v925_v55, %v992_v47  ;;  %v996_v62 = vsel %vm16674_vm9, %v926_v58, %v995_v52  ;;  %v981_v63 = vsel %vm16668_vm8, %v909_v56, %v980_v53  ;;  %v984_v0 = vsel %vm16674_vm9, %v910_v57, %v983_v54  ;;  %v14182_v4 = vpop.f32.mrf.mxu0  ;;  %v14202_v7 = vpop.f32.mrf.mxu1 }
 0x11f   :  { %994 = vst [vmem:[#allocation2 + $0x50] sm:$0xf] %v993_v61  ;;  %997 = vst [vmem:[#allocation2 + $0x54] sm:$0x1] %v996_v62  ;;  %v1413_v52 = vadd.f32 %v14201_v1, %v14181_v59  ;;  %v16726_v53 = vrot.slane %v3903_v49, 5  ;;  %v3950_v54 = vshrl.u32 %v16721_v43, 16  ;;  %v1405_v58 = vadd.f32 %v1404_v3, %v1271_v2 }
 0x120   :  { %982 = vst [vmem:[#allocation2 + $0x40] sm:$0xf] %v981_v63  ;;  %985 = vst [vmem:[#allocation2 + $0x44] sm:$0x1] %v984_v0  ;;  %v1274_v9 = vpop.f32.mrf.mxu0  ;;  %v1407_v14 = vpop.f32.mrf.mxu1  ;;  %v3953_v55 = vshll.u32 %v16721_v43, 16  ;;  %v1416_v62 = vadd.f32 %v14202_v7, %v14182_v4 }
 0x121   :  { %v1408_v63 = vadd.f32 %v1407_v14, %v1274_v9  ;;  %v1993_v0 = vld [vmem:[#allocation2 + $0x78] sm:$0xf]  ;;  %v1996_v1 = vld [vmem:[#allocation2 + $0x7c] sm:$0x1]  ;;  %v1984_v7 = vld [vmem:[#allocation2 + $0x6c] sm:$0x1] }
 0x122   :  { %v15304_v14 = vld [vmem:[%s19848_s4 + $0x8] sm:$0xff]  }
 0x123   :  { %14415 = vmatprep.subr.bf16.mxu1 %v15304_v14 }
 0x124   :  { %14416 = vmatpush3.bf16.msra.mxu1 %v15304_v14 }
 0x125   :  { %14417 = vmatprep.subr.bf16.mxu1 %v15305_v26 }
 0x128   :  { %14418 = vmatpush3.bf16.msra.mxu1 %v15305_v26  ;;  %v16786_v26 = vld [vmem:[#allocation2 + $0x18] sm:$0xf] }
 0x12a   :  { %v14217_v11 = vpop.f32.mrf.mxu0  ;;  %v14237_v21 = vpop.f32.mrf.mxu1 }
 0x12b   :  { %v1574_v15 = vadd.f32 %v14217_v11, %v1397_v10 }
 0x12c   :  { %v1541_v36 = vpop.f32.mrf.mxu0  ;;  %v1814_v31 = vpop.f32.mrf.mxu1 }
 0x12d   :  { %v1572_v19 = vadd.f32 %v1541_v36, %v1389_v30  ;;  %v1847_v39 = vadd.f32 %v14237_v21, %v1574_v15  ;;  %v1981_v30 = vld [vmem:[#allocation2 + $0x68] sm:$0xf] }
 0x12e   :  { %v14218_v25 = vpop.f32.mrf.mxu0  ;;  %v14238_v28 = vpop.f32.mrf.mxu1 }
 0x12f   :  { %v1575_v29 = vadd.f32 %v14218_v25, %v1400_v17  ;;  %v1862_v32 = vadd.f32 %v16654_v40, %v1847_v39  ;;  %v1845_v33 = vadd.f32 %v1814_v31, %v1572_v19 }
 0x130   :  { %v1544_v16 = vpop.f32.mrf.mxu0  ;;  %v1817_v44 = vpop.f32.mrf.mxu1 }
 0x131   :  { %v1573_v34 = vadd.f32 %v1544_v16, %v1392_v27  ;;  %v1870_v35 = vmax.f32 %v1862_v32, 0.0  ;;  %v1860_v37 = vadd.f32 %v16654_v40, %v1845_v33  ;;  %v1848_v38 = vadd.f32 %v14238_v28, %v1575_v29  ;;  %v16738_v27 = vld [vmem:[#allocation2 + $0x10] sm:$0xf]  ;;  %v2002_v28 = vld [vmem:[#allocation2 + $0x84] sm:$0x1] }
 0x132   :  { %v14221_v41 = vpop.f32.mrf.mxu0  ;;  %v4786_v29 = vshll.u32 %v16723_v45, 16  ;;  %v2008_v45 = vld [vmem:[#allocation2 + $0x9c] sm:$0x1] }
 0x133   :  { %v13534_v46 = vpack.c.bf16 %v1870_v35, %v1870_v35  ;;  %v1868_v47 = vmax.f32 %v1860_v37, 0.0  ;;  %v1863_v48 = vadd.f32 %v16654_v40, %v1848_v38  ;;  %v1846_v50 = vadd.f32 %v1817_v44, %v1573_v34  ;;  %v1999_v34 = vld [vmem:[#allocation2 + $0x80] sm:$0xf] }
 0x134   :  { %v1557_v51 = vpop.f32.mrf.mxu0  ;;  %v1578_v2 = vadd.f32 %v14221_v41, %v1413_v52 }
 0x135   :  { %v1917_v56 = vshrl.u32 %v13534_v46, 16  ;;  %v13532_v57 = vpack.c.bf16 %v1868_v47, %v1868_v47  ;;  %v1871_v60 = vmax.f32 %v1863_v48, 0.0  ;;  %v1861_v20 = vadd.f32 %v16654_v40, %v1846_v50  ;;  %v14241_v21 = vpop.f32.mrf.mxu1  ;;  %v16752_v50 = vld [vmem:[%s19848_s4 + $0x28] sm:$0xff]  }
 0x136   :  { %v14222_v61 = vpop.f32.mrf.mxu0  ;;  %v1920_v59 = vshll.u32 %v13534_v46, 16  ;;  %v1576_v15 = vadd.f32 %v1557_v51, %v1405_v58  ;;  %v1851_v38 = vadd.f32 %v14241_v21, %v1578_v2  ;;  %v15308_v51 = vld [vmem:[%s19848_s4 + $0x38] sm:$0xff]   ;;  %14427 = vmatprep.subr.bf16.mxu0 %v16752_v50 }
 0x137   :  { %v1919_v6 = vrot.slane %v1917_v56, 7  ;;  %v1901_v10 = vshrl.u32 %v13532_v57, 16  ;;  %v13535_v11 = vpack.c.bf16 %v1871_v60, %v1871_v60  ;;  %v1904_v13 = vshll.u32 %v13532_v57, 16  ;;  %v1830_v41 = vpop.f32.mrf.mxu1  ;;  %14439 = vmatprep.subr.bf16.mxu1 %v15308_v51 }
 0x138   :  { %v1560_v12 = vpop.f32.mrf.mxu0  ;;  %v1869_v3 = vmax.f32 %v1861_v20, 0.0  ;;  %v1579_v39 = vadd.f32 %v14222_v61, %v1416_v62  ;;  %v1849_v48 = vadd.f32 %v1830_v41, %v1576_v15  ;;  %v1866_v57 = vadd.f32 %v16654_v40, %v1851_v38  ;;  %v1987_v61 = vld [vmem:[#allocation2 + $0x70] sm:$0xf]  ;;  %v1990_v62 = vld [vmem:[#allocation2 + $0x74] sm:$0x1] }
 0x139   :  { %v1922_v36 = vor.u32 %v1920_v59, %v1919_v6  ;;  %v1923_v17 = vrot.slane %v1919_v6, 4  ;;  %v1903_v4 = vrot.slane %v1901_v10, 7  ;;  %v1925_v9 = vshrl.u32 %v13535_v11, 16  ;;  %v14242_v60 = vpop.f32.mrf.mxu1 }
 0x13a   :  { %v13533_v19 = vpack.c.bf16 %v1869_v3, %v1869_v3  ;;  %v1577_v25 = vadd.f32 %v1560_v12, %v1408_v63  ;;  %v1928_v35 = vshll.u32 %v13535_v11, 16  ;;  %v1864_v63 = vadd.f32 %v16654_v40, %v1849_v48 }
 0x13b   :  { %v1994_v31 = vsel %vm16668_vm8, %v1922_v36, %v1993_v0  ;;  %v1997_v32 = vsel %vm16674_vm9, %v1923_v17, %v1996_v1  ;;  %v1906_v33 = vor.u32 %v1904_v13, %v1903_v4  ;;  %v1907_v16 = vrot.slane %v1903_v4, 4  ;;  %v1833_v12 = vpop.f32.mrf.mxu1  ;;  %v16766_v13 = vld [vmem:[#allocation2 + $0xc0] sm:$0xe] }
 0x13c   :  { %1995 = vst [vmem:[#allocation2 + $0x78] sm:$0xf] %v1994_v31  ;;  %1998 = vst [vmem:[#allocation2 + $0x7c] sm:$0x1] %v1997_v32  ;;  %v1927_v49 = vrot.slane %v1925_v9, 7  ;;  %v1909_v37 = vshrl.u32 %v13533_v19, 16  ;;  %v1852_v0 = vadd.f32 %v14242_v60, %v1579_v39  ;;  %v1850_v15 = vadd.f32 %v1833_v12, %v1577_v25 }
 0x13d   :  { %v1982_v44 = vsel %vm16668_vm8, %v1906_v33, %v1981_v30  ;;  %v1985_v46 = vsel %vm16674_vm9, %v1907_v16, %v1984_v7  ;;  %v1912_v47 = vshll.u32 %v13533_v19, 16  ;;  %v4797_v20 = vshrl.u32 %v16738_v27, 16  ;;  %v16784_v25 = vld [vmem:[#allocation2 + $0xf4] sm:$0x1]  ;;  %v16798_v33 = vld [vmem:[#allocation2 + $0x20] sm:$0xf] }
 0x13e   :  { %1983 = vst [vmem:[#allocation2 + $0x68] sm:$0xf] %v1982_v44  ;;  %1986 = vst [vmem:[#allocation2 + $0x6c] sm:$0x1] %v1985_v46  ;;  %v1930_v52 = vor.u32 %v1928_v35, %v1927_v49  ;;  %v1931_v58 = vrot.slane %v1927_v49, 4  ;;  %v1911_v56 = vrot.slane %v1909_v37, 7  ;;  %v1867_v3 = vadd.f32 %v16654_v40, %v1852_v0 }
 0x13f   :  { %v4800_v6 = vshll.u32 %v16738_v27, 16  ;;  %v1874_v30 = vmax.f32 %v1866_v57, 0.0  ;;  %v1872_v2 = vmax.f32 %v1864_v63, 0.0  ;;  %v16777_v7 = vrot.slane %v3950_v54, 4  ;;  %v2017_v49 = vld [vmem:[#allocation2 + $0xa8] sm:$0xf] }
 0x140   :  { %v2000_v59 = vsel %vm16668_vm8, %v1930_v52, %v1999_v34  ;;  %v2003_v1 = vsel %vm16674_vm9, %v1931_v58, %v2002_v28  ;;  %v1914_v10 = vor.u32 %v1912_v47, %v1911_v56  ;;  %v1915_v11 = vrot.slane %v1911_v56, 4  ;;  %v2020_v35 = vld [vmem:[#allocation2 + $0xac] sm:$0x1]  ;;  %v2005_v58 = vld [vmem:[#allocation2 + $0x98] sm:$0xf] }
 0x141   :  { %2001 = vst [vmem:[#allocation2 + $0x80] sm:$0xf] %v2000_v59  ;;  %2004 = vst [vmem:[#allocation2 + $0x84] sm:$0x1] %v2003_v1  ;;  %v16781_v9 = vrot.slane %v3953_v55, 5  ;;  %v13538_v14 = vpack.c.bf16 %v1874_v30, %v1874_v30  ;;  %v13536_v19 = vpack.c.bf16 %v1872_v2, %v1872_v2  ;;  %v1875_v21 = vmax.f32 %v1867_v3, 0.0 }
 0x142   :  { %v1988_v36 = vsel %vm16668_vm8, %v1914_v10, %v1987_v61  ;;  %v1991_v17 = vsel %vm16674_vm9, %v1915_v11, %v1990_v62  ;;  %v16773_v4 = vpop.f32.mrf.mxu0  ;;  %v1865_v39 = vadd.f32 %v16654_v40, %v1850_v15  ;;  %v3959_v54 = vshll.u32 %v16784_v25, 16  ;;  %v4769_v59 = vld [vmem:[#allocation2 + $0x14] sm:$0x1] }
 0x143   :  { %1989 = vst [vmem:[#allocation2 + $0x70] sm:$0xf] %v1988_v36  ;;  %1992 = vst [vmem:[#allocation2 + $0x74] sm:$0x1] %v1991_v17  ;;  %v12652_v43 = vrot.slane %v16766_v13, 9  ;;  %v16794_v55 = vrot.slane %v4797_v20, 4  ;;  %v13539_v37 = vpack.c.bf16 %v1875_v21, %v1875_v21 }
 0x144   :  { %v16788_v27 = vpop.f32.mrf.mxu1  ;;  %v16790_v31 = vpop.f32.mrf.mxu0  ;;  %v16796_v32 = vrot.slane %v4800_v6, 5  ;;  %v1949_v16 = vshrl.u32 %v13538_v14, 16  ;;  %v1933_v40 = vshrl.u32 %v13536_v19, 16  ;;  %v16802_v34 = vrot.slane %v4783_v5, 4  ;;  %v16819_v6 = vld [vmem:[#allocation2 + $0xc] sm:$0x1] }
 0x145   :  { %v16806_v28 = vrot.slane %v4786_v29, 5  ;;  %v1873_v38 = vmax.f32 %v1865_v39, 0.0  ;;  %v4811_v46 = vshrl.u32 %v16786_v26, 16  ;;  %v4814_v47 = vshll.u32 %v16786_v26, 16  ;;  %v2023_v17 = vld [vmem:[#allocation2 + $0xb0] sm:$0xf] }
 0x146   :  { %v16808_v41 = vpop.f32.mrf.mxu1  ;;  %v16810_v44 = vpop.f32.mrf.mxu0  ;;  %v1951_v48 = vrot.slane %v1949_v16, 7  ;;  %v1952_v51 = vshll.u32 %v13538_v14, 16  ;;  %v1935_v5 = vrot.slane %v1933_v40, 7  ;;  %v1936_v52 = vshll.u32 %v13536_v19, 16  ;;  %v2026_v14 = vld [vmem:[#allocation2 + $0xb4] sm:$0x1] }
 0x147   :  { %v1957_v29 = vshrl.u32 %v13539_v37, 16  ;;  %v13537_v56 = vpack.c.bf16 %v1873_v38, %v1873_v38  ;;  %v4803_v60 = vor.u32 %v16796_v32, %v16794_v55  ;;  %v4825_v61 = vshrl.u32 %v16798_v33, 16  ;;  %v2011_v19 = vld [vmem:[#allocation2 + $0xa0] sm:$0xf]  ;;  %v2014_v32 = vld [vmem:[#allocation2 + $0xa4] sm:$0x1] }
 0x148   :  { %v16814_v57 = vpop.f32.mrf.mxu1  ;;  %v1954_v62 = vor.u32 %v1952_v51, %v1951_v48  ;;  %v1955_v63 = vrot.slane %v1951_v48, 4  ;;  %v1938_v0 = vor.u32 %v1936_v52, %v1935_v5  ;;  %v1939_v20 = vrot.slane %v1935_v5, 4  ;;  %v16821_v12 = vpop.f32.mrf.mxu0  ;;  %v4774_v48 = vld [vmem:[#allocation2 + $0x38] sm:$0xf] }
 0x149   :  { %v1959_v1 = vrot.slane %v1957_v29, 7  ;;  %v1960_v10 = vshll.u32 %v13539_v37, 16  ;;  %v1941_v11 = vshrl.u32 %v13537_v56, 16  ;;  %v4828_v30 = vshll.u32 %v16798_v33, 16 }
 0x14a   :  { %v2018_v2 = vsel %vm16668_vm8, %v1954_v62, %v2017_v49  ;;  %v2021_v3 = vsel %vm16674_vm9, %v1955_v63, %v2020_v35  ;;  %v2006_v15 = vsel %vm16668_vm8, %v1938_v0, %v2005_v58  ;;  %v2009_v36 = vsel %vm16674_vm9, %v1939_v20, %v2008_v45  ;;  %v16832_v33 = vpop.f32.mrf.mxu1  ;;  %v16834_v16 = vpop.f32.mrf.mxu0  ;;  %v4467_v35 = vld [vmem:[#allocation2 + $0xf0] sm:$0xe]  ;;  %v4771_v0 = vld [vmem:[#allocation2 + $0x1c] sm:$0x1] }
 0x14b   :  { %2019 = vst [vmem:[#allocation2 + $0xa8] sm:$0xf] %v2018_v2  ;;  %2022 = vst [vmem:[#allocation2 + $0xac] sm:$0x1] %v2021_v3  ;;  %v1962_v21 = vor.u32 %v1960_v10, %v1959_v1  ;;  %v1963_v39 = vrot.slane %v1959_v1, 4  ;;  %v1943_v26 = vrot.slane %v1941_v11, 7  ;;  %v3956_v40 = vor.u32 %v16781_v9, %v16777_v7 }
 0x14c   :  { %2007 = vst [vmem:[#allocation2 + $0x98] sm:$0xf] %v2006_v15  ;;  %2010 = vst [vmem:[#allocation2 + $0x9c] sm:$0x1] %v2009_v36  ;;  %v1944_v55 = vshll.u32 %v13537_v56, 16  ;;  %v4492_v49 = vrot.slane %v16715_v24, 5  ;;  %v16844_v45 = vpop.f32.mrf.mxu1  ;;  %v4789_v24 = vor.u32 %v16806_v28, %v16802_v34  ;;  %v16852_v63 = vpop.f32.mrf.mxu0 }
 0x14d   :  { %v4792_v37 = vshll.u32 %v16819_v6, 16  ;;  %v4806_v38 = vshll.u32 %v4769_v59, 16  ;;  %v2024_v51 = vsel %vm16668_vm8, %v1962_v21, %v2023_v17  ;;  %v2027_v5 = vsel %vm16674_vm9, %v1963_v39, %v2026_v14 }
 0x14e   :  { %v1946_v52 = vor.u32 %v1944_v55, %v1943_v26  ;;  %v1947_v58 = vrot.slane %v1943_v26, 4  ;;  %2025 = vst [vmem:[#allocation2 + $0xb0] sm:$0xf] %v2024_v51  ;;  %2028 = vst [vmem:[#allocation2 + $0xb4] sm:$0x1] %v2027_v5  ;;  %v4804_v7 = vrot.slane %v4803_v60, 4  ;;  %v16854_v10 = vpop.f32.mrf.mxu1  ;;  %v16865_v2 = vpop.f32.mrf.mxu0 }
 0x14f   :  { %v4813_v9 = vrot.slane %v4811_v46, 4  ;;  %v4816_v29 = vrot.slane %v4814_v47, 5  ;;  %v4827_v20 = vrot.slane %v4825_v61, 4  ;;  %v4830_v6 = vrot.slane %v4828_v30, 5  ;;  %v4778_v60 = vld [vmem:[#allocation2 + $0x48] sm:$0xf] }
 0x150   :  { %v2012_v56 = vsel %vm16668_vm8, %v1946_v52, %v2011_v19  ;;  %v2015_v62 = vsel %vm16674_vm9, %v1947_v58, %v2014_v32  ;;  %v4839_v59 = vshrl.u32 %v4774_v48, 16  ;;  %v4842_v1 = vshll.u32 %v4774_v48, 16  ;;  %v4776_v30 = vld [vmem:[#allocation2 + $0x40] sm:$0xf]  ;;  %v4775_v19 = vld [vmem:[#allocation2 + $0x3c] sm:$0x1]  ;;  %v16871_v26 = vpop.f32.mrf.mxu1  ;;  %v16891_v52 = vpop.f32.mrf.mxu0 }
 0x151   :  { %2013 = vst [vmem:[#allocation2 + $0xa0] sm:$0xf] %v2012_v56  ;;  %2016 = vst [vmem:[#allocation2 + $0xa4] sm:$0x1] %v2015_v62  ;;  %v16858_v34 = vrot.slane %v3959_v54, 5  ;;  %v12656_v28 = vrot.slane %v4467_v35, 9  ;;  %v4817_v11 = vor.u32 %v4816_v29, %v4813_v9  ;;  %v4831_v14 = vor.u32 %v4830_v6, %v4827_v20 }
 0x152   :  { %v4508_v46 = vrot.slane %v16784_v25, 5  ;;  %v4808_v47 = vrot.slane %v4806_v38, 5  ;;  %v16867_v3 = vrot.slane %v3956_v40, 4  ;;  %v4790_v15 = vrot.slane %v4789_v24, 4  ;;  %v4773_v54 = vld [vmem:[#allocation2 + $0x24] sm:$0x1] }
 0x153   :  { %v4794_v36 = vrot.slane %v4792_v37, 5  ;;  %v4820_v17 = vshll.u32 %v4771_v0, 16  ;;  %v4841_v21 = vrot.slane %v4839_v59, 4  ;;  %v4844_v39 = vrot.slane %v4842_v1, 5  ;;  %v4777_v29 = vld [vmem:[#allocation2 + $0x44] sm:$0x1]  ;;  %v2323_v0 = vpop.f32.mrf.mxu1 }
 0x154   :  { %v4809_v25 = vsel %vm15867_vm3, %v4804_v7, %v4808_v47  ;;  %v19893_v55 = vmov 0  ;;  %v4853_v32 = vshrl.u32 %v4776_v30, 16  ;;  %v4856_v40 = vshll.u32 %v4776_v30, 16  ;;  %v4780_v62 = vld [vmem:[#allocation2 + $0x50] sm:$0xf] }
 0x155   :  { %v19894_v55 = vsel %vm16875_vm12, 4294967295, %v19893_v55  ;;  %v4867_v35 = vshrl.u32 %v4778_v60, 16  ;;  %v4870_v37 = vshll.u32 %v4778_v60, 16  ;;  %v16883_v38 = vsel %vm16875_vm12, %v12652_v43, %v4492_v49  ;;  %v4779_v60 = vld [vmem:[#allocation2 + $0x4c] sm:$0x1] }
 0x156   :  { %19895 = vst [vmem:[#allocation4_spill] sm:$0xff] %v19894_v55  ;;  %v16887_v48 = vsel %vm16875_vm12, %v12656_v28, %v4508_v46  ;;  %v16889_v51 = vrot.slane %v4817_v11, 4  ;;  %v4834_v5 = vshll.u32 %v4773_v54, 16  ;;  %v4795_v13 = vsel %vm15867_vm3, %v4790_v15, %v4794_v36 }
 0x157   :  { %v16899_v24 = vrot.slane %v4820_v17, 5  ;;  %v4848_v43 = vshll.u32 %v4775_v19, 16  ;;  %v2313_v49 = vadd.f32 %v16788_v27, %v16773_v4  ;;  %v16903_v7 = vcombine.low %v4795_v13, %v4809_v25 }
 0x158   :  { %19896 = vst [vmem:[#allocation5_spill] sm:$0xff] %v16889_v51  ;;  %v16905_v9 = vrot.slane %v4831_v14, 4  ;;  %v4845_v56 = vor.u32 %v4844_v39, %v4841_v21  ;;  %v4855_v6 = vrot.slane %v4853_v32, 4  ;;  %v4858_v59 = vrot.slane %v4856_v40, 5 }
 0x159   :  { %19897 = vst [vmem:[#allocation6_spill] sm:$0xff] %v16899_v24  ;;  %19898 = vst [vmem:[#allocation7_spill] sm:$0xff] %v16903_v7  ;;  %v4869_v1 = vrot.slane %v4867_v35, 4  ;;  %v4872_v28 = vrot.slane %v4870_v37, 5  ;;  %v2305_v46 = vadd.f32 %v16808_v41, %v16790_v31  ;;  %v16913_v27 = vrot.slane %v4834_v5, 5 }
 0x15a   :  { %19899 = vst [vmem:[#allocation8_spill] sm:$0xff] %v16905_v9  ;;  %v14297_v20 = vpop.f32.mrf.mxu0  ;;  %v16915_v15 = vrot.slane %v4848_v43, 5  ;;  %v4862_v36 = vshll.u32 %v4777_v29, 16  ;;  %v4881_v54 = vshrl.u32 %v4780_v62, 16  ;;  %v4884_v17 = vshll.u32 %v4780_v62, 16 }
 0x15b   :  { %v2491_v47 = vadd.f32 %v14297_v20, %v2313_v49  ;;  %19900 = vst [vmem:[#allocation9_spill] sm:$0xff] %v16913_v27  ;;  %v2316_v25 = vadd.f32 %v16814_v57, %v16810_v44  ;;  %v16923_v39 = vrot.slane %v4845_v56, 4  ;;  %v4859_v32 = vor.u32 %v4858_v59, %v4855_v6  ;;  %v16930_v44 = vld [vmem:[%s19847_s3] ss:$0 sm:$0xff] }
 0x15c   :  { %v2458_v11 = vpop.f32.mrf.mxu0  ;;  %v14317_v30 = vpop.f32.mrf.mxu1  ;;  %19901 = vst [vmem:[#allocation10_spill] sm:$0xff] %v16915_v15  ;;  %v4873_v40 = vor.u32 %v4872_v28, %v4869_v1  ;;  %v4876_v35 = vshll.u32 %v4779_v60, 16  ;;  %v2308_v37 = vadd.f32 %v16832_v33, %v16821_v12  ;;  %v2329_v43 = vadd.f32 %v16844_v45, %v16834_v16  ;;  %v2820_v16 = vld [vmem:[#allocation2 + $0x104] sm:$0x1] }
 0x15d   :  { %v2489_v31 = vadd.f32 %v2458_v11, %v2305_v46  ;;  %v2653_v41 = vadd.f32 %v14317_v30, %v2491_v47  ;;  %19902 = vst [vmem:[#allocation11_spill] sm:$0xff] %v16923_v39  ;;  %v16935_v56 = vrot.slane %v4862_v36, 5  ;;  %v16937_v62 = vrot.slane %v4881_v54, 4 }
 0x15e   :  { %v14298_v19 = vpop.f32.mrf.mxu0  ;;  %v2620_v21 = vpop.f32.mrf.mxu1  ;;  %v16939_v20 = vrot.slane %v4884_v17, 5  ;;  %v16946_v45 = vrot.slane %v4859_v32, 4  ;;  %v16948_v46 = vrot.slane %v4873_v40, 4  ;;  %v16950_v47 = vrot.slane %v4876_v35, 5 }
 0x15f   :  { %v2668_v57 = vadd.f32 %v16930_v44, %v2653_v41  ;;  %v2492_v5 = vadd.f32 %v14298_v19, %v2316_v25  ;;  %v2651_v13 = vadd.f32 %v2620_v21, %v2489_v31  ;;  %v2321_v54 = vadd.f32 %v16854_v10, %v16852_v63 }
 0x160   :  { %v2461_v49 = vpop.f32.mrf.mxu0  ;;  %v14318_v29 = vpop.f32.mrf.mxu1  ;;  %19903 = vst [vmem:[#allocation12_spill] sm:$0xff] %v16948_v46  ;;  %19904 = vst [vmem:[#allocation13_spill] sm:$0xff] %v16950_v47  ;;  %v2332_v17 = vadd.f32 %v16871_v26, %v16865_v2  ;;  %v4887_v19 = vor.u32 %v16939_v20, %v16937_v62  ;;  %v2324_v21 = vadd.f32 %v2323_v0, %v16891_v52 }
 0x161   :  { %v2676_v12 = vmax.f32 %v2668_v57, 0.0  ;;  %v2666_v33 = vadd.f32 %v16930_v44, %v2651_v13  ;;  %v2490_v6 = vadd.f32 %v2461_v49, %v2308_v37  ;;  %v2654_v59 = vadd.f32 %v14318_v29, %v2492_v5  ;;  %v2799_v29 = vld [vmem:[#allocation2 + $0xd8] sm:$0xf] }
 0x162   :  { %v14301_v1 = vpop.f32.mrf.mxu0  ;;  %v2623_v28 = vpop.f32.mrf.mxu1 }
 0x163   :  { %v13542_v60 = vpack.c.bf16 %v2676_v12, %v2676_v12  ;;  %v2674_v11 = vmax.f32 %v2666_v33, 0.0  ;;  %v2669_v30 = vadd.f32 %v16930_v44, %v2654_v59  ;;  %v2495_v36 = vadd.f32 %v14301_v1, %v2329_v43  ;;  %v2802_v12 = vld [vmem:[#allocation2 + $0xdc] sm:$0x1] }
 0x164   :  { %v2652_v25 = vadd.f32 %v2623_v28, %v2490_v6  ;;  %v2474_v31 = vpop.f32.mrf.mxu0  ;;  %v14321_v41 = vpop.f32.mrf.mxu1 }
 0x165   :  { %v2723_v32 = vshrl.u32 %v13542_v60, 16  ;;  %v13540_v40 = vpack.c.bf16 %v2674_v11, %v2674_v11  ;;  %v2677_v35 = vmax.f32 %v2669_v30, 0.0  ;;  %v2726_v37 = vshll.u32 %v13542_v60, 16  ;;  %v2787_v30 = vld [vmem:[#allocation2 + $0xc8] sm:$0xf] }
 0x166   :  { %v2667_v57 = vadd.f32 %v16930_v44, %v2652_v25  ;;  %v2493_v5 = vadd.f32 %v2474_v31, %v2321_v54  ;;  %v2657_v13 = vadd.f32 %v14321_v41, %v2495_v36  ;;  %v14302_v63 = vpop.f32.mrf.mxu0  ;;  %v2636_v10 = vpop.f32.mrf.mxu1  ;;  %v2790_v36 = vld [vmem:[#allocation2 + $0xcc] sm:$0x1] }
 0x167   :  { %v2725_v43 = vrot.slane %v2723_v32, 7  ;;  %v2707_v2 = vshrl.u32 %v13540_v40, 16  ;;  %v2710_v26 = vshll.u32 %v13540_v40, 16  ;;  %v13543_v49 = vpack.c.bf16 %v2677_v35, %v2677_v35 }
 0x168   :  { %v2675_v33 = vmax.f32 %v2667_v57, 0.0  ;;  %v2672_v6 = vadd.f32 %v16930_v44, %v2657_v13  ;;  %v2496_v52 = vadd.f32 %v14302_v63, %v2332_v17  ;;  %v2655_v0 = vadd.f32 %v2636_v10, %v2493_v5  ;;  %v14322_v59 = vpop.f32.mrf.mxu1  ;;  %v2477_v32 = vpop.f32.mrf.mxu0 }
 0x169   :  { %v2728_v1 = vor.u32 %v2726_v37, %v2725_v43  ;;  %v2729_v28 = vrot.slane %v2725_v43, 4  ;;  %v2709_v60 = vrot.slane %v2707_v2, 7  ;;  %v2731_v11 = vshrl.u32 %v13543_v49, 16  ;;  %v4781_v43 = vld [vmem:[#allocation2 + $0x54] sm:$0x1] }
 0x16a   :  { %v2734_v54 = vshll.u32 %v13543_v49, 16  ;;  %v13541_v25 = vpack.c.bf16 %v2675_v33, %v2675_v33  ;;  %v2680_v31 = vmax.f32 %v2672_v6, 0.0  ;;  %v2670_v41 = vadd.f32 %v16930_v44, %v2655_v0  ;;  %v2639_v10 = vpop.f32.mrf.mxu1  ;;  %v2808_v33 = vld [vmem:[#allocation2 + $0xe4] sm:$0x1] }
 0x16b   :  { %v2800_v40 = vsel %vm16668_vm8, %v2728_v1, %v2799_v29  ;;  %v2803_v17 = vsel %vm16674_vm9, %v2729_v28, %v2802_v12  ;;  %v2712_v35 = vor.u32 %v2710_v26, %v2709_v60  ;;  %v2713_v57 = vrot.slane %v2709_v60, 4  ;;  %v2805_v29 = vld [vmem:[#allocation2 + $0xe0] sm:$0xf]  ;;  %v2793_v60 = vld [vmem:[#allocation2 + $0xd0] sm:$0xf] }
 0x16c   :  { %2801 = vst [vmem:[#allocation2 + $0xd8] sm:$0xf] %v2800_v40  ;;  %2804 = vst [vmem:[#allocation2 + $0xdc] sm:$0x1] %v2803_v17  ;;  %v2733_v37 = vrot.slane %v2731_v11, 7  ;;  %v2715_v5 = vshrl.u32 %v13541_v25, 16  ;;  %v13546_v63 = vpack.c.bf16 %v2680_v31, %v2680_v31  ;;  %v2494_v12 = vadd.f32 %v2477_v32, %v2324_v21 }
 0x16d   :  { %v2718_v13 = vshll.u32 %v13541_v25, 16  ;;  %v2788_v2 = vsel %vm16668_vm8, %v2712_v35, %v2787_v30  ;;  %v2791_v49 = vsel %vm16674_vm9, %v2713_v57, %v2790_v36  ;;  %v2678_v6 = vmax.f32 %v2670_v41, 0.0  ;;  %v2796_v11 = vld [vmem:[#allocation2 + $0xd4] sm:$0x1]  ;;  %v2823_v32 = vld [vmem:[#allocation2 + $0x108] sm:$0xf] }
 0x16e   :  { %2789 = vst [vmem:[#allocation2 + $0xc8] sm:$0xf] %v2788_v2  ;;  %2792 = vst [vmem:[#allocation2 + $0xcc] sm:$0x1] %v2791_v49  ;;  %v2736_v26 = vor.u32 %v2734_v54, %v2733_v37  ;;  %v2737_v0 = vrot.slane %v2733_v37, 4  ;;  %v2717_v1 = vrot.slane %v2715_v5, 7  ;;  %v2658_v31 = vadd.f32 %v14322_v59, %v2496_v52 }
 0x16f   :  { %v2755_v28 = vshrl.u32 %v13546_v63, 16  ;;  %v13544_v25 = vpack.c.bf16 %v2678_v6, %v2678_v6  ;;  %v2656_v40 = vadd.f32 %v2639_v10, %v2494_v12  ;;  %v4890_v17 = vshll.u32 %v4781_v43, 16  ;;  %v16976_v5 = vld [vmem:[#allocation2 + $0x8] sm:$0xe]  ;;  %v2826_v10 = vld [vmem:[#allocation2 + $0x10c] sm:$0x1] }
 0x170   :  { %v2806_v30 = vsel %vm16668_vm8, %v2736_v26, %v2805_v29  ;;  %v2809_v36 = vsel %vm16674_vm9, %v2737_v0, %v2808_v33  ;;  %v2720_v41 = vor.u32 %v2718_v13, %v2717_v1  ;;  %v2721_v21 = vrot.slane %v2717_v1, 4  ;;  %19905 = vst [vmem:[#allocation14_spill] sm:$0xff] %v16976_v5  ;;  %v2811_v13 = vld [vmem:[#allocation2 + $0xf8] sm:$0xf]  ;;  %v16985_v12 = vld [vmem:[#allocation2 + $0x150] sm:$0xf] }
 0x171   :  { %2807 = vst [vmem:[#allocation2 + $0xe0] sm:$0xf] %v2806_v30  ;;  %2810 = vst [vmem:[#allocation2 + $0xe4] sm:$0x1] %v2809_v36  ;;  %v2757_v54 = vrot.slane %v2755_v28, 7  ;;  %v2758_v35 = vshll.u32 %v13546_v63, 16  ;;  %v2673_v37 = vadd.f32 %v16930_v44, %v2658_v31  ;;  %v2671_v2 = vadd.f32 %v16930_v44, %v2656_v40 }
 0x172   :  { %v2739_v57 = vshrl.u32 %v13544_v25, 16  ;;  %v2794_v52 = vsel %vm16668_vm8, %v2720_v41, %v2793_v60  ;;  %v2797_v59 = vsel %vm16674_vm9, %v2721_v21, %v2796_v11  ;;  %v2742_v43 = vshll.u32 %v13544_v25, 16  ;;  %v16983_v49 = vpop.f32.mrf.mxu0  ;;  %v2814_v26 = vld [vmem:[#allocation2 + $0xfc] sm:$0x1]  ;;  %v17003_v41 = vld [vmem:[#allocation2 + $0x120] sm:$0xf] }
 0x173   :  { %2795 = vst [vmem:[#allocation2 + $0xd0] sm:$0xf] %v2794_v52  ;;  %2798 = vst [vmem:[#allocation2 + $0xd4] sm:$0x1] %v2797_v59  ;;  %v2760_v63 = vor.u32 %v2758_v35, %v2757_v54  ;;  %v2761_v29 = vrot.slane %v2757_v54, 4  ;;  %v2681_v6 = vmax.f32 %v2673_v37, 0.0 }
 0x174   :  { %v2741_v33 = vrot.slane %v2739_v57, 7  ;;  %v2679_v0 = vmax.f32 %v2671_v2, 0.0  ;;  %v16987_v1 = vpop.f32.mrf.mxu1  ;;  %v16989_v28 = vpop.f32.mrf.mxu0  ;;  %v16994_v44 = vrot.slane %v4887_v19, 4  ;;  %v16996_v60 = vrot.slane %v4890_v17, 5  ;;  %v3883_v2 = vld [vmem:[#allocation2 + $0xd8] sm:$0xf] }
 0x175   :  { %v2824_v25 = vsel %vm16668_vm8, %v2760_v63, %v2823_v32  ;;  %v2827_v31 = vsel %vm16674_vm9, %v2761_v29, %v2826_v10  ;;  %v3879_v36 = vld [vmem:[#allocation2 + $0xc8] sm:$0xf]  ;;  %v13547_v62 = vpack.c.bf16 %v2681_v6, %v2681_v6  ;;  %v17009_v21 = vld [vmem:[#allocation2 + $0xcc] sm:$0x1]  ;;  %v17011_v32 = vld [vmem:[#allocation2 + $0x124] sm:$0x1] }
 0x176   :  { %19906 = vst [vmem:[#allocation15_spill] sm:$0xff] %v16994_v44  ;;  %19907 = vst [vmem:[#allocation16_spill] sm:$0xff] %v16996_v60  ;;  %v2744_v40 = vor.u32 %v2742_v43, %v2741_v33  ;;  %v2745_v30 = vrot.slane %v2741_v33, 4  ;;  %v13545_v20 = vpack.c.bf16 %v2679_v0, %v2679_v0  ;;  %v17005_v19 = vpop.f32.mrf.mxu1  ;;  %v17007_v17 = vpop.f32.mrf.mxu0  ;;  %v3908_v54 = vshrl.u32 %v3879_v36, 16  ;;  %v2829_v33 = vld [vmem:[#allocation2 + $0x110] sm:$0xf] }
 0x177   :  { %2825 = vst [vmem:[#allocation2 + $0x108] sm:$0xf] %v2824_v25  ;;  %2828 = vst [vmem:[#allocation2 + $0x10c] sm:$0x1] %v2827_v31  ;;  %v4294_v35 = vshrl.u32 %v16985_v12, 16  ;;  %v3911_v52 = vshll.u32 %v3879_v36, 16 }
 0x178   :  { %v2812_v57 = vsel %vm16668_vm8, %v2744_v40, %v2811_v13  ;;  %v2815_v37 = vsel %vm16674_vm9, %v2745_v30, %v2814_v26  ;;  %v2763_v10 = vshrl.u32 %v13547_v62, 16  ;;  %v2747_v43 = vshrl.u32 %v13545_v20, 16  ;;  %v2832_v6 = vld [vmem:[#allocation2 + $0x114] sm:$0x1]  ;;  %v2817_v0 = vld [vmem:[#allocation2 + $0x100] sm:$0xf]  ;;  %v17025_v22 = vpop.f32.mrf.mxu0 }
 0x179   :  { %2813 = vst [vmem:[#allocation2 + $0xf8] sm:$0xf] %v2812_v57  ;;  %2816 = vst [vmem:[#allocation2 + $0xfc] sm:$0x1] %v2815_v37  ;;  %v4238_v63 = vshrl.u32 %v17003_v41, 16  ;;  %v4241_v29 = vshll.u32 %v17003_v41, 16  ;;  %v17023_v37 = vpop.f32.mrf.mxu1 }
 0x17a   :  { %v3910_v13 = vrot.slane %v3908_v54, 4  ;;  %v3913_v25 = vrot.slane %v3911_v52, 5  ;;  %v3917_v26 = vshll.u32 %v17009_v21, 16  ;;  %v2765_v40 = vrot.slane %v2763_v10, 7  ;;  %v3881_v11 = vld [vmem:[#allocation2 + $0xd0] sm:$0xf]  ;;  %v17027_v7 = vpop.f32.mrf.mxu0 }
 0x17b   :  { %v2766_v30 = vshll.u32 %v13547_v62, 16  ;;  %v2749_v36 = vrot.slane %v2747_v43, 7  ;;  %v2750_v57 = vshll.u32 %v13545_v20, 16  ;;  %v3922_v4 = vshrl.u32 %v3881_v11, 16  ;;  %v17029_v10 = vld [vmem:[#allocation2 + $0xd4] sm:$0x1] }
 0x17c   :  { %v3914_v41 = vor.u32 %v3913_v25, %v3910_v13  ;;  %v3936_v14 = vshrl.u32 %v3883_v2, 16  ;;  %v3939_v59 = vshll.u32 %v3883_v2, 16  ;;  %v2769_v52 = vrot.slane %v2765_v40, 4  ;;  %v17031_v43 = vld [vmem:[#allocation2 + $0xdc] sm:$0x1] }
 0x17d   :  { %v2768_v54 = vor.u32 %v2766_v30, %v2765_v40  ;;  %v2752_v58 = vor.u32 %v2750_v57, %v2749_v36  ;;  %v2753_v61 = vrot.slane %v2749_v36, 4  ;;  %v3919_v20 = vrot.slane %v3917_v26, 5  ;;  %v17041_v30 = vpop.f32.mrf.mxu1  ;;  %v17043_v36 = vld [vmem:[#allocation2 + $0x68] sm:$0xf]  ;;  %v4465_v15 = vld [vmem:[#allocation2 + $0xd0] sm:$0xe] }
 0x17e   :  { %v3915_v62 = vrot.slane %v3914_v41, 4  ;;  %v3924_v31 = vrot.slane %v3922_v4, 4  ;;  %v3925_v5 = vshll.u32 %v3881_v11, 16  ;;  %v2833_v2 = vsel %vm16674_vm9, %v2769_v52, %v2832_v6  ;;  %v4464_v46 = vld [vmem:[#allocation2 + $0xc8] sm:$0xe] }
 0x17f   :  { %v2830_v13 = vsel %vm16668_vm8, %v2768_v54, %v2829_v33  ;;  %v2818_v25 = vsel %vm16668_vm8, %v2752_v58, %v2817_v0  ;;  %v2821_v40 = vsel %vm16674_vm9, %v2753_v61, %v2820_v16  ;;  %2834 = vst [vmem:[#allocation2 + $0x114] sm:$0x1] %v2833_v2  ;;  %v3931_v33 = vshll.u32 %v17029_v10, 16  ;;  %v17050_v58 = vpop.f32.mrf.mxu1  ;;  %v17052_v61 = vpop.f32.mrf.mxu0  ;;  %v4466_v39 = vld [vmem:[#allocation2 + $0xd8] sm:$0xe] }
 0x180   :  { %2831 = vst [vmem:[#allocation2 + $0x110] sm:$0xf] %v2830_v13  ;;  %2819 = vst [vmem:[#allocation2 + $0x100] sm:$0xf] %v2818_v25  ;;  %v3920_v4 = vsel %vm15867_vm3, %v3915_v62, %v3919_v20  ;;  %v3927_v11 = vrot.slane %v3925_v5, 5  ;;  %v17048_v26 = vrot.slane %v4294_v35, 4  ;;  %v19908_v16 = vsel %vm15867_vm3, %v16719_v42, %v16726_v53 }
 0x181   :  { %2822 = vst [vmem:[#allocation2 + $0x104] sm:$0x1] %v2821_v40  ;;  %v3887_v6 = vld [vmem:[#allocation2 + $0xf8] sm:$0xf]  ;;  %v12618_v0 = vcombine.low %v19908_v16, %v3920_v4  ;;  %v3938_v57 = vrot.slane %v3936_v14, 4  ;;  %v3941_v41 = vrot.slane %v3939_v59, 5 }
 0x182   :  { %v3945_v54 = vshll.u32 %v17031_v43, 16  ;;  %v17060_v5 = vld [vmem:[#allocation2 + $0xfc] sm:$0x1]  ;;  %v3928_v52 = vor.u32 %v3927_v11, %v3924_v31  ;;  %v3891_v62 = vld [vmem:[#allocation2 + $0x108] sm:$0xf]  ;;  %v17062_v35 = vrot.slane %v4238_v63, 4  ;;  %v17070_v31 = vpop.f32.mrf.mxu1  ;;  %v17072_v63 = vpop.f32.mrf.mxu0 }
 0x183   :  { %v17064_v20 = vrot.slane %v4241_v29, 5  ;;  %14407 = vmatprep.mubr.msk.bf16.mxu0 %vm4034_vm13, %v12618_v0  ;;  %v3933_v2 = vrot.slane %v3931_v33, 5  ;;  %v3942_v25 = vor.u32 %v3941_v41, %v3938_v57  ;;  %v3964_v53 = vshrl.u32 %v3887_v6, 16  ;;  %v4468_v9 = vld [vmem:[#allocation2 + $0xf8] sm:$0xe] }
 0x184   :  { %v3929_v14 = vrot.slane %v3928_v52, 4  ;;  %v3947_v59 = vrot.slane %v3945_v54, 5  ;;  %v3967_v40 = vshll.u32 %v3887_v6, 16  ;;  %v3973_v4 = vshll.u32 %v17060_v5, 16  ;;  %v17077_v54 = vld [vmem:[#allocation2 + $0x10c] sm:$0x1]  ;;  %v17090_v24 = vpop.f32.mrf.mxu1  ;;  %v17092_v51 = vpop.f32.mrf.mxu0 }
 0x185   :  { %v3943_v29 = vrot.slane %v3942_v25, 4  ;;  %v3966_v11 = vrot.slane %v3964_v53, 4  ;;  %v3992_v16 = vshrl.u32 %v3891_v62, 16  ;;  %v3995_v13 = vshll.u32 %v3891_v62, 16  ;;  %v15311_v6 = vld [vmem:[%s19848_s4 + $0x20] sm:$0xff]  }
 0x186   :  { %v3934_v33 = vsel %vm15867_vm3, %v3929_v14, %v3933_v2  ;;  %v4504_v0 = vrot.slane %v17031_v43, 5  ;;  %v3969_v57 = vrot.slane %v3967_v40, 5  ;;  %v3975_v41 = vrot.slane %v3973_v4, 5  ;;  %v17082_v52 = vld [vmem:[#allocation2 + $0x70] sm:$0xf] }
 0x187   :  { %v3948_v25 = vsel %vm15867_vm3, %v3943_v29, %v3947_v59  ;;  %v3889_v62 = vld [vmem:[#allocation2 + $0x100] sm:$0xf]  ;;  %v3994_v42 = vrot.slane %v3992_v16, 4  ;;  %v3997_v2 = vrot.slane %v3995_v13, 5  ;;  %v4001_v27 = vshll.u32 %v17077_v54, 16 }
 0x188   :  { %v17086_v53 = vld [vmem:[#allocation2 + $0x104] sm:$0x1]  ;;  %v12619_v14 = vcombine.low %v3934_v33, %v3948_v25  ;;  %v3970_v40 = vor.u32 %v3969_v57, %v3966_v11  ;;  %v3978_v4 = vshrl.u32 %v3889_v62, 16  ;;  %v3981_v47 = vshll.u32 %v3889_v62, 16 }
 0x189   :  { %v3987_v59 = vshll.u32 %v17086_v53, 16  ;;  %v3998_v29 = vor.u32 %v3997_v2, %v3994_v42  ;;  %v12653_v16 = vrot.slane %v4464_v46, 9  ;;  %v4496_v11 = vrot.slane %v17009_v21, 5 }
 0x18a   :  { %14408 = vmatmul.mubr.msk.bf16.vlgmr.msra.gmra.mxu0 %vm4034_vm13, %v12619_v14  ;;  %v3971_v13 = vrot.slane %v3970_v40, 4  ;;  %v3980_v43 = vrot.slane %v3978_v4, 4  ;;  %v3983_v33 = vrot.slane %v3981_v47, 5  ;;  %v17098_v57 = vpop.f32.mrf.mxu0  ;;  %v12654_v25 = vrot.slane %v4465_v15, 9  ;;  %v4469_v15 = vld [vmem:[#allocation2 + $0x100] sm:$0xe] }
 0x18b   :  { %14428 = vmatpush3.bf16.msra.mxu0 %v16752_v50  ;;  %v12655_v62 = vrot.slane %v4466_v39, 9  ;;  %v5028_v44 = vshll.u32 %v17043_v36, 16  ;;  %v5039_v42 = vshrl.u32 %v17082_v52, 16  ;;  %v3999_v14 = vrot.slane %v3998_v29, 4  ;;  %v17112_v50 = vld [vmem:[%s19848_s4 + $0x48] sm:$0xff]   ;;  %v17114_v39 = vpop.f32.mrf.mxu1 }
 0x18c   :  { %v3976_v46 = vsel %vm15867_vm3, %v3971_v13, %v3975_v41  ;;  %v3984_v2 = vor.u32 %v3983_v33, %v3980_v43  ;;  %14429 = vmatprep.subr.bf16.mxu0 %v15311_v6  ;;  %v17107_v47 = vsel %vm16875_vm12, %v12653_v16, %v4496_v11  ;;  %v19909_v21 = vsel %vm15867_vm3, %v16867_v3, %v16858_v34  ;;  %v17121_v43 = vpop.f32.mrf.mxu0  ;;  %v4470_v13 = vld [vmem:[#allocation2 + $0x108] sm:$0xe] }
 0x18d   :  { %v12620_v41 = vcombine.low %v19909_v21, %v3976_v46  ;;  %v4003_v40 = vrot.slane %v4001_v27, 5  ;;  %v19910_v29 = vrot.slane %v17029_v10, 5  ;;  %v3989_v11 = vrot.slane %v3987_v59, 5  ;;  %v14401_v27 = vpop.f32.mrf.mxu1 }
 0x18e   :  { %v3985_v33 = vrot.slane %v3984_v2, 4  ;;  %v17133_v60 = vsel %vm16875_vm12, %v12655_v62, %v4504_v0  ;;  %v12657_v34 = vrot.slane %v4468_v9, 9  ;;  %v17136_v3 = vpop.f32.mrf.mxu0  ;;  %v12658_v46 = vrot.slane %v4469_v15, 9  ;;  %v4230_v0 = vld [vmem:[#allocation2 + $0x154] sm:$0x1] }
 0x18f   :  { %v17129_v16 = vsel %vm16875_vm12, %v12654_v25, %v19910_v29  ;;  %14411 = vmatprep.mubr.msk.bf16.mxu0 %vm4034_vm13, %v12620_v41  ;;  %14430 = vmatpush3.bf16.msra.mxu0 %v15311_v6  ;;  %v4512_v25 = vrot.slane %v17060_v5, 5  ;;  %v4516_v2 = vrot.slane %v17086_v53, 5  ;;  %v4004_v9 = vsel %vm15867_vm3, %v3999_v14, %v4003_v40  ;;  %v3664_v29 = vpop.f32.mrf.mxu1 }
 0x190   :  { %v3990_v59 = vsel %vm15867_vm3, %v3985_v33, %v3989_v11  ;;  %14451 = vmatprep.subr.bf16.mxu0 %v17112_v50  ;;  %v12659_v62 = vrot.slane %v4470_v13, 9  ;;  %v4520_v6 = vrot.slane %v17077_v54, 5  ;;  %v17148_v41 = vpop.f32.mrf.mxu0  ;;  %v5042_v14 = vshll.u32 %v17082_v52, 16  ;;  %v5012_v11 = vld [vmem:[#allocation2 + $0x78] sm:$0xf] }
 0x191   :  { %v12621_v21 = vcombine.low %v3990_v59, %v4004_v9  ;;  %v17152_v5 = vsel %vm16875_vm12, %v12657_v34, %v4512_v25  ;;  %v17156_v53 = vsel %vm16875_vm12, %v12658_v46, %v4516_v2  ;;  %v3247_v15 = vadd.f32 %v17050_v58, %v17027_v7 }
 0x192   :  { %19911 = vst [vmem:[#allocation17_spill] sm:$0xff] %v17156_v53  ;;  %v19912_v40 = vshll.u32 %v16985_v12, 16  ;;  %v17167_v33 = vsel %vm16875_vm12, %v12659_v62, %v4520_v6  ;;  %v14381_v34 = vpop.f32.mrf.mxu0  ;;  %v4303_v25 = vshll.u32 %v4230_v0, 16  ;;  %v19914_v7 = vshrl.u32 %v17043_v36, 16  ;;  %v5009_v0 = vld [vmem:[#allocation2 + $0x6c] sm:$0x1]  ;;  %v14402_v36 = vpop.f32.mrf.mxu1 }
 0x193   :  { %19913 = vst [vmem:[#allocation18_spill] sm:$0xff] %v17167_v33  ;;  %14412 = vmatmul.mubr.msk.bf16.gmra.mxu0 %vm4034_vm13, %v12621_v21  ;;  %v5030_v12 = vrot.slane %v5028_v44, 5  ;;  %v3239_v46 = vadd.f32 %v17070_v31, %v17052_v61  ;;  %v3412_v2 = vadd.f32 %v14381_v34, %v3247_v15  ;;  %v19915_v59 = vor.u32 %v17064_v20, %v17062_v35  ;;  %v5011_v21 = vld [vmem:[#allocation2 + $0x74] sm:$0x1]  ;;  %v17188_v44 = vld [vmem:[%s19847_s3] ss:$0 sm:$0xff] }
 0x194   :  { %v4299_v54 = vrot.slane %v19912_v40, 5  ;;  %v5027_v58 = vrot.slane %v19914_v7, 4  ;;  %v19916_v62 = vshll.u32 %v17011_v32, 16  ;;  %v3391_v40 = vpop.f32.mrf.mxu0  ;;  %v5041_v61 = vrot.slane %v5039_v42, 4  ;;  %v17198_v53 = vld [vmem:[#allocation2 + $0x80] sm:$0xf] }
 0x195   :  { %v17179_v9 = vrot.slane %v19915_v59, 4  ;;  %v5044_v31 = vrot.slane %v5042_v14, 5  ;;  %v5053_v15 = vshrl.u32 %v5012_v11, 16  ;;  %v5056_v34 = vshll.u32 %v5012_v11, 16  ;;  %v5013_v59 = vld [vmem:[#allocation2 + $0x7c] sm:$0x1] }
 0x196   :  { %v17183_v6 = vrot.slane %v19916_v62, 5  ;;  %v3250_v35 = vadd.f32 %v17090_v24, %v17072_v63  ;;  %v3410_v20 = vadd.f32 %v3391_v40, %v3239_v46  ;;  %v3685_v32 = vadd.f32 %v14401_v27, %v3412_v2  ;;  %v14382_v62 = vpop.f32.mrf.mxu0  ;;  %v3667_v63 = vpop.f32.mrf.mxu1 }
 0x197   :  { %v4300_v7 = vor.u32 %v4299_v54, %v17048_v26  ;;  %v17193_v52 = vrot.slane %v4303_v25, 5  ;;  %v5031_v13 = vor.u32 %v5030_v12, %v5027_v58  ;;  %v5034_v10 = vshll.u32 %v5009_v0, 16 }
 0x198   :  { %v5048_v4 = vshll.u32 %v5011_v21, 16  ;;  %v3242_v42 = vadd.f32 %v17114_v39, %v17092_v51  ;;  %v3700_v14 = vadd.f32 %v17188_v44, %v3685_v32  ;;  %v3413_v11 = vadd.f32 %v14382_v62, %v3250_v35  ;;  %v3394_v24 = vpop.f32.mrf.mxu0 }
 0x199   :  { %v3683_v33 = vadd.f32 %v3664_v29, %v3410_v20  ;;  %v5045_v27 = vor.u32 %v5044_v31, %v5041_v61  ;;  %v17200_v26 = vrot.slane %v5053_v15, 4  ;;  %v17202_v54 = vrot.slane %v5056_v34, 5 }
 0x19a   :  { %v5062_v25 = vshll.u32 %v5013_v59, 16  ;;  %v3708_v58 = vmax.f32 %v3700_v14, 0.0  ;;  %v3411_v46 = vadd.f32 %v3394_v24, %v3242_v42  ;;  %v3686_v2 = vadd.f32 %v14402_v36, %v3413_v11 }
 0x19b   :  { %v3698_v12 = vadd.f32 %v17188_v44, %v3683_v33  ;;  %v17205_v51 = vrot.slane %v4300_v7, 4  ;;  %v17207_v39 = vrot.slane %v5034_v10, 5  ;;  %v17209_v29 = vrot.slane %v5048_v4, 5 }
 0x19c   :  { %v5067_v0 = vshrl.u32 %v17198_v53, 16  ;;  %v13554_v21 = vpack.c.bf16 %v3708_v58, %v3708_v58  ;;  %v3701_v61 = vadd.f32 %v17188_v44, %v3686_v2  ;;  %v3684_v31 = vadd.f32 %v3667_v63, %v3411_v46 }
 0x19d   :  { %v3706_v40 = vmax.f32 %v3698_v12, 0.0  ;;  %v17213_v15 = vrot.slane %v5031_v13, 4  ;;  %v17215_v34 = vrot.slane %v5045_v27, 4  ;;  %v17217_v33 = vrot.slane %v5062_v25, 5  ;;  %v3851_v27 = vld [vmem:[#allocation2 + $0x168] sm:$0xf] }
 0x19e   :  { %v5070_v36 = vshll.u32 %v17198_v53, 16  ;;  %v3783_v35 = vshrl.u32 %v13554_v21, 16  ;;  %v3709_v20 = vmax.f32 %v3701_v61, 0.0  ;;  %v5059_v4 = vor.u32 %v17202_v54, %v17200_v26  ;;  %v3854_v25 = vld [vmem:[#allocation2 + $0x16c] sm:$0x1] }
 0x19f   :  { %v13552_v10 = vpack.c.bf16 %v3706_v40, %v3706_v40  ;;  %v3231_v32 = vadd.f32 %v16987_v1, %v16983_v49  ;;  %v3223_v7 = vadd.f32 %v17005_v19, %v16989_v28  ;;  %v3699_v13 = vadd.f32 %v17188_v44, %v3684_v31  ;;  %v3842_v40 = vld [vmem:[#allocation2 + $0x15c] sm:$0x1] }
 0x1a0   :  { %v17227_v59 = vrot.slane %v5067_v0, 4  ;;  %v3785_v62 = vrot.slane %v3783_v35, 7  ;;  %v3786_v42 = vshll.u32 %v13554_v21, 16  ;;  %v13555_v11 = vpack.c.bf16 %v3709_v20, %v3709_v20  ;;  %v3839_v21 = vld [vmem:[#allocation2 + $0x158] sm:$0xf] }
 0x1a1   :  { %v3767_v14 = vshrl.u32 %v13552_v10, 16  ;;  %v3234_v24 = vadd.f32 %v17023_v37, %v17007_v17  ;;  %v3226_v63 = vadd.f32 %v17041_v30, %v17025_v22  ;;  %v3770_v49 = vshll.u32 %v13552_v10, 16 }
 0x1a2   :  { %v3707_v1 = vmax.f32 %v3699_v13, 0.0  ;;  %v3788_v58 = vor.u32 %v3786_v42, %v3785_v62  ;;  %v3789_v28 = vrot.slane %v3785_v62, 4  ;;  %v3791_v12 = vshrl.u32 %v13555_v11, 16  ;;  %v14397_v37 = vpop.f32.mrf.mxu0  ;;  %v3857_v13 = vld [vmem:[#allocation2 + $0x170] sm:$0xf] }
 0x1a3   :  { %v3769_v19 = vrot.slane %v3767_v14, 7  ;;  %v3408_v46 = vadd.f32 %v17098_v57, %v3231_v32  ;;  %v3406_v2 = vadd.f32 %v17121_v43, %v3223_v7  ;;  %v3409_v0 = vadd.f32 %v17136_v3, %v3234_v24  ;;  %v5015_v3 = vld [vmem:[#allocation2 + $0x84] sm:$0x1]  ;;  %v3860_v62 = vld [vmem:[#allocation2 + $0x174] sm:$0x1] }
 0x1a4   :  { %v13553_v17 = vpack.c.bf16 %v3707_v1, %v3707_v1  ;;  %v3852_v22 = vsel %vm16668_vm8, %v3788_v58, %v3851_v27  ;;  %v3855_v30 = vsel %vm16674_vm9, %v3789_v28, %v3854_v25  ;;  %v3793_v35 = vrot.slane %v3791_v12, 7  ;;  %v3648_v20 = vpop.f32.mrf.mxu0  ;;  %v3848_v28 = vld [vmem:[#allocation2 + $0x164] sm:$0x1] }
 0x1a5   :  { %v3772_v61 = vor.u32 %v3770_v49, %v3769_v19  ;;  %v3773_v31 = vrot.slane %v3769_v19, 4  ;;  %3853 = vst [vmem:[#allocation2 + $0x168] sm:$0xf] %v3852_v22  ;;  %3856 = vst [vmem:[#allocation2 + $0x16c] sm:$0x1] %v3855_v30  ;;  %v3794_v57 = vshll.u32 %v13555_v11, 16  ;;  %v3681_v43 = vadd.f32 %v14397_v37, %v3408_v46 }
 0x1a6   :  { %v3775_v10 = vshrl.u32 %v13553_v17, 16  ;;  %v3778_v42 = vshll.u32 %v13553_v17, 16  ;;  %v3679_v14 = vadd.f32 %v3648_v20, %v3406_v2  ;;  %v3797_v27 = vrot.slane %v3793_v35, 4  ;;  %v3845_v11 = vld [vmem:[#allocation2 + $0x160] sm:$0xf]  ;;  %v14398_v1 = vpop.f32.mrf.mxu0 }
 0x1a7   :  { %v3840_v32 = vsel %vm16668_vm8, %v3772_v61, %v3839_v21  ;;  %v3843_v7 = vsel %vm16674_vm9, %v3773_v31, %v3842_v40  ;;  %v3796_v24 = vor.u32 %v3794_v57, %v3793_v35  ;;  %v3696_v49 = vadd.f32 %v17188_v44, %v3681_v43  ;;  %v5016_v21 = vld [vmem:[#allocation2 + $0x98] sm:$0xf]  ;;  %v17252_v31 = vld [vmem:[#allocation2 + $0x10] sm:$0xe] }
 0x1a8   :  { %3841 = vst [vmem:[#allocation2 + $0x158] sm:$0xf] %v3840_v32  ;;  %3844 = vst [vmem:[#allocation2 + $0x15c] sm:$0x1] %v3843_v7  ;;  %v3777_v25 = vrot.slane %v3775_v10, 7  ;;  %v3407_v58 = vadd.f32 %v17148_v41, %v3226_v63  ;;  %v3694_v19 = vadd.f32 %v17188_v44, %v3679_v14  ;;  %v3682_v12 = vadd.f32 %v14398_v1, %v3409_v0  ;;  %v3651_v22 = vpop.f32.mrf.mxu0 }
 0x1a9   :  { %v5076_v46 = vshll.u32 %v5015_v3, 16  ;;  %v3858_v2 = vsel %vm16668_vm8, %v3796_v24, %v3857_v13  ;;  %v3861_v40 = vsel %vm16674_vm9, %v3797_v27, %v3860_v62  ;;  %v3704_v30 = vmax.f32 %v3696_v49, 0.0  ;;  %v17263_v7 = vld [vmem:[#allocation2 + $0x9c] sm:$0x1]  ;;  %v17265_v13 = vld [vmem:[#allocation2 + $0xc] sm:$0x1] }
 0x1aa   :  { %v3780_v17 = vor.u32 %v3778_v42, %v3777_v25  ;;  %v3781_v37 = vrot.slane %v3777_v25, 4  ;;  %3859 = vst [vmem:[#allocation2 + $0x170] sm:$0xf] %v3858_v2  ;;  %3862 = vst [vmem:[#allocation2 + $0x174] sm:$0x1] %v3861_v40  ;;  %v3702_v61 = vmax.f32 %v3694_v19, 0.0  ;;  %v3697_v41 = vadd.f32 %v17188_v44, %v3682_v12 }
 0x1ab   :  { %v3680_v63 = vadd.f32 %v3651_v22, %v3407_v58  ;;  %v17260_v57 = vrot.slane %v5070_v36, 5  ;;  %v5081_v10 = vshrl.u32 %v5016_v21, 16  ;;  %v13550_v43 = vpack.c.bf16 %v3704_v30, %v3704_v30  ;;  %v17269_v14 = vld [vmem:[#allocation2 + $0x14] sm:$0x1]  ;;  %v3830_v49 = vld [vmem:[#allocation2 + $0x13c] sm:$0x1] }
 0x1ac   :  { %v3846_v0 = vsel %vm16668_vm8, %v3780_v17, %v3845_v11  ;;  %v3849_v35 = vsel %vm16674_vm9, %v3781_v37, %v3848_v28  ;;  %v13548_v20 = vpack.c.bf16 %v3702_v61, %v3702_v61  ;;  %v3705_v3 = vmax.f32 %v3697_v41, 0.0  ;;  %v3827_v11 = vld [vmem:[#allocation2 + $0x138] sm:$0xf]  ;;  %v3815_v1 = vld [vmem:[#allocation2 + $0x128] sm:$0xf] }
 0x1ad   :  { %3847 = vst [vmem:[#allocation2 + $0x160] sm:$0xf] %v3846_v0  ;;  %3850 = vst [vmem:[#allocation2 + $0x164] sm:$0x1] %v3849_v35  ;;  %v3695_v32 = vadd.f32 %v17188_v44, %v3680_v63  ;;  %v5276_v62 = vrot.slane %v17265_v13, 5  ;;  %v12717_v42 = vrot.slane %v17252_v31, 9 }
 0x1ae   :  { %v5280_v53 = vrot.slane %v17269_v14, 5  ;;  %v5084_v36 = vshll.u32 %v5016_v21, 16  ;;  %v3751_v24 = vshrl.u32 %v13550_v43, 16  ;;  %v3735_v27 = vshrl.u32 %v13548_v20, 16  ;;  %v3818_v58 = vld [vmem:[#allocation2 + $0x12c] sm:$0x1] }
 0x1af   :  { %v17275_v25 = vrot.slane %v5059_v4, 4  ;;  %v17277_v44 = vrot.slane %v5076_v46, 5  ;;  %v13551_v28 = vpack.c.bf16 %v3705_v3, %v3705_v3  ;;  %v3703_v19 = vmax.f32 %v3695_v32, 0.0  ;;  %v5018_v22 = vld [vmem:[#allocation2 + $0xa0] sm:$0xf]  ;;  %v15577_v31 = vld [vmem:[%s19848_s4 + $0x38] sm:$0xff]  }
 0x1b0   :  { %v5083_v12 = vrot.slane %v5081_v10, 4  ;;  %v5090_v2 = vshll.u32 %v17263_v7, 16  ;;  %v3753_v40 = vrot.slane %v3751_v24, 7  ;;  %v3754_v21 = vshll.u32 %v13550_v43, 16  ;;  %v4231_v54 = vld [vmem:[#allocation2 + $0x158] sm:$0xf] }
 0x1b1   :  { %v3737_v17 = vrot.slane %v3735_v27, 7  ;;  %v3738_v37 = vshll.u32 %v13548_v20, 16  ;;  %v3759_v30 = vshrl.u32 %v13551_v28, 16  ;;  %v13549_v26 = vpack.c.bf16 %v3703_v19, %v3703_v19  ;;  %v3833_v35 = vld [vmem:[#allocation2 + $0x140] sm:$0xf] }
 0x1b2   :  { %v5073_v4 = vor.u32 %v17260_v57, %v17227_v59  ;;  %v5086_v46 = vrot.slane %v5084_v36, 5  ;;  %v3756_v61 = vor.u32 %v3754_v21, %v3753_v40  ;;  %v3757_v41 = vrot.slane %v3753_v40, 4  ;;  %v3836_v57 = vld [vmem:[#allocation2 + $0x144] sm:$0x1]  ;;  %v3821_v36 = vld [vmem:[#allocation2 + $0x130] sm:$0xf] }
 0x1b3   :  { %v3740_v63 = vor.u32 %v3738_v37, %v3737_v17  ;;  %v3741_v0 = vrot.slane %v3737_v17, 4  ;;  %v3761_v10 = vrot.slane %v3759_v30, 7  ;;  %v3762_v3 = vshll.u32 %v13551_v28, 16  ;;  %v3824_v27 = vld [vmem:[#allocation2 + $0x134] sm:$0x1] }
 0x1b4   :  { %v3743_v32 = vshrl.u32 %v13549_v26, 16  ;;  %v5095_v7 = vshrl.u32 %v5018_v22, 16  ;;  %v3828_v43 = vsel %vm16668_vm8, %v3756_v61, %v3827_v11  ;;  %v3831_v20 = vsel %vm16674_vm9, %v3757_v41, %v3830_v49  ;;  %v17290_v49 = vld [vmem:[#allocation2 + $0xa4] sm:$0x1] }
 0x1b5   :  { %v3816_v24 = vsel %vm16668_vm8, %v3740_v63, %v3815_v1  ;;  %v3819_v59 = vsel %vm16674_vm9, %v3741_v0, %v3818_v58  ;;  %3829 = vst [vmem:[#allocation2 + $0x138] sm:$0xf] %v3828_v43  ;;  %3832 = vst [vmem:[#allocation2 + $0x13c] sm:$0x1] %v3831_v20  ;;  %v3764_v28 = vor.u32 %v3762_v3, %v3761_v10  ;;  %v3765_v19 = vrot.slane %v3761_v10, 4 }
 0x1b6   :  { %3817 = vst [vmem:[#allocation2 + $0x128] sm:$0xf] %v3816_v24  ;;  %3820 = vst [vmem:[#allocation2 + $0x12c] sm:$0x1] %v3819_v59  ;;  %v3745_v40 = vrot.slane %v3743_v32, 7  ;;  %v3746_v11 = vshll.u32 %v13549_v26, 16  ;;  %v5087_v37 = vor.u32 %v5086_v46, %v5083_v12  ;;  %v4865_v12 = vsel %vm15867_vm3, %v16946_v45, %v16935_v56 }
 0x1b7   :  { %v4308_v21 = vshrl.u32 %v4231_v54, 16  ;;  %v4311_v17 = vshll.u32 %v4231_v54, 16  ;;  %v5098_v1 = vshll.u32 %v5018_v22, 16  ;;  %v3834_v58 = vsel %vm16668_vm8, %v3764_v28, %v3833_v35  ;;  %v17296_v63 = vld [vmem:[#allocation2 + $0x168] sm:$0xf]  ;;  %v19917_v22 = vld [vmem:[#allocation16_spill] sm:$0xff] }
 0x1b8   :  { %v3837_v30 = vsel %vm16674_vm9, %v3765_v19, %v3836_v57  ;;  %v3748_v61 = vor.u32 %v3746_v11, %v3745_v40  ;;  %v3749_v41 = vrot.slane %v3745_v40, 4  ;;  %3835 = vst [vmem:[#allocation2 + $0x140] sm:$0xf] %v3834_v58  ;;  %v17298_v0 = vld [vmem:[#allocation2 + $0x15c] sm:$0x1]  ;;  %v17310_v35 = vrot.slane %v5073_v4, 4 }
 0x1b9   :  { %3838 = vst [vmem:[#allocation2 + $0x144] sm:$0x1] %v3837_v30  ;;  %v17300_v26 = vld [vmem:[#allocation2 + $0x160] sm:$0xf]  ;;  %v19918_v54 = vld [vmem:[#allocation15_spill] sm:$0xff]  ;;  %v17312_v10 = vrot.slane %v5090_v2, 5  ;;  %v5051_v58 = vsel %vm15867_vm3, %v17215_v34, %v17209_v29  ;;  %v5037_v29 = vsel %vm15867_vm3, %v17213_v15, %v17207_v39  ;;  %v5065_v13 = vsel %vm15867_vm3, %v17275_v25, %v17217_v33 }
 0x1ba   :  { %v4893_v46 = vsel %vm15867_vm3, %v19918_v54, %v19917_v22  ;;  %v3822_v3 = vsel %vm16668_vm8, %v3748_v61, %v3821_v36  ;;  %v3825_v32 = vsel %vm16674_vm9, %v3749_v41, %v3824_v27  ;;  %v17318_v43 = vrot.slane %v5095_v7, 4  ;;  %v19919_v7 = vld [vmem:[#allocation8_spill] sm:$0xff]  ;;  %v19920_v36 = vld [vmem:[#allocation9_spill] sm:$0xff]  ;;  %v19923_v19 = vld [vmem:[#allocation6_spill] sm:$0xff] }
 0x1bb   :  { %v5104_v20 = vshll.u32 %v17290_v49, 16  ;;  %3823 = vst [vmem:[#allocation2 + $0x130] sm:$0xf] %v3822_v3  ;;  %3826 = vst [vmem:[#allocation2 + $0x134] sm:$0x1] %v3825_v32  ;;  %v4336_v56 = vshrl.u32 %v17296_v63, 16  ;;  %v19921_v27 = vsel %vm15867_vm3, %v19919_v7, %v19920_v36  ;;  %v4250_v3 = vsel %vm15867_vm3, %v17179_v9, %v17183_v6 }
 0x1bc   :  { %v4339_v45 = vshll.u32 %v17296_v63, 16  ;;  %v17323_v4 = vrot.slane %v5087_v37, 4  ;;  %v5100_v2 = vrot.slane %v5098_v1, 5  ;;  %v4310_v24 = vrot.slane %v4308_v21, 4  ;;  %v19922_v28 = vld [vmem:[#allocation5_spill] sm:$0xff]  ;;  %v19925_v21 = vld [vmem:[#allocation11_spill] sm:$0xff] }
 0x1bd   :  { %v4313_v59 = vrot.slane %v4311_v17, 5  ;;  %v4317_v18 = vshll.u32 %v17298_v0, 16  ;;  %v4322_v23 = vshrl.u32 %v17300_v26, 16  ;;  %v15306_v57 = vld [vmem:[#allocation2 + $0x120] ss:$8 sps:$4 sm:$0xff]   ;;  %v19924_v40 = vsel %vm15867_vm3, %v19922_v28, %v19923_v19  ;;  %v19926_v17 = vld [vmem:[#allocation10_spill] sm:$0xff] }
 0x1be   :  { %v17337_v11 = vcombine.low %v19924_v40, %v19921_v27  ;;  %v19927_v37 = vsel %vm15867_vm3, %v19925_v21, %v19926_v17  ;;  %v19928_v30 = vld [vmem:[#allocation13_spill] sm:$0xff]  ;;  %v19929_v61 = vld [vmem:[#allocation12_spill] sm:$0xff]  ;;  %v4227_v32 = vld [vmem:[#allocation2 + $0x138] sm:$0xf]  ;;  %14419 = vmatprep.mubr.msk.bf16.mxu1 %vm4034_vm13, %v15306_v57  ;;  %v4325_v9 = vshll.u32 %v17300_v26, 16  ;;  %v17373_v21 = vcombine.low %v5037_v29, %v5051_v58 }
 0x1bf   :  { %v17344_v1 = vcombine.low %v19927_v37, %v4865_v12  ;;  %v4879_v41 = vsel %vm15867_vm3, %v19929_v61, %v19928_v30  ;;  %v4223_v22 = vld [vmem:[#allocation2 + $0x128] sm:$0xf]  ;;  %v4224_v54 = vld [vmem:[#allocation2 + $0x12c] sm:$0x1]  ;;  %v4306_v12 = vsel %vm15867_vm3, %v17205_v51, %v17193_v52  ;;  %v4280_v27 = vshrl.u32 %v4227_v32, 16  ;;  %v15312_v28 = vld [vmem:[%s19848_s4 + $0x30] sm:$0xff]  }
 0x1c0   :  { %v17366_v34 = vcombine.low %v4879_v41, %v4893_v46  ;;  %v4252_v7 = vshrl.u32 %v4223_v22, 16  ;;  %v4255_v36 = vshll.u32 %v4223_v22, 16  ;;  %v4261_v6 = vshll.u32 %v4224_v54, 16  ;;  %v4228_v19 = vld [vmem:[#allocation2 + $0x13c] sm:$0x1]  ;;  %v19930_v39 = vld [vmem:[#allocation14_spill] sm:$0xff] }
 0x1c1   :  { %v4283_v40 = vshll.u32 %v4227_v32, 16  ;;  %v19931_v15 = vrot.slane %v19930_v39, 9  ;;  %v15310_v57 = vld [vmem:[#allocation2 + $0x150] ss:$8 sps:$4 sm:$0xff]   ;;  %v4282_v37 = vrot.slane %v4280_v27, 4  ;;  %v17383_v30 = vrot.slane %v4322_v23, 4 }
 0x1c2   :  { %v4254_v17 = vrot.slane %v4252_v7, 4  ;;  %v4257_v26 = vrot.slane %v4255_v36, 5  ;;  %v15309_v61 = vld [vmem:[#allocation2 + $0x130] ss:$8 sps:$4 sm:$0xff]   ;;  %v4314_v22 = vor.u32 %v4313_v59, %v4310_v24  ;;  %v5101_v58 = vor.u32 %v5100_v2, %v17318_v43  ;;  %v4226_v54 = vld [vmem:[#allocation2 + $0x134] sm:$0x1] }
 0x1c3   :  { %v17381_v46 = vsel %vm16875_vm12, %v19931_v15, %v5276_v62  ;;  %v4225_v41 = vld [vmem:[#allocation2 + $0x130] sm:$0xf]  ;;  %v17395_v62 = vsel %vm16875_vm12, %v12717_v42, %v5280_v53  ;;  %v4285_v24 = vrot.slane %v4283_v40, 5  ;;  %14420 = vmatmul.mubr.msk.bf16.vlgmr.msra.gmra.mxu1 %vm4034_vm13, %v15309_v61  ;;  %v4263_v7 = vrot.slane %v4261_v6, 5  ;;  %v17406_v6 = vld [vmem:[%s19848_s4 + $0x58] sm:$0xff]  }
 0x1c4   :  { %v4258_v23 = vor.u32 %v4257_v26, %v4254_v17  ;;  %v4266_v32 = vshrl.u32 %v4225_v41, 16  ;;  %v4269_v29 = vshll.u32 %v4225_v41, 16  ;;  %v5022_v59 = vld [vmem:[#allocation2 + $0xb0] sm:$0xf]  ;;  %v4275_v36 = vshll.u32 %v4226_v54, 16  ;;  %14440 = vmatpush3.bf16.msra.mxu1 %v15577_v31  ;;  %14423 = vmatprep.mubr.msk.bf16.mxu1 %vm4034_vm13, %v15310_v57 }
 0x1c5   :  { %v4289_v27 = vshll.u32 %v4228_v19, 16  ;;  %v4327_v14 = vrot.slane %v4325_v9, 5  ;;  %v4286_v2 = vor.u32 %v4285_v24, %v4282_v37  ;;  %14441 = vmatprep.subr.bf16.mxu1 %v15312_v28  ;;  %v4315_v40 = vrot.slane %v4314_v22, 4  ;;  %v5020_v37 = vld [vmem:[#allocation2 + $0xa8] sm:$0xf] }
 0x1c6   :  { %v4259_v42 = vrot.slane %v4258_v23, 4  ;;  %v4268_v53 = vrot.slane %v4266_v32, 4  ;;  %v4271_v43 = vrot.slane %v4269_v29, 5  ;;  %v4338_v19 = vrot.slane %v4336_v56, 4  ;;  %v4234_v56 = vld [vmem:[#allocation2 + $0x164] sm:$0x1] }
 0x1c7   :  { %v17408_v9 = vrot.slane %v5101_v58, 4  ;;  %v17412_v39 = vrot.slane %v5104_v20, 5  ;;  %v4287_v17 = vrot.slane %v4286_v2, 4  ;;  %v4341_v26 = vrot.slane %v4339_v45, 5  ;;  %v15313_v32 = vld [vmem:[#allocation2 + $0x160] ss:$8 sps:$4 sm:$0xff]  }
 0x1c8   :  { %v4264_v15 = vsel %vm15867_vm3, %v4259_v42, %v4263_v7  ;;  %v4272_v57 = vor.u32 %v4271_v43, %v4268_v53  ;;  %v4319_v41 = vrot.slane %v4317_v18, 5  ;;  %v5123_v22 = vshrl.u32 %v5022_v59, 16  ;;  %14442 = vmatpush3.bf16.msra.mxu1 %v15312_v28  ;;  %v4236_v45 = vld [vmem:[#allocation2 + $0x16c] sm:$0x1]  ;;  %v5023_v2 = vld [vmem:[#allocation2 + $0xb4] sm:$0x1] }
 0x1c9   :  { %v12642_v61 = vcombine.low %v4250_v3, %v4264_v15  ;;  %v5126_v58 = vshll.u32 %v5022_v59, 16  ;;  %v4277_v20 = vrot.slane %v4275_v36, 5  ;;  %v4291_v23 = vrot.slane %v4289_v27, 5  ;;  %14463 = vmatprep.subr.bf16.mxu1 %v17406_v6  ;;  %v5252_v59 = vld [vmem:[#allocation2 + $0x18] sm:$0xe]  ;;  %v15317_v36 = vld [vmem:[%s19848_s4 + $0x40] sm:$0xff]  }
 0x1ca   :  { %v4273_v49 = vrot.slane %v4272_v57, 4  ;;  %v4328_v54 = vor.u32 %v4327_v14, %v17383_v30  ;;  %v4320_v63 = vsel %vm15867_vm3, %v4315_v40, %v4319_v41  ;;  %v5079_v0 = vsel %vm15867_vm3, %v17310_v35, %v17277_v44  ;;  %v5552_v14 = vld [vmem:[#allocation2 + $0xd0] sm:$0xf]  ;;  %v5550_v57 = vld [vmem:[#allocation2 + $0xc8] sm:$0xf] }
 0x1cb   :  { %14431 = vmatprep.mubr.msk.bf16.mxu0 %vm4034_vm13, %v12642_v61  ;;  %v5109_v18 = vshrl.u32 %v5020_v37, 16  ;;  %v5112_v3 = vshll.u32 %v5020_v37, 16  ;;  %v4292_v30 = vsel %vm15867_vm3, %v4287_v17, %v4291_v23  ;;  %v4331_v29 = vshll.u32 %v4234_v56, 16  ;;  %14424 = vmatmul.mubr.msk.bf16.gmra.mxu1 %vm4034_vm13, %v15313_v32  ;;  %v5021_v61 = vld [vmem:[#allocation2 + $0xac] sm:$0x1] }
 0x1cc   :  { %v4278_v28 = vsel %vm15867_vm3, %v4273_v49, %v4277_v20  ;;  %v4342_v24 = vor.u32 %v4341_v26, %v4338_v19  ;;  %v5093_v44 = vsel %vm15867_vm3, %v17323_v4, %v17312_v10  ;;  %v5125_v35 = vrot.slane %v5123_v22, 4  ;;  %v5253_v4 = vld [vmem:[#allocation2 + $0x20] sm:$0xe]  ;;  %v15579_v26 = vld [vmem:[#allocation2 + $0x24] sm:$0x1]  ;;  %v15318_v20 = vld [vmem:[%s19848_s4 + $0x50] sm:$0xff]  }
 0x1cd   :  { %v12643_v7 = vcombine.low %v4278_v28, %v4292_v30  ;;  %v5128_v27 = vrot.slane %v5126_v58, 5  ;;  %v19932_v31 = vcombine.low %v16883_v38, %v17107_v47  ;;  %v12644_v42 = vcombine.low %v4306_v12, %v4320_v63  ;;  %v15578_v47 = vld [vmem:[#allocation2 + $0x1c] sm:$0x1]  ;;  %v17482_v30 = vld [vmem:[#allocation2 + $0x48] sm:$0xe] }
 0x1ce   :  { %v4329_v53 = vrot.slane %v4328_v54, 4  ;;  %v4345_v43 = vshll.u32 %v4236_v45, 16  ;;  %v5107_v10 = vsel %vm15867_vm3, %v17408_v9, %v17412_v39  ;;  %v12718_v38 = vrot.slane %v5252_v59, 9  ;;  %v17460_v9 = vld [vmem:[%s19848_s4 + $0x68] sm:$0xff]   ;;  %v5254_v45 = vld [vmem:[#allocation2 + $0x38] sm:$0xe] }
 0x1cf   :  { %14443 = vmatprep.mubr.msk.bf16.mxu1 %vm4034_vm13, %v19932_v31  ;;  %14432 = vmatmul.mubr.msk.bf16.vlgmr.msra.gmra.mxu0 %vm4034_vm13, %v12643_v7  ;;  %v5284_v40 = vrot.slane %v15578_v47, 5  ;;  %v5111_v19 = vrot.slane %v5109_v18, 4  ;;  %v5114_v15 = vrot.slane %v5112_v3, 5  ;;  %v4333_v52 = vrot.slane %v4331_v29, 5  ;;  %v17478_v18 = vld [vmem:[#allocation2 + $0x40] sm:$0xe] }
 0x1d0   :  { %14435 = vmatprep.mubr.msk.bf16.mxu0 %vm4034_vm13, %v12644_v42  ;;  %14452 = vmatpush3.bf16.msra.mxu0 %v17112_v50  ;;  %v4343_v51 = vrot.slane %v4342_v24, 4  ;;  %v5581_v12 = vshrl.u32 %v5552_v14, 16  ;;  %v5584_v17 = vshll.u32 %v5552_v14, 16  ;;  %v12719_v39 = vrot.slane %v5253_v4, 9  ;;  %v5554_v25 = vld [vmem:[#allocation2 + $0xd8] sm:$0xf] }
 0x1d1   :  { %14453 = vmatprep.subr.bf16.mxu0 %v15317_v36  ;;  %v5288_v37 = vrot.slane %v15579_v26, 5  ;;  %v5129_v41 = vor.u32 %v5128_v27, %v5125_v35  ;;  %v5132_v56 = vshll.u32 %v5023_v2, 16  ;;  %v4334_v22 = vsel %vm15867_vm3, %v4329_v53, %v4333_v52  ;;  %v15316_v24 = vld [vmem:[#allocation2 + $0x68] ss:$8 sps:$4 sm:$0xff]   ;;  %v15580_v53 = vld [vmem:[#allocation2 + $0x3c] sm:$0x1] }
 0x1d2   :  { %v4347_v50 = vrot.slane %v4345_v43, 5  ;;  %v5567_v58 = vshrl.u32 %v5550_v57, 16  ;;  %v5570_v49 = vshll.u32 %v5550_v57, 16  ;;  %v17472_v23 = vcombine.low %v5065_v13, %v5079_v0  ;;  %v17508_v43 = vld [vmem:[#allocation2 + $0xd4] sm:$0x1] }
 0x1d3   :  { %v12728_v54 = vcombine.low %v17381_v46, %v17395_v62  ;;  %v17476_v32 = vcombine.low %v5093_v44, %v5107_v10  ;;  %v5115_v63 = vor.u32 %v5114_v15, %v5111_v19  ;;  %v5118_v28 = vshll.u32 %v5021_v61, 16  ;;  %v5257_v44 = vld [vmem:[#allocation2 + $0x50] sm:$0xe]  ;;  %v15581_v19 = vld [vmem:[#allocation2 + $0x44] sm:$0x1] }
 0x1d4   :  { %v4348_v3 = vsel %vm15867_vm3, %v4343_v51, %v4347_v50  ;;  %14454 = vmatpush3.bf16.msra.mxu0 %v15317_v36  ;;  %v5583_v29 = vrot.slane %v5581_v12, 4  ;;  %v5586_v33 = vrot.slane %v5584_v17, 5  ;;  %v19933_v13 = vcombine.low %v17129_v16, %v17133_v60  ;;  %v17505_v16 = vld [vmem:[%s19848_s4 + $0x78] sm:$0xff]   ;;  %v15582_v52 = vld [vmem:[#allocation2 + $0x4c] sm:$0x1] }
 0x1d5   :  { %v12645_v0 = vcombine.low %v4334_v22, %v4348_v3  ;;  %14475 = vmatprep.subr.bf16.mxu0 %v17460_v9  ;;  %v17491_v59 = vsel %vm16875_vm12, %v12718_v38, %v5284_v40  ;;  %v17495_v7 = vsel %vm16875_vm12, %v12719_v39, %v5288_v37  ;;  %v5130_v36 = vrot.slane %v5129_v41, 4  ;;  %v17514_v38 = vld [vmem:[#allocation2 + $0xcc] sm:$0x1]  ;;  %v5556_v12 = vld [vmem:[#allocation2 + $0xe0] sm:$0xf] }
 0x1d6   :  { %14444 = vmatmul.mubr.msk.bf16.vlgmr.msra.gmra.mxu1 %vm4034_vm13, %v19933_v13  ;;  %v19934_v60 = vcombine.low %v16887_v48, %v17152_v5  ;;  %v5134_v35 = vrot.slane %v5132_v56, 5  ;;  %v12720_v27 = vrot.slane %v5254_v45, 9  ;;  %v5569_v14 = vrot.slane %v5567_v58, 4  ;;  %v15583_v39 = vld [vmem:[#allocation2 + $0x54] sm:$0x1] }
 0x1d7   :  { %14464 = vmatpush3.bf16.msra.mxu1 %v17406_v6  ;;  %v5572_v31 = vrot.slane %v5570_v49, 5  ;;  %14436 = vmatmul.mubr.msk.bf16.gmra.mxu0 %vm4034_vm13, %v12645_v0  ;;  %v5116_v42 = vrot.slane %v5115_v63, 4  ;;  %v5292_v6 = vrot.slane %v15580_v53, 5  ;;  %v5595_v48 = vshrl.u32 %v5554_v25, 16  ;;  %v5558_v41 = vld [vmem:[#allocation2 + $0xf8] sm:$0xf] }
 0x1d8   :  { %14447 = vmatprep.mubr.msk.bf16.mxu1 %vm4034_vm13, %v19934_v60  ;;  %14465 = vmatprep.subr.bf16.mxu1 %v15318_v20  ;;  %v5598_v5 = vshll.u32 %v5554_v25, 16  ;;  %v12729_v10 = vcombine.low %v17491_v59, %v17495_v7  ;;  %v5120_v4 = vrot.slane %v5118_v28, 5  ;;  %v12721_v2 = vrot.slane %v17478_v18, 9  ;;  %v17527_v50 = vld [vmem:[#allocation2 + $0xdc] sm:$0x1]  ;;  %v19935_v28 = vld [vmem:[#allocation17_spill] sm:$0xff] }
 0x1d9   :  { %14455 = vmatprep.mubr.msk.bf16.mxu0 %vm4034_vm13, %v15316_v24  ;;  %v5587_v47 = vor.u32 %v5586_v33, %v5583_v29  ;;  %v5135_v40 = vsel %vm15867_vm3, %v5130_v36, %v5134_v35  ;;  %v5296_v15 = vrot.slane %v15581_v19, 5  ;;  %v12722_v57 = vrot.slane %v17482_v30, 9  ;;  %v5560_v3 = vld [vmem:[#allocation2 + $0x100] sm:$0xf]  ;;  %v19936_v30 = vld [vmem:[#allocation18_spill] sm:$0xff] }
 0x1da   :  { %v5300_v51 = vrot.slane %v15582_v52, 5  ;;  %v12723_v17 = vrot.slane %v5257_v44, 9  ;;  %v5304_v26 = vrot.slane %v15583_v39, 5  ;;  %v5573_v37 = vor.u32 %v5572_v31, %v5569_v14  ;;  %v15319_v33 = vld [vmem:[#allocation2 + $0x78] ss:$8 sps:$4 sm:$0xff]  }
 0x1db   :  { %14466 = vmatpush3.bf16.msra.mxu1 %v15318_v20  ;;  %v5590_v61 = vshll.u32 %v17508_v43, 16  ;;  %v5121_v56 = vsel %vm15867_vm3, %v5116_v42, %v5120_v4  ;;  %v17525_v22 = vsel %vm16875_vm12, %v12720_v27, %v5292_v6  ;;  %v5597_v58 = vrot.slane %v5595_v48, 4  ;;  %v15324_v25 = vld [vmem:[%s19848_s4 + $0x60] sm:$0xff]   ;;  %v19938_v44 = vld [vmem:[#allocation7_spill] sm:$0xff]  ;;  %v5794_v42 = vld [vmem:[#allocation2 + $0x130] sm:$0xf] }
 0x1dc   :  { %14487 = vmatprep.subr.bf16.mxu1 %v17505_v16  ;;  %v5600_v49 = vrot.slane %v5598_v5, 5  ;;  %v5576_v20 = vshll.u32 %v17514_v38, 16  ;;  %v5588_v63 = vrot.slane %v5587_v47, 4  ;;  %v5609_v45 = vshrl.u32 %v5556_v12, 16  ;;  %v15320_v60 = vld [vmem:[#allocation2 + $0x98] ss:$8 sps:$4 sm:$0xff]  }
 0x1dd   :  { %v5612_v18 = vshll.u32 %v5556_v12, 16  ;;  %v19937_v29 = vcombine.low %v19935_v28, %v19936_v30  ;;  %v17537_v13 = vcombine.low %v5121_v56, %v5135_v40  ;;  %v17541_v0 = vsel %vm16875_vm12, %v12721_v2, %v5296_v15  ;;  %v17554_v53 = vld [vmem:[#allocation2 + $0xe4] sm:$0x1]  ;;  %v17562_v2 = vld [vmem:[%s19848_s4 + $0x88] sm:$0xff]  }
 0x1de   :  { %v5623_v24 = vshrl.u32 %v5558_v41, 16  ;;  %v5626_v36 = vshll.u32 %v5558_v41, 16  ;;  %v17547_v35 = vsel %vm16875_vm12, %v12722_v57, %v5300_v51  ;;  %v17551_v27 = vsel %vm16875_vm12, %v12723_v17, %v5304_v26  ;;  %v17566_v57 = vld [vmem:[#allocation2 + $0xfc] sm:$0x1]  ;;  %v5792_v12 = vld [vmem:[#allocation2 + $0x128] sm:$0xf] }
 0x1df   :  { %14448 = vmatmul.mubr.msk.bf16.gmra.mxu1 %vm4034_vm13, %v19937_v29  ;;  %v5574_v14 = vrot.slane %v5573_v37, 4  ;;  %v5592_v31 = vrot.slane %v5590_v61, 5  ;;  %14456 = vmatmul.mubr.msk.bf16.vlgmr.msra.gmra.mxu0 %vm4034_vm13, %v15319_v33  ;;  %v5601_v6 = vor.u32 %v5600_v49, %v5597_v58  ;;  %v5604_v48 = vshll.u32 %v17527_v50, 16  ;;  %v5562_v56 = vld [vmem:[#allocation2 + $0x108] sm:$0xf] }
 0x1e0   :  { %14467 = vmatprep.mubr.msk.bf16.mxu1 %vm4034_vm13, %v19938_v44  ;;  %v5637_v5 = vshrl.u32 %v5560_v3, 16  ;;  %v5640_v4 = vshll.u32 %v5560_v3, 16  ;;  %14459 = vmatprep.mubr.msk.bf16.mxu0 %vm4034_vm13, %v15320_v60  ;;  %v5578_v47 = vrot.slane %v5576_v20, 5  ;;  %v5611_v19 = vrot.slane %v5609_v45, 4  ;;  %v17582_v20 = vld [vmem:[#allocation2 + $0x104] sm:$0x1] }
 0x1e1   :  { %14476 = vmatpush3.bf16.msra.mxu0 %v17460_v9  ;;  %v5593_v40 = vsel %vm15867_vm3, %v5588_v63, %v5592_v31  ;;  %v5614_v15 = vrot.slane %v5612_v18, 5  ;;  %v5625_v52 = vrot.slane %v5623_v24, 4  ;;  %v5628_v51 = vrot.slane %v5626_v36, 5  ;;  %v15325_v9 = vld [vmem:[%s19848_s4 + $0x70] sm:$0xff]   ;;  %v5793_v36 = vld [vmem:[#allocation2 + $0x12c] sm:$0x1] }
 0x1e2   :  { %14477 = vmatprep.subr.bf16.mxu0 %v15324_v25  ;;  %v5823_v17 = vshrl.u32 %v5794_v42, 16  ;;  %v5826_v39 = vshll.u32 %v5794_v42, 16  ;;  %v12730_v26 = vcombine.low %v17525_v22, %v17541_v0  ;;  %v12731_v37 = vcombine.low %v17547_v35, %v17551_v27  ;;  %v15323_v18 = vld [vmem:[#allocation2 + $0xa8] ss:$8 sps:$4 sm:$0xff]   ;;  %v5795_v42 = vld [vmem:[#allocation2 + $0x134] sm:$0x1] }
 0x1e3   :  { %v5579_v61 = vsel %vm15867_vm3, %v5574_v14, %v5578_v47  ;;  %v5618_v41 = vshll.u32 %v17554_v53, 16  ;;  %v17578_v58 = vrot.slane %v5601_v6, 4  ;;  %v17580_v49 = vrot.slane %v5604_v48, 5  ;;  %v5564_v33 = vld [vmem:[#allocation2 + $0x110] sm:$0xf] }
 0x1e4   :  { %v5639_v63 = vrot.slane %v5637_v5, 4  ;;  %v5642_v45 = vrot.slane %v5640_v4, 5  ;;  %v17584_v3 = vcombine.low %v5579_v61, %v5593_v40  ;;  %v5615_v28 = vor.u32 %v5614_v15, %v5611_v19  ;;  %v5796_v47 = vld [vmem:[#allocation2 + $0x138] sm:$0xf]  ;;  %v5798_v61 = vld [vmem:[#allocation2 + $0x140] sm:$0xf] }
 0x1e5   :  { %14478 = vmatpush3.bf16.msra.mxu0 %v15324_v25  ;;  %v5632_v30 = vshll.u32 %v17566_v57, 16  ;;  %v5809_v29 = vshrl.u32 %v5792_v12, 16  ;;  %v5629_v24 = vor.u32 %v5628_v51, %v5625_v52  ;;  %v5812_v44 = vshll.u32 %v5792_v12, 16  ;;  %v5803_v59 = vld [vmem:[#allocation2 + $0x164] sm:$0x1] }
 0x1e6   :  { %14499 = vmatprep.subr.bf16.mxu0 %v17562_v2  ;;  %v5825_v60 = vrot.slane %v5823_v17, 4  ;;  %v5828_v14 = vrot.slane %v5826_v39, 5  ;;  %v17593_v25 = vrot.slane %v5618_v41, 5  ;;  %v5646_v31 = vshll.u32 %v17582_v20, 16  ;;  %v17614_v41 = vld [vmem:[#allocation2 + $0x10c] sm:$0x1] }
 0x1e7   :  { %14468 = vmatmul.mubr.msk.bf16.vlgmr.msra.gmra.mxu1 %vm4034_vm13, %v17337_v11  ;;  %v5651_v6 = vshrl.u32 %v5562_v56, 16  ;;  %v5654_v48 = vshll.u32 %v5562_v56, 16  ;;  %14460 = vmatmul.mubr.msk.bf16.gmra.mxu0 %vm4034_vm13, %v15323_v18  ;;  %v17600_v11 = vld [vmem:[%s19848_s4 + $0x98] sm:$0xff]   ;;  %v5665_v5 = vshrl.u32 %v5564_v33, 16  ;;  %v5668_v4 = vshll.u32 %v5564_v33, 16 }
 0x1e8   :  { %14488 = vmatpush3.bf16.msra.mxu1 %v17505_v16  ;;  %14471 = vmatprep.mubr.msk.bf16.mxu1 %vm4034_vm13, %v17344_v1  ;;  %v5607_v1 = vsel %vm15867_vm3, %v17578_v58, %v17580_v49  ;;  %v5643_v16 = vor.u32 %v5642_v45, %v5639_v63  ;;  %v17608_v40 = vrot.slane %v5615_v28, 4  ;;  %v17610_v19 = vrot.slane %v5632_v30, 5  ;;  %v15328_v7 = vld [vmem:[#allocation2 + $0x128] ss:$8 sps:$4 sm:$0xff]  }
 0x1e9   :  { %14489 = vmatprep.subr.bf16.mxu1 %v15325_v9  ;;  %14479 = vmatprep.mubr.msk.bf16.mxu0 %vm4034_vm13, %v17373_v21  ;;  %v5811_v15 = vrot.slane %v5809_v29, 4  ;;  %v5818_v52 = vshll.u32 %v5793_v36, 16  ;;  %v17612_v51 = vrot.slane %v5629_v24, 4  ;;  %v5814_v12 = vrot.slane %v5812_v44, 5  ;;  %v5800_v44 = vld [vmem:[#allocation2 + $0x158] sm:$0xf] }
 0x1ea   :  { %v5829_v17 = vor.u32 %v5828_v14, %v5825_v60  ;;  %v5832_v39 = vshll.u32 %v5795_v42, 16  ;;  %v5653_v56 = vrot.slane %v5651_v6, 4  ;;  %v5656_v63 = vrot.slane %v5654_v48, 5  ;;  %v15329_v60 = vld [vmem:[%s19848_s4 + $0x80] sm:$0xff]   ;;  %v17637_v48 = vld [vmem:[#allocation2 + $0x114] sm:$0x1] }
 0x1eb   :  { %v5837_v45 = vshrl.u32 %v5796_v47, 16  ;;  %v5840_v18 = vshll.u32 %v5796_v47, 16  ;;  %v5644_v21 = vrot.slane %v5643_v16, 4  ;;  %v5648_v28 = vrot.slane %v5646_v31, 5  ;;  %v5802_v6 = vld [vmem:[#allocation2 + $0x160] sm:$0xf] }
 0x1ec   :  { %14490 = vmatpush3.bf16.msra.mxu1 %v15325_v9  ;;  %v5667_v30 = vrot.slane %v5665_v5, 4  ;;  %v5670_v29 = vrot.slane %v5668_v4, 5  ;;  %v5621_v33 = vsel %vm15867_vm3, %v17608_v40, %v17593_v25  ;;  %v17621_v24 = vrot.slane %v5818_v52, 5 }
 0x1ed   :  { %14511 = vmatprep.subr.bf16.mxu1 %v17600_v11  ;;  %v5851_v9 = vshrl.u32 %v5798_v61, 16  ;;  %v5854_v36 = vshll.u32 %v5798_v61, 16  ;;  %v5635_v14 = vsel %vm15867_vm3, %v17612_v51, %v17610_v19  ;;  %v5815_v31 = vor.u32 %v5814_v12, %v5811_v15  ;;  %v5797_v19 = vld [vmem:[#allocation2 + $0x13c] sm:$0x1]  ;;  %v5799_v15 = vld [vmem:[#allocation2 + $0x144] sm:$0x1] }
 0x1ee   :  { %v5830_v42 = vrot.slane %v5829_v17, 4  ;;  %v5660_v25 = vshll.u32 %v17614_v41, 16  ;;  %v5657_v16 = vor.u32 %v5656_v63, %v5653_v56  ;;  %v5839_v5 = vrot.slane %v5837_v45, 4 }
 0x1ef   :  { %14472 = vmatmul.mubr.msk.bf16.gmra.mxu1 %vm4034_vm13, %v17366_v34  ;;  %v5834_v34 = vrot.slane %v5832_v39, 5  ;;  %v5842_v4 = vrot.slane %v5840_v18, 5  ;;  %14480 = vmatmul.mubr.msk.bf16.vlgmr.msra.gmra.mxu0 %vm4034_vm13, %v17472_v23  ;;  %v5649_v47 = vsel %vm15867_vm3, %v5644_v21, %v5648_v28  ;;  %v5671_v40 = vor.u32 %v5670_v29, %v5667_v30  ;;  %v17649_v23 = vld [vmem:[%s19848_s4 + $0xa8] sm:$0xff]   ;;  %v6035_v30 = vld [vmem:[#allocation2 + $0xd0] sm:$0xe] }
 0x1f0   :  { %14491 = vmatprep.mubr.msk.bf16.mxu1 %vm4034_vm13, %v12728_v54  ;;  %v5865_v52 = vshrl.u32 %v5800_v44, 16  ;;  %v5868_v51 = vshll.u32 %v5800_v44, 16  ;;  %14483 = vmatprep.mubr.msk.bf16.mxu0 %vm4034_vm13, %v17476_v32  ;;  %v5853_v46 = vrot.slane %v5851_v9, 4  ;;  %v5856_v62 = vrot.slane %v5854_v36, 5  ;;  %v6034_v54 = vld [vmem:[#allocation2 + $0xc8] sm:$0xe] }
 0x1f1   :  { %14500 = vmatpush3.bf16.msra.mxu0 %v17562_v2  ;;  %v5879_v12 = vshrl.u32 %v5802_v6, 16  ;;  %v5882_v17 = vshll.u32 %v5802_v6, 16  ;;  %v5816_v39 = vrot.slane %v5815_v31, 4  ;;  %v5835_v61 = vsel %vm15867_vm3, %v5830_v42, %v5834_v34  ;;  %v15330_v2 = vld [vmem:[%s19848_s4 + $0x90] sm:$0xff]   ;;  %v6037_v6 = vld [vmem:[#allocation2 + $0xe0] sm:$0xe] }
 0x1f2   :  { %14501 = vmatprep.subr.bf16.mxu0 %v15329_v60  ;;  %v5662_v56 = vrot.slane %v5660_v25, 5  ;;  %v5674_v32 = vshll.u32 %v17637_v48, 16  ;;  %v5658_v63 = vrot.slane %v5657_v16, 4  ;;  %v5843_v45 = vor.u32 %v5842_v4, %v5839_v5  ;;  %v5801_v5 = vld [vmem:[#allocation2 + $0x15c] sm:$0x1] }
 0x1f3   :  { %v5846_v18 = vshll.u32 %v5797_v19, 16  ;;  %v5860_v21 = vshll.u32 %v5799_v15, 16  ;;  %v5672_v28 = vrot.slane %v5671_v40, 4  ;;  %v12780_v29 = vrot.slane %v6034_v54, 9  ;;  %v6036_v19 = vld [vmem:[#allocation2 + $0xd8] sm:$0xe] }
 0x1f4   :  { %v5867_v9 = vrot.slane %v5865_v52, 4  ;;  %v5870_v36 = vrot.slane %v5868_v51, 5  ;;  %v5857_v44 = vor.u32 %v5856_v62, %v5853_v46  ;;  %v6060_v31 = vrot.slane %v17514_v38, 5 }
 0x1f5   :  { %14502 = vmatpush3.bf16.msra.mxu0 %v15329_v60  ;;  %v5881_v42 = vrot.slane %v5879_v12, 4  ;;  %v5884_v25 = vrot.slane %v5882_v17, 5  ;;  %v17668_v34 = vcombine.low %v5607_v1, %v5621_v33  ;;  %v17670_v60 = vcombine.low %v5635_v14, %v5649_v47  ;;  %v5804_v33 = vld [vmem:[#allocation2 + $0x168] sm:$0xf]  ;;  %v5806_v14 = vld [vmem:[#allocation2 + $0x170] sm:$0xf] }
 0x1f6   :  { %14523 = vmatprep.subr.bf16.mxu0 %v17649_v23  ;;  %v5821_v38 = vsel %vm15867_vm3, %v5816_v39, %v17621_v24  ;;  %v5676_v16 = vrot.slane %v5674_v32, 5  ;;  %v5663_v58 = vsel %vm15867_vm3, %v5658_v63, %v5662_v56  ;;  %v5844_v49 = vrot.slane %v5843_v45, 4  ;;  %v15336_v63 = vld [vmem:[%s19848_s4 + $0xa0] sm:$0xff]  }
 0x1f7   :  { %14492 = vmatmul.mubr.msk.bf16.vlgmr.msra.gmra.mxu1 %vm4034_vm13, %v12729_v10  ;;  %v17680_v10 = vcombine.low %v5821_v38, %v5835_v61  ;;  %v5848_v1 = vrot.slane %v5846_v18, 5  ;;  %14484 = vmatmul.mubr.msk.bf16.gmra.mxu0 %vm4034_vm13, %v17537_v13  ;;  %v5862_v22 = vrot.slane %v5860_v21, 5  ;;  %v12781_v0 = vrot.slane %v6035_v30, 9  ;;  %v6336_v21 = vld [vmem:[#allocation2 + $0x10] sm:$0xf] }
 0x1f8   :  { %14512 = vmatpush3.bf16.msra.mxu1 %v17600_v11  ;;  %14495 = vmatprep.mubr.msk.bf16.mxu1 %vm4034_vm13, %v12730_v26  ;;  %v17689_v11 = vld [vmem:[%s19848_s4 + $0xb8] sm:$0xff]   ;;  %v6064_v26 = vrot.slane %v17508_v43, 5  ;;  %v5871_v24 = vor.u32 %v5870_v36, %v5867_v9  ;;  %v5677_v4 = vsel %vm15867_vm3, %v5672_v28, %v5676_v16  ;;  %v5858_v47 = vrot.slane %v5857_v44, 4  ;;  %v5805_v43 = vld [vmem:[#allocation2 + $0x16c] sm:$0x1] }
 0x1f9   :  { %14513 = vmatprep.subr.bf16.mxu1 %v15330_v2  ;;  %14503 = vmatprep.mubr.msk.bf16.mxu0 %vm4034_vm13, %v15328_v7  ;;  %v17697_v13 = vsel %vm16875_vm12, %v12780_v29, %v6060_v31  ;;  %v5885_v40 = vor.u32 %v5884_v25, %v5881_v42  ;;  %v5874_v15 = vshll.u32 %v5801_v5, 16  ;;  %v5888_v52 = vshll.u32 %v5803_v59, 16  ;;  %v6340_v28 = vld [vmem:[#allocation2 + $0x20] sm:$0xf]  ;;  %v5807_v44 = vld [vmem:[#allocation2 + $0x174] sm:$0x1] }
 0x1fa   :  { %v12783_v51 = vrot.slane %v6037_v6, 9  ;;  %v6072_v46 = vrot.slane %v17554_v53, 5  ;;  %v5893_v62 = vshrl.u32 %v5804_v33, 16  ;;  %v5896_v54 = vshll.u32 %v5804_v33, 16  ;;  %v15332_v31 = vld [vmem:[#allocation2 + $0x158] ss:$8 sps:$4 sm:$0xff]  }
 0x1fb   :  { %v5907_v12 = vshrl.u32 %v5806_v14, 16  ;;  %v5910_v17 = vshll.u32 %v5806_v14, 16  ;;  %v17701_v39 = vcombine.low %v5663_v58, %v5677_v4  ;;  %v5872_v61 = vrot.slane %v5871_v24, 4  ;;  %v6338_v5 = vld [vmem:[#allocation2 + $0x18] sm:$0xf] }
 0x1fc   :  { %14514 = vmatpush3.bf16.msra.mxu1 %v15330_v2  ;;  %v12782_v56 = vrot.slane %v6036_v19, 9  ;;  %v6068_v32 = vrot.slane %v17527_v50, 5  ;;  %v5863_v53 = vsel %vm15867_vm3, %v5858_v47, %v5862_v22  ;;  %v17711_v2 = vsel %vm16875_vm12, %v12781_v0, %v6064_v26  ;;  %v15331_v50 = vld [vmem:[#allocation2 + $0x138] ss:$8 sps:$4 sm:$0xff]   ;;  %v6342_v33 = vld [vmem:[#allocation2 + $0x28] sm:$0xf] }
 0x1fd   :  { %14535 = vmatprep.subr.bf16.mxu1 %v17689_v11  ;;  %v5886_v45 = vrot.slane %v5885_v40, 4  ;;  %v5902_v18 = vshll.u32 %v5805_v43, 16  ;;  %v5849_v30 = vsel %vm15867_vm3, %v5844_v49, %v5848_v1  ;;  %v5876_v29 = vrot.slane %v5874_v15, 5  ;;  %v6039_v1 = vld [vmem:[#allocation2 + $0x100] sm:$0xe]  ;;  %v17747_v22 = vld [vmem:[%s19848_s4 + $0xc8] sm:$0xff]  }
 0x1fe   :  { %v5890_v9 = vrot.slane %v5888_v52, 5  ;;  %v17721_v36 = vsel %vm16875_vm12, %v12783_v51, %v6072_v46  ;;  %v5895_v42 = vrot.slane %v5893_v62, 4  ;;  %v5898_v25 = vrot.slane %v5896_v54, 5  ;;  %v15337_v19 = vld [vmem:[%s19848_s4 + $0xb0] sm:$0xff]   ;;  %v6040_v51 = vld [vmem:[#allocation2 + $0x108] sm:$0xe] }
 0x1ff   :  { %14496 = vmatmul.mubr.msk.bf16.gmra.mxu1 %vm4034_vm13, %v12731_v37  ;;  %v5909_v35 = vrot.slane %v5907_v12, 4  ;;  %v5912_v27 = vrot.slane %v5910_v17, 5  ;;  %14504 = vmatmul.mubr.msk.bf16.vlgmr.msra.gmra.mxu0 %vm4034_vm13, %v15331_v50  ;;  %v17726_v37 = vcombine.low %v5849_v30, %v5863_v53  ;;  %v12792_v6 = vcombine.low %v17697_v13, %v17711_v2  ;;  %v17758_v12 = vld [vmem:[#allocation2 + $0x110] sm:$0xe] }
 0x200   :  { %14515 = vmatprep.mubr.msk.bf16.mxu1 %vm4034_vm13, %v17584_v3  ;;  %v5877_v38 = vsel %vm15867_vm3, %v5872_v61, %v5876_v29  ;;  %v17734_v16 = vsel %vm16875_vm12, %v12782_v56, %v6068_v32  ;;  %v6038_v3 = vld [vmem:[#allocation2 + $0xf8] sm:$0xe]  ;;  %14507 = vmatprep.mubr.msk.bf16.mxu0 %vm4034_vm13, %v15332_v31  ;;  %v5891_v59 = vsel %vm15867_vm3, %v5886_v45, %v5890_v9  ;;  %v17742_v58 = vrot.slane %v5902_v18, 5  ;;  %v6346_v29 = vld [vmem:[#allocation2 + $0x48] sm:$0xf] }
 0x201   :  { %14524 = vmatpush3.bf16.msra.mxu0 %v17649_v23  ;;  %v12793_v7 = vcombine.low %v17734_v16, %v17721_v36  ;;  %v5916_v49 = vshll.u32 %v5807_v44, 16  ;;  %v6353_v0 = vshrl.u32 %v6336_v21, 16  ;;  %v6356_v26 = vshll.u32 %v6336_v21, 16  ;;  %v17789_v31 = vld [vmem:[#allocation2 + $0x14] sm:$0x1]  ;;  %v17873_v36 = vld [vmem:[%s19848_s4 + $0xf8] sm:$0xff]  }
 0x202   :  { %14525 = vmatprep.subr.bf16.mxu0 %v15336_v63  ;;  %v6381_v23 = vshrl.u32 %v6340_v28, 16  ;;  %v6384_v24 = vshll.u32 %v6340_v28, 16  ;;  %v5899_v14 = vor.u32 %v5898_v25, %v5895_v42  ;;  %v5913_v4 = vor.u32 %v5912_v27, %v5909_v35  ;;  %v6344_v28 = vld [vmem:[#allocation2 + $0x40] sm:$0xf]  ;;  %v17791_v35 = vld [vmem:[#allocation2 + $0x1c] sm:$0x1] }
 0x203   :  { %v12784_v47 = vrot.slane %v6038_v3, 9  ;;  %v6076_v40 = vrot.slane %v17566_v57, 5  ;;  %v17753_v15 = vcombine.low %v5877_v38, %v5891_v59  ;;  %v12785_v52 = vrot.slane %v6039_v1, 9  ;;  %v15335_v57 = vld [vmem:[#allocation2 + $0x168] ss:$8 sps:$4 sm:$0xff]  }
 0x204   :  { %v6395_v46 = vshrl.u32 %v6342_v33, 16  ;;  %v6398_v43 = vshll.u32 %v6342_v33, 16  ;;  %v17755_v62 = vrot.slane %v5916_v49, 5  ;;  %v6080_v54 = vrot.slane %v17582_v20, 5  ;;  %v17769_v20 = vld [vmem:[%s19848_s4 + $0xd8] sm:$0xff]  }
 0x205   :  { %14526 = vmatpush3.bf16.msra.mxu0 %v15336_v63  ;;  %v6367_v17 = vshrl.u32 %v6338_v5, 16  ;;  %v6370_v61 = vshll.u32 %v6338_v5, 16  ;;  %v6355_v56 = vrot.slane %v6353_v0, 4  ;;  %v6358_v32 = vrot.slane %v6356_v26, 5  ;;  %v17793_v27 = vld [vmem:[#allocation2 + $0x24] sm:$0x1] }
 0x206   :  { %14547 = vmatprep.subr.bf16.mxu0 %v17747_v22  ;;  %v6383_v53 = vrot.slane %v6381_v23, 4  ;;  %v6386_v45 = vrot.slane %v6384_v24, 5  ;;  %v17771_v63 = vrot.slane %v5899_v14, 4  ;;  %v17777_v18 = vsel %vm16875_vm12, %v12784_v47, %v6076_v40  ;;  %v17803_v59 = vld [vmem:[#allocation2 + $0x2c] sm:$0x1]  ;;  %v15341_v24 = vld [vmem:[%s19848_s4 + $0xc0] sm:$0xff]  }
 0x207   :  { %14516 = vmatmul.mubr.msk.bf16.vlgmr.msra.gmra.mxu1 %vm4034_vm13, %v17668_v34  ;;  %v17773_v34 = vrot.slane %v5913_v4, 4  ;;  %v12786_v21 = vrot.slane %v6040_v51, 9  ;;  %14508 = vmatmul.mubr.msk.bf16.gmra.mxu0 %vm4034_vm13, %v15335_v57  ;;  %v6397_v50 = vrot.slane %v6395_v46, 4  ;;  %v6400_v30 = vrot.slane %v6398_v43, 5  ;;  %v6580_v43 = vld [vmem:[#allocation2 + $0x78] sm:$0xf] }
 0x208   :  { %14536 = vmatpush3.bf16.msra.mxu1 %v17689_v11  ;;  %14519 = vmatprep.mubr.msk.bf16.mxu1 %vm4034_vm13, %v17670_v60  ;;  %v6084_v60 = vrot.slane %v17614_v41, 5  ;;  %v12787_v11 = vrot.slane %v17758_v12, 9  ;;  %v17786_v9 = vsel %vm16875_vm12, %v12785_v52, %v6080_v54  ;;  %v6088_v44 = vrot.slane %v17637_v48, 5 }
 0x209   :  { %14537 = vmatprep.subr.bf16.mxu1 %v15337_v19  ;;  %14527 = vmatprep.mubr.msk.bf16.mxu0 %vm4034_vm13, %v17680_v10  ;;  %v6369_v42 = vrot.slane %v6367_v17, 4  ;;  %v6372_v25 = vrot.slane %v6370_v61, 5  ;;  %v6359_v41 = vor.u32 %v6358_v32, %v6355_v56  ;;  %v6387_v38 = vor.u32 %v6386_v45, %v6383_v53  ;;  %v17833_v53 = vld [vmem:[#allocation2 + $0x4c] sm:$0x1] }
 0x20a   :  { %v6409_v3 = vshrl.u32 %v6344_v28, 16  ;;  %v6412_v5 = vshll.u32 %v6344_v28, 16  ;;  %v5905_v10 = vsel %vm15867_vm3, %v17771_v63, %v17742_v58  ;;  %v5919_v48 = vsel %vm15867_vm3, %v17773_v34, %v17755_v62  ;;  %v6578_v58 = vld [vmem:[#allocation2 + $0x70] sm:$0xf]  ;;  %v17825_v62 = vld [vmem:[#allocation2 + $0x44] sm:$0x1] }
 0x20b   :  { %v6423_v49 = vshrl.u32 %v6346_v29, 16  ;;  %v6426_v1 = vshll.u32 %v6346_v29, 16  ;;  %v12794_v33 = vcombine.low %v17777_v18, %v17786_v9  ;;  %v6362_v0 = vshll.u32 %v17789_v31, 16  ;;  %v6348_v63 = vld [vmem:[#allocation2 + $0x50] sm:$0xf] }
 0x20c   :  { %14538 = vmatpush3.bf16.msra.mxu1 %v15337_v19  ;;  %v6401_v26 = vor.u32 %v6400_v30, %v6397_v50  ;;  %v6404_v23 = vshll.u32 %v17803_v59, 16  ;;  %v17815_v14 = vsel %vm16875_vm12, %v12786_v21, %v6084_v60  ;;  %v6373_v4 = vor.u32 %v6372_v25, %v6369_v42  ;;  %v17843_v21 = vld [vmem:[%s19848_s4 + $0xe8] sm:$0xff]   ;;  %v15342_v29 = vld [vmem:[%s19848_s4 + $0xd0] sm:$0xff]  }
 0x20d   :  { %14559 = vmatprep.subr.bf16.mxu1 %v17769_v20  ;;  %v6376_v47 = vshll.u32 %v17791_v35, 16  ;;  %v6390_v40 = vshll.u32 %v17793_v27, 16  ;;  %v6360_v19 = vrot.slane %v6359_v41, 4  ;;  %v6388_v52 = vrot.slane %v6387_v38, 4 }
 0x20e   :  { %v6411_v51 = vrot.slane %v6409_v3, 4  ;;  %v6414_v46 = vrot.slane %v6412_v5, 5  ;;  %v6425_v54 = vrot.slane %v6423_v49, 4  ;;  %v6428_v12 = vrot.slane %v6426_v1, 5  ;;  %v15340_v3 = vld [vmem:[#allocation2 + $0x70] ss:$8 sps:$4 sm:$0xff]  }
 0x20f   :  { %14520 = vmatmul.mubr.msk.bf16.gmra.mxu1 %vm4034_vm13, %v17701_v39  ;;  %v6595_v17 = vshrl.u32 %v6578_v58, 16  ;;  %v6598_v61 = vshll.u32 %v6578_v58, 16  ;;  %14528 = vmatmul.mubr.msk.bf16.vlgmr.msra.gmra.mxu0 %vm4034_vm13, %v17726_v37  ;;  %v17831_v39 = vsel %vm16875_vm12, %v12787_v11, %v6088_v44  ;;  %v6364_v57 = vrot.slane %v6362_v0, 5  ;;  %v6579_v11 = vld [vmem:[#allocation2 + $0x74] sm:$0x1] }
 0x210   :  { %14539 = vmatprep.mubr.msk.bf16.mxu1 %vm4034_vm13, %v12792_v6  ;;  %v6402_v56 = vrot.slane %v6401_v26, 4  ;;  %v6406_v32 = vrot.slane %v6404_v23, 5  ;;  %14531 = vmatprep.mubr.msk.bf16.mxu0 %vm4034_vm13, %v17753_v15  ;;  %v6374_v13 = vrot.slane %v6373_v4, 4  ;;  %v6392_v2 = vrot.slane %v6390_v40, 5  ;;  %v6350_v0 = vld [vmem:[#allocation2 + $0x58] sm:$0xf] }
 0x211   :  { %14548 = vmatpush3.bf16.msra.mxu0 %v17747_v22  ;;  %v6609_v6 = vshrl.u32 %v6580_v43, 16  ;;  %v6612_v45 = vshll.u32 %v6580_v43, 16  ;;  %v6365_v37 = vsel %vm15867_vm3, %v6360_v19, %v6364_v57  ;;  %v6378_v34 = vrot.slane %v6376_v47, 5  ;;  %v17863_v58 = vld [vmem:[#allocation2 + $0x54] sm:$0x1] }
 0x212   :  { %14549 = vmatprep.subr.bf16.mxu0 %v15341_v24  ;;  %v6415_v28 = vor.u32 %v6414_v46, %v6411_v51  ;;  %v6418_v15 = vshll.u32 %v17825_v62, 16  ;;  %v6393_v22 = vsel %vm15867_vm3, %v6388_v52, %v6392_v2  ;;  %v6429_v60 = vor.u32 %v6428_v12, %v6425_v54  ;;  %v6584_v47 = vld [vmem:[#allocation2 + $0x88] sm:$0xf]  ;;  %v6581_v40 = vld [vmem:[#allocation2 + $0x7c] sm:$0x1] }
 0x213   :  { %v6597_v50 = vrot.slane %v6595_v17, 4  ;;  %v6600_v30 = vrot.slane %v6598_v61, 5  ;;  %v6407_v44 = vsel %vm15867_vm3, %v6402_v56, %v6406_v32  ;;  %v6432_v42 = vshll.u32 %v17833_v53, 16  ;;  %v6586_v43 = vld [vmem:[#allocation2 + $0xa0] sm:$0xf] }
 0x214   :  { %v6437_v25 = vshrl.u32 %v6348_v63, 16  ;;  %v6440_v41 = vshll.u32 %v6348_v63, 16  ;;  %v12773_v38 = vcombine.low %v5905_v10, %v5919_v48  ;;  %v6379_v5 = vsel %vm15867_vm3, %v6374_v13, %v6378_v34  ;;  %v6588_v13 = vld [vmem:[#allocation2 + $0xa8] sm:$0xf] }
 0x215   :  { %14550 = vmatpush3.bf16.msra.mxu0 %v15341_v24  ;;  %v6611_v49 = vrot.slane %v6609_v6, 4  ;;  %v6614_v1 = vrot.slane %v6612_v45, 5  ;;  %v12795_v26 = vcombine.low %v17815_v14, %v17831_v39  ;;  %v12820_v23 = vcombine.low %v6365_v37, %v6379_v5  ;;  %v6582_v24 = vld [vmem:[#allocation2 + $0x80] sm:$0xf] }
 0x216   :  { %14571 = vmatprep.subr.bf16.mxu0 %v17843_v21  ;;  %v6416_v10 = vrot.slane %v6415_v28, 4  ;;  %v6604_v48 = vshll.u32 %v6579_v11, 16  ;;  %v17875_v16 = vcombine.low %v6393_v22, %v6407_v44  ;;  %v6430_v14 = vrot.slane %v6429_v60, 4  ;;  %v15343_v2 = vld [vmem:[#allocation2 + $0x80] ss:$8 sps:$4 sm:$0xff]  }
 0x217   :  { %14540 = vmatmul.mubr.msk.bf16.vlgmr.msra.gmra.mxu1 %vm4034_vm13, %v12793_v7  ;;  %v6420_v7 = vrot.slane %v6418_v15, 5  ;;  %v6601_v4 = vor.u32 %v6600_v30, %v6597_v50  ;;  %14532 = vmatmul.mubr.msk.bf16.gmra.mxu0 %vm4034_vm13, %v12773_v38  ;;  %v6439_v19 = vrot.slane %v6437_v25, 4  ;;  %v6442_v18 = vrot.slane %v6440_v41, 5  ;;  %v15344_v34 = vld [vmem:[#allocation2 + $0xa0] ss:$8 sps:$4 sm:$0xff]  }
 0x218   :  { %14560 = vmatpush3.bf16.msra.mxu1 %v17769_v20  ;;  %14543 = vmatprep.mubr.msk.bf16.mxu1 %vm4034_vm13, %v12794_v33  ;;  %v6434_v20 = vrot.slane %v6432_v42, 5  ;;  %v6451_v9 = vshrl.u32 %v6350_v0, 16  ;;  %v6615_v33 = vor.u32 %v6614_v1, %v6611_v49  ;;  %v6454_v52 = vshll.u32 %v6350_v0, 16  ;;  %v17885_v15 = vld [vmem:[#allocation2 + $0x5c] sm:$0x1]  ;;  %v15348_v30 = vld [vmem:[%s19848_s4 + $0xe0] sm:$0xff]  }
 0x219   :  { %14561 = vmatprep.subr.bf16.mxu1 %v15342_v29  ;;  %14551 = vmatprep.mubr.msk.bf16.mxu0 %vm4034_vm13, %v15340_v3  ;;  %v6623_v51 = vshrl.u32 %v6582_v24, 16  ;;  %v6626_v46 = vshll.u32 %v6582_v24, 16  ;;  %v6421_v54 = vsel %vm15867_vm3, %v6416_v10, %v6420_v7  ;;  %v6606_v12 = vrot.slane %v6604_v48, 5  ;;  %v6583_v60 = vld [vmem:[#allocation2 + $0x84] sm:$0x1] }
 0x21a   :  { %v6637_v17 = vshrl.u32 %v6584_v47, 16  ;;  %v6640_v61 = vshll.u32 %v6584_v47, 16  ;;  %v6435_v39 = vsel %vm15867_vm3, %v6430_v14, %v6434_v20  ;;  %v6602_v57 = vrot.slane %v6601_v4, 4  ;;  %v6585_v49 = vld [vmem:[#allocation2 + $0x8c] sm:$0x1] }
 0x21b   :  { %v6618_v56 = vshll.u32 %v6581_v40, 16  ;;  %v6446_v32 = vshll.u32 %v17863_v58, 16  ;;  %v6443_v6 = vor.u32 %v6442_v18, %v6439_v19  ;;  %v6453_v45 = vrot.slane %v6451_v9, 4  ;;  %v6590_v1 = vld [vmem:[#allocation2 + $0xb0] sm:$0xf] }
 0x21c   :  { %14562 = vmatpush3.bf16.msra.mxu1 %v15342_v29  ;;  %v6651_v63 = vshrl.u32 %v6586_v43, 16  ;;  %v6654_v37 = vshll.u32 %v6586_v43, 16  ;;  %v6616_v28 = vrot.slane %v6615_v33, 4  ;;  %v6456_v22 = vrot.slane %v6454_v52, 5  ;;  %v6592_v24 = vld [vmem:[#allocation2 + $0xb8] sm:$0xf] }
 0x21d   :  { %14583 = vmatprep.subr.bf16.mxu1 %v17873_v36  ;;  %v6625_v11 = vrot.slane %v6623_v51, 4  ;;  %v6628_v50 = vrot.slane %v6626_v46, 5  ;;  %v6639_v29 = vrot.slane %v6637_v17, 4  ;;  %v6642_v44 = vrot.slane %v6640_v61, 5  ;;  %v6820_v40 = vld [vmem:[#allocation2 + $0x10] sm:$0xe] }
 0x21e   :  { %v6665_v42 = vshrl.u32 %v6588_v13, 16  ;;  %v6668_v25 = vshll.u32 %v6588_v13, 16  ;;  %v12822_v41 = vcombine.low %v6421_v54, %v6435_v39  ;;  %v6607_v38 = vsel %vm15867_vm3, %v6602_v57, %v6606_v12  ;;  %v6587_v9 = vld [vmem:[#allocation2 + $0xa4] sm:$0x1]  ;;  %v6821_v17 = vld [vmem:[#allocation2 + $0x18] sm:$0xe] }
 0x21f   :  { %14544 = vmatmul.mubr.msk.bf16.gmra.mxu1 %vm4034_vm13, %v12795_v26  ;;  %v6620_v3 = vrot.slane %v6618_v56, 5  ;;  %v17894_v5 = vrot.slane %v6446_v32, 5  ;;  %14552 = vmatmul.mubr.msk.bf16.vlgmr.msra.gmra.mxu0 %vm4034_vm13, %v15343_v2  ;;  %v6460_v0 = vshll.u32 %v17885_v15, 16  ;;  %v6632_v26 = vshll.u32 %v6583_v60, 16  ;;  %v6589_v13 = vld [vmem:[#allocation2 + $0xac] sm:$0x1] }
 0x220   :  { %14563 = vmatprep.mubr.msk.bf16.mxu1 %vm4034_vm13, %v12820_v23  ;;  %v6653_v10 = vrot.slane %v6651_v63, 4  ;;  %v6656_v48 = vrot.slane %v6654_v37, 5  ;;  %14555 = vmatprep.mubr.msk.bf16.mxu0 %vm4034_vm13, %v15344_v34  ;;  %v17902_v7 = vrot.slane %v6443_v6, 4  ;;  %v6457_v14 = vor.u32 %v6456_v22, %v6453_v45  ;;  %v15347_v2 = vld [vmem:[#allocation2 + $0xb0] ss:$8 sps:$4 sm:$0xff]  }
 0x221   :  { %14572 = vmatpush3.bf16.msra.mxu0 %v17843_v21  ;;  %v6621_v23 = vsel %vm15867_vm3, %v6616_v28, %v6620_v3  ;;  %v6629_v4 = vor.u32 %v6628_v50, %v6625_v11  ;;  %v6643_v47 = vor.u32 %v6642_v44, %v6639_v29  ;;  %v6646_v20 = vshll.u32 %v6585_v49, 16  ;;  %v15349_v21 = vld [vmem:[%s19848_s4 + $0xf0] sm:$0xff]  }
 0x222   :  { %14573 = vmatprep.subr.bf16.mxu0 %v15348_v30  ;;  %v6667_v19 = vrot.slane %v6665_v42, 4  ;;  %v6670_v18 = vrot.slane %v6668_v25, 5  ;;  %v6679_v33 = vshrl.u32 %v6590_v1, 16  ;;  %v6682_v52 = vshll.u32 %v6590_v1, 16  ;;  %v6822_v25 = vld [vmem:[#allocation2 + $0x20] sm:$0xe] }
 0x223   :  { %v6693_v51 = vshrl.u32 %v6592_v24, 16  ;;  %v6696_v46 = vshll.u32 %v6592_v24, 16  ;;  %v12834_v43 = vcombine.low %v6607_v38, %v6621_v23  ;;  %v6462_v54 = vrot.slane %v6460_v0, 5  ;;  %v6591_v3 = vld [vmem:[#allocation2 + $0xb4] sm:$0x1] }
 0x224   :  { %v6634_v12 = vrot.slane %v6632_v26, 5  ;;  %v6657_v61 = vor.u32 %v6656_v48, %v6653_v10  ;;  %v6458_v39 = vrot.slane %v6457_v14, 4  ;;  %v6630_v57 = vrot.slane %v6629_v4, 4  ;;  %v6824_v26 = vld [vmem:[#allocation2 + $0x40] sm:$0xe] }
 0x225   :  { %14574 = vmatpush3.bf16.msra.mxu0 %v15348_v30  ;;  %v12844_v56 = vrot.slane %v6820_v40, 9  ;;  %v6846_v32 = vrot.slane %v17789_v31, 5  ;;  %v6644_v6 = vrot.slane %v6643_v47, 4  ;;  %v6648_v45 = vrot.slane %v6646_v20, 5  ;;  %v6593_v30 = vld [vmem:[#allocation2 + $0xbc] sm:$0x1] }
 0x226   :  { %v6660_v63 = vshll.u32 %v6587_v9, 16  ;;  %v6671_v37 = vor.u32 %v6670_v18, %v6667_v19  ;;  %v6681_v34 = vrot.slane %v6679_v33, 4  ;;  %v6684_v28 = vrot.slane %v6682_v52, 5  ;;  %v6825_v20 = vld [vmem:[#allocation2 + $0x48] sm:$0xe] }
 0x227   :  { %14564 = vmatmul.mubr.msk.bf16.vlgmr.msra.gmra.mxu1 %vm4034_vm13, %v17875_v16  ;;  %v6695_v22 = vrot.slane %v6693_v51, 4  ;;  %v6698_v60 = vrot.slane %v6696_v46, 5  ;;  %14556 = vmatmul.mubr.msk.bf16.gmra.mxu0 %vm4034_vm13, %v15347_v2  ;;  %v12845_v31 = vrot.slane %v6821_v17, 9  ;;  %v6850_v11 = vrot.slane %v17791_v35, 5  ;;  %v6826_v17 = vld [vmem:[#allocation2 + $0x50] sm:$0xe] }
 0x228   :  { %14584 = vmatpush3.bf16.msra.mxu1 %v17873_v36  ;;  %14567 = vmatprep.mubr.msk.bf16.mxu1 %vm4034_vm13, %v12822_v41  ;;  %v6658_v16 = vrot.slane %v6657_v61, 4  ;;  %v6674_v50 = vshll.u32 %v6589_v13, 16  ;;  %v6854_v29 = vrot.slane %v17793_v27, 5  ;;  %v6858_v44 = vrot.slane %v17803_v59, 5  ;;  %v6823_v59 = vld [vmem:[#allocation2 + $0x28] sm:$0xe] }
 0x229   :  { %14585 = vmatprep.subr.bf16.mxu1 %v15349_v21  ;;  %14575 = vmatprep.mubr.msk.bf16.mxu0 %vm4034_vm13, %v12834_v43  ;;  %v6449_v36 = vsel %vm15867_vm3, %v17902_v7, %v17894_v5  ;;  %v6463_v42 = vsel %vm15867_vm3, %v6458_v39, %v6462_v54  ;;  %v6635_v35 = vsel %vm15867_vm3, %v6630_v57, %v6634_v12  ;;  %v6662_v27 = vrot.slane %v6660_v63, 5  ;;  %v6827_v39 = vld [vmem:[#allocation2 + $0x58] sm:$0xe] }
 0x22a   :  { %v6847_v41 = vsel %vm16875_vm12, %v12844_v56, %v6846_v32  ;;  %v6672_v38 = vrot.slane %v6671_v37, 4  ;;  %v6649_v49 = vsel %vm15867_vm3, %v6644_v6, %v6648_v45  ;;  %v6685_v1 = vor.u32 %v6684_v28, %v6681_v34 }
 0x22b   :  { %v6699_v5 = vor.u32 %v6698_v60, %v6695_v22  ;;  %v6702_v0 = vshll.u32 %v6593_v30, 16  ;;  %v12823_v10 = vcombine.low %v6449_v36, %v6463_v42  ;;  %v6851_v48 = vsel %vm16875_vm12, %v12845_v31, %v6850_v11 }
 0x22c   :  { %14586 = vmatpush3.bf16.msra.mxu1 %v15349_v21  ;;  %v6663_v24 = vsel %vm15867_vm3, %v6658_v16, %v6662_v27  ;;  %v6676_v23 = vrot.slane %v6674_v50, 5  ;;  %v12856_v7 = vcombine.low %v6847_v41, %v6851_v48  ;;  %v12846_v14 = vrot.slane %v6822_v25, 9 }
 0x22d   :  { %v12847_v4 = vrot.slane %v6823_v59, 9  ;;  %v6688_v47 = vshll.u32 %v6591_v3, 16  ;;  %v12835_v40 = vcombine.low %v6635_v35, %v6649_v49  ;;  %v12848_v18 = vrot.slane %v6824_v26, 9 }
 0x22e   :  { %v6677_v19 = vsel %vm15867_vm3, %v6672_v38, %v6676_v23  ;;  %v6862_v9 = vrot.slane %v17825_v62, 5  ;;  %v6686_v52 = vrot.slane %v6685_v1, 4  ;;  %v6700_v51 = vrot.slane %v6699_v5, 4 }
 0x22f   :  { %14568 = vmatmul.mubr.msk.bf16.gmra.mxu1 %vm4034_vm13, %v12823_v10  ;;  %v12836_v33 = vcombine.low %v6663_v24, %v6677_v19  ;;  %v6704_v46 = vrot.slane %v6702_v0, 5  ;;  %14576 = vmatmul.mubr.msk.bf16.vlgmr.msra.gmra.mxu0 %vm4034_vm13, %v12835_v40  ;;  %v12849_v43 = vrot.slane %v6825_v20, 9  ;;  %v6866_v21 = vrot.slane %v17833_v53, 5 }
 0x230   :  { %14587 = vmatprep.mubr.msk.bf16.mxu1 %vm4034_vm13, %v12856_v7  ;;  %v6855_v54 = vsel %vm16875_vm12, %v12846_v14, %v6854_v29  ;;  %v6859_v12 = vsel %vm16875_vm12, %v12847_v4, %v6858_v44  ;;  %v6690_v62 = vrot.slane %v6688_v47, 5  ;;  %v6863_v61 = vsel %vm16875_vm12, %v12848_v18, %v6862_v9 }
 0x231   :  { %14579 = vmatprep.mubr.msk.bf16.mxu0 %vm4034_vm13, %v12836_v33  ;;  %v6705_v53 = vsel %vm15867_vm3, %v6700_v51, %v6704_v46  ;;  %v12857_v56 = vcombine.low %v6855_v54, %v6859_v12  ;;  %v6867_v32 = vsel %vm16875_vm12, %v12849_v43, %v6866_v21  ;;  %v12850_v13 = vrot.slane %v6826_v17, 9  ;;  %v15351_v43 = vld [vmem:[%s19849_s6 + $0x10] sm:$0xff]   ;;  %v15352_v12 = vld [vmem:[%s19849_s6 + $0x38] sm:$0xff]   ;;  %v15353_v17 = vld [vmem:[%s19849_s6 + $0x8] sm:$0xff]  }
 0x232   :  { %v6691_v57 = vsel %vm15867_vm3, %v6686_v52, %v6690_v62  ;;  %v12858_v2 = vcombine.low %v6863_v61, %v6867_v32  ;;  %v6870_v6 = vrot.slane %v17863_v58, 5  ;;  %v12851_v45 = vrot.slane %v6827_v39, 9  ;;  %v15350_v52 = vld [vmem:[%s19849_s6 + $0x18] sm:$0xff]   ;;  %14595 = vmatprep.subr.bf16.mxu0 %v15352_v12 }
 0x233   :  { %v6874_v63 = vrot.slane %v17885_v15, 5  ;;  %v12837_v37 = vcombine.low %v6691_v57, %v6705_v53  ;;  %v19939_v15 = vmov 0   ;;  %14611 = vmatprep.subr.bf16.mxu1 %v15350_v52  ;;  %v15354_v57 = vld [vmem:[%s19849_s6 + $0x30] sm:$0xff]   ;;  %14596 = vmatpush3.bf16.msra.mxu0 %v15352_v12 }
 0x234   :  { %v6871_v34 = vsel %vm16875_vm12, %v12850_v13, %v6870_v6  ;;  %163 = vst.msk [vmem:[#allocation3 + $0x18] sm:$0xf] %vm155_vm14, %v19939_v15  ;;  %156 = vst.msk [vmem:[#allocation3] sm:$0xf] %vm155_vm14, %v19939_v15  ;;  %14597 = vmatprep.subr.bf16.mxu0 %v15354_v57  ;;  %v15357_v13 = vld [vmem:[%s19849_s6 + $0x28] sm:$0xff]  }
 0x235   :  { %v6875_v28 = vsel %vm16875_vm12, %v12851_v45, %v6874_v63  ;;  %164 = vst.msk [vmem:[#allocation3 + $0x1c] sm:$0x1] %vm157_vm15, %v19939_v15  ;;  %158 = vst.msk [vmem:[#allocation3 + $0x4] sm:$0x1] %vm157_vm15, %v19939_v15  ;;  %v15355_v63 = vld [vmem:[%s19849_s6] sm:$0xff]  }
 0x236   :  { %v12859_v22 = vcombine.low %v6871_v34, %v6875_v28  ;;  %159 = vst.msk [vmem:[#allocation3 + $0x8] sm:$0xf] %vm155_vm14, %v19939_v15  ;;  %161 = vst.msk [vmem:[#allocation3 + $0x10] sm:$0xf] %vm155_vm14, %v19939_v15 }
 0x237   :  { %14588 = vmatmul.mubr.msk.bf16.vlgmr.msra.gmra.mxu1 %vm4034_vm13, %v12857_v56  ;;  %14580 = vmatmul.mubr.msk.bf16.gmra.mxu0 %vm4034_vm13, %v12837_v37  ;;  %160 = vst.msk [vmem:[#allocation3 + $0xc] sm:$0x1] %vm157_vm15, %v19939_v15  ;;  %162 = vst.msk [vmem:[#allocation3 + $0x14] sm:$0x1] %vm157_vm15, %v19939_v15 }
 0x238   :  { %14591 = vmatprep.mubr.msk.bf16.mxu1 %vm4034_vm13, %v12858_v2  ;;  %165 = vst.msk [vmem:[#allocation3 + $0x20] sm:$0xf] %vm155_vm14, %v19939_v15  ;;  %167 = vst.msk [vmem:[#allocation3 + $0x28] sm:$0xf] %vm155_vm14, %v19939_v15  ;;  %14612 = vmatpush3.bf16.msra.mxu1 %v15350_v52 }
 0x239   :  { %166 = vst.msk [vmem:[#allocation3 + $0x24] sm:$0x1] %vm157_vm15, %v19939_v15  ;;  %168 = vst.msk [vmem:[#allocation3 + $0x2c] sm:$0x1] %vm157_vm15, %v19939_v15  ;;  %14613 = vmatprep.subr.bf16.mxu1 %v15351_v43  ;;  %14598 = vmatpush3.bf16.msra.mxu0 %v15354_v57 }
 0x23a   :  { %169 = vst.msk [vmem:[#allocation3 + $0x30] sm:$0xf] %vm155_vm14, %v19939_v15  ;;  %171 = vst.msk [vmem:[#allocation3 + $0x38] sm:$0xf] %vm155_vm14, %v19939_v15  ;;  %14599 = vmatprep.subr.bf16.mxu0 %v15357_v13 }
 0x23b   :  { %170 = vst.msk [vmem:[#allocation3 + $0x34] sm:$0x1] %vm157_vm15, %v19939_v15  ;;  %172 = vst.msk [vmem:[#allocation3 + $0x3c] sm:$0x1] %vm157_vm15, %v19939_v15 }
 0x23c   :  { %173 = vst.msk [vmem:[#allocation3 + $0x40] sm:$0xf] %vm155_vm14, %v19939_v15  ;;  %175 = vst.msk [vmem:[#allocation3 + $0x48] sm:$0xf] %vm155_vm14, %v19939_v15  ;;  %14614 = vmatpush3.bf16.msra.mxu1 %v15351_v43 }
 0x23d   :  { %174 = vst.msk [vmem:[#allocation3 + $0x44] sm:$0x1] %vm157_vm15, %v19939_v15  ;;  %176 = vst.msk [vmem:[#allocation3 + $0x4c] sm:$0x1] %vm157_vm15, %v19939_v15  ;;  %14615 = vmatprep.subr.bf16.mxu1 %v15353_v17  ;;  %14600 = vmatpush3.bf16.msra.mxu0 %v15357_v13 }
 0x23e   :  { %177 = vst.msk [vmem:[#allocation3 + $0x50] sm:$0xf] %vm155_vm14, %v19939_v15  ;;  %179 = vst.msk [vmem:[#allocation3 + $0x58] sm:$0xf] %vm155_vm14, %v19939_v15 }
 0x23f   :  { %14592 = vmatmul.mubr.msk.bf16.gmra.mxu1 %vm4034_vm13, %v12859_v22  ;;  %178 = vst.msk [vmem:[#allocation3 + $0x54] sm:$0x1] %vm157_vm15, %v19939_v15  ;;  %180 = vst.msk [vmem:[#allocation3 + $0x5c] sm:$0x1] %vm157_vm15, %v19939_v15  ;;  %v15360_v22 = vld [vmem:[%s19849_s6 + $0x20] sm:$0xff]  }
 0x240   :  { %14616 = vmatpush3.bf16.msra.mxu1 %v15353_v17  ;;  %14601 = vmatprep.subr.bf16.mxu0 %v15360_v22 }
 0x241   :  { %14617 = vmatprep.subr.bf16.mxu1 %v15355_v63  ;;  %14602 = vmatpush3.bf16.msra.mxu0 %v15360_v22  ;;  %v18171_v55 = vld [vmem:[#allocation3 + $0x30] sm:$0xf] }
 0x242   :  { %19957 = vst [vmem:[#allocation22_spill] sm:$0xff] %v18171_v55 }
 0x244   :  { %14618 = vmatpush3.bf16.msra.mxu1 %v15355_v63 }
 0x24a   :  { %v14409_v58 = vpop.f32.mrf.mxu0 }
 0x24c   :  { %v4081_v60 = vpop.f32.mrf.mxu0 }
 0x24e   :  { %v14410_v31 = vpop.f32.mrf.mxu0 }
 0x250   :  { %v18011_v11 = vpop.f32.mrf.mxu0 }
 0x253   :  { %v14413_v16 = vpop.f32.mrf.mxu0 }
 0x255   :  { %v4097_v50 = vpop.f32.mrf.mxu0 }
 0x257   :  { %v14414_v42 = vpop.f32.mrf.mxu0 }
 0x259   :  { %v18015_v27 = vpop.f32.mrf.mxu0 }
 0x283   :  { %v14421_v30 = vpop.f32.mrf.mxu1 }
 0x284   :  { %v4199_v29 = vadd.f32 %v14421_v30, %v14409_v58  ;;  %v18083_v30 = vld [vmem:[%s19849_s6 + $0x58] sm:$0xff]  }
 0x285   :  { %v4190_v44 = vpop.f32.mrf.mxu1  ;;  %19941 = vst [vmem:[#allocation15_spill] sm:$0xff] %v18083_v30  ;;  %14627 = vmatprep.subr.bf16.mxu0 %v18083_v30 }
 0x286   :  { %v4191_v36 = vadd.f32 %v4190_v44, %v4081_v60 }
 0x287   :  { %v14422_v25 = vpop.f32.mrf.mxu1 }
 0x288   :  { %v4202_v35 = vadd.f32 %v14422_v25, %v14410_v31  ;;  %v18074_v31 = vld [vmem:[%s19849_s6 + $0x78] sm:$0xff]  }
 0x289   :  { %v18013_v41 = vpop.f32.mrf.mxu1  ;;  %19940 = vst [vmem:[#allocation16_spill] sm:$0xff] %v18074_v31  ;;  %14643 = vmatprep.subr.bf16.mxu1 %v18074_v31  ;;  %v18169_v31 = vld [vmem:[#allocation3] sm:$0xf] }
 0x28a   :  { %19956 = vst [vmem:[#allocation21_spill] sm:$0xff] %v18169_v31 }
 0x28b   :  { %v14425_v38 = vpop.f32.mrf.mxu1 }
 0x28c   :  { %v4215_v59 = vadd.f32 %v14425_v38, %v14413_v16 }
 0x28d   :  { %v4206_v49 = vpop.f32.mrf.mxu1 }
 0x28e   :  { %v4207_v5 = vadd.f32 %v4206_v49, %v4097_v50 }
 0x28f   :  { %v14433_v3 = vpop.f32.mrf.mxu0  ;;  %v14426_v26 = vpop.f32.mrf.mxu1 }
 0x290   :  { %v4457_v1 = vadd.f32 %v14433_v3, %v4199_v29  ;;  %v4218_v48 = vadd.f32 %v14426_v26, %v14414_v42 }
 0x291   :  { %v4424_v0 = vpop.f32.mrf.mxu0  ;;  %v18017_v23 = vpop.f32.mrf.mxu1 }
 0x292   :  { %v4455_v10 = vadd.f32 %v4424_v0, %v4191_v36 }
 0x293   :  { %v14434_v24 = vpop.f32.mrf.mxu0 }
 0x294   :  { %v4458_v7 = vadd.f32 %v14434_v24, %v4202_v35 }
 0x295   :  { %v18019_v14 = vpop.f32.mrf.mxu0 }
 0x296   :  { %v14445_v4 = vpop.f32.mrf.mxu1 }
 0x297   :  { %v18021_v47 = vadd.f32 %v14445_v4, %v4457_v1  ;;  %v14437_v20 = vpop.f32.mrf.mxu0 }
 0x298   :  { %v4597_v40 = vpop.f32.mrf.mxu1  ;;  %v4461_v19 = vadd.f32 %v14437_v20, %v4215_v59 }
 0x299   :  { %v18023_v18 = vadd.f32 %v4597_v40, %v4455_v10  ;;  %v4440_v9 = vpop.f32.mrf.mxu0 }
 0x29a   :  { %v14446_v33 = vpop.f32.mrf.mxu1  ;;  %v4459_v51 = vadd.f32 %v4440_v9, %v4207_v5 }
 0x29b   :  { %v18028_v46 = vadd.f32 %v14446_v33, %v4458_v7  ;;  %v14438_v21 = vpop.f32.mrf.mxu0 }
 0x29c   :  { %v18033_v54 = vpop.f32.mrf.mxu1  ;;  %v4462_v62 = vadd.f32 %v14438_v21, %v4218_v48 }
 0x29d   :  { %v18041_v61 = vpop.f32.mrf.mxu0 }
 0x29f   :  { %v14449_v39 = vpop.f32.mrf.mxu1  ;;  %v18048_v56 = vpop.f32.mrf.mxu0 }
 0x2a0   :  { %v18046_v53 = vadd.f32 %v14449_v39, %v4461_v19 }
 0x2a1   :  { %v4613_v32 = vpop.f32.mrf.mxu1  ;;  %v18055_v6 = vpop.f32.mrf.mxu0 }
 0x2a2   :  { %v18053_v2 = vadd.f32 %v4613_v32, %v4459_v51 }
 0x2a3   :  { %v14450_v45 = vpop.f32.mrf.mxu1  ;;  %v18060_v34 = vpop.f32.mrf.mxu0 }
 0x2a4   :  { %v4635_v37 = vadd.f32 %v14450_v45, %v4462_v62 }
 0x2a5   :  { %v18062_v28 = vpop.f32.mrf.mxu1  ;;  %v18067_v58 = vpop.f32.mrf.mxu0 }
 0x2a7   :  { %v18069_v60 = vpop.f32.mrf.mxu1  ;;  %v18076_v16 = vpop.f32.mrf.mxu0 }
 0x2a9   :  { %v18078_v50 = vpop.f32.mrf.mxu1  ;;  %v18085_v29 = vpop.f32.mrf.mxu0 }
 0x2ab   :  { %v18087_v44 = vpop.f32.mrf.mxu1  ;;  %v14462_v36 = vpop.f32.mrf.mxu0 }
 0x2ac   :  { %v4765_v25 = vadd.f32 %v14462_v36, %v4635_v37 }
 0x2ad   :  { %v18090_v42 = vpop.f32.mrf.mxu1  ;;  %v18093_v35 = vpop.f32.mrf.mxu0 }
 0x2af   :  { %v18095_v38 = vpop.f32.mrf.mxu1  ;;  %v18097_v59 = vpop.f32.mrf.mxu0 }
 0x2b1   :  { %v18099_v3 = vpop.f32.mrf.mxu1  ;;  %v18101_v49 = vpop.f32.mrf.mxu0 }
 0x2b3   :  { %v14474_v1 = vpop.f32.mrf.mxu1  ;;  %v18105_v0 = vpop.f32.mrf.mxu0 }
 0x2b4   :  { %v18103_v5 = vadd.f32 %v14474_v1, %v4765_v25 }
 0x2b5   :  { %v18107_v26 = vpop.f32.mrf.mxu1  ;;  %v18109_v10 = vpop.f32.mrf.mxu0 }
 0x2b7   :  { %v18111_v48 = vpop.f32.mrf.mxu1  ;;  %v18113_v24 = vpop.f32.mrf.mxu0 }
 0x2b9   :  { %v18115_v7 = vpop.f32.mrf.mxu1  ;;  %v18117_v4 = vpop.f32.mrf.mxu0 }
 0x2bb   :  { %v18119_v20 = vpop.f32.mrf.mxu1  ;;  %v18121_v40 = vpop.f32.mrf.mxu0 }
 0x2bd   :  { %v18123_v19 = vpop.f32.mrf.mxu1  ;;  %v18125_v9 = vpop.f32.mrf.mxu0 }
 0x2bf   :  { %v18127_v33 = vpop.f32.mrf.mxu1  ;;  %v18129_v52 = vpop.f32.mrf.mxu0 }
 0x2c1   :  { %v18131_v51 = vpop.f32.mrf.mxu1  ;;  %v18133_v43 = vpop.f32.mrf.mxu0 }
 0x2c2   :  { %19942 = vst [vmem:[#allocation8_spill] sm:$0xff] %v18131_v51 }
 0x2c3   :  { %v18135_v21 = vpop.f32.mrf.mxu1  ;;  %v18137_v12 = vpop.f32.mrf.mxu0 }
 0x2c4   :  { %19943 = vst [vmem:[#allocation9_spill] sm:$0xff] %v18135_v21 }
 0x2c5   :  { %v18139_v62 = vpop.f32.mrf.mxu1  ;;  %v18141_v17 = vpop.f32.mrf.mxu0 }
 0x2c6   :  { %19944 = vst [vmem:[#allocation5_spill] sm:$0xff] %v18139_v62  ;;  %19945 = vst [vmem:[#allocation6_spill] sm:$0xff] %v18141_v17 }
 0x2c7   :  { %v18143_v39 = vpop.f32.mrf.mxu1  ;;  %v18145_v57 = vpop.f32.mrf.mxu0 }
 0x2c8   :  { %19946 = vst [vmem:[#allocation11_spill] sm:$0xff] %v18145_v57 }
 0x2c9   :  { %v18147_v32 = vpop.f32.mrf.mxu1  ;;  %v18149_v13 = vpop.f32.mrf.mxu0 }
 0x2ca   :  { %19947 = vst [vmem:[#allocation10_spill] sm:$0xff] %v18149_v13 }
 0x2cb   :  { %v18151_v45 = vpop.f32.mrf.mxu1  ;;  %v18153_v63 = vpop.f32.mrf.mxu0 }
 0x2cc   :  { %19948 = vst [vmem:[#allocation13_spill] sm:$0xff] %v18151_v45  ;;  %19949 = vst [vmem:[#allocation12_spill] sm:$0xff] %v18153_v63 }
 0x2cd   :  { %v18155_v37 = vpop.f32.mrf.mxu1  ;;  %v18157_v22 = vpop.f32.mrf.mxu0 }
 0x2ce   :  { %19950 = vst [vmem:[#allocation14_spill] sm:$0xff] %v18155_v37  ;;  %19951 = vst [vmem:[#allocation17_spill] sm:$0xff] %v18157_v22  ;;  %v7195_v22 = vshrl.u32 %v18169_v31, 16 }
 0x2cf   :  { %v18159_v36 = vpop.f32.mrf.mxu1  ;;  %v18161_v25 = vpop.f32.mrf.mxu0 }
 0x2d0   :  { %19952 = vst [vmem:[#allocation18_spill] sm:$0xff] %v18159_v36  ;;  %v7198_v36 = vshll.u32 %v18169_v31, 16  ;;  %v7197_v17 = vrot.slane %v7195_v22, 4  ;;  %v18202_v22 = vld [vmem:[#allocation3 + $0x34] sm:$0x1] }
 0x2d1   :  { %v18163_v1 = vpop.f32.mrf.mxu1  ;;  %v18165_v15 = vpop.f32.mrf.mxu0 }
 0x2d2   :  { %19953 = vst [vmem:[#allocation7_spill] sm:$0xff] %v18163_v1  ;;  %19954 = vst [vmem:[#allocation19_spill] sm:$0xff] %v18165_v15  ;;  %v7251_v1 = vshrl.u32 %v18171_v55, 16 }
 0x2d3   :  { %v18167_v30 = vpop.f32.mrf.mxu1  ;;  %v18173_v13 = vpop.f32.mrf.mxu0 }
 0x2d4   :  { %19955 = vst [vmem:[#allocation20_spill] sm:$0xff] %v18167_v30  ;;  %19958 = vst [vmem:[#allocation23_spill] sm:$0xff] %v18173_v13  ;;  %v7254_v30 = vshll.u32 %v18171_v55, 16  ;;  %v7200_v13 = vrot.slane %v7198_v36, 5  ;;  %v7253_v21 = vrot.slane %v7251_v1, 4  ;;  %v4194_v55 = vadd.f32 %v18013_v41, %v18011_v11 }
 0x2d5   :  { %v18175_v63 = vpop.f32.mrf.mxu1  ;;  %v18179_v37 = vpop.f32.mrf.mxu0 }
 0x2d6   :  { %19959 = vst [vmem:[#allocation24_spill] sm:$0xff] %v18175_v63  ;;  %19960 = vst [vmem:[#allocation25_spill] sm:$0xff] %v18179_v37  ;;  %v7256_v31 = vrot.slane %v7254_v30, 5  ;;  %v7260_v30 = vshll.u32 %v18202_v22, 16 }
 0x2d7   :  { %v18181_v57 = vpop.f32.mrf.mxu1  ;;  %v18185_v15 = vpop.f32.mrf.mxu0 }
 0x2d8   :  { %19961 = vst [vmem:[#allocation26_spill] sm:$0xff] %v18181_v57  ;;  %19962 = vst [vmem:[#allocation27_spill] sm:$0xff] %v18185_v15  ;;  %v18197_v57 = vld [vmem:[#allocation3 + $0x4] sm:$0x1]  ;;  %v7201_v15 = vor.u32 %v7200_v13, %v7197_v17  ;;  %v7257_v1 = vor.u32 %v7256_v31, %v7253_v21  ;;  %v4760_v17 = vadd.f32 %v18048_v56, %v18021_v47  ;;  %v18232_v21 = vrot.slane %v7260_v30, 5 }
 0x2d9   :  { %v18187_v45 = vpop.f32.mrf.mxu1  ;;  %v18189_v62 = vpop.f32.mrf.mxu0  ;;  %v4761_v47 = vadd.f32 %v18060_v34, %v18028_v46  ;;  %v4762_v46 = vadd.f32 %v18085_v29, %v18053_v2  ;;  %v18271_v30 = vld [vmem:[#allocation3 + $0x30] sm:$0xe] }
 0x2da   :  { %19963 = vst [vmem:[#allocation28_spill] sm:$0xff] %v18187_v45  ;;  %19964 = vst [vmem:[#allocation29_spill] sm:$0xff] %v18189_v62  ;;  %v7204_v45 = vshll.u32 %v18197_v57, 16  ;;  %v18219_v13 = vrot.slane %v7201_v15, 4  ;;  %v5002_v15 = vadd.f32 %v18069_v60, %v4760_v17 }
 0x2db   :  { %v18191_v63 = vpop.f32.mrf.mxu1  ;;  %v18193_v51 = vpop.f32.mrf.mxu0  ;;  %v5003_v34 = vadd.f32 %v18087_v44, %v4761_v47  ;;  %v7576_v44 = vrot.slane %v18197_v57, 5 }
 0x2dc   :  { %19965 = vst [vmem:[#allocation30_spill] sm:$0xff] %v18191_v63  ;;  %19966 = vst [vmem:[#allocation31_spill] sm:$0xff] %v18193_v51  ;;  %v4456_v51 = vadd.f32 %v18019_v14, %v4194_v55  ;;  %v4758_v55 = vadd.f32 %v18055_v6, %v18023_v18  ;;  %v4764_v18 = vadd.f32 %v18076_v16, %v18046_v53 }
 0x2dd   :  { %v18195_v37 = vpop.f32.mrf.mxu1  ;;  %v18204_v36 = vpop.f32.mrf.mxu0  ;;  %v5244_v60 = vadd.f32 %v18097_v59, %v5002_v15  ;;  %v5245_v17 = vadd.f32 %v18105_v0, %v5003_v34 }
 0x2de   :  { %19967 = vst [vmem:[#allocation32_spill] sm:$0xff] %v18195_v37  ;;  %v4210_v37 = vadd.f32 %v18017_v23, %v18015_v27  ;;  %v4629_v41 = vadd.f32 %v18033_v54, %v4456_v51  ;;  %v18230_v23 = vrot.slane %v7257_v1, 4  ;;  %v18237_v54 = vld [vmem:[#allocation3] sm:$0xe]  ;;  %v5000_v6 = vadd.f32 %v18078_v50, %v4758_v55 }
 0x2df   :  { %v18206_v62 = vpop.f32.mrf.mxu1  ;;  %v18212_v63 = vpop.f32.mrf.mxu0  ;;  %v12907_v29 = vrot.slane %v18237_v54, 9 }
 0x2e0   :  { %19968 = vst [vmem:[#allocation33_spill] sm:$0xff] %v18206_v62  ;;  %v18221_v62 = vrot.slane %v7204_v45, 5  ;;  %v4460_v31 = vadd.f32 %v18041_v61, %v4210_v37  ;;  %v4759_v56 = vadd.f32 %v18067_v58, %v4629_v41  ;;  %v8479_v58 = vld [vmem:[#allocation3 + $0x28] sm:$0xf]  ;;  %v5006_v37 = vadd.f32 %v18095_v38, %v4764_v18 }
 0x2e1   :  { %v18214_v11 = vpop.f32.mrf.mxu1  ;;  %v18226_v14 = vpop.f32.mrf.mxu0  ;;  %v5242_v1 = vadd.f32 %v18101_v49, %v5000_v6  ;;  %v5004_v41 = vadd.f32 %v18099_v3, %v4762_v46  ;;  %v8532_v47 = vshrl.u32 %v8479_v58, 16  ;;  %v8535_v15 = vshll.u32 %v8479_v58, 16 }
 0x2e2   :  { %v4633_v61 = vadd.f32 %v18062_v28, %v4460_v31  ;;  %v7207_v28 = vsel %vm15867_vm3, %v18219_v13, %v18221_v62  ;;  %v5001_v53 = vadd.f32 %v18090_v42, %v4759_v56  ;;  %v5414_v42 = vadd.f32 %v18111_v48, %v5244_v60 }
 0x2e3   :  { %v18228_v27 = vpop.f32.mrf.mxu1  ;;  %v18244_v51 = vpop.f32.mrf.mxu0  ;;  %v5412_v38 = vadd.f32 %v18115_v7, %v5242_v1  ;;  %v7592_v48 = vrot.slane %v18202_v22, 5  ;;  %v5248_v3 = vadd.f32 %v18113_v24, %v5006_v37  ;;  %v5246_v0 = vadd.f32 %v18117_v4, %v5004_v41 }
 0x2e4   :  { %v4763_v59 = vadd.f32 %v18093_v35, %v4633_v61  ;;  %v5544_v49 = vadd.f32 %v18129_v52, %v5414_v42  ;;  %v5243_v61 = vadd.f32 %v18109_v10, %v5001_v53  ;;  %v12911_v6 = vrot.slane %v18271_v30, 9  ;;  %v20002_v30 = vld [vmem:[#allocation15_spill] sm:$0xff] }
 0x2e5   :  { %v18246_v45 = vpop.f32.mrf.mxu1  ;;  %v18257_v16 = vpop.f32.mrf.mxu0  ;;  %v5249_v7 = vadd.f32 %v18121_v40, %v18103_v5  ;;  %v5542_v52 = vadd.f32 %v18133_v43, %v5412_v38  ;;  %v8534_v60 = vrot.slane %v8532_v47, 4  ;;  %v8537_v58 = vrot.slane %v8535_v15, 5  ;;  %v8480_v43 = vld [vmem:[#allocation3 + $0x2c] sm:$0x1]  ;;  %v19972_v47 = vld [vmem:[#allocation6_spill] sm:$0xff] }
 0x2e6   :  { %v5005_v35 = vadd.f32 %v18107_v26, %v4763_v59  ;;  %v5415_v26 = vadd.f32 %v18119_v20, %v5245_v17  ;;  %v5786_v46 = vadd.f32 %v18143_v39, %v5544_v49  ;;  %v5413_v10 = vadd.f32 %v18123_v19, %v5243_v61  ;;  %v19969_v39 = vld [vmem:[#allocation8_spill] sm:$0xff]  ;;  %v19970_v19 = vld [vmem:[#allocation9_spill] sm:$0xff]  ;;  %v19975_v38 = vld [vmem:[#allocation26_spill] sm:$0xff] }
 0x2e7   :  { %v18259_v50 = vpop.f32.mrf.mxu1  ;;  %v18275_v31 = vpop.f32.mrf.mxu0  ;;  %v5418_v53 = vadd.f32 %v18127_v33, %v5248_v3  ;;  %v5784_v5 = vadd.f32 %v18147_v32, %v5542_v52  ;;  %v5416_v59 = vadd.f32 %v19969_v39, %v5246_v0  ;;  %v5419_v37 = vadd.f32 %v19970_v19, %v5249_v7  ;;  %v19973_v15 = vld [vmem:[#allocation13_spill] sm:$0xff]  ;;  %v18317_v49 = vld [vmem:[#allocation3 + $0x58] sm:$0xf]  ;;  %v19977_v0 = vld [vmem:[#allocation10_spill] sm:$0xff] }
 0x2e8   :  { %v5247_v24 = vadd.f32 %v18125_v9, %v5005_v35  ;;  %v5545_v20 = vadd.f32 %v18137_v12, %v5415_v26  ;;  %v6028_v40 = vadd.f32 %v18161_v25, %v5786_v46  ;;  %v19971_v9 = vld [vmem:[#allocation5_spill] sm:$0xff]  ;;  %v8541_v17 = vshll.u32 %v8480_v43, 16  ;;  %v19974_v35 = vld [vmem:[#allocation19_spill] sm:$0xff]  ;;  %v19978_v7 = vld [vmem:[#allocation12_spill] sm:$0xff] }
 0x2e9   :  { %v18277_v55 = vpop.f32.mrf.mxu1  ;;  %v18286_v56 = vpop.f32.mrf.mxu0  ;;  %v5543_v33 = vadd.f32 %v19972_v47, %v5413_v10  ;;  %v6026_v32 = vadd.f32 %v19974_v35, %v5784_v5  ;;  %v19976_v61 = vld [vmem:[#allocation11_spill] sm:$0xff]  ;;  %v5546_v26 = vadd.f32 %v19977_v0, %v5416_v59  ;;  %v5549_v52 = vadd.f32 %v19978_v7, %v5419_v37  ;;  %v19979_v39 = vld [vmem:[#allocation14_spill] sm:$0xff]  ;;  %v19982_v47 = vld [vmem:[#allocation17_spill] sm:$0xff] }
 0x2ea   :  { %v5417_v1 = vadd.f32 %v19971_v9, %v5247_v24  ;;  %v5787_v12 = vadd.f32 %v19973_v15, %v5545_v20  ;;  %v6198_v25 = vadd.f32 %v19975_v38, %v6028_v40  ;;  %v5548_v3 = vadd.f32 %v19976_v61, %v5418_v53  ;;  %v19980_v19 = vld [vmem:[#allocation23_spill] sm:$0xff]  ;;  %v19981_v9 = vld [vmem:[#allocation28_spill] sm:$0xff]  ;;  %v19983_v35 = vld [vmem:[#allocation18_spill] sm:$0xff] }
 0x2eb   :  { %v18288_v18 = vpop.f32.mrf.mxu1  ;;  %v18298_v4 = vpop.f32.mrf.mxu0  ;;  %v8538_v43 = vor.u32 %v8537_v58, %v8534_v60  ;;  %v5785_v10 = vadd.f32 %v19979_v39, %v5543_v33  ;;  %v6196_v5 = vadd.f32 %v19981_v9, %v6026_v32  ;;  %v18330_v61 = vrot.slane %v8541_v17, 5  ;;  %v19984_v0 = vld [vmem:[#allocation7_spill] sm:$0xff]  ;;  %v19985_v58 = vld [vmem:[#allocation30_spill] sm:$0xff]  ;;  %v19986_v7 = vld [vmem:[#allocation20_spill] sm:$0xff] }
 0x2ec   :  { %v6029_v20 = vadd.f32 %v19980_v19, %v5787_v12  ;;  %v6329_v40 = vadd.f32 %v18212_v63, %v6198_v25  ;;  %v5547_v15 = vadd.f32 %v19982_v47, %v5417_v1  ;;  %v5790_v53 = vadd.f32 %v19983_v35, %v5548_v3  ;;  %v19987_v25 = vld [vmem:[#allocation24_spill] sm:$0xff]  ;;  %v19988_v39 = vld [vmem:[#allocation25_spill] sm:$0xff] }
 0x2ed   :  { %v18300_v34 = vpop.f32.mrf.mxu1  ;;  %v18309_v42 = vpop.f32.mrf.mxu0  ;;  %v8588_v37 = vshrl.u32 %v18317_v49, 16  ;;  %v5788_v60 = vadd.f32 %v19984_v0, %v5546_v26  ;;  %v6327_v12 = vadd.f32 %v18226_v14, %v6196_v5  ;;  %v5791_v63 = vadd.f32 %v19986_v7, %v5549_v52  ;;  %v19990_v52 = vld [vmem:[#allocation32_spill] sm:$0xff] }
 0x2ee   :  { %v6199_v33 = vadd.f32 %v19985_v58, %v6029_v20  ;;  %v6572_v32 = vadd.f32 %v18259_v50, %v6329_v40  ;;  %v5789_v1 = vadd.f32 %v19987_v25, %v5547_v15  ;;  %v6027_v3 = vadd.f32 %v19988_v39, %v5785_v10  ;;  %v18344_v20 = vld [vmem:[#allocation3 + $0x5c] sm:$0x1]  ;;  %v19993_v25 = vld [vmem:[#allocation33_spill] sm:$0xff] }
 0x2ef   :  { %v18311_v41 = vpop.f32.mrf.mxu1  ;;  %v14577_v46 = vpop.f32.mrf.mxu0  ;;  %v18340_v17 = vrot.slane %v8538_v43, 4  ;;  %v6570_v26 = vadd.f32 %v18277_v55, %v6327_v12  ;;  %v8591_v14 = vshll.u32 %v18317_v49, 16  ;;  %v19989_v50 = vld [vmem:[#allocation27_spill] sm:$0xff]  ;;  %v18352_v43 = vld [vmem:[%s19850_s5] ss:$0 sm:$0xff]  ;;  %v18354_v10 = vrot.slane %v8588_v37, 4 }
 0x2f0   :  { %v6330_v47 = vadd.f32 %v18244_v51, %v6199_v33  ;;  %v6814_v35 = vadd.f32 %v14577_v46, %v6572_v32  ;;  %v6032_v5 = vadd.f32 %v19989_v50, %v5790_v53  ;;  %v6197_v40 = vadd.f32 %v19990_v52, %v6027_v3  ;;  %v19991_v55 = vld [vmem:[#allocation29_spill] sm:$0xff]  ;;  %v19992_v53 = vld [vmem:[#allocation31_spill] sm:$0xff] }
 0x2f1   :  { %v18322_v24 = vpop.f32.mrf.mxu1  ;;  %v6781_v38 = vpop.f32.mrf.mxu0  ;;  %v6030_v46 = vadd.f32 %v19991_v55, %v5788_v60  ;;  %v6033_v32 = vadd.f32 %v19992_v53, %v5791_v63  ;;  %v6031_v7 = vadd.f32 %v18204_v36, %v5789_v1  ;;  %v8544_v22 = vsel %vm15867_vm3, %v18340_v17, %v18330_v61 }
 0x2f2   :  { %v6573_v58 = vadd.f32 %v18288_v18, %v6330_v47  ;;  %v6812_v33 = vadd.f32 %v6781_v38, %v6570_v26  ;;  %v6202_v39 = vadd.f32 %v19993_v25, %v6032_v5  ;;  %v6328_v3 = vadd.f32 %v18257_v16, %v6197_v40 }
 0x2f3   :  { %v14570_v59 = vpop.f32.mrf.mxu1  ;;  %v14578_v19 = vpop.f32.mrf.mxu0  ;;  %v6200_v37 = vadd.f32 %v18214_v11, %v6030_v46  ;;  %v6203_v18 = vadd.f32 %v18228_v27, %v6033_v32  ;;  %v6201_v38 = vadd.f32 %v18246_v45, %v6031_v7 }
 0x2f4   :  { %v6815_v2 = vadd.f32 %v14578_v19, %v6573_v58  ;;  %v6333_v63 = vadd.f32 %v18275_v31, %v6202_v39  ;;  %v6571_v36 = vadd.f32 %v18300_v34, %v6328_v3 }
 0x2f5   :  { %v6558_v9 = vpop.f32.mrf.mxu1  ;;  %v6784_v15 = vpop.f32.mrf.mxu0  ;;  %v6331_v16 = vadd.f32 %v18286_v56, %v6200_v37  ;;  %v6334_v19 = vadd.f32 %v18298_v4, %v6203_v18  ;;  %v6332_v5 = vadd.f32 %v18309_v42, %v6201_v38  ;;  %v7134_v37 = vld [vmem:[#allocation3 + $0x18] sm:$0xf] }
 0x2f6   :  { %v6576_v27 = vadd.f32 %v18311_v41, %v6333_v63  ;;  %v6813_v40 = vadd.f32 %v6784_v15, %v6571_v36 }
 0x2f7   :  { %v14589_v0 = vpop.f32.mrf.mxu1  ;;  %v14581_v50 = vpop.f32.mrf.mxu0  ;;  %v6574_v31 = vadd.f32 %v18322_v24, %v6331_v16  ;;  %v6577_v56 = vadd.f32 %v14570_v59, %v6334_v19  ;;  %v7125_v19 = vld [vmem:[#allocation3 + $0xc] sm:$0x1] }
 0x2f8   :  { %v6984_v12 = vadd.f32 %v14589_v0, %v6814_v35  ;;  %v6818_v58 = vadd.f32 %v14581_v50, %v6576_v27  ;;  %v15365_v59 = vld [vmem:[%s19849_s6 + $0x68] sm:$0xff]  }
 0x2f9   :  { %v6951_v52 = vpop.f32.mrf.mxu1  ;;  %v6797_v1 = vpop.f32.mrf.mxu0 }
 0x2fa   :  { %v6999_v51 = vadd.f32 %v18352_v43, %v6984_v12  ;;  %v6982_v60 = vadd.f32 %v6951_v52, %v6812_v33  ;;  %v6816_v42 = vadd.f32 %v6797_v1, %v6574_v31 }
 0x2fb   :  { %v14590_v47 = vpop.f32.mrf.mxu1  ;;  %v14582_v45 = vpop.f32.mrf.mxu0 }
 0x2fc   :  { %v7007_v26 = vmax.f32 %v6999_v51, 0.0  ;;  %v6997_v35 = vadd.f32 %v18352_v43, %v6982_v60  ;;  %v6985_v11 = vadd.f32 %v14590_v47, %v6815_v2  ;;  %v6575_v51 = vadd.f32 %v6558_v9, %v6332_v5  ;;  %v7137_v60 = vld [vmem:[#allocation3 + $0x1c] sm:$0x1] }
 0x2fd   :  { %v6954_v0 = vpop.f32.mrf.mxu1  ;;  %v6800_v2 = vpop.f32.mrf.mxu0  ;;  %v6819_v15 = vadd.f32 %v14582_v45, %v6577_v56 }
 0x2fe   :  { %v13558_v34 = vpack.c.bf16 %v7007_v26, %v7007_v26  ;;  %v7005_v55 = vmax.f32 %v6997_v35, 0.0  ;;  %v7000_v46 = vadd.f32 %v18352_v43, %v6985_v11  ;;  %v6983_v33 = vadd.f32 %v6954_v0, %v6813_v40  ;;  %v7120_v11 = vld [vmem:[#allocation3 + $0x8] sm:$0xf] }
 0x2ff   :  { %v14593_v12 = vpop.f32.mrf.mxu1  ;;  %v6817_v50 = vadd.f32 %v6800_v2, %v6575_v51 }
 0x300   :  { %v7054_v4 = vshrl.u32 %v13558_v34, 16  ;;  %v13556_v53 = vpack.c.bf16 %v7005_v55, %v7005_v55  ;;  %v7008_v32 = vmax.f32 %v7000_v46, 0.0  ;;  %v7057_v41 = vshll.u32 %v13558_v34, 16 }
 0x301   :  { %v6998_v7 = vadd.f32 %v18352_v43, %v6983_v33  ;;  %v6988_v25 = vadd.f32 %v14593_v12, %v6818_v58  ;;  %v6967_v24 = vpop.f32.mrf.mxu1 }
 0x302   :  { %v7056_v39 = vrot.slane %v7054_v4, 7  ;;  %v7038_v9 = vshrl.u32 %v13556_v53, 16  ;;  %v13559_v3 = vpack.c.bf16 %v7008_v32, %v7008_v32  ;;  %v7041_v18 = vshll.u32 %v13556_v53, 16  ;;  %v7140_v4 = vld [vmem:[#allocation3 + $0x20] sm:$0xf] }
 0x303   :  { %v7006_v38 = vmax.f32 %v6998_v7, 0.0  ;;  %v7003_v63 = vadd.f32 %v18352_v43, %v6988_v25  ;;  %v6986_v36 = vadd.f32 %v6967_v24, %v6816_v42  ;;  %v14594_v1 = vpop.f32.mrf.mxu1  ;;  %v7143_v53 = vld [vmem:[#allocation3 + $0x24] sm:$0x1] }
 0x304   :  { %v7059_v47 = vor.u32 %v7057_v41, %v7056_v39  ;;  %v7060_v16 = vrot.slane %v7056_v39, 4  ;;  %v7040_v26 = vrot.slane %v7038_v9, 7  ;;  %v7062_v35 = vshrl.u32 %v13559_v3, 16  ;;  %v7128_v39 = vld [vmem:[#allocation3 + $0x10] sm:$0xf] }
 0x305   :  { %v7065_v5 = vshll.u32 %v13559_v3, 16  ;;  %v13557_v27 = vpack.c.bf16 %v7006_v38, %v7006_v38  ;;  %v7011_v40 = vmax.f32 %v7003_v63, 0.0  ;;  %v7001_v45 = vadd.f32 %v18352_v43, %v6986_v36  ;;  %v6970_v33 = vpop.f32.mrf.mxu1  ;;  %v7131_v9 = vld [vmem:[#allocation3 + $0x14] sm:$0x1] }
 0x306   :  { %v7135_v0 = vsel %vm18379_vm0, %v7059_v47, %v7134_v37  ;;  %v7138_v31 = vsel %vm18385_vm1, %v7060_v16, %v7137_v60  ;;  %v7043_v34 = vor.u32 %v7041_v18, %v7040_v26  ;;  %v7044_v55 = vrot.slane %v7040_v26, 4  ;;  %v7161_v26 = vld [vmem:[#allocation3 + $0x4c] sm:$0x1] }
 0x307   :  { %7136 = vst [vmem:[#allocation3 + $0x18] sm:$0xf] %v7135_v0  ;;  %7139 = vst [vmem:[#allocation3 + $0x1c] sm:$0x1] %v7138_v31  ;;  %v7064_v46 = vrot.slane %v7062_v35, 7  ;;  %v7046_v56 = vshrl.u32 %v13557_v27, 16  ;;  %v13562_v58 = vpack.c.bf16 %v7011_v40, %v7011_v40  ;;  %v6989_v32 = vadd.f32 %v14594_v1, %v6819_v15 }
 0x308   :  { %v7049_v51 = vshll.u32 %v13557_v27, 16  ;;  %v7121_v2 = vsel %vm18379_vm0, %v7043_v34, %v7120_v11  ;;  %v7126_v12 = vsel %vm18385_vm1, %v7044_v55, %v7125_v19  ;;  %v7009_v42 = vmax.f32 %v7001_v45, 0.0  ;;  %v7158_v1 = vld [vmem:[#allocation3 + $0x48] sm:$0xf]  ;;  %v7146_v19 = vld [vmem:[#allocation3 + $0x38] sm:$0xf] }
 0x309   :  { %7122 = vst [vmem:[#allocation3 + $0x8] sm:$0xf] %v7121_v2  ;;  %7127 = vst [vmem:[#allocation3 + $0xc] sm:$0x1] %v7126_v12  ;;  %v7067_v41 = vor.u32 %v7065_v5, %v7064_v46  ;;  %v7068_v7 = vrot.slane %v7064_v46, 4  ;;  %v7048_v25 = vrot.slane %v7046_v56, 7  ;;  %v7004_v37 = vadd.f32 %v18352_v43, %v6989_v32 }
 0x30a   :  { %v7086_v24 = vshrl.u32 %v13562_v58, 16  ;;  %v13560_v3 = vpack.c.bf16 %v7009_v42, %v7009_v42  ;;  %v6987_v60 = vadd.f32 %v6970_v33, %v6817_v50  ;;  %v18402_v18 = vrot.slane %v8591_v14, 5  ;;  %v7149_v5 = vld [vmem:[#allocation3 + $0x3c] sm:$0x1] }
 0x30b   :  { %v7141_v15 = vsel %vm18379_vm0, %v7067_v41, %v7140_v4  ;;  %v7144_v38 = vsel %vm18385_vm1, %v7068_v7, %v7143_v53  ;;  %v7051_v63 = vor.u32 %v7049_v51, %v7048_v25  ;;  %v7052_v36 = vrot.slane %v7048_v25, 4  ;;  %v15400_v7 = vld [vmem:[%s19851_s8 + $0x30] sm:$0xff]  }
 0x30c   :  { %7142 = vst [vmem:[#allocation3 + $0x20] sm:$0xf] %v7141_v15  ;;  %7145 = vst [vmem:[#allocation3 + $0x24] sm:$0x1] %v7144_v38  ;;  %v7088_v47 = vrot.slane %v7086_v24, 7  ;;  %v7089_v16 = vshll.u32 %v13562_v58, 16  ;;  %v7002_v27 = vadd.f32 %v18352_v43, %v6987_v60  ;;  %v18428_v25 = vsel %vm16875_vm12, %v12907_v29, %v7576_v44 }
 0x30d   :  { %v7070_v35 = vshrl.u32 %v13560_v3, 16  ;;  %v7012_v50 = vmax.f32 %v7004_v37, 0.0  ;;  %v7129_v49 = vsel %vm18379_vm0, %v7051_v63, %v7128_v39  ;;  %v7132_v14 = vsel %vm18385_vm1, %v7052_v36, %v7131_v9  ;;  %v7164_v9 = vld [vmem:[#allocation3 + $0x50] sm:$0xf]  ;;  %v19999_v60 = vld [vmem:[#allocation21_spill] sm:$0xff] }
 0x30e   :  { %v7073_v11 = vshll.u32 %v13560_v3, 16  ;;  %7130 = vst [vmem:[#allocation3 + $0x10] sm:$0xf] %v7129_v49  ;;  %7133 = vst [vmem:[#allocation3 + $0x14] sm:$0x1] %v7132_v14  ;;  %v7091_v40 = vor.u32 %v7089_v16, %v7088_v47  ;;  %v7092_v45 = vrot.slane %v7088_v47, 4 }
 0x30f   :  { %v7072_v0 = vrot.slane %v7070_v35, 7  ;;  %v13563_v31 = vpack.c.bf16 %v7012_v50, %v7012_v50  ;;  %v7173_v34 = vld [vmem:[#allocation3 + $0x18] sm:$0xf]  ;;  %v18413_v55 = vld [vmem:[#allocation3 + $0x1c] sm:$0x1]  ;;  %v7010_v46 = vmax.f32 %v7002_v27, 0.0 }
 0x310   :  { %v7237_v56 = vshrl.u32 %v7173_v34, 16  ;;  %v7240_v51 = vshll.u32 %v7173_v34, 16  ;;  %v7246_v58 = vshll.u32 %v18413_v55, 16  ;;  %v7159_v33 = vsel %vm18379_vm0, %v7091_v40, %v7158_v1  ;;  %v7171_v4 = vld [vmem:[#allocation3 + $0x8] sm:$0xf]  ;;  %v15362_v27 = vld [vmem:[%s19849_s6 + $0x70] sm:$0xff]  }
 0x311   :  { %v7162_v43 = vsel %vm18385_vm1, %v7092_v45, %v7161_v26  ;;  %v7075_v2 = vor.u32 %v7073_v11, %v7072_v0  ;;  %v7076_v12 = vrot.slane %v7072_v0, 4  ;;  %7160 = vst [vmem:[#allocation3 + $0x48] sm:$0xf] %v7159_v33  ;;  %v7094_v53 = vshrl.u32 %v13563_v31, 16  ;;  %v18420_v41 = vld [vmem:[#allocation3 + $0xc] sm:$0x1] }
 0x312   :  { %7163 = vst [vmem:[#allocation3 + $0x4c] sm:$0x1] %v7162_v43  ;;  %v13561_v42 = vpack.c.bf16 %v7010_v46, %v7010_v46  ;;  %v7209_v32 = vshrl.u32 %v7171_v4, 16  ;;  %v7167_v3 = vld [vmem:[#allocation3 + $0x54] sm:$0x1]  ;;  %v7212_v37 = vshll.u32 %v7171_v4, 16  ;;  %v12895_v15 = vcombine.low %v19999_v60, %v7171_v4 }
 0x313   :  { %v7147_v24 = vsel %vm18379_vm0, %v7075_v2, %v7146_v19  ;;  %v7150_v39 = vsel %vm18385_vm1, %v7076_v12, %v7149_v5  ;;  %v7096_v57 = vrot.slane %v7094_v53, 7  ;;  %v7097_v38 = vshll.u32 %v13563_v31, 16  ;;  %v7152_v29 = vld [vmem:[#allocation3 + $0x40] sm:$0xf]  ;;  %v7155_v44 = vld [vmem:[#allocation3 + $0x44] sm:$0x1] }
 0x314   :  { %7148 = vst [vmem:[#allocation3 + $0x38] sm:$0xf] %v7147_v24  ;;  %7151 = vst [vmem:[#allocation3 + $0x3c] sm:$0x1] %v7150_v39  ;;  %v7078_v54 = vshrl.u32 %v13561_v42, 16  ;;  %v7211_v63 = vrot.slane %v7209_v32, 4  ;;  %14619 = vmatprep.mubr.msk.bf16.mxu1 %vm7351_vm2, %v12895_v15 }
 0x315   :  { %v7081_v36 = vshll.u32 %v13561_v42, 16  ;;  %v7214_v1 = vrot.slane %v7212_v37, 5  ;;  %v7239_v47 = vrot.slane %v7237_v56, 4  ;;  %v7218_v16 = vshll.u32 %v18420_v41, 16  ;;  %v7172_v49 = vld [vmem:[#allocation3 + $0x10] sm:$0xf] }
 0x316   :  { %v7099_v26 = vor.u32 %v7097_v38, %v7096_v57  ;;  %v7100_v35 = vrot.slane %v7096_v57, 4  ;;  %v7080_v50 = vrot.slane %v7078_v54, 7  ;;  %v7242_v14 = vrot.slane %v7240_v51, 5  ;;  %v18444_v56 = vld [vmem:[#allocation3 + $0x14] sm:$0x1]  ;;  %v20000_v53 = vld [vmem:[#allocation16_spill] sm:$0xff] }
 0x317   :  { %v7223_v11 = vshrl.u32 %v7172_v49, 16  ;;  %v7226_v19 = vshll.u32 %v7172_v49, 16  ;;  %v12896_v5 = vcombine.low %v7172_v49, %v7173_v34  ;;  %v7215_v40 = vor.u32 %v7214_v1, %v7211_v63  ;;  %v20001_v57 = vld [vmem:[#allocation22_spill] sm:$0xff] }
 0x318   :  { %v7165_v45 = vsel %vm18379_vm0, %v7099_v26, %v7164_v9  ;;  %v7168_v0 = vsel %vm18385_vm1, %v7100_v35, %v7167_v3  ;;  %v7083_v31 = vor.u32 %v7081_v36, %v7080_v50  ;;  %v7084_v46 = vrot.slane %v7080_v50, 4  ;;  %v18447_v2 = vld [vmem:[#allocation3 + $0x48] sm:$0xf] }
 0x319   :  { %7166 = vst [vmem:[#allocation3 + $0x50] sm:$0xf] %v7165_v45  ;;  %7169 = vst [vmem:[#allocation3 + $0x54] sm:$0x1] %v7168_v0  ;;  %v7225_v51 = vrot.slane %v7223_v11, 4  ;;  %v7228_v33 = vrot.slane %v7226_v19, 5  ;;  %14620 = vmatmul.mubr.msk.bf16.vlgmr.msra.gmra.mxu1 %vm7351_vm2, %v12896_v5  ;;  %v7243_v3 = vor.u32 %v7242_v14, %v7239_v47 }
 0x31a   :  { %v7216_v34 = vrot.slane %v7215_v40, 4  ;;  %v7220_v43 = vrot.slane %v7218_v16, 5  ;;  %v7153_v12 = vsel %vm18379_vm0, %v7083_v31, %v7152_v29  ;;  %v7156_v4 = vsel %vm18385_vm1, %v7084_v46, %v7155_v44  ;;  %14644 = vmatpush3.bf16.msra.mxu1 %v20000_v53  ;;  %v18462_v37 = vld [vmem:[#allocation3 + $0x4c] sm:$0x1]  ;;  %v7551_v16 = vld [vmem:[#allocation3 + $0x8] sm:$0xe] }
 0x31b   :  { %v7293_v42 = vshrl.u32 %v18447_v2, 16  ;;  %v7296_v32 = vshll.u32 %v18447_v2, 16  ;;  %7154 = vst [vmem:[#allocation3 + $0x40] sm:$0xf] %v7153_v12  ;;  %7157 = vst [vmem:[#allocation3 + $0x44] sm:$0x1] %v7156_v4  ;;  %14645 = vmatprep.subr.bf16.mxu1 %v15362_v27  ;;  %v7229_v9 = vor.u32 %v7228_v33, %v7225_v51 }
 0x31c   :  { %v7175_v24 = vld [vmem:[#allocation3 + $0x38] sm:$0xf]  ;;  %v7221_v39 = vsel %vm15867_vm3, %v7216_v34, %v7220_v43  ;;  %v7232_v52 = vshll.u32 %v18444_v56, 16  ;;  %v18470_v63 = vld [vmem:[#allocation3 + $0x3c] sm:$0x1]  ;;  %v7244_v35 = vrot.slane %v7243_v3, 4 }
 0x31d   :  { %v7265_v60 = vshrl.u32 %v7175_v24, 16  ;;  %v7268_v15 = vshll.u32 %v7175_v24, 16  ;;  %v12897_v38 = vcombine.low %v20001_v57, %v7175_v24  ;;  %v12883_v54 = vcombine.low %v7207_v28, %v7221_v39  ;;  %v7552_v14 = vld [vmem:[#allocation3 + $0x10] sm:$0xe]  ;;  %v15368_v19 = vld [vmem:[%s19849_s6 + $0x60] sm:$0xff]   ;;  %v18496_v12 = vld [vmem:[%s19849_s6 + $0xb8] sm:$0xff]  }
 0x31e   :  { %v7295_v36 = vrot.slane %v7293_v42, 4  ;;  %v7298_v29 = vrot.slane %v7296_v32, 5  ;;  %v7230_v44 = vrot.slane %v7229_v9, 4  ;;  %v7234_v1 = vrot.slane %v7232_v52, 5  ;;  %14646 = vmatpush3.bf16.msra.mxu1 %v15362_v27  ;;  %v15367_v45 = vld [vmem:[%s19849_s6 + $0x50] sm:$0xff]   ;;  %v15369_v52 = vld [vmem:[%s19849_s6 + $0x48] sm:$0xff]  }
 0x31f   :  { %v7267_v47 = vrot.slane %v7265_v60, 4  ;;  %v7270_v26 = vrot.slane %v7268_v15, 5  ;;  %14623 = vmatprep.mubr.msk.bf16.mxu1 %vm7351_vm2, %v12897_v38  ;;  %14603 = vmatprep.mubr.msk.bf16.mxu0 %vm7351_vm2, %v12883_v54  ;;  %v7248_v50 = vrot.slane %v7246_v58, 5  ;;  %v7274_v13 = vshll.u32 %v18470_v63, 16  ;;  %v7553_v51 = vld [vmem:[#allocation3 + $0x18] sm:$0xe] }
 0x320   :  { %v7235_v62 = vsel %vm15867_vm3, %v7230_v44, %v7234_v1  ;;  %v7299_v28 = vor.u32 %v7298_v29, %v7295_v36  ;;  %v7302_v49 = vshll.u32 %v18462_v37, 16  ;;  %14647 = vmatprep.subr.bf16.mxu1 %v15365_v59  ;;  %v12908_v58 = vrot.slane %v7551_v16, 9  ;;  %v15366_v34 = vld [vmem:[#allocation3 + $0x8] ss:$8 sps:$4 sm:$0xff]   ;;  %v18504_v42 = vld [vmem:[#allocation3 + $0xc] sm:$0x1] }
 0x321   :  { %v7249_v11 = vsel %vm15867_vm3, %v7244_v35, %v7248_v50  ;;  %v7271_v5 = vor.u32 %v7270_v26, %v7267_v47  ;;  %v7580_v27 = vrot.slane %v18420_v41, 5  ;;  %v7276_v0 = vrot.slane %v7274_v13, 5  ;;  %v8140_v3 = vld [vmem:[#allocation3 + $0x8] sm:$0xe]  ;;  %v18532_v60 = vld [vmem:[#allocation3 + $0x14] sm:$0x1] }
 0x322   :  { %v12884_v40 = vcombine.low %v7235_v62, %v7249_v11  ;;  %v18489_v31 = vrot.slane %v7299_v28, 4  ;;  %v18491_v46 = vrot.slane %v7302_v49, 5  ;;  %v7176_v33 = vld [vmem:[#allocation3 + $0x40] sm:$0xf]  ;;  %v18498_v41 = vld [vmem:[#allocation3 + $0x44] sm:$0x1]  ;;  %v18512_v32 = vsel %vm16875_vm12, %v12911_v6, %v7592_v48  ;;  %14648 = vmatpush3.bf16.msra.mxu1 %v15365_v59 }
 0x323   :  { %v7272_v43 = vrot.slane %v7271_v5, 4  ;;  %v18502_v4 = vsel %vm16875_vm12, %v12908_v58, %v7580_v27  ;;  %v12909_v53 = vrot.slane %v7552_v14, 9  ;;  %v7279_v24 = vshrl.u32 %v7176_v33, 16  ;;  %14649 = vmatprep.subr.bf16.mxu1 %v15368_v19  ;;  %v8141_v15 = vld [vmem:[#allocation3 + $0x10] sm:$0xe] }
 0x324   :  { %v7282_v39 = vshll.u32 %v7176_v33, 16  ;;  %v12898_v9 = vcombine.low %v7176_v33, %v18447_v2  ;;  %14604 = vmatmul.mubr.msk.bf16.vlgmr.msra.gmra.mxu0 %vm7351_vm2, %v12884_v40  ;;  %v7288_v6 = vshll.u32 %v18498_v41, 16  ;;  %v7305_v2 = vsel %vm15867_vm3, %v18489_v31, %v18491_v46  ;;  %v7555_v44 = vld [vmem:[#allocation3 + $0x38] sm:$0xe]  ;;  %v18542_v1 = vld [vmem:[#allocation3 + $0x1c] sm:$0x1] }
 0x325   :  { %14628 = vmatpush3.bf16.msra.mxu0 %v20002_v30  ;;  %v7277_v48 = vsel %vm15867_vm3, %v7272_v43, %v7276_v0  ;;  %v7584_v59 = vrot.slane %v18444_v56, 5  ;;  %v7281_v57 = vrot.slane %v7279_v24, 4  ;;  %v20003_v54 = vsel %vm15867_vm3, %v18230_v23, %v18232_v21  ;;  %v18550_v35 = vld [vmem:[#allocation3 + $0x24] sm:$0x1]  ;;  %v8142_v23 = vld [vmem:[#allocation3 + $0x18] sm:$0xe] }
 0x326   :  { %v7284_v38 = vrot.slane %v7282_v39, 5  ;;  %14624 = vmatmul.mubr.msk.bf16.gmra.mxu1 %vm7351_vm2, %v12898_v9  ;;  %14629 = vmatprep.subr.bf16.mxu0 %v15367_v45  ;;  %v12885_v36 = vcombine.low %v20003_v54, %v7277_v48  ;;  %v12923_v29 = vcombine.low %v18428_v25, %v18502_v4  ;;  %v12910_v16 = vrot.slane %v7553_v51, 9  ;;  %v8143_v28 = vld [vmem:[#allocation3 + $0x20] sm:$0xe]  ;;  %v7557_v31 = vld [vmem:[#allocation3 + $0x48] sm:$0xe] }
 0x327   :  { %14651 = vmatprep.mubr.msk.bf16.mxu1 %vm7351_vm2, %v15366_v34  ;;  %v18547_v56 = vsel %vm16875_vm12, %v12909_v53, %v7584_v59  ;;  %v7588_v47 = vrot.slane %v18413_v55, 5  ;;  %v12975_v26 = vrot.slane %v8140_v3, 9  ;;  %14650 = vmatpush3.bf16.msra.mxu1 %v15368_v19  ;;  %v8166_v50 = vrot.slane %v18504_v42, 5  ;;  %v15373_v55 = vld [vmem:[%s19849_s6 + $0x40] sm:$0xff]   ;;  %v15374_v46 = vld [vmem:[%s19849_s6 + $0xb0] sm:$0xff]  }
 0x328   :  { %14607 = vmatprep.mubr.msk.bf16.mxu0 %vm7351_vm2, %v12885_v36  ;;  %v7285_v21 = vor.u32 %v7284_v38, %v7281_v57  ;;  %v12976_v62 = vrot.slane %v8141_v15, 9  ;;  %v8170_v13 = vrot.slane %v18532_v60, 5  ;;  %14675 = vmatprep.subr.bf16.mxu1 %v18496_v12  ;;  %v7290_v49 = vrot.slane %v7288_v6, 5  ;;  %v7556_v5 = vld [vmem:[#allocation3 + $0x40] sm:$0xe]  ;;  %v18598_v36 = vld [vmem:[%s19849_s6 + $0x98] sm:$0xff]  }
 0x329   :  { %14630 = vmatpush3.bf16.msra.mxu0 %v15367_v45  ;;  %v18561_v14 = vsel %vm16875_vm12, %v12910_v16, %v7588_v47  ;;  %v12912_v11 = vrot.slane %v7555_v44, 9  ;;  %v7596_v19 = vrot.slane %v18470_v63, 5  ;;  %v15370_v58 = vld [vmem:[#allocation3 + $0x18] ss:$8 sps:$4 sm:$0xff]   ;;  %v12977_v0 = vrot.slane %v8142_v23, 9  ;;  %v15377_v47 = vld [vmem:[%s19849_s6 + $0xa8] sm:$0xff]  }
 0x32a   :  { %14631 = vmatprep.subr.bf16.mxu0 %v15369_v52  ;;  %v7286_v27 = vrot.slane %v7285_v21, 4  ;;  %v12924_v40 = vcombine.low %v18547_v56, %v18561_v14  ;;  %v18568_v45 = vsel %vm16875_vm12, %v12976_v62, %v8170_v13  ;;  %v18575_v63 = vsel %vm16875_vm12, %v12975_v26, %v8166_v50  ;;  %v18582_v43 = vld [vmem:[#allocation3 + $0x3c] sm:$0x1]  ;;  %v8144_v53 = vld [vmem:[#allocation3 + $0x38] sm:$0xe] }
 0x32b   :  { %v18579_v51 = vsel %vm16875_vm12, %v12912_v11, %v7596_v19  ;;  %v8174_v33 = vrot.slane %v18542_v1, 5  ;;  %v12978_v34 = vrot.slane %v8143_v28, 9  ;;  %v12991_v39 = vcombine.low %v18575_v63, %v18568_v45  ;;  %v18589_v30 = vld [vmem:[#allocation3 + $0x44] sm:$0x1]  ;;  %v8145_v48 = vld [vmem:[#allocation3 + $0x40] sm:$0xe] }
 0x32c   :  { %v7291_v24 = vsel %vm15867_vm3, %v7286_v27, %v7290_v49  ;;  %v8178_v9 = vrot.slane %v18550_v35, 5  ;;  %v12913_v3 = vrot.slane %v7556_v5, 9  ;;  %v15372_v59 = vld [vmem:[#allocation3 + $0x38] ss:$8 sps:$4 sm:$0xff]   ;;  %v12925_v15 = vcombine.low %v18512_v32, %v18579_v51  ;;  %v7882_v54 = vld [vmem:[#allocation3 + $0x8] sm:$0xf] }
 0x32d   :  { %v12886_v6 = vcombine.low %v7291_v24, %v7305_v2  ;;  %14632 = vmatpush3.bf16.msra.mxu0 %v15369_v52  ;;  %v7600_v57 = vrot.slane %v18498_v41, 5  ;;  %v12914_v38 = vrot.slane %v7557_v31, 9  ;;  %v7604_v52 = vrot.slane %v18462_v37, 5  ;;  %v7884_v41 = vld [vmem:[#allocation3 + $0x10] sm:$0xf] }
 0x32e   :  { %14652 = vmatmul.mubr.msk.bf16.vlgmr.msra.gmra.mxu1 %vm7351_vm2, %v15370_v58  ;;  %14633 = vmatprep.subr.bf16.mxu0 %v15373_v55  ;;  %v18602_v2 = vsel %vm16875_vm12, %v12978_v34, %v8178_v9  ;;  %v12979_v44 = vrot.slane %v8144_v53, 9  ;;  %v8182_v16 = vrot.slane %v18582_v43, 5  ;;  %v18613_v26 = vsel %vm16875_vm12, %v12977_v0, %v8174_v33  ;;  %v18631_v49 = vld [vmem:[#allocation3 + $0x4c] sm:$0x1]  ;;  %v8146_v11 = vld [vmem:[#allocation3 + $0x48] sm:$0xe] }
 0x32f   :  { %14608 = vmatmul.mubr.msk.bf16.gmra.mxu0 %vm7351_vm2, %v12886_v6  ;;  %14655 = vmatprep.mubr.msk.bf16.mxu1 %vm7351_vm2, %v15372_v59  ;;  %v18617_v23 = vsel %vm16875_vm12, %v12913_v3, %v7600_v57  ;;  %v12980_v37 = vrot.slane %v8145_v48, 9  ;;  %v8186_v21 = vrot.slane %v18589_v30, 5  ;;  %v12992_v50 = vcombine.low %v18613_v26, %v18602_v2  ;;  %v18642_v19 = vld [vmem:[#allocation3 + $0x54] sm:$0x1]  ;;  %v8147_v5 = vld [vmem:[#allocation3 + $0x50] sm:$0xe] }
 0x330   :  { %14676 = vmatpush3.bf16.msra.mxu1 %v18496_v12  ;;  %14635 = vmatprep.mubr.msk.bf16.mxu0 %vm7351_vm2, %v12923_v29  ;;  %v18629_v62 = vsel %vm16875_vm12, %v12914_v38, %v7604_v52  ;;  %v7899_v13 = vshrl.u32 %v7882_v54, 16  ;;  %v7902_v28 = vshll.u32 %v7882_v54, 16  ;;  %v18635_v12 = vsel %vm16875_vm12, %v12979_v44, %v8182_v16  ;;  %v7886_v31 = vld [vmem:[#allocation3 + $0x18] sm:$0xf]  ;;  %v15375_v33 = vld [vmem:[#allocation3 + $0x48] ss:$8 sps:$4 sm:$0xff]  }
 0x331   :  { %14677 = vmatprep.subr.bf16.mxu1 %v15374_v46  ;;  %14634 = vmatpush3.bf16.msra.mxu0 %v15373_v55  ;;  %v18639_v25 = vsel %vm16875_vm12, %v12980_v37, %v8186_v21  ;;  %v7908_v4 = vshll.u32 %v18504_v42, 16  ;;  %v7913_v29 = vshrl.u32 %v7884_v41, 16  ;;  %v12926_v58 = vcombine.low %v18617_v23, %v18629_v62  ;;  %v7888_v59 = vld [vmem:[#allocation3 + $0x20] sm:$0xf]  ;;  %v15378_v57 = vld [vmem:[%s19849_s6 + $0x90] sm:$0xff]  }
 0x332   :  { %14659 = vmatprep.subr.bf16.mxu0 %v18598_v36  ;;  %v7901_v55 = vrot.slane %v7899_v13, 4  ;;  %v7904_v27 = vrot.slane %v7902_v28, 5  ;;  %v7916_v0 = vshll.u32 %v7884_v41, 16  ;;  %v12993_v34 = vcombine.low %v18635_v12, %v18639_v25  ;;  %v8473_v21 = vld [vmem:[#allocation3 + $0x10] sm:$0xf]  ;;  %v15380_v13 = vld [vmem:[%s19849_s6 + $0x88] sm:$0xff]  }
 0x333   :  { %v7915_v53 = vrot.slane %v7913_v29, 4  ;;  %v7922_v42 = vshll.u32 %v18532_v60, 16  ;;  %v12981_v24 = vrot.slane %v8146_v11, 9  ;;  %v8190_v48 = vrot.slane %v18631_v49, 5  ;;  %v15379_v60 = vld [vmem:[%s19849_s6 + $0xa0] sm:$0xff]   ;;  %v15385_v12 = vld [vmem:[%s19849_s6 + $0xe8] sm:$0xff]  }
 0x334   :  { %14678 = vmatpush3.bf16.msra.mxu1 %v15374_v46  ;;  %v7905_v9 = vor.u32 %v7904_v27, %v7901_v55  ;;  %v7918_v3 = vrot.slane %v7916_v0, 5  ;;  %v12982_v6 = vrot.slane %v8147_v5, 9  ;;  %v7910_v38 = vrot.slane %v7908_v4, 5  ;;  %v18679_v29 = vld [vmem:[#allocation3 + $0x14] sm:$0x1] }
 0x335   :  { %14679 = vmatprep.subr.bf16.mxu1 %v15377_v47  ;;  %v8194_v54 = vrot.slane %v18642_v19, 5  ;;  %v7927_v52 = vshrl.u32 %v7886_v31, 16  ;;  %v7930_v44 = vshll.u32 %v7886_v31, 16  ;;  %v18661_v41 = vsel %vm16875_vm12, %v12981_v24, %v8190_v48  ;;  %v8475_v63 = vld [vmem:[#allocation3 + $0x18] sm:$0xf] }
 0x336   :  { %14656 = vmatmul.mubr.msk.bf16.gmra.mxu1 %vm7351_vm2, %v15375_v33  ;;  %v7906_v46 = vrot.slane %v7905_v9, 4  ;;  %v7919_v16 = vor.u32 %v7918_v3, %v7915_v53  ;;  %v7936_v37 = vshll.u32 %v18542_v1, 16  ;;  %v7941_v4 = vshrl.u32 %v7888_v59, 16  ;;  %v7890_v0 = vld [vmem:[#allocation3 + $0x38] sm:$0xf] }
 0x337   :  { %14636 = vmatmul.mubr.msk.bf16.vlgmr.msra.gmra.mxu0 %vm7351_vm2, %v12924_v40  ;;  %14683 = vmatprep.mubr.msk.bf16.mxu1 %vm7351_vm2, %v12991_v39  ;;  %v18677_v28 = vsel %vm16875_vm12, %v12982_v6, %v8194_v54  ;;  %v7929_v1 = vrot.slane %v7927_v52, 4  ;;  %v7932_v11 = vrot.slane %v7930_v44, 5  ;;  %v7924_v40 = vrot.slane %v7922_v42, 5  ;;  %v18686_v39 = vld [vmem:[#allocation3 + $0x1c] sm:$0x1]  ;;  %v15382_v6 = vld [vmem:[%s19849_s6 + $0x80] sm:$0xff]  }
 0x338   :  { %14660 = vmatpush3.bf16.msra.mxu0 %v18598_v36  ;;  %14680 = vmatpush3.bf16.msra.mxu1 %v15377_v47  ;;  %v7911_v56 = vsel %vm15867_vm3, %v7906_v46, %v7910_v38  ;;  %v7920_v14 = vrot.slane %v7919_v16, 4  ;;  %v12994_v45 = vcombine.low %v18661_v41, %v18677_v28  ;;  %v15381_v36 = vld [vmem:[%s19849_s6 + $0xf8] sm:$0xff]   ;;  %v7943_v5 = vrot.slane %v7941_v4, 4  ;;  %v7892_v44 = vld [vmem:[#allocation3 + $0x40] sm:$0xf]  ;;  %v15388_v28 = vld [vmem:[%s19849_s6 + $0xc8] sm:$0xff]  }
 0x339   :  { %14639 = vmatprep.mubr.msk.bf16.mxu0 %vm7351_vm2, %v12925_v15  ;;  %14661 = vmatprep.subr.bf16.mxu0 %v15378_v57  ;;  %v7933_v47 = vor.u32 %v7932_v11, %v7929_v1  ;;  %v7944_v55 = vshll.u32 %v7888_v59, 16  ;;  %v7950_v27 = vshll.u32 %v18550_v35, 16  ;;  %v8490_v33 = vshrl.u32 %v8473_v21, 16  ;;  %v15384_v1 = vld [vmem:[%s19849_s6 + $0xd8] sm:$0xff]   ;;  %v18723_v2 = vld [vmem:[#allocation3 + $0x24] sm:$0x1] }
 0x33a   :  { %14681 = vmatprep.subr.bf16.mxu1 %v15379_v60  ;;  %v7925_v31 = vsel %vm15867_vm3, %v7920_v14, %v7924_v40  ;;  %v8493_v53 = vshll.u32 %v8473_v21, 16  ;;  %v8499_v32 = vshll.u32 %v18679_v29, 16  ;;  %v7938_v42 = vrot.slane %v7936_v37, 5  ;;  %v8477_v21 = vld [vmem:[#allocation3 + $0x20] sm:$0xf] }
 0x33b   :  { %v12963_v51 = vcombine.low %v7911_v56, %v7925_v31  ;;  %v18699_v15 = vrot.slane %v7933_v47, 4  ;;  %v7946_v24 = vrot.slane %v7944_v55, 5  ;;  %v7952_v9 = vrot.slane %v7950_v27, 5  ;;  %v7894_v47 = vld [vmem:[#allocation3 + $0x48] sm:$0xf] }
 0x33c   :  { %14662 = vmatpush3.bf16.msra.mxu0 %v15378_v57  ;;  %14682 = vmatpush3.bf16.msra.mxu1 %v15379_v60  ;;  %v8492_v3 = vrot.slane %v8490_v33, 4  ;;  %v8495_v48 = vrot.slane %v8493_v53, 5  ;;  %v8504_v35 = vshrl.u32 %v8475_v63, 16  ;;  %v8501_v38 = vrot.slane %v8499_v32, 5  ;;  %v15383_v57 = vld [vmem:[%s19849_s6 + $0xf0] sm:$0xff]  }
 0x33d   :  { %14663 = vmatprep.subr.bf16.mxu0 %v15380_v13  ;;  %14707 = vmatprep.subr.bf16.mxu1 %v15381_v36  ;;  %v7947_v59 = vor.u32 %v7946_v24, %v7943_v5  ;;  %v8507_v54 = vshll.u32 %v8475_v63, 16  ;;  %v8513_v52 = vshll.u32 %v18686_v39, 16  ;;  %v7955_v16 = vshrl.u32 %v7890_v0, 16  ;;  %v15386_v24 = vld [vmem:[%s19849_s6 + $0xd0] sm:$0xff]  }
 0x33e   :  { %v8496_v60 = vor.u32 %v8495_v48, %v8492_v3  ;;  %v8506_v46 = vrot.slane %v8504_v35, 4  ;;  %v7958_v37 = vshll.u32 %v7890_v0, 16  ;;  %v7939_v11 = vsel %vm15867_vm3, %v18699_v15, %v7938_v42 }
 0x33f   :  { %14684 = vmatmul.mubr.msk.bf16.vlgmr.msra.gmra.mxu1 %vm7351_vm2, %v12992_v50  ;;  %14640 = vmatmul.mubr.msk.bf16.gmra.mxu0 %vm7351_vm2, %v12926_v58  ;;  %v7948_v4 = vrot.slane %v7947_v59, 4  ;;  %v8509_v56 = vrot.slane %v8507_v54, 5  ;;  %v7964_v14 = vshll.u32 %v18582_v43, 16  ;;  %v7957_v23 = vrot.slane %v7955_v16, 4 }
 0x340   :  { %14664 = vmatpush3.bf16.msra.mxu0 %v15380_v13  ;;  %14687 = vmatprep.mubr.msk.bf16.mxu1 %vm7351_vm2, %v12993_v34  ;;  %v8497_v26 = vrot.slane %v8496_v60, 4  ;;  %v7960_v50 = vrot.slane %v7958_v37, 5  ;;  %v7969_v62 = vshrl.u32 %v7892_v44, 16  ;;  %v8515_v43 = vrot.slane %v8513_v52, 5 }
 0x341   :  { %14708 = vmatpush3.bf16.msra.mxu1 %v15381_v36  ;;  %14667 = vmatprep.mubr.msk.bf16.mxu0 %vm7351_vm2, %v12963_v51  ;;  %v7953_v58 = vsel %vm15867_vm3, %v7948_v4, %v7952_v9  ;;  %v8510_v40 = vor.u32 %v8509_v56, %v8506_v46  ;;  %v7972_v63 = vshll.u32 %v7892_v44, 16  ;;  %v7966_v13 = vrot.slane %v7964_v14, 5 }
 0x342   :  { %14665 = vmatprep.subr.bf16.mxu0 %v15382_v6  ;;  %14709 = vmatprep.subr.bf16.mxu1 %v15383_v57  ;;  %v8502_v25 = vsel %vm15867_vm3, %v8497_v26, %v8501_v38  ;;  %v7961_v34 = vor.u32 %v7960_v50, %v7957_v23  ;;  %v7971_v36 = vrot.slane %v7969_v62, 4  ;;  %v7978_v27 = vshll.u32 %v18589_v30, 16  ;;  %v7896_v30 = vld [vmem:[#allocation3 + $0x50] sm:$0xf]  ;;  %v8481_v38 = vld [vmem:[#allocation3 + $0x40] sm:$0xf] }
 0x343   :  { %v8511_v5 = vrot.slane %v8510_v40, 4  ;;  %v7974_v55 = vrot.slane %v7972_v63, 5  ;;  %v8518_v0 = vshrl.u32 %v8477_v21, 16  ;;  %v8521_v33 = vshll.u32 %v8477_v21, 16  ;;  %v18756_v21 = vld [vmem:[#allocation3 + $0x44] sm:$0x1] }
 0x344   :  { %14666 = vmatpush3.bf16.msra.mxu0 %v15382_v6  ;;  %v7962_v31 = vrot.slane %v7961_v34, 4  ;;  %v8527_v53 = vshll.u32 %v18723_v2, 16  ;;  %v7983_v32 = vshrl.u32 %v7894_v47, 16  ;;  %v12964_v51 = vcombine.low %v7939_v11, %v7953_v58  ;;  %v15387_v6 = vld [vmem:[%s19849_s6 + $0xe0] sm:$0xff]   ;;  %v8483_v11 = vld [vmem:[#allocation3 + $0x48] sm:$0xf] }
 0x345   :  { %14710 = vmatpush3.bf16.msra.mxu1 %v15383_v57  ;;  %14691 = vmatprep.subr.bf16.mxu0 %v15384_v1  ;;  %v8516_v15 = vsel %vm15867_vm3, %v8511_v5, %v8515_v43  ;;  %v7975_v42 = vor.u32 %v7974_v55, %v7971_v36  ;;  %v8520_v9 = vrot.slane %v8518_v0, 4  ;;  %v7980_v35 = vrot.slane %v7978_v27, 5  ;;  %v18769_v43 = vld [vmem:[#allocation3 + $0x4c] sm:$0x1] }
 0x346   :  { %14711 = vmatprep.subr.bf16.mxu1 %v15385_v12  ;;  %v13031_v3 = vcombine.low %v8502_v25, %v8516_v15  ;;  %v7967_v48 = vsel %vm15867_vm3, %v7962_v31, %v7966_v13  ;;  %v8523_v59 = vrot.slane %v8521_v33, 5  ;;  %v8529_v52 = vrot.slane %v8527_v53, 5  ;;  %v18781_v53 = vld [vmem:[#allocation3 + $0x54] sm:$0x1] }
 0x347   :  { %14688 = vmatmul.mubr.msk.bf16.gmra.mxu1 %vm7351_vm2, %v12994_v45  ;;  %14668 = vmatmul.mubr.msk.bf16.vlgmr.msra.gmra.mxu0 %vm7351_vm2, %v12964_v51  ;;  %v7976_v54 = vrot.slane %v7975_v42, 4  ;;  %v7985_v44 = vrot.slane %v7983_v32, 4  ;;  %v7986_v57 = vshll.u32 %v7894_v47, 16  ;;  %v7992_v46 = vshll.u32 %v18631_v49, 16 }
 0x348   :  { %14692 = vmatpush3.bf16.msra.mxu0 %v15384_v1  ;;  %14715 = vmatprep.mubr.msk.bf16.mxu1 %vm7351_vm2, %v13031_v3  ;;  %v8524_v60 = vor.u32 %v8523_v59, %v8520_v9  ;;  %v7997_v16 = vshrl.u32 %v7896_v30, 16  ;;  %v8000_v37 = vshll.u32 %v7896_v30, 16  ;;  %v8006_v1 = vshll.u32 %v18642_v19, 16  ;;  %v15391_v30 = vld [vmem:[%s19849_s6 + $0x118] sm:$0xff]  }
 0x349   :  { %14712 = vmatpush3.bf16.msra.mxu1 %v15385_v12  ;;  %v7981_v41 = vsel %vm15867_vm3, %v7976_v54, %v7980_v35  ;;  %14693 = vmatprep.subr.bf16.mxu0 %v15386_v24  ;;  %v7988_v45 = vrot.slane %v7986_v57, 5  ;;  %v8546_v4 = vshrl.u32 %v8481_v38, 16  ;;  %v8549_v62 = vshll.u32 %v8481_v38, 16  ;;  %v8485_v12 = vld [vmem:[#allocation3 + $0x50] sm:$0xf] }
 0x34a   :  { %v12965_v56 = vcombine.low %v7967_v48, %v7981_v41  ;;  %14713 = vmatprep.subr.bf16.mxu1 %v15387_v6  ;;  %v8525_v49 = vrot.slane %v8524_v60, 4  ;;  %v7999_v14 = vrot.slane %v7997_v16, 4  ;;  %v8002_v26 = vrot.slane %v8000_v37, 5  ;;  %v15389_v3 = vld [vmem:[#allocation3 + $0x10] ss:$8 sps:$4 sm:$0xff]  }
 0x34b   :  { %v7989_v23 = vor.u32 %v7988_v45, %v7985_v44  ;;  %v8548_v50 = vrot.slane %v8546_v4, 4  ;;  %v8594_v58 = vor.u32 %v18402_v18, %v18354_v10  ;;  %v8555_v63 = vshll.u32 %v18756_v21, 16  ;;  %v15390_v10 = vld [vmem:[%s19849_s6 + $0xc0] sm:$0xff]  }
 0x34c   :  { %14671 = vmatprep.mubr.msk.bf16.mxu0 %vm7351_vm2, %v12965_v56  ;;  %14694 = vmatpush3.bf16.msra.mxu0 %v15386_v24  ;;  %v8530_v40 = vsel %vm15867_vm3, %v8525_v49, %v8529_v52  ;;  %v8003_v19 = vor.u32 %v8002_v26, %v7999_v14  ;;  %v8560_v47 = vshrl.u32 %v8483_v11, 16  ;;  %v7994_v34 = vrot.slane %v7992_v46, 5  ;;  %v15393_v4 = vld [vmem:[#allocation3 + $0x40] ss:$8 sps:$4 sm:$0xff]   ;;  %v8732_v56 = vld [vmem:[#allocation3 + $0x18] sm:$0xe] }
 0x34d   :  { %14714 = vmatpush3.bf16.msra.mxu1 %v15387_v6  ;;  %14695 = vmatprep.subr.bf16.mxu0 %v15388_v28  ;;  %v7990_v25 = vrot.slane %v7989_v23, 4  ;;  %v8551_v13 = vrot.slane %v8549_v62, 5  ;;  %v8563_v36 = vshll.u32 %v8483_v11, 16  ;;  %v13032_v18 = vcombine.low %v8530_v40, %v8544_v22  ;;  %v15394_v11 = vld [vmem:[%s19849_s6 + $0x110] sm:$0xff]   ;;  %v8733_v62 = vld [vmem:[#allocation3 + $0x20] sm:$0xe] }
 0x34e   :  { %v8004_v5 = vrot.slane %v8003_v19, 4  ;;  %v8008_v55 = vrot.slane %v8006_v1, 5  ;;  %v8562_v27 = vrot.slane %v8560_v47, 4  ;;  %v8569_v33 = vshll.u32 %v18769_v43, 16  ;;  %v15392_v1 = vld [vmem:[#allocation3 + $0x20] ss:$8 sps:$4 sm:$0xff]  }
 0x34f   :  { %v8552_v0 = vor.u32 %v8551_v13, %v8548_v50  ;;  %v8565_v31 = vrot.slane %v8563_v36, 5  ;;  %v8574_v32 = vshrl.u32 %v8485_v12, 16  ;;  %v7995_v51 = vsel %vm15867_vm3, %v7990_v25, %v7994_v34  ;;  %v8735_v40 = vld [vmem:[#allocation3 + $0x40] sm:$0xe]  ;;  %v15584_v47 = vld [vmem:[#allocation3 + $0x2c] sm:$0x1] }
 0x350   :  { %14716 = vmatmul.mubr.msk.bf16.vlgmr.msra.gmra.mxu1 %vm7351_vm2, %v13032_v18  ;;  %v8009_v15 = vsel %vm15867_vm3, %v8004_v5, %v8008_v55  ;;  %14696 = vmatpush3.bf16.msra.mxu0 %v15388_v28  ;;  %v8557_v61 = vrot.slane %v8555_v63, 5  ;;  %v8577_v17 = vshll.u32 %v8485_v12, 16  ;;  %v8583_v35 = vshll.u32 %v18781_v53, 16  ;;  %v8731_v28 = vld [vmem:[#allocation3 + $0x10] sm:$0xe]  ;;  %v15397_v63 = vld [vmem:[%s19849_s6 + $0x100] sm:$0xff]  }
 0x351   :  { %v12966_v22 = vcombine.low %v7995_v51, %v8009_v15  ;;  %v8553_v42 = vrot.slane %v8552_v0, 4  ;;  %v8566_v24 = vor.u32 %v8565_v31, %v8562_v27  ;;  %14697 = vmatprep.subr.bf16.mxu0 %v15390_v10  ;;  %v8576_v9 = vrot.slane %v8574_v32, 4  ;;  %v8736_v36 = vld [vmem:[#allocation3 + $0x48] sm:$0xe]  ;;  %v8737_v31 = vld [vmem:[#allocation3 + $0x50] sm:$0xe] }
 0x352   :  { %v8579_v48 = vrot.slane %v8577_v17, 5  ;;  %v8595_v6 = vrot.slane %v8594_v58, 4  ;;  %v20004_v59 = vshll.u32 %v18344_v20, 16  ;;  %v8571_v44 = vrot.slane %v8569_v33, 5  ;;  %v8734_v58 = vld [vmem:[#allocation3 + $0x28] sm:$0xe] }
 0x353   :  { %14672 = vmatmul.mubr.msk.bf16.gmra.mxu0 %vm7351_vm2, %v12966_v22  ;;  %v8558_v54 = vsel %vm15867_vm3, %v8553_v42, %v8557_v61  ;;  %v8567_v52 = vrot.slane %v8566_v24, 4  ;;  %v8585_v37 = vrot.slane %v8583_v35, 5  ;;  %v13043_v49 = vrot.slane %v8731_v28, 9  ;;  %v8738_v33 = vld [vmem:[#allocation3 + $0x58] sm:$0xe]  ;;  %v15402_v35 = vld [vmem:[%s19851_s8 + $0x28] sm:$0xff]  }
 0x354   :  { %v8599_v38 = vrot.slane %v20004_v59, 5  ;;  %14699 = vmatprep.mubr.msk.bf16.mxu0 %vm7351_vm2, %v15389_v3  ;;  %14698 = vmatpush3.bf16.msra.mxu0 %v15390_v10  ;;  %v8580_v57 = vor.u32 %v8579_v48, %v8576_v9  ;;  %v8757_v14 = vrot.slane %v18679_v29, 5  ;;  %v13044_v26 = vrot.slane %v8732_v56, 9  ;;  %v15396_v29 = vld [vmem:[#allocation3 + $0x50] ss:$8 sps:$4 sm:$0xff]   ;;  %v15404_v59 = vld [vmem:[%s19851_s8 + $0x20] sm:$0xff]  }
 0x355   :  { %v8572_v60 = vsel %vm15867_vm3, %v8567_v52, %v8571_v44  ;;  %14723 = vmatprep.subr.bf16.mxu0 %v15391_v30  ;;  %v8761_v23 = vrot.slane %v18686_v39, 5  ;;  %v8769_v12 = vrot.slane %v15584_v47, 5  ;;  %v13045_v39 = vrot.slane %v8733_v62, 9  ;;  %v15585_v51 = vld [vmem:[#allocation3 + $0x5c] sm:$0x1]  ;;  %v15401_v48 = vld [vmem:[%s19851_s8 + $0x10] sm:$0xff]  }
 0x356   :  { %v13033_v46 = vcombine.low %v8558_v54, %v8572_v60  ;;  %v8581_v16 = vrot.slane %v8580_v57, 4  ;;  %v8600_v20 = vsel %vm15867_vm3, %v8595_v6, %v8599_v38  ;;  %v8758_v50 = vsel %vm16875_vm12, %v13043_v49, %v8757_v14  ;;  %v15399_v3 = vld [vmem:[%s19851_s8 + $0x18] sm:$0xff]   ;;  %v15403_v6 = vld [vmem:[%s19851_s8 + $0x8] sm:$0xff]   ;;  %v15405_v38 = vld [vmem:[%s19851_s8] sm:$0xff]  }
 0x357   :  { %v8762_v19 = vsel %vm16875_vm12, %v13044_v26, %v8761_v23  ;;  %v8765_v34 = vrot.slane %v18723_v2, 5  ;;  %v13046_v13 = vrot.slane %v8734_v58, 9  ;;  %v13047_v10 = vrot.slane %v8735_v40, 9 }
 0x358   :  { %14719 = vmatprep.mubr.msk.bf16.mxu1 %vm7351_vm2, %v13033_v46  ;;  %v8586_v41 = vsel %vm15867_vm3, %v8581_v16, %v8585_v37  ;;  %v13059_v25 = vcombine.low %v8758_v50, %v8762_v19  ;;  %v8773_v18 = vrot.slane %v18756_v21, 5  ;;  %v13048_v5 = vrot.slane %v8736_v36, 9 }
 0x359   :  { %v13034_v45 = vcombine.low %v8586_v41, %v8600_v20  ;;  %v8777_v55 = vrot.slane %v18769_v43, 5  ;;  %v8766_v27 = vsel %vm16875_vm12, %v13045_v39, %v8765_v34  ;;  %v8770_v2 = vsel %vm16875_vm12, %v13046_v13, %v8769_v12 }
 0x35a   :  { %v8774_v0 = vsel %vm16875_vm12, %v13047_v10, %v8773_v18  ;;  %v13060_v21 = vcombine.low %v8766_v27, %v8770_v2  ;;  %v8785_v15 = vrot.slane %v15585_v51, 5  ;;  %v13049_v43 = vrot.slane %v8737_v31, 9 }
 0x35b   :  { %14720 = vmatmul.mubr.msk.bf16.gmra.mxu1 %vm7351_vm2, %v13034_v45  ;;  %14700 = vmatmul.mubr.msk.bf16.vlgmr.msra.gmra.mxu0 %vm7351_vm2, %v15392_v1  ;;  %v8778_v32 = vsel %vm16875_vm12, %v13048_v5, %v8777_v55  ;;  %v8781_v17 = vrot.slane %v18781_v53, 5  ;;  %v13050_v22 = vrot.slane %v8738_v33, 9  ;;  %v15398_v53 = vld [vmem:[%s19851_s8 + $0x38] sm:$0xff]   ;;  %vm15588_vm3 = vmmov 0  }
 0x35c   :  { %14724 = vmatpush3.bf16.msra.mxu0 %v15391_v30  ;;  %14703 = vmatprep.mubr.msk.bf16.mxu0 %vm7351_vm2, %v15393_v4  ;;  %v13061_v61 = vcombine.low %v8774_v0, %v8778_v32  ;;  %v15587_v30 = vmov 0.0  }
 0x35d   :  { %14725 = vmatprep.subr.bf16.mxu0 %v15394_v11  ;;  %v8782_v42 = vsel %vm16875_vm12, %v13049_v43, %v8781_v17  ;;  %v8786_v24 = vsel %vm16875_vm12, %v13050_v22, %v8785_v15  ;;  %14739 = vmatprep.subr.bf16.mxu1 %v15587_v30 }
 0x35e   :  { %v13062_v9 = vcombine.low %v8782_v42, %v8786_v24  ;;  %14747 = vmatprep.mubr.msk.bf16.mxu1 %vm15588_vm3, %v15587_v30  ;;  %14740 = vmatpush3.bf16.msra.mxu1 %v15398_v53 }
 0x35f   :  { %14741 = vmatprep.subr.bf16.mxu1 %v15587_v30 }
 0x360   :  { %14726 = vmatpush3.bf16.msra.mxu0 %v15394_v11 }
 0x361   :  { %14727 = vmatprep.subr.bf16.mxu0 %v15395_v8 }
 0x362   :  { %14742 = vmatpush3.bf16.msra.mxu1 %v15400_v7 }
 0x363   :  { %14704 = vmatmul.mubr.msk.bf16.gmra.mxu0 %vm7351_vm2, %v15396_v29  ;;  %14743 = vmatprep.subr.bf16.mxu1 %v15587_v30 }
 0x364   :  { %14728 = vmatpush3.bf16.msra.mxu0 %v15395_v8  ;;  %14731 = vmatprep.mubr.msk.bf16.mxu0 %vm7351_vm2, %v13059_v25 }
 0x365   :  { %14729 = vmatprep.subr.bf16.mxu0 %v15397_v63 }
 0x366   :  { %14744 = vmatpush3.bf16.msra.mxu1 %v15402_v35 }
 0x367   :  { %14745 = vmatprep.subr.bf16.mxu1 %v15587_v30 }
 0x368   :  { %14730 = vmatpush3.bf16.msra.mxu0 %v15397_v63 }
 0x369   :  { %14751 = vmatprep.subr.bf16.mxu0 %v15587_v30 }
 0x36a   :  { %14746 = vmatpush3.bf16.msra.mxu1 %v15404_v59 }
 0x36b   :  { %14732 = vmatmul.mubr.msk.bf16.vlgmr.msra.gmra.mxu0 %vm7351_vm2, %v13060_v21  ;;  %14763 = vmatprep.subr.bf16.mxu1 %v15587_v30 }
 0x36c   :  { %14735 = vmatprep.mubr.msk.bf16.mxu0 %vm7351_vm2, %v13061_v61  ;;  %14752 = vmatpush3.bf16.msra.mxu0 %v15399_v3 }
 0x36d   :  { %14753 = vmatprep.subr.bf16.mxu0 %v15587_v30 }
 0x370   :  { %14754 = vmatpush3.bf16.msra.mxu0 %v15401_v48 }
 0x371   :  { %14755 = vmatprep.subr.bf16.mxu0 %v15587_v30 }
 0x373   :  { %14736 = vmatmul.mubr.msk.bf16.gmra.mxu0 %vm7351_vm2, %v13062_v9 }
 0x374   :  { %14759 = vmatprep.mubr.msk.bf16.mxu0 %vm15588_vm3, %v15587_v30  ;;  %14756 = vmatpush3.bf16.msra.mxu0 %v15403_v6 }
 0x375   :  { %14757 = vmatprep.subr.bf16.mxu0 %v15587_v30 }
 0x378   :  { %14758 = vmatpush3.bf16.msra.mxu0 %v15405_v38 }
 0x379   :  { %14775 = vmatprep.subr.bf16.mxu0 %v15587_v30 }
 0x3d9   :  { %v14621_v54 = vpop.f32.mrf.mxu1 }
 0x3db   :  { %v18882_v52 = vpop.f32.mrf.mxu1 }
 0x3dd   :  { %v14622_v44 = vpop.f32.mrf.mxu1 }
 0x3df   :  { %v18884_v57 = vpop.f32.mrf.mxu1 }
 0x3e4   :  { %v14605_v60 = vpop.f32.mrf.mxu0 }
 0x3e5   :  { %v7528_v46 = vadd.f32 %v14621_v54, %v14605_v60 }
 0x3e6   :  { %v14625_v16 = vpop.f32.mrf.mxu1  ;;  %v18886_v37 = vpop.f32.mrf.mxu0 }
 0x3e8   :  { %v18888_v20 = vpop.f32.mrf.mxu1  ;;  %v14606_v41 = vpop.f32.mrf.mxu0 }
 0x3e9   :  { %v7531_v28 = vadd.f32 %v14622_v44, %v14606_v41 }
 0x3ea   :  { %v14626_v45 = vpop.f32.mrf.mxu1  ;;  %v18890_v1 = vpop.f32.mrf.mxu0 }
 0x3ec   :  { %v18892_v11 = vpop.f32.mrf.mxu1 }
 0x3ee   :  { %v14653_v4 = vpop.f32.mrf.mxu1 }
 0x3ef   :  { %v14609_v56 = vpop.f32.mrf.mxu0 }
 0x3f0   :  { %v7544_v49 = vadd.f32 %v14625_v16, %v14609_v56  ;;  %v18894_v14 = vpop.f32.mrf.mxu1  ;;  %v7520_v56 = vadd.f32 %v18882_v52, %v18886_v37 }
 0x3f1   :  { %v18896_v8 = vpop.f32.mrf.mxu0 }
 0x3f2   :  { %v14654_v26 = vpop.f32.mrf.mxu1 }
 0x3f3   :  { %v14610_v23 = vpop.f32.mrf.mxu0 }
 0x3f4   :  { %v7547_v50 = vadd.f32 %v14626_v45, %v14610_v23  ;;  %v18898_v62 = vpop.f32.mrf.mxu1 }
 0x3f5   :  { %v18900_v58 = vpop.f32.mrf.mxu0 }
 0x3f6   :  { %v14657_v40 = vpop.f32.mrf.mxu1 }
 0x3f7   :  { %v14637_v29 = vpop.f32.mrf.mxu0 }
 0x3f8   :  { %v7730_v19 = vadd.f32 %v14637_v29, %v7528_v46  ;;  %v18902_v63 = vpop.f32.mrf.mxu1 }
 0x3f9   :  { %v7697_v47 = vpop.f32.mrf.mxu0 }
 0x3fa   :  { %v14658_v12 = vpop.f32.mrf.mxu1  ;;  %v7876_v25 = vadd.f32 %v14653_v4, %v7730_v19 }
 0x3fb   :  { %v14638_v39 = vpop.f32.mrf.mxu0 }
 0x3fc   :  { %v7731_v34 = vadd.f32 %v14638_v39, %v7531_v28  ;;  %v18904_v13 = vpop.f32.mrf.mxu1  ;;  %v7536_v39 = vadd.f32 %v18888_v20, %v18896_v8 }
 0x3fd   :  { %v7700_v36 = vpop.f32.mrf.mxu0 }
 0x3fe   :  { %v7877_v10 = vadd.f32 %v14654_v26, %v7731_v34 }
 0x3ff   :  { %v14685_v18 = vpop.f32.mrf.mxu1  ;;  %v14641_v5 = vpop.f32.mrf.mxu0 }
 0x400   :  { %v7734_v55 = vadd.f32 %v14641_v5, %v7544_v49 }
 0x401   :  { %v8287_v27 = vpop.f32.mrf.mxu1  ;;  %v7713_v2 = vpop.f32.mrf.mxu0 }
 0x402   :  { %v7880_v0 = vadd.f32 %v14657_v40, %v7734_v55  ;;  %v7728_v40 = vadd.f32 %v7697_v47, %v7520_v56  ;;  %v7732_v52 = vadd.f32 %v7713_v2, %v7536_v39 }
 0x403   :  { %v14686_v31 = vpop.f32.mrf.mxu1  ;;  %v14642_v33 = vpop.f32.mrf.mxu0 }
 0x404   :  { %v7735_v21 = vadd.f32 %v14642_v33, %v7547_v50  ;;  %v7523_v50 = vadd.f32 %v18884_v57, %v18890_v1  ;;  %v7539_v57 = vadd.f32 %v18892_v11, %v18900_v58  ;;  %v7878_v20 = vadd.f32 %v18902_v63, %v7732_v52  ;;  %v13071_v11 = vld [vmem:[%s19852_s7] ss:$0 sm:$0xff] }
 0x405   :  { %v8290_v32 = vpop.f32.mrf.mxu1  ;;  %v7716_v51 = vpop.f32.mrf.mxu0 }
 0x406   :  { %v7881_v15 = vadd.f32 %v14658_v12, %v7735_v21  ;;  %v7729_v12 = vadd.f32 %v7700_v36, %v7523_v50  ;;  %v7733_v21 = vadd.f32 %v7716_v51, %v7539_v57 }
 0x407   :  { %v14689_v61 = vpop.f32.mrf.mxu1  ;;  %v14669_v43 = vpop.f32.mrf.mxu0 }
 0x408   :  { %v8134_v17 = vadd.f32 %v14669_v43, %v7876_v25 }
 0x409   :  { %v18906_v22 = vpop.f32.mrf.mxu1  ;;  %v8101_v42 = vpop.f32.mrf.mxu0 }
 0x40a   :  { %v8320_v24 = vadd.f32 %v14685_v18, %v8134_v17  ;;  %v7874_v18 = vadd.f32 %v18894_v14, %v7728_v40 }
 0x40b   :  { %v14690_v9 = vpop.f32.mrf.mxu1  ;;  %v14670_v53 = vpop.f32.mrf.mxu0 }
 0x40c   :  { %v8135_v3 = vadd.f32 %v14670_v53, %v7877_v10  ;;  %v8132_v55 = vadd.f32 %v8101_v42, %v7874_v18 }
 0x40d   :  { %v18908_v7 = vpop.f32.mrf.mxu1  ;;  %v8104_v35 = vpop.f32.mrf.mxu0 }
 0x40e   :  { %v8321_v48 = vadd.f32 %v14686_v31, %v8135_v3 }
 0x410   :  { %v14717_v6 = vpop.f32.mrf.mxu1 }
 0x412   :  { %v8692_v54 = vpop.f32.mrf.mxu1 }
 0x413   :  { %v14673_v59 = vpop.f32.mrf.mxu0 }
 0x414   :  { %v8138_v38 = vadd.f32 %v14673_v59, %v7880_v0  ;;  %v14718_v41 = vpop.f32.mrf.mxu1  ;;  %v7875_v0 = vadd.f32 %v18898_v62, %v7729_v12 }
 0x415   :  { %v8117_v44 = vpop.f32.mrf.mxu0 }
 0x416   :  { %v8324_v60 = vadd.f32 %v14689_v61, %v8138_v38  ;;  %v8695_v26 = vpop.f32.mrf.mxu1  ;;  %v8133_v36 = vadd.f32 %v8104_v35, %v7875_v0  ;;  %v8136_v61 = vadd.f32 %v8117_v44, %v7878_v20  ;;  %v15406_v20 = vld [vmem:[%s19851_s8 + $0x58] sm:$0xff]  }
 0x417   :  { %v14674_v46 = vpop.f32.mrf.mxu0 }
 0x418   :  { %v8139_v16 = vadd.f32 %v14674_v46, %v7881_v15  ;;  %v8318_v15 = vadd.f32 %v8287_v27, %v8132_v55  ;;  %v8319_v42 = vadd.f32 %v8290_v32, %v8133_v36  ;;  %v8322_v63 = vadd.f32 %v18906_v22, %v8136_v61  ;;  %v15407_v61 = vld [vmem:[%s19851_s8 + $0x78] sm:$0xff]  }
 0x419   :  { %v8120_v28 = vpop.f32.mrf.mxu0 }
 0x41a   :  { %v8325_v45 = vadd.f32 %v14690_v9, %v8139_v16 }
 0x41b   :  { %v14701_v4 = vpop.f32.mrf.mxu0  ;;  %v14721_v34 = vpop.f32.mrf.mxu1 }
 0x41c   :  { %v8467_v49 = vadd.f32 %v14701_v4, %v8320_v24  ;;  %v7879_v24 = vadd.f32 %v18904_v13, %v7733_v21 }
 0x41d   :  { %v8434_v23 = vpop.f32.mrf.mxu0  ;;  %v8708_v1 = vpop.f32.mrf.mxu1 }
 0x41e   :  { %v8725_v29 = vadd.f32 %v14717_v6, %v8467_v49  ;;  %v8465_v17 = vadd.f32 %v8434_v23, %v8318_v15  ;;  %v8137_v53 = vadd.f32 %v8120_v28, %v7879_v24  ;;  %v15410_v24 = vld [vmem:[%s19851_s8 + $0x48] sm:$0xff]  }
 0x41f   :  { %v14702_v19 = vpop.f32.mrf.mxu0  ;;  %v14722_v2 = vpop.f32.mrf.mxu1 }
 0x420   :  { %v8468_v25 = vadd.f32 %v14702_v19, %v8321_v48  ;;  %v8723_v48 = vadd.f32 %v8692_v54, %v8465_v17  ;;  %v8323_v13 = vadd.f32 %v18908_v7, %v8137_v53 }
 0x421   :  { %v8437_v10 = vpop.f32.mrf.mxu0 }
 0x422   :  { %v8726_v5 = vadd.f32 %v14718_v41, %v8468_v25  ;;  %v8466_v58 = vadd.f32 %v8437_v10, %v8319_v42 }
 0x423   :  { %v14705_v37 = vpop.f32.mrf.mxu0 }
 0x424   :  { %v8471_v31 = vadd.f32 %v14705_v37, %v8324_v60  ;;  %v8724_v38 = vadd.f32 %v8695_v26, %v8466_v58  ;;  %v8711_v26 = vpop.f32.mrf.mxu1 }
 0x425   :  { %v8450_v47 = vpop.f32.mrf.mxu0 }
 0x426   :  { %v8729_v33 = vadd.f32 %v14721_v34, %v8471_v31  ;;  %v8469_v35 = vadd.f32 %v8450_v47, %v8322_v63  ;;  %v15412_v63 = vld [vmem:[%s19851_s8 + $0x40] sm:$0xff]  }
 0x427   :  { %v14706_v8 = vpop.f32.mrf.mxu0 }
 0x428   :  { %v8472_v14 = vadd.f32 %v14706_v8, %v8325_v45  ;;  %v8727_v4 = vadd.f32 %v8708_v1, %v8469_v35  ;;  %v15413_v35 = vld [vmem:[%s19851_s8 + $0x60] sm:$0xff]  }
 0x429   :  { %v8453_v43 = vpop.f32.mrf.mxu0 }
 0x42a   :  { %v8730_v62 = vadd.f32 %v14722_v2, %v8472_v14  ;;  %v8470_v16 = vadd.f32 %v8453_v43, %v8323_v13  ;;  %v15408_v43 = vld [vmem:[%s19851_s8 + $0x50] sm:$0xff]  }
 0x42b   :  { %v14733_v9 = vpop.f32.mrf.mxu0 }
 0x42c   :  { %v8911_v51 = vadd.f32 %v14733_v9, %v8725_v29  ;;  %v8728_v12 = vadd.f32 %v8711_v26, %v8470_v16 }
 0x42d   :  { %v8878_v27 = vpop.f32.mrf.mxu0 }
 0x42e   :  { %v8926_v3 = vadd.f32 %v13071_v11, %v8911_v51  ;;  %v8909_v59 = vadd.f32 %v8878_v27, %v8723_v48 }
 0x42f   :  { %v14734_v6 = vpop.f32.mrf.mxu0 }
 0x430   :  { %v8912_v32 = vadd.f32 %v14734_v6, %v8726_v5  ;;  %v8934_v41 = vmax.f32 %v8926_v3, 0.0  ;;  %v8924_v28 = vadd.f32 %v13071_v11, %v8909_v59 }
 0x431   :  { %v8881_v44 = vpop.f32.mrf.mxu0 }
 0x432   :  { %v8927_v60 = vadd.f32 %v13071_v11, %v8912_v32  ;;  %v8910_v46 = vadd.f32 %v8881_v44, %v8724_v38  ;;  %v8932_v7 = vmax.f32 %v8924_v28, 0.0  ;;  %v15414_v32 = vld [vmem:[%s19851_s8 + $0x98] sm:$0xff]  }
 0x433   :  { %v14737_v45 = vpop.f32.mrf.mxu0  ;;  %v15415_v44 = vld [vmem:[%s19851_s8 + $0xb8] sm:$0xff]  }
 0x434   :  { %v8935_v56 = vmax.f32 %v8927_v60, 0.0  ;;  %v8925_v22 = vadd.f32 %v13071_v11, %v8910_v46  ;;  %v8915_v49 = vadd.f32 %v14737_v45, %v8729_v33 }
 0x435   :  { %v8894_v23 = vpop.f32.mrf.mxu0 }
 0x436   :  { %v18927_v54 = vpack.c.bf16 %v8935_v56, %v8934_v41  ;;  %v8933_v50 = vmax.f32 %v8925_v22, 0.0  ;;  %v8930_v40 = vadd.f32 %v13071_v11, %v8915_v49  ;;  %v8913_v29 = vadd.f32 %v8894_v23, %v8727_v4  ;;  %v15416_v41 = vld [vmem:[%s19851_s8 + $0x90] sm:$0xff]   ;;  %v15418_v49 = vld [vmem:[%s19851_s8 + $0x88] sm:$0xff]  }
 0x437   :  { %v14738_v19 = vpop.f32.mrf.mxu0  ;;  %v15417_v56 = vld [vmem:[%s19851_s8 + $0xb0] sm:$0xff]   ;;  %v15419_v23 = vld [vmem:[%s19851_s8 + $0xa8] sm:$0xff]  }
 0x438   :  { %v8916_v25 = vadd.f32 %v14738_v19, %v8730_v62  ;;  %v18929_v34 = vpack.c.bf16 %v8933_v50, %v8932_v7  ;;  %v8928_v10 = vadd.f32 %v13071_v11, %v8913_v29  ;;  %v8938_v37 = vmax.f32 %v8930_v40, 0.0  ;;  %v15409_v62 = vld [vmem:[%s19851_s8 + $0x70] sm:$0xff]   ;;  %v15420_v40 = vld [vmem:[%s19851_s8 + $0x80] sm:$0xff]  }
 0x439   :  { %v8897_v39 = vpop.f32.mrf.mxu0  ;;  %v18965_v42 = vunpack.c.l.b16 %v18927_v54  ;;  %v15421_v19 = vld [vmem:[%s19851_s8 + $0xa0] sm:$0xff]  }
 0x43a   :  { %v8914_v18 = vadd.f32 %v8897_v39, %v8728_v12  ;;  %v8931_v5 = vadd.f32 %v13071_v11, %v8916_v25  ;;  %v18932_v0 = vunpack.c.l.b16 %v18929_v34  ;;  %v8936_v31 = vmax.f32 %v8928_v10, 0.0  ;;  %v15422_v25 = vld [vmem:[%s19851_s8 + $0xd8] sm:$0xff]  }
 0x43b   :  { %v10333_v51 = vrot.slane %v18965_v42, 1  ;;  %v10413_v60 = vrot.slane %v18965_v42, 2  ;;  %v10494_v4 = vrot.slane %v18965_v42, 3 }
 0x43c   :  { %v8929_v52 = vadd.f32 %v13071_v11, %v8914_v18  ;;  %v8939_v55 = vmax.f32 %v8931_v5, 0.0  ;;  %v8965_v33 = vrot.slane %v18932_v0, 1  ;;  %v15411_v11 = vld [vmem:[%s19851_s8 + $0x68] sm:$0xff]   ;;  %v9115_v27 = vrot.slane %v18932_v0, 2  ;;  %v15423_v18 = vld [vmem:[%s19851_s8 + $0xf8] sm:$0xff]  }
 0x43d   :  { %v9196_v59 = vrot.slane %v18932_v0, 3  ;;  %v9277_v29 = vrot.slane %v18932_v0, 4  ;;  %v9358_v12 = vrot.slane %v18932_v0, 5  ;;  %v10575_v5 = vrot.slane %v18965_v42, 4 }
 0x43e   :  { %v8937_v57 = vmax.f32 %v8929_v52, 0.0  ;;  %v18934_v1 = vpack.c.bf16 %v8939_v55, %v8938_v37  ;;  %v15424_v55 = vld [vmem:[%s19851_s8 + $0xd0] sm:$0xff]  }
 0x440   :  { %v18936_v47 = vpack.c.bf16 %v8937_v57, %v8936_v31  ;;  %v18960_v17 = vunpack.c.l.b16 %v18934_v1  ;;  %v10656_v57 = vrot.slane %v18965_v42, 5 }
 0x442   :  { %v18939_v36 = vunpack.c.l.b16 %v18936_v47  ;;  %v10253_v9 = vrot.slane %v18960_v17, 7  ;;  %v18995_v48 = vsel %vm8966_vm4, %v18960_v17, %v10333_v51  ;;  %v10414_v46 = vrot.slane %v18960_v17, 1  ;;  %v15431_v51 = vld [vmem:[%s19851_s8 + $0x138] sm:$0xff]  }
 0x443   :  { %v10495_v28 = vrot.slane %v18960_v17, 2  ;;  %v10576_v52 = vrot.slane %v18960_v17, 3 }
 0x444   :  { %v8967_v21 = vsel %vm8966_vm4, %v18939_v36, %v8965_v33  ;;  %v9036_v8 = vrot.slane %v18939_v36, 7  ;;  %v9116_v58 = vrot.slane %v18939_v36, 1  ;;  %v18986_v53 = vsel %vm8966_vm4, %v10253_v9, %v18965_v42 }
 0x445   :  { %v8968_v15 = vpack.c.b16 %v8967_v21, %v8967_v21  ;;  %v9197_v3 = vrot.slane %v18939_v36, 2  ;;  %v19022_v45 = vsel %vm8966_vm4, %v10414_v46, %v10413_v60  ;;  %v19034_v22 = vsel %vm8966_vm4, %v10495_v28, %v10494_v4  ;;  %v15425_v21 = vld [vmem:[%s19851_s8 + $0xf0] sm:$0xff]   ;;  %v15436_v60 = vld [vmem:[%s19851_s8 + $0x100] sm:$0xff]  }
 0x446   :  { %v9037_v14 = vsel %vm8966_vm4, %v9036_v8, %v18932_v0  ;;  %v9117_v6 = vsel %vm8966_vm4, %v9116_v58, %v9115_v27  ;;  %v9278_v50 = vrot.slane %v18939_v36, 3  ;;  %v9359_v26 = vrot.slane %v18939_v36, 4  ;;  %v15426_v8 = vld [vmem:[%s19851_s8 + $0xc8] sm:$0xff]  }
 0x447   :  { %14748 = vmatmul.mubr.msk.bf16.vlgmr.msra.gmra.mxu1 %vm7351_vm2, %v8968_v15  ;;  %v9038_v2 = vpack.c.b16 %v9037_v14, %v9037_v14  ;;  %v9198_v38 = vsel %vm8966_vm4, %v9197_v3, %v9196_v59  ;;  %v9118_v13 = vpack.c.b16 %v9117_v6, %v9117_v6  ;;  %v19076_v31 = vsel %vm8966_vm4, %v10576_v52, %v10575_v5  ;;  %v15427_v15 = vld [vmem:[%s19851_s8 + $0xe8] sm:$0xff]   ;;  %v15432_v3 = vld [vmem:[%s19851_s8 + $0x110] sm:$0xff]   ;;  %v15445_v5 = vld [vmem:[%s19851_s8 + $0x160] sm:$0xff]  }
 0x448   :  { %14764 = vmatpush3.bf16.msra.mxu1 %v15406_v20  ;;  %14771 = vmatprep.mubr.msk.bf16.mxu1 %vm15588_vm3, %v15587_v30  ;;  %v9199_v16 = vpack.c.b16 %v9198_v38, %v9198_v38  ;;  %v9279_v7 = vsel %vm8966_vm4, %v9278_v50, %v9277_v29  ;;  %v9360_v39 = vsel %vm8966_vm4, %v9359_v26, %v9358_v12  ;;  %v10657_v33 = vrot.slane %v18960_v17, 4  ;;  %v15433_v38 = vld [vmem:[%s19851_s8 + $0x130] sm:$0xff]   ;;  %v15443_v12 = vld [vmem:[%s19851_s8 + $0x168] sm:$0xff]  }
 0x449   :  { %14760 = vmatmul.mubr.msk.bf16.vlgmr.msra.gmra.mxu0 %vm7351_vm2, %v9038_v2  ;;  %14765 = vmatprep.subr.bf16.mxu1 %v15587_v30  ;;  %v9280_v10 = vpack.c.b16 %v9279_v7, %v9279_v7  ;;  %v9361_v37 = vpack.c.b16 %v9360_v39, %v9360_v39  ;;  %v9440_v14 = vrot.slane %v18939_v36, 5  ;;  %v9439_v2 = vrot.slane %v18932_v0, 6  ;;  %v15440_v50 = vld [vmem:[%s19851_s8 + $0x150] sm:$0xff]   ;;  %v15442_v7 = vld [vmem:[%s19851_s8 + $0x148] sm:$0xff]   ;;  %v15444_v39 = vld [vmem:[%s19851_s8 + $0x140] sm:$0xff]  }
 0x44a   :  { %14776 = vmatpush3.bf16.msra.mxu0 %v15407_v61  ;;  %14783 = vmatprep.mubr.msk.bf16.mxu0 %vm15588_vm3, %v15587_v30  ;;  %v19088_v20 = vsel %vm8966_vm4, %v10657_v33, %v10656_v57  ;;  %v15428_v61 = vld [vmem:[%s19851_s8 + $0xc0] sm:$0xff]   ;;  %v9520_v9 = vrot.slane %v18932_v0, 7  ;;  %v10738_v0 = vrot.slane %v18960_v17, 5  ;;  %v10818_v6 = vrot.slane %v18965_v42, 7  ;;  %v15441_v26 = vld [vmem:[%s19851_s8 + $0x170] sm:$0xff]  }
 0x44b   :  { %14777 = vmatprep.subr.bf16.mxu0 %v15587_v30  ;;  %v10819_v59 = vrot.slane %v18960_v17, 6  ;;  %v15434_v17 = vld [vmem:[%s19851_s8 + $0x108] sm:$0xff]   ;;  %v19165_v46 = vunpack.c.h.b16 %v18934_v1  ;;  %v19175_v4 = vunpack.c.h.b16 %v18927_v54  ;;  %v15438_v1 = vld [vmem:[%s19851_s8 + $0x158] sm:$0xff]  }
 0x44c   :  { %14766 = vmatpush3.bf16.msra.mxu1 %v15408_v43  ;;  %v9521_v43 = vrot.slane %v18939_v36, 6 }
 0x44d   :  { %14767 = vmatprep.subr.bf16.mxu1 %v15587_v30  ;;  %v10981_v29 = vrot.slane %v19175_v4, 1 }
 0x44e   :  { %14778 = vmatpush3.bf16.msra.mxu0 %v15409_v62  ;;  %v15429_v62 = vld [vmem:[%s19851_s8 + $0xe0] sm:$0xff]   ;;  %v9522_v36 = vsel %vm8966_vm4, %v9521_v43, %v9520_v9  ;;  %v15450_v9 = vld [vmem:[%s19851_s8 + $0x188] sm:$0xff]  }
 0x44f   :  { %14779 = vmatprep.subr.bf16.mxu0 %v15587_v30  ;;  %v9523_v27 = vpack.c.b16 %v9522_v36, %v9522_v36  ;;  %v15451_v36 = vld [vmem:[%s19851_s8 + $0x1a8] sm:$0xff]  }
 0x450   :  { %14768 = vmatpush3.bf16.msra.mxu1 %v15410_v24  ;;  %v9441_v24 = vsel %vm8966_vm4, %v9440_v14, %v9439_v2  ;;  %v11061_v14 = vrot.slane %v19175_v4, 2  ;;  %v15449_v2 = vld [vmem:[%s19851_s8 + $0x1b0] sm:$0xff]  }
 0x451   :  { %14769 = vmatprep.subr.bf16.mxu1 %v15587_v30  ;;  %v9442_v58 = vpack.c.b16 %v9441_v24, %v9441_v24  ;;  %v11143_v24 = vrot.slane %v19165_v46, 2 }
 0x452   :  { %14780 = vmatpush3.bf16.msra.mxu0 %v15411_v11  ;;  %v15430_v11 = vld [vmem:[%s19851_s8 + $0x118] sm:$0xff]  }
 0x453   :  { %14781 = vmatprep.subr.bf16.mxu0 %v15587_v30 }
 0x454   :  { %14770 = vmatpush3.bf16.msra.mxu1 %v15412_v63  ;;  %v10737_v63 = vrot.slane %v18965_v42, 6  ;;  %v15435_v42 = vld [vmem:[%s19851_s8 + $0x128] sm:$0xff]  }
 0x455   :  { %14787 = vmatprep.subr.bf16.mxu1 %v15587_v30 }
 0x456   :  { %14782 = vmatpush3.bf16.msra.mxu0 %v15413_v35  ;;  %v19130_v35 = vsel %vm8966_vm4, %v10738_v0, %v10737_v63 }
 0x457   :  { %14772 = vmatmul.mubr.msk.bf16.vlgmr.msra.gmra.mxu1 %vm7351_vm2, %v9118_v13  ;;  %14799 = vmatprep.subr.bf16.mxu0 %v15587_v30  ;;  %v19145_v13 = vsel %vm8966_vm4, %v10819_v59, %v10818_v6  ;;  %v15454_v59 = vld [vmem:[%s19851_s8 + $0x1d8] sm:$0xff]  }
 0x458   :  { %14788 = vmatpush3.bf16.msra.mxu1 %v15414_v32  ;;  %14795 = vmatprep.mubr.msk.bf16.mxu1 %vm15588_vm3, %v15587_v30  ;;  %v19137_v32 = vunpack.c.h.b16 %v18936_v47  ;;  %v19153_v47 = vunpack.c.h.b16 %v18929_v34  ;;  %v15437_v34 = vld [vmem:[%s19851_s8 + $0x120] sm:$0xff]  }
 0x459   :  { %14784 = vmatmul.mubr.msk.bf16.vlgmr.msra.gmra.mxu0 %vm7351_vm2, %v9199_v16  ;;  %14789 = vmatprep.subr.bf16.mxu1 %v15587_v30 }
 0x45a   :  { %14800 = vmatpush3.bf16.msra.mxu0 %v15415_v44  ;;  %14807 = vmatprep.mubr.msk.bf16.mxu0 %vm15588_vm3, %v15587_v30  ;;  %v9603_v44 = vrot.slane %v19137_v32, 7  ;;  %v9925_v63 = vrot.slane %v19153_v47, 4  ;;  %v10007_v0 = vrot.slane %v19137_v32, 4  ;;  %v10006_v6 = vrot.slane %v19153_v47, 5 }
 0x45b   :  { %14801 = vmatprep.subr.bf16.mxu0 %v15587_v30 }
 0x45c   :  { %14790 = vmatpush3.bf16.msra.mxu1 %v15416_v41  ;;  %v9604_v16 = vsel %vm8966_vm4, %v9603_v44, %v19153_v47  ;;  %v9683_v41 = vrot.slane %v19153_v47, 1 }
 0x45d   :  { %14791 = vmatprep.subr.bf16.mxu1 %v15587_v30 }
 0x45e   :  { %14802 = vmatpush3.bf16.msra.mxu0 %v15417_v56  ;;  %v9684_v28 = vsel %vm8966_vm4, %v19137_v32, %v9683_v41  ;;  %v9605_v56 = vpack.c.b16 %v9604_v16, %v9604_v16  ;;  %v11224_v16 = vrot.slane %v19165_v46, 3  ;;  %v15457_v41 = vld [vmem:[%s19851_s8 + $0x1f0] sm:$0xff]  }
 0x45f   :  { %14803 = vmatprep.subr.bf16.mxu0 %v15587_v30  ;;  %v9685_v54 = vpack.c.b16 %v9684_v28, %v9684_v28  ;;  %v11304_v28 = vrot.slane %v19175_v4, 5 }
 0x460   :  { %14792 = vmatpush3.bf16.msra.mxu1 %v15418_v49  ;;  %v15439_v49 = vld [vmem:[%s19851_s8 + $0x178] sm:$0xff]  }
 0x461   :  { %14793 = vmatprep.subr.bf16.mxu1 %v15587_v30 }
 0x462   :  { %14804 = vmatpush3.bf16.msra.mxu0 %v15419_v23  ;;  %v10901_v23 = vrot.slane %v19165_v46, 7 }
 0x463   :  { %14805 = vmatprep.subr.bf16.mxu0 %v15587_v30 }
 0x464   :  { %14794 = vmatpush3.bf16.msra.mxu1 %v15420_v40  ;;  %v19196_v40 = vsel %vm8966_vm4, %v10901_v23, %v19175_v4 }
 0x465   :  { %14811 = vmatprep.subr.bf16.mxu1 %v15587_v30 }
 0x466   :  { %14806 = vmatpush3.bf16.msra.mxu0 %v15421_v19  ;;  %v19208_v19 = vsel %vm8966_vm4, %v19165_v46, %v10981_v29  ;;  %v10169_v29 = vrot.slane %v19137_v32, 6 }
 0x467   :  { %14796 = vmatmul.mubr.msk.bf16.vlgmr.msra.gmra.mxu1 %vm7351_vm2, %v9280_v10  ;;  %14823 = vmatprep.subr.bf16.mxu0 %v15587_v30  ;;  %v9763_v10 = vrot.slane %v19153_v47, 2 }
 0x468   :  { %14812 = vmatpush3.bf16.msra.mxu1 %v15422_v25  ;;  %14819 = vmatprep.mubr.msk.bf16.mxu1 %vm15588_vm3, %v15587_v30  ;;  %v9764_v25 = vrot.slane %v19137_v32, 1 }
 0x469   :  { %14808 = vmatmul.mubr.msk.bf16.vlgmr.msra.gmra.mxu0 %vm7351_vm2, %v9361_v37  ;;  %14813 = vmatprep.subr.bf16.mxu1 %v15587_v30  ;;  %v9844_v37 = vrot.slane %v19153_v47, 3 }
 0x46a   :  { %14824 = vmatpush3.bf16.msra.mxu0 %v15423_v18  ;;  %14831 = vmatprep.mubr.msk.bf16.mxu0 %vm15588_vm3, %v15587_v30  ;;  %v9845_v18 = vrot.slane %v19137_v32, 2  ;;  %v9765_v52 = vsel %vm8966_vm4, %v9764_v25, %v9763_v10  ;;  %v15461_v25 = vld [vmem:[%s19851_s8 + $0x1e0] sm:$0xff]   ;;  %v15462_v10 = vld [vmem:[%s19851_s8 + $0x218] sm:$0xff]  }
 0x46b   :  { %14825 = vmatprep.subr.bf16.mxu0 %v15587_v30  ;;  %v9766_v33 = vpack.c.b16 %v9765_v52, %v9765_v52  ;;  %v11467_v52 = vrot.slane %v19165_v46, 6 }
 0x46c   :  { %14814 = vmatpush3.bf16.msra.mxu1 %v15424_v55  ;;  %v15446_v55 = vld [vmem:[%s19851_s8 + $0x198] sm:$0xff]   ;;  %v9846_v57 = vsel %vm8966_vm4, %v9845_v18, %v9844_v37  ;;  %v11385_v18 = vrot.slane %v19175_v4, 6 }
 0x46d   :  { %14815 = vmatprep.subr.bf16.mxu1 %v15587_v30 }
 0x46e   :  { %14826 = vmatpush3.bf16.msra.mxu0 %v15425_v21  ;;  %v15447_v21 = vld [vmem:[%s19851_s8 + $0x1b8] sm:$0xff]  }
 0x46f   :  { %14827 = vmatprep.subr.bf16.mxu0 %v15587_v30 }
 0x470   :  { %14816 = vmatpush3.bf16.msra.mxu1 %v15426_v8  ;;  %v9847_v8 = vpack.c.b16 %v9846_v57, %v9846_v57 }
 0x471   :  { %14817 = vmatprep.subr.bf16.mxu1 %v15587_v30 }
 0x472   :  { %14828 = vmatpush3.bf16.msra.mxu0 %v15427_v15  ;;  %v15448_v15 = vld [vmem:[%s19851_s8 + $0x190] sm:$0xff]  }
 0x473   :  { %14829 = vmatprep.subr.bf16.mxu0 %v15587_v30 }
 0x474   :  { %14818 = vmatpush3.bf16.msra.mxu1 %v15428_v61  ;;  %v11062_v61 = vrot.slane %v19165_v46, 1 }
 0x475   :  { %14835 = vmatprep.subr.bf16.mxu1 %v15587_v30 }
 0x476   :  { %14830 = vmatpush3.bf16.msra.mxu0 %v15429_v62  ;;  %v19257_v43 = vsel %vm8966_vm4, %v11062_v61, %v11061_v14  ;;  %v11142_v62 = vrot.slane %v19175_v4, 3  ;;  %v15468_v14 = vld [vmem:[%s19851_s8 + $0x200] sm:$0xff]  }
 0x477   :  { %14820 = vmatmul.mubr.msk.bf16.vlgmr.msra.gmra.mxu1 %vm7351_vm2, %v9442_v58  ;;  %14847 = vmatprep.subr.bf16.mxu0 %v15587_v30  ;;  %v9926_v58 = vrot.slane %v19137_v32, 3  ;;  %v15469_v61 = vld [vmem:[%s19851_s8 + $0x220] sm:$0xff]  }
 0x478   :  { %14836 = vmatpush3.bf16.msra.mxu1 %v15430_v11  ;;  %14843 = vmatprep.mubr.msk.bf16.mxu1 %vm15588_vm3, %v15587_v30  ;;  %v19266_v11 = vsel %vm8966_vm4, %v11143_v24, %v11142_v62  ;;  %v10255_v62 = vpack.c.b16 %v18986_v53, %v18986_v53  ;;  %v15471_v24 = vld [vmem:[%s19851_s8 + $0x278] sm:$0xff]   ;;  %v15473_v53 = vld [vmem:[%s19851_s8 + $0x270] sm:$0xff]  }
 0x479   :  { %14832 = vmatmul.mubr.msk.bf16.vlgmr.msra.gmra.mxu0 %vm7351_vm2, %v9523_v27  ;;  %14837 = vmatprep.subr.bf16.mxu1 %v15587_v30  ;;  %v15453_v27 = vld [vmem:[%s19851_s8 + $0x1a0] sm:$0xff]  }
 0x47a   :  { %14848 = vmatpush3.bf16.msra.mxu0 %v15431_v51  ;;  %14855 = vmatprep.mubr.msk.bf16.mxu0 %vm15588_vm3, %v15587_v30  ;;  %v15452_v51 = vld [vmem:[%s19851_s8 + $0x180] sm:$0xff]  }
 0x47b   :  { %14849 = vmatprep.subr.bf16.mxu0 %v15587_v30 }
 0x47c   :  { %14838 = vmatpush3.bf16.msra.mxu1 %v15432_v3  ;;  %v9927_v3 = vsel %vm8966_vm4, %v9926_v58, %v9925_v63  ;;  %v15475_v58 = vld [vmem:[%s19851_s8 + $0x268] sm:$0xff]   ;;  %v15477_v63 = vld [vmem:[%s19851_s8 + $0x260] sm:$0xff]  }
 0x47d   :  { %14839 = vmatprep.subr.bf16.mxu1 %v15587_v30 }
 0x47e   :  { %14850 = vmatpush3.bf16.msra.mxu0 %v15433_v38  ;;  %v10008_v38 = vsel %vm8966_vm4, %v10007_v0, %v10006_v6  ;;  %v15478_v0 = vld [vmem:[%s19851_s8 + $0x298] sm:$0xff]   ;;  %v10497_v6 = vpack.c.b16 %v19034_v22, %v19034_v22  ;;  %v15482_v22 = vld [vmem:[%s19851_s8 + $0x288] sm:$0xff]  }
 0x47f   :  { %14851 = vmatprep.subr.bf16.mxu0 %v15587_v30  ;;  %v10009_v44 = vpack.c.b16 %v10008_v38, %v10008_v38  ;;  %v15483_v38 = vld [vmem:[%s19851_s8 + $0x2a8] sm:$0xff]  }
 0x480   :  { %14840 = vmatpush3.bf16.msra.mxu1 %v15434_v17  ;;  %v9928_v17 = vpack.c.b16 %v9927_v3, %v9927_v3  ;;  %v15479_v3 = vld [vmem:[%s19851_s8 + $0x2b8] sm:$0xff]  }
 0x481   :  { %14841 = vmatprep.subr.bf16.mxu1 %v15587_v30 }
 0x482   :  { %14852 = vmatpush3.bf16.msra.mxu0 %v15435_v42  ;;  %v15455_v42 = vld [vmem:[%s19851_s8 + $0x1f8] sm:$0xff]  }
 0x483   :  { %14853 = vmatprep.subr.bf16.mxu0 %v15587_v30 }
 0x484   :  { %14842 = vmatpush3.bf16.msra.mxu1 %v15436_v60  ;;  %v15456_v60 = vld [vmem:[%s19851_s8 + $0x1d0] sm:$0xff]  }
 0x485   :  { %14859 = vmatprep.subr.bf16.mxu1 %v15587_v30 }
 0x486   :  { %14854 = vmatpush3.bf16.msra.mxu0 %v15437_v34  ;;  %v11223_v34 = vrot.slane %v19175_v4, 4 }
 0x487   :  { %14844 = vmatmul.mubr.msk.bf16.vlgmr.msra.gmra.mxu1 %vm7351_vm2, %v9605_v56  ;;  %14871 = vmatprep.subr.bf16.mxu0 %v15587_v30  ;;  %v11305_v56 = vrot.slane %v19165_v46, 4 }
 0x488   :  { %14860 = vmatpush3.bf16.msra.mxu1 %v15438_v1  ;;  %14867 = vmatprep.mubr.msk.bf16.mxu1 %vm15588_vm3, %v15587_v30  ;;  %v19311_v1 = vsel %vm8966_vm4, %v11224_v16, %v11223_v34  ;;  %v15487_v34 = vld [vmem:[%s19851_s8 + $0x2f8] sm:$0xff]   ;;  %v10659_v16 = vpack.c.b16 %v19088_v20, %v19088_v20  ;;  %v15490_v20 = vld [vmem:[%s19851_s8 + $0x2c8] sm:$0xff]  }
 0x489   :  { %14856 = vmatmul.mubr.msk.bf16.vlgmr.msra.gmra.mxu0 %vm7351_vm2, %v9685_v54  ;;  %14861 = vmatprep.subr.bf16.mxu1 %v15587_v30  ;;  %v19320_v23 = vsel %vm8966_vm4, %v11305_v56, %v11304_v28  ;;  %v15459_v54 = vld [vmem:[%s19851_s8 + $0x1e8] sm:$0xff]   ;;  %v15492_v56 = vld [vmem:[%s19851_s8 + $0x2c0] sm:$0xff]  }
 0x48a   :  { %14872 = vmatpush3.bf16.msra.mxu0 %v15439_v49  ;;  %14879 = vmatprep.mubr.msk.bf16.mxu0 %vm15588_vm3, %v15587_v30  ;;  %v15458_v49 = vld [vmem:[%s19851_s8 + $0x1c8] sm:$0xff]  }
 0x48b   :  { %14873 = vmatprep.subr.bf16.mxu0 %v15587_v30  ;;  %v15491_v28 = vld [vmem:[%s19851_s8 + $0x2e8] sm:$0xff]  }
 0x48c   :  { %14862 = vmatpush3.bf16.msra.mxu1 %v15440_v50  ;;  %v10088_v50 = vrot.slane %v19137_v32, 5 }
 0x48d   :  { %14863 = vmatprep.subr.bf16.mxu1 %v15587_v30 }
 0x48e   :  { %14874 = vmatpush3.bf16.msra.mxu0 %v15441_v26  ;;  %v15460_v26 = vld [vmem:[%s19851_s8 + $0x1c0] sm:$0xff]  }
 0x48f   :  { %14875 = vmatprep.subr.bf16.mxu0 %v15587_v30 }
 0x490   :  { %14864 = vmatpush3.bf16.msra.mxu1 %v15442_v7  ;;  %v10087_v7 = vrot.slane %v19153_v47, 6 }
 0x491   :  { %14865 = vmatprep.subr.bf16.mxu1 %v15587_v30 }
 0x492   :  { %14876 = vmatpush3.bf16.msra.mxu0 %v15443_v12  ;;  %v10168_v12 = vrot.slane %v19153_v47, 7  ;;  %v11386_v47 = vrot.slane %v19165_v46, 5  ;;  %v15464_v46 = vld [vmem:[%s19851_s8 + $0x210] sm:$0xff]  }
 0x493   :  { %14877 = vmatprep.subr.bf16.mxu0 %v15587_v30 }
 0x494   :  { %14866 = vmatpush3.bf16.msra.mxu1 %v15444_v39  ;;  %v10089_v39 = vsel %vm8966_vm4, %v10088_v50, %v10087_v7  ;;  %v10170_v32 = vsel %vm8966_vm4, %v10169_v29, %v10168_v12  ;;  %v19353_v57 = vsel %vm8966_vm4, %v11386_v47, %v11385_v18  ;;  %v10740_v50 = vpack.c.b16 %v19130_v35, %v19130_v35  ;;  %v15495_v29 = vld [vmem:[%s19851_s8 + $0x338] sm:$0xff]   ;;  %v15496_v7 = vld [vmem:[%s19851_s8 + $0x310] sm:$0xff]   ;;  %v15499_v12 = vld [vmem:[%s19851_s8 + $0x328] sm:$0xff]  }
 0x495   :  { %14883 = vmatprep.subr.bf16.mxu1 %v15587_v30  ;;  %v10090_v37 = vpack.c.b16 %v10089_v39, %v10089_v39  ;;  %v15497_v35 = vld [vmem:[%s19851_s8 + $0x330] sm:$0xff]   ;;  %v15501_v39 = vld [vmem:[%s19851_s8 + $0x320] sm:$0xff]   ;;  %v15503_v18 = vld [vmem:[%s19851_s8 + $0x378] sm:$0xff]  }
 0x496   :  { %14878 = vmatpush3.bf16.msra.mxu0 %v15445_v5  ;;  %v11466_v5 = vrot.slane %v19175_v4, 7  ;;  %v15465_v4 = vld [vmem:[%s19851_s8 + $0x230] sm:$0xff]  }
 0x497   :  { %14868 = vmatmul.mubr.msk.bf16.vlgmr.msra.gmra.mxu1 %vm7351_vm2, %v9766_v33  ;;  %14895 = vmatprep.subr.bf16.mxu0 %v15587_v30 }
 0x498   :  { %14884 = vmatpush3.bf16.msra.mxu1 %v15446_v55  ;;  %14891 = vmatprep.mubr.msk.bf16.mxu1 %vm15588_vm3, %v15587_v30  ;;  %v15463_v55 = vld [vmem:[%s19851_s8 + $0x238] sm:$0xff]   ;;  %v19356_v33 = vsel %vm8966_vm4, %v11467_v52, %v11466_v5  ;;  %v10983_v5 = vpack.c.b16 %v19208_v19, %v19208_v19  ;;  %v15505_v19 = vld [vmem:[%s19851_s8 + $0x370] sm:$0xff]  }
 0x499   :  { %14880 = vmatmul.mubr.msk.bf16.vlgmr.msra.gmra.mxu0 %vm7351_vm2, %v9847_v8  ;;  %14885 = vmatprep.subr.bf16.mxu1 %v15587_v30  ;;  %v15466_v8 = vld [vmem:[%s19851_s8 + $0x208] sm:$0xff]  }
 0x49a   :  { %14896 = vmatpush3.bf16.msra.mxu0 %v15447_v21  ;;  %14903 = vmatprep.mubr.msk.bf16.mxu0 %vm15588_vm3, %v15587_v30  ;;  %v10171_v21 = vpack.c.b16 %v10170_v32, %v10170_v32  ;;  %v15502_v32 = vld [vmem:[%s19851_s8 + $0x358] sm:$0xff]  }
 0x49b   :  { %14897 = vmatprep.subr.bf16.mxu0 %v15587_v30 }
 0x49c   :  { %14886 = vmatpush3.bf16.msra.mxu1 %v15448_v15  ;;  %v15467_v15 = vld [vmem:[%s19851_s8 + $0x228] sm:$0xff]  }
 0x49d   :  { %14887 = vmatprep.subr.bf16.mxu1 %v15587_v30 }
 0x49e   :  { %14898 = vmatpush3.bf16.msra.mxu0 %v15449_v2  ;;  %v15470_v2 = vld [vmem:[%s19851_s8 + $0x258] sm:$0xff]  }
 0x49f   :  { %14899 = vmatprep.subr.bf16.mxu0 %v15587_v30 }
 0x4a0   :  { %14888 = vmatpush3.bf16.msra.mxu1 %v15450_v9  ;;  %v10335_v9 = vpack.c.b16 %v18995_v48, %v18995_v48  ;;  %v15474_v48 = vld [vmem:[%s19851_s8 + $0x248] sm:$0xff]  }
 0x4a1   :  { %14889 = vmatprep.subr.bf16.mxu1 %v15587_v30 }
 0x4a2   :  { %14900 = vmatpush3.bf16.msra.mxu0 %v15451_v36  ;;  %v15472_v36 = vld [vmem:[%s19851_s8 + $0x250] sm:$0xff]  }
 0x4a3   :  { %14901 = vmatprep.subr.bf16.mxu0 %v15587_v30 }
 0x4a4   :  { %14890 = vmatpush3.bf16.msra.mxu1 %v15452_v51  ;;  %v15476_v51 = vld [vmem:[%s19851_s8 + $0x240] sm:$0xff]  }
 0x4a5   :  { %14907 = vmatprep.subr.bf16.mxu1 %v15587_v30 }
 0x4a6   :  { %14902 = vmatpush3.bf16.msra.mxu0 %v15453_v27  ;;  %v10416_v27 = vpack.c.b16 %v19022_v45, %v19022_v45  ;;  %v15481_v45 = vld [vmem:[%s19851_s8 + $0x2b0] sm:$0xff]  }
 0x4a7   :  { %14892 = vmatmul.mubr.msk.bf16.vlgmr.msra.gmra.mxu1 %vm7351_vm2, %v9928_v17  ;;  %14919 = vmatprep.subr.bf16.mxu0 %v15587_v30  ;;  %v15484_v17 = vld [vmem:[%s19851_s8 + $0x280] sm:$0xff]  }
 0x4a8   :  { %14908 = vmatpush3.bf16.msra.mxu1 %v15454_v59  ;;  %14915 = vmatprep.mubr.msk.bf16.mxu1 %vm15588_vm3, %v15587_v30  ;;  %v15480_v59 = vld [vmem:[%s19851_s8 + $0x290] sm:$0xff]  }
 0x4a9   :  { %14904 = vmatmul.mubr.msk.bf16.vlgmr.msra.gmra.mxu0 %vm7351_vm2, %v10009_v44  ;;  %14909 = vmatprep.subr.bf16.mxu1 %v15587_v30  ;;  %v15486_v44 = vld [vmem:[%s19851_s8 + $0x2d8] sm:$0xff]  }
 0x4aa   :  { %14920 = vmatpush3.bf16.msra.mxu0 %v15455_v42  ;;  %14927 = vmatprep.mubr.msk.bf16.mxu0 %vm15588_vm3, %v15587_v30  ;;  %v15485_v42 = vld [vmem:[%s19851_s8 + $0x2a0] sm:$0xff]  }
 0x4ab   :  { %14921 = vmatprep.subr.bf16.mxu0 %v15587_v30 }
 0x4ac   :  { %14910 = vmatpush3.bf16.msra.mxu1 %v15456_v60  ;;  %v10578_v60 = vpack.c.b16 %v19076_v31, %v19076_v31  ;;  %v15489_v31 = vld [vmem:[%s19851_s8 + $0x2f0] sm:$0xff]  }
 0x4ad   :  { %14911 = vmatprep.subr.bf16.mxu1 %v15587_v30 }
 0x4ae   :  { %14922 = vmatpush3.bf16.msra.mxu0 %v15457_v41  ;;  %v15488_v41 = vld [vmem:[%s19851_s8 + $0x2d0] sm:$0xff]  }
 0x4af   :  { %14923 = vmatprep.subr.bf16.mxu0 %v15587_v30 }
 0x4b0   :  { %14912 = vmatpush3.bf16.msra.mxu1 %v15458_v49  ;;  %v15493_v49 = vld [vmem:[%s19851_s8 + $0x2e0] sm:$0xff]  }
 0x4b1   :  { %14913 = vmatprep.subr.bf16.mxu1 %v15587_v30 }
 0x4b2   :  { %14924 = vmatpush3.bf16.msra.mxu0 %v15459_v54  ;;  %v15494_v54 = vld [vmem:[%s19851_s8 + $0x318] sm:$0xff]  }
 0x4b3   :  { %14925 = vmatprep.subr.bf16.mxu0 %v15587_v30 }
 0x4b4   :  { %14914 = vmatpush3.bf16.msra.mxu1 %v15460_v26  ;;  %v10821_v26 = vpack.c.b16 %v19145_v13, %v19145_v13  ;;  %v15498_v13 = vld [vmem:[%s19851_s8 + $0x308] sm:$0xff]  }
 0x4b5   :  { %14931 = vmatprep.subr.bf16.mxu1 %v15587_v30 }
 0x4b6   :  { %14926 = vmatpush3.bf16.msra.mxu0 %v15461_v25  ;;  %v15500_v25 = vld [vmem:[%s19851_s8 + $0x300] sm:$0xff]  }
 0x4b7   :  { %14916 = vmatmul.mubr.msk.bf16.vlgmr.msra.gmra.mxu1 %vm7351_vm2, %v10090_v37  ;;  %14943 = vmatprep.subr.bf16.mxu0 %v15587_v30 }
 0x4b8   :  { %14932 = vmatpush3.bf16.msra.mxu1 %v15462_v10  ;;  %14939 = vmatprep.mubr.msk.bf16.mxu1 %vm15588_vm3, %v15587_v30  ;;  %v10903_v10 = vpack.c.b16 %v19196_v40, %v19196_v40  ;;  %v15504_v40 = vld [vmem:[%s19851_s8 + $0x350] sm:$0xff]  }
 0x4b9   :  { %14928 = vmatmul.mubr.msk.bf16.vlgmr.msra.gmra.mxu0 %vm7351_vm2, %v10171_v21  ;;  %14933 = vmatprep.subr.bf16.mxu1 %v15587_v30 }
 0x4ba   :  { %14944 = vmatpush3.bf16.msra.mxu0 %v15463_v55  ;;  %14951 = vmatprep.mubr.msk.bf16.mxu0 %vm15588_vm3, %v15587_v30 }
 0x4bb   :  { %14945 = vmatprep.subr.bf16.mxu0 %v15587_v30 }
 0x4bc   :  { %14934 = vmatpush3.bf16.msra.mxu1 %v15464_v46 }
 0x4bd   :  { %14935 = vmatprep.subr.bf16.mxu1 %v15587_v30 }
 0x4be   :  { %14946 = vmatpush3.bf16.msra.mxu0 %v15465_v4  ;;  %v15506_v4 = vld [vmem:[%s19851_s8 + $0x348] sm:$0xff]  }
 0x4bf   :  { %14947 = vmatprep.subr.bf16.mxu0 %v15587_v30 }
 0x4c0   :  { %14936 = vmatpush3.bf16.msra.mxu1 %v15466_v8 }
 0x4c1   :  { %14937 = vmatprep.subr.bf16.mxu1 %v15587_v30 }
 0x4c2   :  { %14948 = vmatpush3.bf16.msra.mxu0 %v15467_v15 }
 0x4c3   :  { %14949 = vmatprep.subr.bf16.mxu0 %v15587_v30 }
 0x4c4   :  { %14938 = vmatpush3.bf16.msra.mxu1 %v15468_v14  ;;  %v15507_v14 = vld [vmem:[%s19851_s8 + $0x368] sm:$0xff]  }
 0x4c5   :  { %14955 = vmatprep.subr.bf16.mxu1 %v15587_v30 }
 0x4c6   :  { %14950 = vmatpush3.bf16.msra.mxu0 %v15469_v61 }
 0x4c7   :  { %14940 = vmatmul.mubr.msk.bf16.vlgmr.msra.gmra.mxu1 %vm7351_vm2, %v10255_v62  ;;  %14967 = vmatprep.subr.bf16.mxu0 %v15587_v30  ;;  %v15509_v62 = vld [vmem:[%s19851_s8 + $0x360] sm:$0xff]  }
 0x4c8   :  { %14956 = vmatpush3.bf16.msra.mxu1 %v15470_v2  ;;  %14963 = vmatprep.mubr.msk.bf16.mxu1 %vm15588_vm3, %v15587_v30  ;;  %v15508_v2 = vld [vmem:[%s19851_s8 + $0x340] sm:$0xff]  }
 0x4c9   :  { %14952 = vmatmul.mubr.msk.bf16.vlgmr.msra.gmra.mxu0 %vm7351_vm2, %v10335_v9  ;;  %14957 = vmatprep.subr.bf16.mxu1 %v15587_v30  ;;  %v11064_v9 = vpack.c.b16 %v19257_v43, %v19257_v43  ;;  %v15512_v43 = vld [vmem:[%s19851_s8 + $0x390] sm:$0xff]  }
 0x4ca   :  { %14968 = vmatpush3.bf16.msra.mxu0 %v15471_v24  ;;  %14975 = vmatprep.mubr.msk.bf16.mxu0 %vm15588_vm3, %v15587_v30  ;;  %v15510_v24 = vld [vmem:[%s19851_s8 + $0x398] sm:$0xff]  }
 0x4cb   :  { %14969 = vmatprep.subr.bf16.mxu0 %v15587_v30 }
 0x4cc   :  { %14958 = vmatpush3.bf16.msra.mxu1 %v15472_v36  ;;  %v15511_v36 = vld [vmem:[%s19851_s8 + $0x3b8] sm:$0xff]  }
 0x4cd   :  { %14959 = vmatprep.subr.bf16.mxu1 %v15587_v30 }
 0x4ce   :  { %14970 = vmatpush3.bf16.msra.mxu0 %v15473_v53 }
 0x4cf   :  { %14971 = vmatprep.subr.bf16.mxu0 %v15587_v30 }
 0x4d0   :  { %14960 = vmatpush3.bf16.msra.mxu1 %v15474_v48  ;;  %v11145_v48 = vpack.c.b16 %v19266_v11, %v19266_v11  ;;  %v15513_v11 = vld [vmem:[%s19851_s8 + $0x3b0] sm:$0xff]  }
 0x4d1   :  { %14961 = vmatprep.subr.bf16.mxu1 %v15587_v30 }
 0x4d2   :  { %14972 = vmatpush3.bf16.msra.mxu0 %v15475_v58 }
 0x4d3   :  { %14973 = vmatprep.subr.bf16.mxu0 %v15587_v30 }
 0x4d4   :  { %14962 = vmatpush3.bf16.msra.mxu1 %v15476_v51 }
 0x4d5   :  { %14979 = vmatprep.subr.bf16.mxu1 %v15587_v30 }
 0x4d6   :  { %14974 = vmatpush3.bf16.msra.mxu0 %v15477_v63 }
 0x4d7   :  { %14964 = vmatmul.mubr.msk.bf16.vlgmr.msra.gmra.mxu1 %vm7351_vm2, %v10416_v27  ;;  %14991 = vmatprep.subr.bf16.mxu0 %v15587_v30 }
 0x4d8   :  { %14980 = vmatpush3.bf16.msra.mxu1 %v15478_v0  ;;  %14987 = vmatprep.mubr.msk.bf16.mxu1 %vm15588_vm3, %v15587_v30 }
 0x4d9   :  { %14976 = vmatmul.mubr.msk.bf16.vlgmr.msra.gmra.mxu0 %vm7351_vm2, %v10497_v6  ;;  %14981 = vmatprep.subr.bf16.mxu1 %v15587_v30  ;;  %v15514_v6 = vld [vmem:[%s19851_s8 + $0x388] sm:$0xff]  }
 0x4da   :  { %14992 = vmatpush3.bf16.msra.mxu0 %v15479_v3  ;;  %14999 = vmatprep.mubr.msk.bf16.mxu0 %vm15588_vm3, %v15587_v30 }
 0x4db   :  { %14993 = vmatprep.subr.bf16.mxu0 %v15587_v30 }
 0x4dc   :  { %14982 = vmatpush3.bf16.msra.mxu1 %v15480_v59 }
 0x4dd   :  { %14983 = vmatprep.subr.bf16.mxu1 %v15587_v30 }
 0x4de   :  { %14994 = vmatpush3.bf16.msra.mxu0 %v15481_v45 }
 0x4df   :  { %14995 = vmatprep.subr.bf16.mxu0 %v15587_v30 }
 0x4e0   :  { %14984 = vmatpush3.bf16.msra.mxu1 %v15482_v22  ;;  %v15515_v22 = vld [vmem:[%s19851_s8 + $0x3a8] sm:$0xff]  }
 0x4e1   :  { %14985 = vmatprep.subr.bf16.mxu1 %v15587_v30 }
 0x4e2   :  { %14996 = vmatpush3.bf16.msra.mxu0 %v15483_v38 }
 0x4e3   :  { %14997 = vmatprep.subr.bf16.mxu0 %v15587_v30 }
 0x4e4   :  { %14986 = vmatpush3.bf16.msra.mxu1 %v15484_v17  ;;  %v15516_v17 = vld [vmem:[%s19851_s8 + $0x380] sm:$0xff]  }
 0x4e5   :  { %15003 = vmatprep.subr.bf16.mxu1 %v15587_v30 }
 0x4e6   :  { %14998 = vmatpush3.bf16.msra.mxu0 %v15485_v42  ;;  %v15517_v42 = vld [vmem:[%s19851_s8 + $0x3a0] sm:$0xff]  }
 0x4e7   :  { %14988 = vmatmul.mubr.msk.bf16.vlgmr.msra.gmra.mxu1 %vm7351_vm2, %v10578_v60  ;;  %15015 = vmatprep.subr.bf16.mxu0 %v15587_v30  ;;  %v11226_v60 = vpack.c.b16 %v19311_v1, %v19311_v1  ;;  %v15520_v1 = vld [vmem:[%s19851_s8 + $0x3d0] sm:$0xff]  }
 0x4e8   :  { %15004 = vmatpush3.bf16.msra.mxu1 %v15486_v44  ;;  %15011 = vmatprep.mubr.msk.bf16.mxu1 %vm15588_vm3, %v15587_v30  ;;  %v15518_v44 = vld [vmem:[%s19851_s8 + $0x3d8] sm:$0xff]  }
 0x4e9   :  { %15000 = vmatmul.mubr.msk.bf16.vlgmr.msra.gmra.mxu0 %vm7351_vm2, %v10659_v16  ;;  %15005 = vmatprep.subr.bf16.mxu1 %v15587_v30 }
 0x4ea   :  { %15016 = vmatpush3.bf16.msra.mxu0 %v15487_v34  ;;  %15023 = vmatprep.mubr.msk.bf16.mxu0 %vm15588_vm3, %v15587_v30  ;;  %v15519_v34 = vld [vmem:[%s19851_s8 + $0x3f8] sm:$0xff]  }
 0x4eb   :  { %15017 = vmatprep.subr.bf16.mxu0 %v15587_v30 }
 0x4ec   :  { %15006 = vmatpush3.bf16.msra.mxu1 %v15488_v41  ;;  %v11307_v41 = vpack.c.b16 %v19320_v23, %v19320_v23  ;;  %v15521_v23 = vld [vmem:[%s19851_s8 + $0x3f0] sm:$0xff]  }
 0x4ed   :  { %15007 = vmatprep.subr.bf16.mxu1 %v15587_v30 }
 0x4ee   :  { %15018 = vmatpush3.bf16.msra.mxu0 %v15489_v31 }
 0x4ef   :  { %15019 = vmatprep.subr.bf16.mxu0 %v15587_v30 }
 0x4f0   :  { %15008 = vmatpush3.bf16.msra.mxu1 %v15490_v20 }
 0x4f1   :  { %15009 = vmatprep.subr.bf16.mxu1 %v15587_v30 }
 0x4f2   :  { %15020 = vmatpush3.bf16.msra.mxu0 %v15491_v28 }
 0x4f3   :  { %15021 = vmatprep.subr.bf16.mxu0 %v15587_v30 }
 0x4f4   :  { %15010 = vmatpush3.bf16.msra.mxu1 %v15492_v56 }
 0x4f5   :  { %15027 = vmatprep.subr.bf16.mxu1 %v15587_v30 }
 0x4f6   :  { %15022 = vmatpush3.bf16.msra.mxu0 %v15493_v49 }
 0x4f7   :  { %15012 = vmatmul.mubr.msk.bf16.vlgmr.msra.gmra.mxu1 %vm7351_vm2, %v10740_v50  ;;  %15039 = vmatprep.subr.bf16.mxu0 %v15587_v30  ;;  %v15522_v50 = vld [vmem:[%s19851_s8 + $0x3c8] sm:$0xff]  }
 0x4f8   :  { %15028 = vmatpush3.bf16.msra.mxu1 %v15494_v54  ;;  %15035 = vmatprep.mubr.msk.bf16.mxu1 %vm15588_vm3, %v15587_v30 }
 0x4f9   :  { %15024 = vmatmul.mubr.msk.bf16.vlgmr.msra.gmra.mxu0 %vm7351_vm2, %v10821_v26  ;;  %15029 = vmatprep.subr.bf16.mxu1 %v15587_v30 }
 0x4fa   :  { %15040 = vmatpush3.bf16.msra.mxu0 %v15495_v29  ;;  %15047 = vmatprep.mubr.msk.bf16.mxu0 %vm15588_vm3, %v15587_v30 }
 0x4fb   :  { %15041 = vmatprep.subr.bf16.mxu0 %v15587_v30 }
 0x4fc   :  { %15030 = vmatpush3.bf16.msra.mxu1 %v15496_v7  ;;  %v15523_v7 = vld [vmem:[%s19851_s8 + $0x3e8] sm:$0xff]  }
 0x4fd   :  { %15031 = vmatprep.subr.bf16.mxu1 %v15587_v30 }
 0x4fe   :  { %15042 = vmatpush3.bf16.msra.mxu0 %v15497_v35 }
 0x4ff   :  { %15043 = vmatprep.subr.bf16.mxu0 %v15587_v30 }
 0x500   :  { %15032 = vmatpush3.bf16.msra.mxu1 %v15498_v13  ;;  %v15524_v13 = vld [vmem:[%s19851_s8 + $0x3c0] sm:$0xff]  }
 0x501   :  { %15033 = vmatprep.subr.bf16.mxu1 %v15587_v30 }
 0x502   :  { %15044 = vmatpush3.bf16.msra.mxu0 %v15499_v12  ;;  %v15525_v12 = vld [vmem:[%s19851_s8 + $0x3e0] sm:$0xff]  }
 0x503   :  { %15045 = vmatprep.subr.bf16.mxu0 %v15587_v30 }
 0x504   :  { %15034 = vmatpush3.bf16.msra.mxu1 %v15500_v25  ;;  %v11388_v25 = vpack.c.b16 %v19353_v57, %v19353_v57 }
 0x505   :  { %15051 = vmatprep.subr.bf16.mxu1 %v15587_v30 }
 0x506   :  { %15046 = vmatpush3.bf16.msra.mxu0 %v15501_v39 }
 0x507   :  { %15036 = vmatmul.mubr.msk.bf16.vlgmr.msra.gmra.mxu1 %vm7351_vm2, %v10903_v10  ;;  %v9030_v47 = vpop.f32.mrf.mxu1  ;;  %15063 = vmatprep.subr.bf16.mxu0 %v15587_v30 }
 0x508   :  { %15052 = vmatpush3.bf16.msra.mxu1 %v15502_v32  ;;  %15059 = vmatprep.mubr.msk.bf16.mxu1 %vm15588_vm3, %v15587_v30  ;;  %v11469_v32 = vpack.c.b16 %v19356_v33, %v19356_v33 }
 0x509   :  { %15048 = vmatmul.mubr.msk.bf16.vlgmr.msra.gmra.mxu0 %vm7351_vm2, %v10983_v5  ;;  %v14749_v52 = vpop.f32.mrf.mxu1  ;;  %v9100_v37 = vpop.f32.mrf.mxu0  ;;  %15053 = vmatprep.subr.bf16.mxu1 %v15587_v30 }
 0x50a   :  { %v9101_v55 = vadd.f32 %v9100_v37, %v9030_v47  ;;  %15064 = vmatpush3.bf16.msra.mxu0 %v15503_v18  ;;  %15071 = vmatprep.mubr.msk.bf16.mxu0 %vm15588_vm3, %v15587_v30 }
 0x50b   :  { %v9033_v21 = vpop.f32.mrf.mxu1  ;;  %v14761_v46 = vpop.f32.mrf.mxu0  ;;  %15065 = vmatprep.subr.bf16.mxu0 %v15587_v30 }
 0x50c   :  { %15054 = vmatpush3.bf16.msra.mxu1 %v15504_v40 }
 0x50d   :  { %v14750_v8 = vpop.f32.mrf.mxu1  ;;  %v9103_v15 = vpop.f32.mrf.mxu0  ;;  %15055 = vmatprep.subr.bf16.mxu1 %v15587_v30 }
 0x50e   :  { %15066 = vmatpush3.bf16.msra.mxu0 %v15505_v19 }
 0x50f   :  { %v14762_v61 = vpop.f32.mrf.mxu0  ;;  %15067 = vmatprep.subr.bf16.mxu0 %v15587_v30 }
 0x510   :  { %15056 = vmatpush3.bf16.msra.mxu1 %v15506_v4 }
 0x511   :  { %15057 = vmatprep.subr.bf16.mxu1 %v15587_v30 }
 0x512   :  { %15068 = vmatpush3.bf16.msra.mxu0 %v15507_v14 }
 0x513   :  { %15069 = vmatprep.subr.bf16.mxu0 %v15587_v30 }
 0x514   :  { %15058 = vmatpush3.bf16.msra.mxu1 %v15508_v2 }
 0x515   :  { %15075 = vmatprep.subr.bf16.mxu1 %v15587_v30 }
 0x516   :  { %15070 = vmatpush3.bf16.msra.mxu0 %v15509_v62 }
 0x517   :  { %v9180_v53 = vpop.f32.mrf.mxu1  ;;  %15060 = vmatmul.mubr.msk.bf16.vlgmr.msra.gmra.mxu1 %vm7351_vm2, %v11064_v9  ;;  %15087 = vmatprep.subr.bf16.mxu0 %v15587_v30 }
 0x518   :  { %v9186_v58 = vadd.f32 %v9180_v53, %v9101_v55  ;;  %15076 = vmatpush3.bf16.msra.mxu1 %v15510_v24  ;;  %15083 = vmatprep.mubr.msk.bf16.mxu1 %vm15588_vm3, %v15587_v30 }
 0x519   :  { %v14773_v51 = vpop.f32.mrf.mxu1  ;;  %v9261_v63 = vpop.f32.mrf.mxu0  ;;  %15072 = vmatmul.mubr.msk.bf16.vlgmr.msra.gmra.mxu0 %vm7351_vm2, %v11145_v48  ;;  %15077 = vmatprep.subr.bf16.mxu1 %v15587_v30 }
 0x51a   :  { %v9267_v0 = vadd.f32 %v9261_v63, %v9186_v58  ;;  %15088 = vmatpush3.bf16.msra.mxu0 %v15511_v36  ;;  %15095 = vmatprep.mubr.msk.bf16.mxu0 %vm15588_vm3, %v15587_v30  ;;  %v11565_v51 = vld [vmem:[%s19853_s11] sm:$0xff] }
 0x51b   :  { %v9183_v27 = vpop.f32.mrf.mxu1  ;;  %v14785_v3 = vpop.f32.mrf.mxu0  ;;  %15089 = vmatprep.subr.bf16.mxu0 %v15587_v30 }
 0x51c   :  { %15078 = vmatpush3.bf16.msra.mxu1 %v15512_v43  ;;  %v11566_v43 = vld [vmem:[%s19853_s11 + $0x8] sm:$0xff]  ;;  %v11564_v27 = vld [vmem:[%s19854_s1] sm:$0x3]  ;;  %v15526_v3 = vld [vmem:[%s19855_s10 + $0x70] ss:$8 sps:$4 sm:$0xff]  }
 0x51d   :  { %v14774_v59 = vpop.f32.mrf.mxu1  ;;  %v9264_v45 = vpop.f32.mrf.mxu0  ;;  %15079 = vmatprep.subr.bf16.mxu1 %v15587_v30 }
 0x51e   :  { %15090 = vmatpush3.bf16.msra.mxu0 %v15513_v11  ;;  %v15529_v59 = vld [vmem:[%s19855_s10 + $0x60] ss:$8 sps:$4 sm:$0xff]   ;;  %v15531_v45 = vld [vmem:[%s19855_s10 + $0x64] ss:$8 sps:$4 sm:$0xff]  }
 0x51f   :  { %v14786_v38 = vpop.f32.mrf.mxu0  ;;  %15091 = vmatprep.subr.bf16.mxu0 %v15587_v30 }
 0x520   :  { %15080 = vmatpush3.bf16.msra.mxu1 %v15514_v6  ;;  %v15528_v6 = vld [vmem:[%s19855_s10 + $0x74] ss:$8 sps:$4 sm:$0xff]  }
 0x521   :  { %15081 = vmatprep.subr.bf16.mxu1 %v15587_v30 }
 0x522   :  { %15092 = vmatpush3.bf16.msra.mxu0 %v15515_v22  ;;  %v20005_v22 = vmov 0  }
 0x523   :  { %15093 = vmatprep.subr.bf16.mxu0 %v15587_v30 }
 0x524   :  { %15082 = vmatpush3.bf16.msra.mxu1 %v15516_v17 }
 0x525   :  { %15099 = vmatprep.subr.bf16.mxu1 %v15587_v30 }
 0x526   :  { %15094 = vmatpush3.bf16.msra.mxu0 %v15517_v42 }
 0x527   :  { %v9342_v16 = vpop.f32.mrf.mxu1  ;;  %15084 = vmatmul.mubr.msk.bf16.vlgmr.msra.gmra.mxu1 %vm7351_vm2, %v11226_v60  ;;  %15111 = vmatprep.subr.bf16.mxu0 %v15587_v30 }
 0x528   :  { %v9348_v31 = vadd.f32 %v9342_v16, %v9267_v0  ;;  %15100 = vmatpush3.bf16.msra.mxu1 %v15518_v44  ;;  %15107 = vmatprep.mubr.msk.bf16.mxu1 %vm15588_vm3, %v15587_v30  ;;  %v15534_v16 = vld [vmem:[%s19855_s10 + $0x54] ss:$8 sps:$4 sm:$0xff]  }
 0x529   :  { %v14797_v20 = vpop.f32.mrf.mxu1  ;;  %v9423_v28 = vpop.f32.mrf.mxu0  ;;  %15096 = vmatmul.mubr.msk.bf16.vlgmr.msra.gmra.mxu0 %vm7351_vm2, %v11307_v41  ;;  %15101 = vmatprep.subr.bf16.mxu1 %v15587_v30 }
 0x52a   :  { %v9429_v56 = vadd.f32 %v9423_v28, %v9348_v31  ;;  %15112 = vmatpush3.bf16.msra.mxu0 %v15519_v34  ;;  %15119 = vmatprep.mubr.msk.bf16.mxu0 %vm15588_vm3, %v15587_v30  ;;  %v15532_v34 = vld [vmem:[%s19855_s10 + $0x50] ss:$8 sps:$4 sm:$0xff]   ;;  %v15535_v28 = vld [vmem:[%s19855_s10 + $0x40] ss:$8 sps:$4 sm:$0xff]  }
 0x52b   :  { %v9345_v49 = vpop.f32.mrf.mxu1  ;;  %v14809_v54 = vpop.f32.mrf.mxu0  ;;  %15113 = vmatprep.subr.bf16.mxu0 %v15587_v30 }
 0x52c   :  { %15102 = vmatpush3.bf16.msra.mxu1 %v15520_v1  ;;  %v15540_v49 = vld [vmem:[%s19855_s10 + $0x34] ss:$8 sps:$4 sm:$0xff]   ;;  %v15538_v54 = vld [vmem:[%s19855_s10 + $0x30] ss:$8 sps:$4 sm:$0xff]  }
 0x52d   :  { %v14798_v29 = vpop.f32.mrf.mxu1  ;;  %v9426_v26 = vpop.f32.mrf.mxu0  ;;  %15103 = vmatprep.subr.bf16.mxu1 %v15587_v30 }
 0x52e   :  { %15114 = vmatpush3.bf16.msra.mxu0 %v15521_v23  ;;  %v15541_v29 = vld [vmem:[%s19855_s10 + $0x20] ss:$8 sps:$4 sm:$0xff]  }
 0x52f   :  { %v14810_v35 = vpop.f32.mrf.mxu0  ;;  %15115 = vmatprep.subr.bf16.mxu0 %v15587_v30 }
 0x530   :  { %15104 = vmatpush3.bf16.msra.mxu1 %v15522_v50  ;;  %v15543_v50 = vld [vmem:[%s19855_s10 + $0x24] ss:$8 sps:$4 sm:$0xff]  }
 0x531   :  { %15105 = vmatprep.subr.bf16.mxu1 %v15587_v30 }
 0x532   :  { %15116 = vmatpush3.bf16.msra.mxu0 %v15523_v7 }
 0x533   :  { %15117 = vmatprep.subr.bf16.mxu0 %v15587_v30 }
 0x534   :  { %15106 = vmatpush3.bf16.msra.mxu1 %v15524_v13 }
 0x535   :  { %11601 = vmatprep.subr.mxu1 %v11566_v43  ;;  %v15550_v43 = vld [vmem:[%s19856_s13 + $0x78] sm:$0xff]  }
 0x536   :  { %15118 = vmatpush3.bf16.msra.mxu0 %v15525_v12 }
 0x537   :  { %v9504_v39 = vpop.f32.mrf.mxu1  ;;  %15108 = vmatmul.mubr.msk.bf16.vlgmr.msra.gmra.mxu1 %vm7351_vm2, %v11388_v25  ;;  %14052 = vmatprep.subr.bf16.mxu0 %v15550_v43 }
 0x538   :  { %v9510_v10 = vadd.f32 %v9504_v39, %v9429_v56  ;;  %11635 = vmatprep.mubr.f32.mxu1 %v15587_v30  ;;  %11602 = vmatpush1.msra.mxu1 %v11565_v51  ;;  %v15537_v56 = vld [vmem:[%s19855_s10 + $0x44] ss:$8 sps:$4 sm:$0xff]   ;;  %v15551_v51 = vld [vmem:[%s19856_s13 + $0x38] sm:$0xff]  }
 0x539   :  { %v14821_v18 = vpop.f32.mrf.mxu1  ;;  %v9585_v47 = vpop.f32.mrf.mxu0  ;;  %15120 = vmatmul.mubr.msk.bf16.vlgmr.msra.gmra.mxu0 %vm7351_vm2, %v11469_v32  ;;  %11722 = vmatprep.subr.bf16.mxu1 %v15528_v6 }
 0x53a   :  { %v9591_v5 = vadd.f32 %v9585_v47, %v9510_v10  ;;  %v15544_v47 = vld [vmem:[%s19855_s10 + $0x10] ss:$8 sps:$4 sm:$0xff]   ;;  %14053 = vmatpush3.bf16.msra.mxu0 %v15551_v51  ;;  %v13480_v51 = vld [vmem:[%s19857_s9] ss:$0 sm:$0xff] }
 0x53b   :  { %v9507_v40 = vpop.f32.mrf.mxu1  ;;  %v14833_v52 = vpop.f32.mrf.mxu0 }
 0x53c   :  { %v15549_v40 = vld [vmem:[%s19855_s10 + $0x4] ss:$8 sps:$4 sm:$0xff]   ;;  %v15547_v52 = vld [vmem:[%s19855_s10] ss:$8 sps:$4 sm:$0xff]  }
 0x53d   :  { %v14822_v37 = vpop.f32.mrf.mxu1  ;;  %v9588_v55 = vpop.f32.mrf.mxu0 }
 0x53f   :  { %v14834_v57 = vpop.f32.mrf.mxu0  ;;  %13481 = vmatmul.mubr.msk.f32.vlgmr.msra.gmra.mxu1 %vm11567_vm5, %v11564_v27  ;;  %v15554_v27 = vld [vmem:[%s19856_s13 + $0x68] sm:$0xff]  }
 0x540   :  { %11754 = vmatprep.mubr.bf16.mxu1 %v20005_v22  ;;  %11723 = vmatpush1.bf16.msra.mxu1 %v15526_v3  ;;  %v15555_v22 = vld [vmem:[%s19856_s13 + $0x28] sm:$0xff]  }
 0x541   :  { %11724 = vmatprep.subr.bf16.mxu1 %v15531_v45 }
 0x544   :  { %11725 = vmatpush1.bf16.msra.mxu1 %v15529_v59 }
 0x545   :  { %11726 = vmatprep.subr.bf16.mxu1 %v15534_v16  ;;  %v15559_v16 = vld [vmem:[%s19856_s13 + $0x18] sm:$0xff]  }
 0x547   :  { %v9667_v19 = vpop.f32.mrf.mxu1 }
 0x548   :  { %v9673_v21 = vadd.f32 %v9667_v19, %v9591_v5  ;;  %11727 = vmatpush1.bf16.msra.mxu1 %v15532_v34  ;;  %v15546_v5 = vld [vmem:[%s19855_s10 + $0x14] ss:$8 sps:$4 sm:$0xff]  }
 0x549   :  { %v14845_v46 = vpop.f32.mrf.mxu1  ;;  %v9747_v4 = vpop.f32.mrf.mxu0  ;;  %11728 = vmatprep.subr.bf16.mxu1 %v15537_v56 }
 0x54a   :  { %v9753_v8 = vadd.f32 %v9747_v4, %v9673_v21 }
 0x54b   :  { %v9670_v15 = vpop.f32.mrf.mxu1  ;;  %v14857_v33 = vpop.f32.mrf.mxu0 }
 0x54c   :  { %11729 = vmatpush1.bf16.msra.mxu1 %v15535_v28 }
 0x54d   :  { %v14846_v14 = vpop.f32.mrf.mxu1  ;;  %v9750_v61 = vpop.f32.mrf.mxu0  ;;  %11730 = vmatprep.subr.bf16.mxu1 %v15540_v49 }
 0x54f   :  { %v14858_v2 = vpop.f32.mrf.mxu0 }
 0x550   :  { %11731 = vmatpush1.bf16.msra.mxu1 %v15538_v54 }
 0x551   :  { %11732 = vmatprep.subr.bf16.mxu1 %v15543_v50 }
 0x554   :  { %11733 = vmatpush1.bf16.msra.mxu1 %v15541_v29 }
 0x555   :  { %11734 = vmatprep.subr.bf16.mxu1 %v15546_v5 }
 0x557   :  { %v9828_v62 = vpop.f32.mrf.mxu1 }
 0x558   :  { %v9834_v24 = vadd.f32 %v9828_v62, %v9753_v8  ;;  %11735 = vmatpush1.bf16.msra.mxu1 %v15544_v47 }
 0x559   :  { %v14869_v9 = vpop.f32.mrf.mxu1  ;;  %v9909_v36 = vpop.f32.mrf.mxu0  ;;  %11736 = vmatprep.subr.bf16.mxu1 %v15549_v40 }
 0x55a   :  { %v9915_v53 = vadd.f32 %v9909_v36, %v9834_v24 }
 0x55b   :  { %v9831_v48 = vpop.f32.mrf.mxu1  ;;  %v14881_v58 = vpop.f32.mrf.mxu0 }
 0x55c   :  { %11737 = vmatpush1.bf16.msra.mxu1 %v15547_v52 }
 0x55d   :  { %v14870_v63 = vpop.f32.mrf.mxu1  ;;  %v9912_v0 = vpop.f32.mrf.mxu0  ;;  %15123 = vmatprep.subr.bf16.mxu1 %v15587_v30 }
 0x55e   :  { %v15552_v63 = vld [vmem:[%s19856_s13 + $0x70] sm:$0xff]  }
 0x55f   :  { %v14882_v11 = vpop.f32.mrf.mxu0  ;;  %14054 = vmatprep.subr.bf16.mxu0 %v15552_v63 }
 0x560   :  { %v15553_v11 = vld [vmem:[%s19856_s13 + $0x30] sm:$0xff]  }
 0x561   :  { %14055 = vmatpush3.bf16.msra.mxu0 %v15553_v11 }
 0x562   :  { %14056 = vmatprep.subr.bf16.mxu0 %v15554_v27 }
 0x565   :  { %14057 = vmatpush3.bf16.msra.mxu0 %v15555_v22 }
 0x567   :  { %v9990_v38 = vpop.f32.mrf.mxu1 }
 0x568   :  { %v9996_v17 = vadd.f32 %v9990_v38, %v9915_v53  ;;  %v15556_v38 = vld [vmem:[%s19856_s13 + $0x60] sm:$0xff]  }
 0x569   :  { %v14893_v42 = vpop.f32.mrf.mxu1  ;;  %v10071_v44 = vpop.f32.mrf.mxu0  ;;  %14058 = vmatprep.subr.bf16.mxu0 %v15556_v38  ;;  %v15560_v38 = vld [vmem:[%s19856_s13 + $0x50] sm:$0xff]  }
 0x56a   :  { %v10077_v60 = vadd.f32 %v10071_v44, %v9996_v17  ;;  %v15557_v44 = vld [vmem:[%s19856_s13 + $0x20] sm:$0xff]  }
 0x56b   :  { %v9993_v41 = vpop.f32.mrf.mxu1  ;;  %v14905_v31 = vpop.f32.mrf.mxu0  ;;  %14059 = vmatpush3.bf16.msra.mxu0 %v15557_v44  ;;  %v15563_v44 = vld [vmem:[%s19856_s13 + $0x8] sm:$0xff]  }
 0x56d   :  { %v14894_v1 = vpop.f32.mrf.mxu1  ;;  %v10074_v20 = vpop.f32.mrf.mxu0 }
 0x56f   :  { %v14906_v23 = vpop.f32.mrf.mxu0 }
 0x577   :  { %v10152_v26 = vpop.f32.mrf.mxu1 }
 0x578   :  { %v10158_v7 = vadd.f32 %v10152_v26, %v10077_v60  ;;  %v15558_v60 = vld [vmem:[%s19856_s13 + $0x58] sm:$0xff]  }
 0x579   :  { %v14917_v35 = vpop.f32.mrf.mxu1  ;;  %v10233_v13 = vpop.f32.mrf.mxu0  ;;  %14060 = vmatprep.subr.bf16.mxu0 %v15558_v60  ;;  %v15564_v60 = vld [vmem:[%s19856_s13 + $0x40] sm:$0xff]  }
 0x57a   :  { %v10239_v12 = vadd.f32 %v10233_v13, %v10158_v7  ;;  %14061 = vmatpush3.bf16.msra.mxu0 %v15559_v16  ;;  %v15565_v16 = vld [vmem:[%s19856_s13] sm:$0xff]  }
 0x57b   :  { %v10155_v25 = vpop.f32.mrf.mxu1  ;;  %v14929_v39 = vpop.f32.mrf.mxu0  ;;  %14062 = vmatprep.subr.bf16.mxu0 %v15560_v38 }
 0x57d   :  { %v14918_v32 = vpop.f32.mrf.mxu1  ;;  %v10236_v10 = vpop.f32.mrf.mxu0 }
 0x57f   :  { %v14930_v18 = vpop.f32.mrf.mxu0 }
 0x587   :  { %v10317_v37 = vpop.f32.mrf.mxu1 }
 0x588   :  { %v10323_v55 = vadd.f32 %v10317_v37, %v10239_v12 }
 0x589   :  { %v14941_v57 = vpop.f32.mrf.mxu1  ;;  %v10397_v19 = vpop.f32.mrf.mxu0 }
 0x58a   :  { %v10403_v21 = vadd.f32 %v10397_v19, %v10323_v55 }
 0x58b   :  { %v10320_v46 = vpop.f32.mrf.mxu1  ;;  %v14953_v4 = vpop.f32.mrf.mxu0 }
 0x58d   :  { %v14942_v8 = vpop.f32.mrf.mxu1  ;;  %v10400_v15 = vpop.f32.mrf.mxu0 }
 0x58f   :  { %v14954_v33 = vpop.f32.mrf.mxu0 }
 0x597   :  { %v10478_v14 = vpop.f32.mrf.mxu1 }
 0x598   :  { %v10484_v61 = vadd.f32 %v10478_v14, %v10403_v21 }
 0x599   :  { %v14965_v2 = vpop.f32.mrf.mxu1  ;;  %v10559_v62 = vpop.f32.mrf.mxu0 }
 0x59a   :  { %v10565_v24 = vadd.f32 %v10559_v62, %v10484_v61 }
 0x59b   :  { %v10481_v9 = vpop.f32.mrf.mxu1  ;;  %v14977_v36 = vpop.f32.mrf.mxu0 }
 0x59d   :  { %v14966_v53 = vpop.f32.mrf.mxu1  ;;  %v10562_v48 = vpop.f32.mrf.mxu0 }
 0x59f   :  { %v14978_v58 = vpop.f32.mrf.mxu0 }
 0x5a7   :  { %v10640_v0 = vpop.f32.mrf.mxu1 }
 0x5a8   :  { %v10646_v10 = vadd.f32 %v10640_v0, %v10565_v24 }
 0x5a9   :  { %v14989_v3 = vpop.f32.mrf.mxu1  ;;  %v10721_v6 = vpop.f32.mrf.mxu0 }
 0x5aa   :  { %v10727_v52 = vadd.f32 %v10721_v6, %v10646_v10 }
 0x5ab   :  { %v10643_v59 = vpop.f32.mrf.mxu1  ;;  %v15001_v45 = vpop.f32.mrf.mxu0 }
 0x5ad   :  { %v14990_v17 = vpop.f32.mrf.mxu1  ;;  %v10724_v42 = vpop.f32.mrf.mxu0 }
 0x5ae   :  { %v15561_v17 = vld [vmem:[%s19856_s13 + $0x10] sm:$0xff]   ;;  %v15562_v42 = vld [vmem:[%s19856_s13 + $0x48] sm:$0xff]  }
 0x5af   :  { %v15002_v34 = vpop.f32.mrf.mxu0  ;;  %14063 = vmatpush3.bf16.msra.mxu0 %v15561_v17 }
 0x5b0   :  { %14064 = vmatprep.subr.bf16.mxu0 %v15562_v42  ;;  %v15566_v34 = vld [vmem:[%s19858_s15 + $0x38] sm:$0xff]  }
 0x5b3   :  { %14065 = vmatpush3.bf16.msra.mxu0 %v15563_v44 }
 0x5b4   :  { %14066 = vmatprep.subr.bf16.mxu0 %v15564_v60 }
 0x5b7   :  { %v10802_v41 = vpop.f32.mrf.mxu1  ;;  %14067 = vmatpush3.bf16.msra.mxu0 %v15565_v16 }
 0x5b8   :  { %v10808_v55 = vadd.f32 %v10802_v41, %v10727_v52  ;;  %v15567_v41 = vld [vmem:[%s19858_s15 + $0x30] sm:$0xff]  }
 0x5b9   :  { %v15013_v31 = vpop.f32.mrf.mxu1  ;;  %v10883_v1 = vpop.f32.mrf.mxu0 }
 0x5ba   :  { %v10889_v57 = vadd.f32 %v10883_v1, %v10808_v55  ;;  %v15568_v31 = vld [vmem:[%s19858_s15 + $0x28] sm:$0xff]   ;;  %v15569_v1 = vld [vmem:[%s19858_s15 + $0x20] sm:$0xff]  }
 0x5bb   :  { %v10805_v20 = vpop.f32.mrf.mxu1  ;;  %v15025_v28 = vpop.f32.mrf.mxu0  ;;  %v15572_v55 = vld [vmem:[%s19858_s15 + $0x8] sm:$0xff]  }
 0x5bc   :  { %v15570_v20 = vld [vmem:[%s19858_s15 + $0x18] sm:$0xff]   ;;  %v11765_v28 = vlaneseq }
 0x5bd   :  { %v15014_v56 = vpop.f32.mrf.mxu1  ;;  %v10886_v23 = vpop.f32.mrf.mxu0 }
 0x5be   :  { %v11766_v56 = vshrl.u32 %v11765_v28, 7 }
 0x5bf   :  { %v15026_v49 = vpop.f32.mrf.mxu0 }
 0x5c0   :  { %v11767_v49 = vsub.s32 0, %v11766_v56 }
 0x5c7   :  { %v10965_v54 = vpop.f32.mrf.mxu1 }
 0x5c8   :  { %v10971_v19 = vadd.f32 %v10965_v54, %v10889_v57  ;;  %v11763_v54 = vld [vmem:[%s19859_s12] sm:$0x3] }
 0x5c9   :  { %v15037_v50 = vpop.f32.mrf.mxu1  ;;  %v11045_v29 = vpop.f32.mrf.mxu0  ;;  %v15573_v57 = vld [vmem:[%s19858_s15] sm:$0xff]  }
 0x5ca   :  { %v11051_v8 = vadd.f32 %v11045_v29, %v10971_v19  ;;  %v11771_v50 = vsub.s32 1, %v11766_v56 }
 0x5cb   :  { %v10968_v26 = vpop.f32.mrf.mxu1  ;;  %v15049_v7 = vpop.f32.mrf.mxu0 }
 0x5cc   :  { %v11768_v26 = vrot.slane %v11763_v54, %v11767_v49 }
 0x5cd   :  { %v15038_v35 = vpop.f32.mrf.mxu1  ;;  %v11048_v13 = vpop.f32.mrf.mxu0 }
 0x5ce   :  { %v11772_v13 = vrot.slane %v11763_v54, %v11771_v50 }
 0x5cf   :  { %v15050_v12 = vpop.f32.mrf.mxu0 }
 0x5d7   :  { %v11126_v25 = vpop.f32.mrf.mxu1 }
 0x5d8   :  { %v11132_v14 = vadd.f32 %v11126_v25, %v11051_v8 }
 0x5d9   :  { %v15061_v39 = vpop.f32.mrf.mxu1  ;;  %v11207_v32 = vpop.f32.mrf.mxu0 }
 0x5da   :  { %v11213_v24 = vadd.f32 %v11207_v32, %v11132_v14 }
 0x5db   :  { %v11129_v18 = vpop.f32.mrf.mxu1  ;;  %v15073_v47 = vpop.f32.mrf.mxu0 }
 0x5dd   :  { %v15062_v5 = vpop.f32.mrf.mxu1  ;;  %v11210_v40 = vpop.f32.mrf.mxu0 }
 0x5df   :  { %v15074_v37 = vpop.f32.mrf.mxu0 }
 0x5e0   :  { %v15571_v37 = vld [vmem:[%s19858_s15 + $0x10] sm:$0xff]  }
 0x5e7   :  { %v11288_v21 = vpop.f32.mrf.mxu1 }
 0x5e8   :  { %v11294_v9 = vadd.f32 %v11288_v21, %v11213_v24  ;;  %v13498_v21 = vld [vmem:[%s19860_s14] ss:$0 sm:$0xff] }
 0x5e9   :  { %v15085_v46 = vpop.f32.mrf.mxu1  ;;  %v11369_v4 = vpop.f32.mrf.mxu0 }
 0x5ea   :  { %v11375_v36 = vadd.f32 %v11369_v4, %v11294_v9 }
 0x5eb   :  { %v11291_v15 = vpop.f32.mrf.mxu1  ;;  %v15097_v33 = vpop.f32.mrf.mxu0 }
 0x5ed   :  { %v15086_v61 = vpop.f32.mrf.mxu1  ;;  %v11372_v2 = vpop.f32.mrf.mxu0 }
 0x5ee   :  { %v13515_v2 = vld [vmem:[%s19861_s16] ss:$0 sm:$0xff] }
 0x5ef   :  { %v15098_v62 = vpop.f32.mrf.mxu0 }
 0x5f7   :  { %v11450_v53 = vpop.f32.mrf.mxu1 }
 0x5f8   :  { %v11456_v48 = vadd.f32 %v11450_v53, %v11375_v36 }
 0x5f9   :  { %v15109_v58 = vpop.f32.mrf.mxu1  ;;  %v11531_v43 = vpop.f32.mrf.mxu0 }
 0x5fa   :  { %v11537_v63 = vadd.f32 %v11531_v43, %v11456_v48 }
 0x5fb   :  { %v11453_v0 = vpop.f32.mrf.mxu1  ;;  %v15121_v11 = vpop.f32.mrf.mxu0 }
 0x5fc   :  { %v11545_v27 = vadd.f32 %v13480_v51, %v11537_v63 }
 0x5fd   :  { %v15110_v3 = vpop.f32.mrf.mxu1  ;;  %v11534_v6 = vpop.f32.mrf.mxu0 }
 0x5fe   :  { %v11546_v59 = vmax.f32 %v11545_v27, 0.0 }
 0x5ff   :  { %v15122_v45 = vpop.f32.mrf.mxu0  ;;  %v11637_v23 = vpop.f32.mrf.mxu1 }
 0x600   :  { %v11547_v22 = vpack.c.bf16 %v11546_v59, %v11546_v59 }
 0x601   :  { %v11639_v29 = vpop.f32.mrf.mxu1 }
 0x602   :  { %11755 = vmatmul.mubr.bf16.vlgmr.msra.gmra.mxu1 %v11547_v22 }
 0x603   :  { %15139 = vmatprep.mubr.msk.bf16.mxu1 %vm15588_vm3, %v15587_v30  ;;  %15124 = vmatpush3.bf16.msra.mxu1 %v15566_v34 }
 0x604   :  { %15125 = vmatprep.subr.bf16.mxu1 %v15587_v30 }
 0x607   :  { %15126 = vmatpush3.bf16.msra.mxu1 %v15567_v41 }
 0x608   :  { %15127 = vmatprep.subr.bf16.mxu1 %v15587_v30 }
 0x60b   :  { %15128 = vmatpush3.bf16.msra.mxu1 %v15568_v31 }
 0x60c   :  { %15129 = vmatprep.subr.bf16.mxu1 %v15587_v30 }
 0x60f   :  { %15130 = vmatpush3.bf16.msra.mxu1 %v15569_v1 }
 0x610   :  { %15131 = vmatprep.subr.bf16.mxu1 %v15587_v30 }
 0x613   :  { %15132 = vmatpush3.bf16.msra.mxu1 %v15570_v20 }
 0x614   :  { %15133 = vmatprep.subr.bf16.mxu1 %v15587_v30 }
 0x617   :  { %15134 = vmatpush3.bf16.msra.mxu1 %v15571_v37 }
 0x618   :  { %15135 = vmatprep.subr.bf16.mxu1 %v15587_v30 }
 0x61b   :  { %15136 = vmatpush3.bf16.msra.mxu1 %v15572_v55 }
 0x61c   :  { %15137 = vmatprep.subr.bf16.mxu1 %v15587_v30 }
 0x61f   :  { %15138 = vmatpush3.bf16.msra.mxu1 %v15573_v57 }
 0x6c2   :  { %v11756_v7 = vpop.f32.mrf.mxu1 }
 0x6c3   :  { %v11757_v35 = vadd.f32 %v11756_v7, %v11637_v23 }
 0x6c4   :  { %v11758_v12 = vpop.f32.mrf.mxu1 }
 0x6c5   :  { %v11775_v25 = vadd.f32 %v11768_v26, %v11757_v35  ;;  %v11759_v39 = vadd.f32 %v11758_v12, %v11639_v29 }
 0x6c6   :  { %v11760_v32 = vpop.f32.mrf.mxu1 }
 0x6c7   :  { %v11776_v10 = vadd.f32 %v11772_v13, %v11759_v39  ;;  %v11777_v18 = vmax.f32 %v11775_v25, 0.0 }
 0x6c8   :  { %v11761_v47 = vpop.f32.mrf.mxu1 }
 0x6c9   :  { %v11778_v5 = vmax.f32 %v11776_v10, 0.0  ;;  %v11779_v52 = vpack.c.bf16 %v11777_v18, %v11777_v18 }
 0x6cb   :  { %v11780_v40 = vpack.c.bf16 %v11778_v5, %v11778_v5 }
 0x6cd   :  { %11948 = vmatprep.mubr.bf16.mxu0 %v11780_v40 }
 0x6ce   :  { %11949 = vmatmul.mubr.bf16.vlgmr.msra.gmra.mxu0 %v11779_v52 }
 0x78e   :  { %v14068_v19 = vpop.f32.mrf.mxu0 }
 0x790   :  { %v14069_v46 = vpop.f32.mrf.mxu0 }
 0x791   :  { %v14070_v4 = vadd.f32 %v14069_v46, %v14068_v19 }
 0x792   :  { %v14071_v8 = vpop.f32.mrf.mxu0 }
 0x793   :  { %v11951_v15 = vadd.f32 %v14070_v4, %v13498_v21 }
 0x794   :  { %v14072_v33 = vpop.f32.mrf.mxu0 }
 0x795   :  { %v11956_v14 = vmax.f32 %v11951_v15, 0.0 }
 0x797   :  { %v11957_v61 = vpack.c.bf16 %v11956_v14, %v11956_v14 }
 0x799   :  { %15140 = vmatmul.mubr.bf16.vlgmr.msra.gmra.mxu1 %v11957_v61 }
 0x859   :  { %v12063_v62 = vpop.f32.mrf.mxu1 }
 0x85a   :  { %v12064_v30 = vadd.f32 %v13515_v2, %v12063_v62 }
 0x85b   :  { %v15141_v24 = vpop.f32.mrf.mxu1 }
 0x85c   :  { %12069 = vst [vmem:[%s19862_s17] sm:$0x3] %v12064_v30 }
 0x85d   :  { %v12066_v9 = vpop.f32.mrf.mxu1 }
 0x85f   :  { %v15142_v36 = vpop.f32.mrf.mxu1 }

</bundles_post_ra>
